<compile_context>
chip_gen: v7x
topology: tpu7x:2x2x1
jax: 0.10.0
libtpu: 0.0.40
codegen_flags: <defaults>
</compile_context>

<pallas_src>
import jax
import jax.numpy as jnp
from jax import lax
from jax.experimental import pallas as pl
from jax.experimental.pallas import tpu as pltpu


def _round_up(x, m):
    return (x + m - 1) // m * m


def _make_decoder_kernel(num_layers, D, R, bb, img_dim, compute_dtype):
    """Per-batch-block kernel operating on width-D flattened canvas rows.

    Refs (positional):
      x_ref                              (bb*R, in_chnls + 2)      compute dtype
      w_0, b_0, ..., w_{L-1}, b_{L-1}    (9, c_in, h) / (1, h)     (b in f32)
      w_f, b_f                           (out, h)     / (out, 1)   (b in f32)
      o_ref                              (bb, out_chnls, R)        f32
      canvas_0 .. canvas_{L-1}           (bb*R, h)                 compute dtype
    """
    n_wb = 2 * num_layers + 2

    def rows_for(s_out):
        # Highest valid flat output index + 1 inside one batch block.
        return (bb - 1) * R + (s_out - 1) * D + s_out

    def kernel(*refs):
        x_ref = refs[0]
        wb = refs[1:1 + n_wb]
        o_ref = refs[1 + n_wb]
        canvases = refs[2 + n_wb:]

        src = x_ref
        s_in = D
        for l in range(num_layers):
            w_ref = wb[2 * l]                       # (9, c_in, h)
            b = wb[2 * l + 1][...]                  # (1, h) f32
            s_out = s_in - 2
            m = rows_for(s_out)
            # 3x3 VALID conv == sum over 9 taps of a shifted-canvas matmul.
            # Accumulator starts from the first tap (no zeros broadcast).
            acc = jnp.dot(src[pl.ds(0, m), :], w_ref[0],
                          preferred_element_type=jnp.float32)
            for t in range(1, 9):
                dy, dx = divmod(t, 3)
                acc = acc + jnp.dot(src[pl.ds(dy * D + dx, m), :], w_ref[t],
                                    preferred_element_type=jnp.float32)
            y = jnp.maximum(acc + b, 0.0)           # Conv2d bias + ReLU (`act`)
            canvases[l][pl.ds(0, m), :] = y.astype(compute_dtype)
            src = canvases[l]
            s_in = s_out

        # Final 1x1 conv (no activation): one A @ B^T matmul per batch item,
        # producing a lane-dense (out_chnls, canvas_rows) result.
        wf_t = wb[-2][...]                          # (out, h)
        bf_t = wb[-1][...]                          # (out, 1) f32
        m_item = (img_dim - 1) * D + img_dim
        for bidx in range(bb):
            acts = src[pl.ds(bidx * R, m_item), :]  # (m_item, h)
            res = lax.dot_general(
                wf_t, acts,
                dimension_numbers=(((1,), (1,)), ((), ())),   # contract h dims
                preferred_element_type=jnp.float32)            # (out, m_item)
            o_ref[bidx, :, pl.ds(0, m_item)] = res + bf_t

    return kernel


def _broadcast_input(z, broad_dim):
    # BroadcastLayer: tile latent spatially + append pixel coords (zero-FLOP glue).
    N, in_chnls = z.shape
    Dd = broad_dim
    lin = jnp.linspace(-1.0, 1.0, Dd)
    g1 = jnp.broadcast_to(lin[:, None], (Dd, Dd))   # torch.meshgrid 'ij': varies along H
    g2 = jnp.broadcast_to(lin[None, :], (Dd, Dd))   # varies along W
    zb = jnp.broadcast_to(z[:, None, None, :], (N, Dd, Dd, in_chnls))
    coords = jnp.broadcast_to(jnp.stack([g1, g2], axis=-1)[None], (N, Dd, Dd, 2))
    return jnp.concatenate([zb, coords], axis=-1).astype(jnp.float32)


def _full_spec(arr):
    zeros = (0,) * arr.ndim
    return pl.BlockSpec(arr.shape, lambda n, _z=zeros: _z)


def broadcast_decoder_forward(z, params, *, img_dim, num_layers, h_chnls,
                              out_chnls, compute_dtype=jnp.bfloat16):
    N, in_chnls = z.shape
    D = img_dim + 2 * num_layers
    cin2 = in_chnls + 2
    R = _round_up(D * D, 8)                 # per-item canvas rows (8-aligned)

    # Batch blocking: keep >= 2 grid steps when possible (both v7x TCs busy);
    # the batch block itself is folded into the matmul M dimension.
    nblocks = 2 if N >= 2 else 1
    bb = pl.cdiv(N, nblocks)
    Npad = bb * nblocks

    x_nhwc = _broadcast_input(z, D)                          # (N, D, D, cin2)
    if Npad > N:
        x_nhwc = jnp.pad(x_nhwc, ((0, Npad - N), (0, 0), (0, 0), (0, 0)))
    x_canvas = x_nhwc.reshape(Npad, D * D, cin2)
    if R > D * D:
        x_canvas = jnp.pad(x_canvas, ((0, 0), (0, R - D * D), (0, 0)))
    x_flat = x_canvas.reshape(Npad * R, cin2).astype(compute_dtype)

    # Matmul-ready weights (free layout plumbing in XLA, outside the kernel).
    flat_params = []
    for l in range(num_layers):
        w, b = params[l]                                     # (3,3,cin,h), (1,h)
        flat_params.append(
            w.reshape(9, w.shape[2], w.shape[3]).astype(compute_dtype))
        flat_params.append(b.reshape(1, -1).astype(jnp.float32))
    wf, bf = params[-1]                                      # (h,out), (1,out)
    flat_params.append(jnp.transpose(wf, (1, 0)).astype(compute_dtype))  # (out, h)
    flat_params.append(bf.reshape(-1, 1).astype(jnp.float32))            # (out, 1)

    kernel = _make_decoder_kernel(num_layers, D, R, bb, img_dim, compute_dtype)

    in_specs = [pl.BlockSpec((bb * R, cin2), lambda n: (n, 0))]
    in_specs += [_full_spec(p) for p in flat_params]
    out_specs = pl.BlockSpec((bb, out_chnls, R), lambda n: (n, 0, 0))
    scratch_shapes = [pltpu.VMEM((bb * R, h_chnls), compute_dtype)
                      for _ in range(num_layers)]

    out_canvas = pl.pallas_call(
        kernel,
        out_shape=jax.ShapeDtypeStruct((Npad, out_chnls, R), jnp.float32),
        grid_spec=pltpu.PrefetchScalarGridSpec(
            num_scalar_prefetch=0,
            grid=(nblocks,),
            in_specs=in_specs,
            out_specs=out_specs,
            scratch_shapes=scratch_shapes,
        ),
        compiler_params=pltpu.CompilerParams(
            dimension_semantics=("parallel",)),
    )(x_flat, *flat_params)

    # NCHW result falls out with a slice + free reshape (no transpose).
    out_canvas = out_canvas[:N, :, : img_dim * D]
    out = out_canvas.reshape(N, out_chnls, img_dim, D)[:, :, :, :img_dim]
    return out


def reference_forward(z, params, *, img_dim, num_layers,
                      compute_dtype=jnp.bfloat16):
    # Pure-JAX reference with identical bf16 operand quantization and f32
    # accumulation, so the comparison checks the kernel, not the dtype choice.
    D = img_dim + 2 * num_layers
    x = _broadcast_input(z, D).astype(compute_dtype)
    for l in range(num_layers):
        w, b = params[l]
        y = lax.conv_general_dilated(
            x, w.astype(compute_dtype), (1, 1), "VALID",
            dimension_numbers=("NHWC", "HWIO", "NHWC"),
            preferred_element_type=jnp.float32)
        y = jax.nn.relu(y + b.reshape(1, 1, 1, -1).astype(jnp.float32))
        x = y.astype(compute_dtype)
    wf, bf = params[-1]
    y = jnp.einsum("nhwc,co->nhwo", x, wf.astype(compute_dtype),
                   preferred_element_type=jnp.float32)
    y = y + bf.reshape(1, 1, 1, -1).astype(jnp.float32)
    return jnp.transpose(y, (0, 3, 1, 2))


if __name__ == "__main__":
    # Small config consistent with the module:
    #   in_chnls=8 (latent), out_chnls=4 (RGB + mask logit), h_chnls=32,
    #   num_layers=2, img_dim=16  ->  broad_dim = 20, output 16x16.
    in_chnls, out_chnls, h_chnls = 8, 4, 32
    num_layers, img_dim = 2, 16
    N = 2

    keys = jax.random.split(jax.random.PRNGKey(0), 1 + 2 * (num_layers + 1))
    z = jax.random.normal(keys[0], (N, in_chnls), jnp.float32)

    params = []
    c_in = in_chnls + 2
    ki = 1
    for _ in range(num_layers):
        w = 0.1 * jax.random.normal(keys[ki], (3, 3, c_in, h_chnls), jnp.float32); ki += 1
        b = 0.1 * jax.random.normal(keys[ki], (1, h_chnls), jnp.float32); ki += 1
        params.append((w, b))
        c_in = h_chnls
    wf = 0.1 * jax.random.normal(keys[ki], (h_chnls, out_chnls), jnp.float32); ki += 1
    bf = 0.1 * jax.random.normal(keys[ki], (1, out_chnls), jnp.float32)
    params.append((wf, bf))

    out = broadcast_decoder_forward(z, params, img_dim=img_dim,
                                    num_layers=num_layers, h_chnls=h_chnls,
                                    out_chnls=out_chnls)
    out = jax.block_until_ready(out)

    ref = reference_forward(z, params, img_dim=img_dim, num_layers=num_layers)
    assert out.shape == (N, out_chnls, img_dim, img_dim), out.shape
    err = float(jnp.max(jnp.abs(out - ref)))
    assert jnp.allclose(out, ref, rtol=1e-3, atol=1e-3), err
    print("KERNEL_OK")
</pallas_src>

<mosaic_0001>
module attributes {stable_mosaic.version = 11 : i64} {
  func.func @kernel(%arg0: i32, %arg1: memref<400x10xbf16, #tpu.memory_space<vmem>>, %arg2: memref<9x10x32xbf16, #tpu.memory_space<vmem>>, %arg3: memref<1x32xf32, #tpu.memory_space<vmem>>, %arg4: memref<9x32x32xbf16, #tpu.memory_space<vmem>>, %arg5: memref<1x32xf32, #tpu.memory_space<vmem>>, %arg6: memref<4x32xbf16, #tpu.memory_space<vmem>>, %arg7: memref<4x1xf32, #tpu.memory_space<vmem>>, %arg8: memref<1x4x400xf32, #tpu.memory_space<vmem>>, %arg9: memref<400x32xbf16, #tpu.memory_space<vmem>>, %arg10: memref<400x32xbf16, #tpu.memory_space<vmem>>) attributes {dimension_semantics = [#tpu.dimension_semantics<parallel>], iteration_bounds = array<i64: 2>, scalar_prefetch = 0 : i64, scratch_operands = 2 : i64, tpu.core_type = #tpu.core_type<tc>, window_params = [{transform_indices = @transform_0, window_bounds = array<i64: 400, 10>}, {pipeline_mode = #tpu.pipeline_mode<synchronous>, transform_indices = @transform_1, window_bounds = array<i64: 9, 10, 32>}, {pipeline_mode = #tpu.pipeline_mode<synchronous>, transform_indices = @transform_2, window_bounds = array<i64: 1, 32>}, {pipeline_mode = #tpu.pipeline_mode<synchronous>, transform_indices = @transform_3, window_bounds = array<i64: 9, 32, 32>}, {pipeline_mode = #tpu.pipeline_mode<synchronous>, transform_indices = @transform_4, window_bounds = array<i64: 1, 32>}, {pipeline_mode = #tpu.pipeline_mode<synchronous>, transform_indices = @transform_5, window_bounds = array<i64: 4, 32>}, {pipeline_mode = #tpu.pipeline_mode<synchronous>, transform_indices = @transform_6, window_bounds = array<i64: 4, 1>}, {transform_indices = @transform_7, window_bounds = array<i64: 1, 4, 400>}]} {
    %c0 = arith.constant 0 : index
    %c0_0 = arith.constant 0 : index
    %0 = vector.load %arg3[%c0, %c0_0] : memref<1x32xf32, #tpu.memory_space<vmem>>, vector<1x32xf32>
    %c0_1 = arith.constant 0 : index
    %c0_2 = arith.constant 0 : index
    %1 = vector.load %arg1[%c0_1, %c0_2] : memref<400x10xbf16, #tpu.memory_space<vmem>>, vector<358x10xbf16>
    %c0_3 = arith.constant 0 : index
    %c0_4 = arith.constant 0 : index
    %c0_5 = arith.constant 0 : index
    %2 = vector.load %arg2[%c0_3, %c0_4, %c0_5] : memref<9x10x32xbf16, #tpu.memory_space<vmem>>, vector<1x10x32xbf16>
    %3 = vector.shape_cast %2 : vector<1x10x32xbf16> to vector<10x32xbf16>
    %cst = arith.constant dense<0.000000e+00> : vector<358x32xf32>
    %4 = tpu.matmul %1, %3, %cst {dimension_numbers = #tpu.dot_dimension_numbers<[1], [0], [0], [1], [0, 0, 1, 1], [], []>} : vector<358x10xbf16>, vector<10x32xbf16>, vector<358x32xf32> -> vector<358x32xf32>
    %c1 = arith.constant 1 : index
    %c0_6 = arith.constant 0 : index
    %5 = vector.load %arg1[%c1, %c0_6] : memref<400x10xbf16, #tpu.memory_space<vmem>>, vector<358x10xbf16>
    %c1_7 = arith.constant 1 : index
    %c0_8 = arith.constant 0 : index
    %c0_9 = arith.constant 0 : index
    %6 = vector.load %arg2[%c1_7, %c0_8, %c0_9] : memref<9x10x32xbf16, #tpu.memory_space<vmem>>, vector<1x10x32xbf16>
    %7 = vector.shape_cast %6 : vector<1x10x32xbf16> to vector<10x32xbf16>
    %cst_10 = arith.constant dense<0.000000e+00> : vector<358x32xf32>
    %8 = tpu.matmul %5, %7, %cst_10 {dimension_numbers = #tpu.dot_dimension_numbers<[1], [0], [0], [1], [0, 0, 1, 1], [], []>} : vector<358x10xbf16>, vector<10x32xbf16>, vector<358x32xf32> -> vector<358x32xf32>
    %9 = arith.addf %4, %8 : vector<358x32xf32>
    %c2 = arith.constant 2 : index
    %c0_11 = arith.constant 0 : index
    %10 = vector.load %arg1[%c2, %c0_11] : memref<400x10xbf16, #tpu.memory_space<vmem>>, vector<358x10xbf16>
    %c2_12 = arith.constant 2 : index
    %c0_13 = arith.constant 0 : index
    %c0_14 = arith.constant 0 : index
    %11 = vector.load %arg2[%c2_12, %c0_13, %c0_14] : memref<9x10x32xbf16, #tpu.memory_space<vmem>>, vector<1x10x32xbf16>
    %12 = vector.shape_cast %11 : vector<1x10x32xbf16> to vector<10x32xbf16>
    %cst_15 = arith.constant dense<0.000000e+00> : vector<358x32xf32>
    %13 = tpu.matmul %10, %12, %cst_15 {dimension_numbers = #tpu.dot_dimension_numbers<[1], [0], [0], [1], [0, 0, 1, 1], [], []>} : vector<358x10xbf16>, vector<10x32xbf16>, vector<358x32xf32> -> vector<358x32xf32>
    %14 = arith.addf %9, %13 : vector<358x32xf32>
    %c20 = arith.constant 20 : index
    %c0_16 = arith.constant 0 : index
    %15 = vector.load %arg1[%c20, %c0_16] : memref<400x10xbf16, #tpu.memory_space<vmem>>, vector<358x10xbf16>
    %c3 = arith.constant 3 : index
    %c0_17 = arith.constant 0 : index
    %c0_18 = arith.constant 0 : index
    %16 = vector.load %arg2[%c3, %c0_17, %c0_18] : memref<9x10x32xbf16, #tpu.memory_space<vmem>>, vector<1x10x32xbf16>
    %17 = vector.shape_cast %16 : vector<1x10x32xbf16> to vector<10x32xbf16>
    %cst_19 = arith.constant dense<0.000000e+00> : vector<358x32xf32>
    %18 = tpu.matmul %15, %17, %cst_19 {dimension_numbers = #tpu.dot_dimension_numbers<[1], [0], [0], [1], [0, 0, 1, 1], [], []>} : vector<358x10xbf16>, vector<10x32xbf16>, vector<358x32xf32> -> vector<358x32xf32>
    %19 = arith.addf %14, %18 : vector<358x32xf32>
    %c21 = arith.constant 21 : index
    %c0_20 = arith.constant 0 : index
    %20 = vector.load %arg1[%c21, %c0_20] : memref<400x10xbf16, #tpu.memory_space<vmem>>, vector<358x10xbf16>
    %c4 = arith.constant 4 : index
    %c0_21 = arith.constant 0 : index
    %c0_22 = arith.constant 0 : index
    %21 = vector.load %arg2[%c4, %c0_21, %c0_22] : memref<9x10x32xbf16, #tpu.memory_space<vmem>>, vector<1x10x32xbf16>
    %22 = vector.shape_cast %21 : vector<1x10x32xbf16> to vector<10x32xbf16>
    %cst_23 = arith.constant dense<0.000000e+00> : vector<358x32xf32>
    %23 = tpu.matmul %20, %22, %cst_23 {dimension_numbers = #tpu.dot_dimension_numbers<[1], [0], [0], [1], [0, 0, 1, 1], [], []>} : vector<358x10xbf16>, vector<10x32xbf16>, vector<358x32xf32> -> vector<358x32xf32>
    %24 = arith.addf %19, %23 : vector<358x32xf32>
    %c22 = arith.constant 22 : index
    %c0_24 = arith.constant 0 : index
    %25 = vector.load %arg1[%c22, %c0_24] : memref<400x10xbf16, #tpu.memory_space<vmem>>, vector<358x10xbf16>
    %c5 = arith.constant 5 : index
    %c0_25 = arith.constant 0 : index
    %c0_26 = arith.constant 0 : index
    %26 = vector.load %arg2[%c5, %c0_25, %c0_26] : memref<9x10x32xbf16, #tpu.memory_space<vmem>>, vector<1x10x32xbf16>
    %27 = vector.shape_cast %26 : vector<1x10x32xbf16> to vector<10x32xbf16>
    %cst_27 = arith.constant dense<0.000000e+00> : vector<358x32xf32>
    %28 = tpu.matmul %25, %27, %cst_27 {dimension_numbers = #tpu.dot_dimension_numbers<[1], [0], [0], [1], [0, 0, 1, 1], [], []>} : vector<358x10xbf16>, vector<10x32xbf16>, vector<358x32xf32> -> vector<358x32xf32>
    %29 = arith.addf %24, %28 : vector<358x32xf32>
    %c40 = arith.constant 40 : index
    %c0_28 = arith.constant 0 : index
    %30 = vector.load %arg1[%c40, %c0_28] : memref<400x10xbf16, #tpu.memory_space<vmem>>, vector<358x10xbf16>
    %c6 = arith.constant 6 : index
    %c0_29 = arith.constant 0 : index
    %c0_30 = arith.constant 0 : index
    %31 = vector.load %arg2[%c6, %c0_29, %c0_30] : memref<9x10x32xbf16, #tpu.memory_space<vmem>>, vector<1x10x32xbf16>
    %32 = vector.shape_cast %31 : vector<1x10x32xbf16> to vector<10x32xbf16>
    %cst_31 = arith.constant dense<0.000000e+00> : vector<358x32xf32>
    %33 = tpu.matmul %30, %32, %cst_31 {dimension_numbers = #tpu.dot_dimension_numbers<[1], [0], [0], [1], [0, 0, 1, 1], [], []>} : vector<358x10xbf16>, vector<10x32xbf16>, vector<358x32xf32> -> vector<358x32xf32>
    %34 = arith.addf %29, %33 : vector<358x32xf32>
    %c41 = arith.constant 41 : index
    %c0_32 = arith.constant 0 : index
    %35 = vector.load %arg1[%c41, %c0_32] : memref<400x10xbf16, #tpu.memory_space<vmem>>, vector<358x10xbf16>
    %c7 = arith.constant 7 : index
    %c0_33 = arith.constant 0 : index
    %c0_34 = arith.constant 0 : index
    %36 = vector.load %arg2[%c7, %c0_33, %c0_34] : memref<9x10x32xbf16, #tpu.memory_space<vmem>>, vector<1x10x32xbf16>
    %37 = vector.shape_cast %36 : vector<1x10x32xbf16> to vector<10x32xbf16>
    %cst_35 = arith.constant dense<0.000000e+00> : vector<358x32xf32>
    %38 = tpu.matmul %35, %37, %cst_35 {dimension_numbers = #tpu.dot_dimension_numbers<[1], [0], [0], [1], [0, 0, 1, 1], [], []>} : vector<358x10xbf16>, vector<10x32xbf16>, vector<358x32xf32> -> vector<358x32xf32>
    %39 = arith.addf %34, %38 : vector<358x32xf32>
    %c42 = arith.constant 42 : index
    %c0_36 = arith.constant 0 : index
    %40 = vector.load %arg1[%c42, %c0_36] : memref<400x10xbf16, #tpu.memory_space<vmem>>, vector<358x10xbf16>
    %c8 = arith.constant 8 : index
    %c0_37 = arith.constant 0 : index
    %c0_38 = arith.constant 0 : index
    %41 = vector.load %arg2[%c8, %c0_37, %c0_38] : memref<9x10x32xbf16, #tpu.memory_space<vmem>>, vector<1x10x32xbf16>
    %42 = vector.shape_cast %41 : vector<1x10x32xbf16> to vector<10x32xbf16>
    %cst_39 = arith.constant dense<0.000000e+00> : vector<358x32xf32>
    %43 = tpu.matmul %40, %42, %cst_39 {dimension_numbers = #tpu.dot_dimension_numbers<[1], [0], [0], [1], [0, 0, 1, 1], [], []>} : vector<358x10xbf16>, vector<10x32xbf16>, vector<358x32xf32> -> vector<358x32xf32>
    %44 = arith.addf %39, %43 : vector<358x32xf32>
    %45 = vector.broadcast %0 : vector<1x32xf32> to vector<358x32xf32>
    %46 = arith.addf %44, %45 : vector<358x32xf32>
    %cst_40 = arith.constant 0.000000e+00 : f32
    %47 = vector.broadcast %cst_40 : f32 to vector<358x32xf32>
    %48 = arith.maximumf %46, %47 : vector<358x32xf32>
    %49 = arith.truncf %48 : vector<358x32xf32> to vector<358x32xbf16>
    %c0_41 = arith.constant 0 : index
    %c0_42 = arith.constant 0 : index
    %50 = vector.load %arg9[%c0_41, %c0_42] : memref<400x32xbf16, #tpu.memory_space<vmem>>, vector<358x32xbf16>
    tpu.vector_store %arg9[%c0_41, %c0_42], %49 {strides = array<i32>} : memref<400x32xbf16, #tpu.memory_space<vmem>>, vector<358x32xbf16>,
    %c0_43 = arith.constant 0 : index
    %c0_44 = arith.constant 0 : index
    %51 = vector.load %arg5[%c0_43, %c0_44] : memref<1x32xf32, #tpu.memory_space<vmem>>, vector<1x32xf32>
    %c0_45 = arith.constant 0 : index
    %c0_46 = arith.constant 0 : index
    %52 = vector.load %arg9[%c0_45, %c0_46] : memref<400x32xbf16, #tpu.memory_space<vmem>>, vector<316x32xbf16>
    %c0_47 = arith.constant 0 : index
    %c0_48 = arith.constant 0 : index
    %c0_49 = arith.constant 0 : index
    %53 = vector.load %arg4[%c0_47, %c0_48, %c0_49] : memref<9x32x32xbf16, #tpu.memory_space<vmem>>, vector<1x32x32xbf16>
    %54 = vector.shape_cast %53 : vector<1x32x32xbf16> to vector<32x32xbf16>
    %cst_50 = arith.constant dense<0.000000e+00> : vector<316x32xf32>
    %55 = tpu.matmul %52, %54, %cst_50 {dimension_numbers = #tpu.dot_dimension_numbers<[1], [0], [0], [1], [0, 0, 1, 1], [], []>} : vector<316x32xbf16>, vector<32x32xbf16>, vector<316x32xf32> -> vector<316x32xf32>
    %c1_51 = arith.constant 1 : index
    %c0_52 = arith.constant 0 : index
    %56 = vector.load %arg9[%c1_51, %c0_52] : memref<400x32xbf16, #tpu.memory_space<vmem>>, vector<316x32xbf16>
    %c1_53 = arith.constant 1 : index
    %c0_54 = arith.constant 0 : index
    %c0_55 = arith.constant 0 : index
    %57 = vector.load %arg4[%c1_53, %c0_54, %c0_55] : memref<9x32x32xbf16, #tpu.memory_space<vmem>>, vector<1x32x32xbf16>
    %58 = vector.shape_cast %57 : vector<1x32x32xbf16> to vector<32x32xbf16>
    %cst_56 = arith.constant dense<0.000000e+00> : vector<316x32xf32>
    %59 = tpu.matmul %56, %58, %cst_56 {dimension_numbers = #tpu.dot_dimension_numbers<[1], [0], [0], [1], [0, 0, 1, 1], [], []>} : vector<316x32xbf16>, vector<32x32xbf16>, vector<316x32xf32> -> vector<316x32xf32>
    %60 = arith.addf %55, %59 : vector<316x32xf32>
    %c2_57 = arith.constant 2 : index
    %c0_58 = arith.constant 0 : index
    %61 = vector.load %arg9[%c2_57, %c0_58] : memref<400x32xbf16, #tpu.memory_space<vmem>>, vector<316x32xbf16>
    %c2_59 = arith.constant 2 : index
    %c0_60 = arith.constant 0 : index
    %c0_61 = arith.constant 0 : index
    %62 = vector.load %arg4[%c2_59, %c0_60, %c0_61] : memref<9x32x32xbf16, #tpu.memory_space<vmem>>, vector<1x32x32xbf16>
    %63 = vector.shape_cast %62 : vector<1x32x32xbf16> to vector<32x32xbf16>
    %cst_62 = arith.constant dense<0.000000e+00> : vector<316x32xf32>
    %64 = tpu.matmul %61, %63, %cst_62 {dimension_numbers = #tpu.dot_dimension_numbers<[1], [0], [0], [1], [0, 0, 1, 1], [], []>} : vector<316x32xbf16>, vector<32x32xbf16>, vector<316x32xf32> -> vector<316x32xf32>
    %65 = arith.addf %60, %64 : vector<316x32xf32>
    %c20_63 = arith.constant 20 : index
    %c0_64 = arith.constant 0 : index
    %66 = vector.load %arg9[%c20_63, %c0_64] : memref<400x32xbf16, #tpu.memory_space<vmem>>, vector<316x32xbf16>
    %c3_65 = arith.constant 3 : index
    %c0_66 = arith.constant 0 : index
    %c0_67 = arith.constant 0 : index
    %67 = vector.load %arg4[%c3_65, %c0_66, %c0_67] : memref<9x32x32xbf16, #tpu.memory_space<vmem>>, vector<1x32x32xbf16>
    %68 = vector.shape_cast %67 : vector<1x32x32xbf16> to vector<32x32xbf16>
    %cst_68 = arith.constant dense<0.000000e+00> : vector<316x32xf32>
    %69 = tpu.matmul %66, %68, %cst_68 {dimension_numbers = #tpu.dot_dimension_numbers<[1], [0], [0], [1], [0, 0, 1, 1], [], []>} : vector<316x32xbf16>, vector<32x32xbf16>, vector<316x32xf32> -> vector<316x32xf32>
    %70 = arith.addf %65, %69 : vector<316x32xf32>
    %c21_69 = arith.constant 21 : index
    %c0_70 = arith.constant 0 : index
    %71 = vector.load %arg9[%c21_69, %c0_70] : memref<400x32xbf16, #tpu.memory_space<vmem>>, vector<316x32xbf16>
    %c4_71 = arith.constant 4 : index
    %c0_72 = arith.constant 0 : index
    %c0_73 = arith.constant 0 : index
    %72 = vector.load %arg4[%c4_71, %c0_72, %c0_73] : memref<9x32x32xbf16, #tpu.memory_space<vmem>>, vector<1x32x32xbf16>
    %73 = vector.shape_cast %72 : vector<1x32x32xbf16> to vector<32x32xbf16>
    %cst_74 = arith.constant dense<0.000000e+00> : vector<316x32xf32>
    %74 = tpu.matmul %71, %73, %cst_74 {dimension_numbers = #tpu.dot_dimension_numbers<[1], [0], [0], [1], [0, 0, 1, 1], [], []>} : vector<316x32xbf16>, vector<32x32xbf16>, vector<316x32xf32> -> vector<316x32xf32>
    %75 = arith.addf %70, %74 : vector<316x32xf32>
    %c22_75 = arith.constant 22 : index
    %c0_76 = arith.constant 0 : index
    %76 = vector.load %arg9[%c22_75, %c0_76] : memref<400x32xbf16, #tpu.memory_space<vmem>>, vector<316x32xbf16>
    %c5_77 = arith.constant 5 : index
    %c0_78 = arith.constant 0 : index
    %c0_79 = arith.constant 0 : index
    %77 = vector.load %arg4[%c5_77, %c0_78, %c0_79] : memref<9x32x32xbf16, #tpu.memory_space<vmem>>, vector<1x32x32xbf16>
    %78 = vector.shape_cast %77 : vector<1x32x32xbf16> to vector<32x32xbf16>
    %cst_80 = arith.constant dense<0.000000e+00> : vector<316x32xf32>
    %79 = tpu.matmul %76, %78, %cst_80 {dimension_numbers = #tpu.dot_dimension_numbers<[1], [0], [0], [1], [0, 0, 1, 1], [], []>} : vector<316x32xbf16>, vector<32x32xbf16>, vector<316x32xf32> -> vector<316x32xf32>
    %80 = arith.addf %75, %79 : vector<316x32xf32>
    %c40_81 = arith.constant 40 : index
    %c0_82 = arith.constant 0 : index
    %81 = vector.load %arg9[%c40_81, %c0_82] : memref<400x32xbf16, #tpu.memory_space<vmem>>, vector<316x32xbf16>
    %c6_83 = arith.constant 6 : index
    %c0_84 = arith.constant 0 : index
    %c0_85 = arith.constant 0 : index
    %82 = vector.load %arg4[%c6_83, %c0_84, %c0_85] : memref<9x32x32xbf16, #tpu.memory_space<vmem>>, vector<1x32x32xbf16>
    %83 = vector.shape_cast %82 : vector<1x32x32xbf16> to vector<32x32xbf16>
    %cst_86 = arith.constant dense<0.000000e+00> : vector<316x32xf32>
    %84 = tpu.matmul %81, %83, %cst_86 {dimension_numbers = #tpu.dot_dimension_numbers<[1], [0], [0], [1], [0, 0, 1, 1], [], []>} : vector<316x32xbf16>, vector<32x32xbf16>, vector<316x32xf32> -> vector<316x32xf32>
    %85 = arith.addf %80, %84 : vector<316x32xf32>
    %c41_87 = arith.constant 41 : index
    %c0_88 = arith.constant 0 : index
    %86 = vector.load %arg9[%c41_87, %c0_88] : memref<400x32xbf16, #tpu.memory_space<vmem>>, vector<316x32xbf16>
    %c7_89 = arith.constant 7 : index
    %c0_90 = arith.constant 0 : index
    %c0_91 = arith.constant 0 : index
    %87 = vector.load %arg4[%c7_89, %c0_90, %c0_91] : memref<9x32x32xbf16, #tpu.memory_space<vmem>>, vector<1x32x32xbf16>
    %88 = vector.shape_cast %87 : vector<1x32x32xbf16> to vector<32x32xbf16>
    %cst_92 = arith.constant dense<0.000000e+00> : vector<316x32xf32>
    %89 = tpu.matmul %86, %88, %cst_92 {dimension_numbers = #tpu.dot_dimension_numbers<[1], [0], [0], [1], [0, 0, 1, 1], [], []>} : vector<316x32xbf16>, vector<32x32xbf16>, vector<316x32xf32> -> vector<316x32xf32>
    %90 = arith.addf %85, %89 : vector<316x32xf32>
    %c42_93 = arith.constant 42 : index
    %c0_94 = arith.constant 0 : index
    %91 = vector.load %arg9[%c42_93, %c0_94] : memref<400x32xbf16, #tpu.memory_space<vmem>>, vector<316x32xbf16>
    %c8_95 = arith.constant 8 : index
    %c0_96 = arith.constant 0 : index
    %c0_97 = arith.constant 0 : index
    %92 = vector.load %arg4[%c8_95, %c0_96, %c0_97] : memref<9x32x32xbf16, #tpu.memory_space<vmem>>, vector<1x32x32xbf16>
    %93 = vector.shape_cast %92 : vector<1x32x32xbf16> to vector<32x32xbf16>
    %cst_98 = arith.constant dense<0.000000e+00> : vector<316x32xf32>
    %94 = tpu.matmul %91, %93, %cst_98 {dimension_numbers = #tpu.dot_dimension_numbers<[1], [0], [0], [1], [0, 0, 1, 1], [], []>} : vector<316x32xbf16>, vector<32x32xbf16>, vector<316x32xf32> -> vector<316x32xf32>
    %95 = arith.addf %90, %94 : vector<316x32xf32>
    %96 = vector.broadcast %51 : vector<1x32xf32> to vector<316x32xf32>
    %97 = arith.addf %95, %96 : vector<316x32xf32>
    %cst_99 = arith.constant 0.000000e+00 : f32
    %98 = vector.broadcast %cst_99 : f32 to vector<316x32xf32>
    %99 = arith.maximumf %97, %98 : vector<316x32xf32>
    %100 = arith.truncf %99 : vector<316x32xf32> to vector<316x32xbf16>
    %c0_100 = arith.constant 0 : index
    %c0_101 = arith.constant 0 : index
    %101 = vector.load %arg10[%c0_100, %c0_101] : memref<400x32xbf16, #tpu.memory_space<vmem>>, vector<316x32xbf16>
    tpu.vector_store %arg10[%c0_100, %c0_101], %100 {strides = array<i32>} : memref<400x32xbf16, #tpu.memory_space<vmem>>, vector<316x32xbf16>,
    %c0_102 = arith.constant 0 : index
    %c0_103 = arith.constant 0 : index
    %102 = vector.load %arg6[%c0_102, %c0_103] : memref<4x32xbf16, #tpu.memory_space<vmem>>, vector<4x32xbf16>
    %c0_104 = arith.constant 0 : index
    %c0_105 = arith.constant 0 : index
    %103 = vector.load %arg7[%c0_104, %c0_105] : memref<4x1xf32, #tpu.memory_space<vmem>>, vector<4x1xf32>
    %c0_106 = arith.constant 0 : index
    %c0_107 = arith.constant 0 : index
    %104 = vector.load %arg10[%c0_106, %c0_107] : memref<400x32xbf16, #tpu.memory_space<vmem>>, vector<316x32xbf16>
    %cst_108 = arith.constant dense<0.000000e+00> : vector<4x316xf32>
    %105 = tpu.matmul %102, %104, %cst_108 {dimension_numbers = #tpu.dot_dimension_numbers<[1], [1], [0], [0], [0, 0, 1, 0], [], []>} : vector<4x32xbf16>, vector<316x32xbf16>, vector<4x316xf32> -> vector<4x316xf32>
    %106 = vector.broadcast %103 : vector<4x1xf32> to vector<4x316xf32>
    %107 = arith.addf %105, %106 : vector<4x316xf32>
    %c0_109 = arith.constant 0 : index
    %c0_110 = arith.constant 0 : index
    %c0_111 = arith.constant 0 : index
    %108 = vector.load %arg8[%c0_109, %c0_110, %c0_111] : memref<1x4x400xf32, #tpu.memory_space<vmem>>, vector<1x4x316xf32>
    %109 = vector.shape_cast %108 : vector<1x4x316xf32> to vector<4x316xf32>
    %110 = vector.shape_cast %107 : vector<4x316xf32> to vector<1x4x316xf32>
    tpu.vector_store %arg8[%c0_109, %c0_110, %c0_111], %110 {strides = array<i32>} : memref<1x4x400xf32, #tpu.memory_space<vmem>>, vector<1x4x316xf32>,
    return
  }
  func.func @transform_0(%arg0: i32) -> (i32, i32) {
    %c0_i32 = arith.constant 0 : i32
    %c0_i32_0 = arith.constant 0 : i32
    return %arg0, %c0_i32 : i32, i32
  }
  func.func @transform_1(%arg0: i32) -> (i32, i32, i32) {
    %c0_i32 = arith.constant 0 : i32
    %c0_i32_0 = arith.constant 0 : i32
    %c0_i32_1 = arith.constant 0 : i32
    %c0_i32_2 = arith.constant 0 : i32
    return %c0_i32, %c0_i32_0, %c0_i32_1 : i32, i32, i32
  }
  func.func @transform_2(%arg0: i32) -> (i32, i32) {
    %c0_i32 = arith.constant 0 : i32
    %c0_i32_0 = arith.constant 0 : i32
    %c0_i32_1 = arith.constant 0 : i32
    return %c0_i32, %c0_i32_0 : i32, i32
  }
  func.func @transform_3(%arg0: i32) -> (i32, i32, i32) {
    %c0_i32 = arith.constant 0 : i32
    %c0_i32_0 = arith.constant 0 : i32
    %c0_i32_1 = arith.constant 0 : i32
    %c0_i32_2 = arith.constant 0 : i32
    return %c0_i32, %c0_i32_0, %c0_i32_1 : i32, i32, i32
  }
  func.func @transform_4(%arg0: i32) -> (i32, i32) {
    %c0_i32 = arith.constant 0 : i32
    %c0_i32_0 = arith.constant 0 : i32
    %c0_i32_1 = arith.constant 0 : i32
    return %c0_i32, %c0_i32_0 : i32, i32
  }
  func.func @transform_5(%arg0: i32) -> (i32, i32) {
    %c0_i32 = arith.constant 0 : i32
    %c0_i32_0 = arith.constant 0 : i32
    %c0_i32_1 = arith.constant 0 : i32
    return %c0_i32, %c0_i32_0 : i32, i32
  }
  func.func @transform_6(%arg0: i32) -> (i32, i32) {
    %c0_i32 = arith.constant 0 : i32
    %c0_i32_0 = arith.constant 0 : i32
    %c0_i32_1 = arith.constant 0 : i32
    return %c0_i32, %c0_i32_0 : i32, i32
  }
  func.func @transform_7(%arg0: i32) -> (i32, i32, i32) {
    %c0_i32 = arith.constant 0 : i32
    %c0_i32_0 = arith.constant 0 : i32
    %c0_i32_1 = arith.constant 0 : i32
    return %arg0, %c0_i32, %c0_i32_0 : i32, i32, i32
  }
}

</mosaic_0001>

<bundles_post_ra>
// kernel: tpu_custom_call.1
= control target key start
LH: loop header
LB: loop body
LE: loop exit
PB: predicated region body
PF: predicated region fallthrough
CT: control target
= control target key end

     0   :  { %12 = vsyncpa [#allocation5], 0  ;;  %s15075_s0 = inlined_call_operand.vmem [shape: bf16[800,10], index: 0, kind: input, shape index: {}]   ;;  %s15076_s1 = inlined_call_operand.vmem [shape: bf16[9,10,32], index: 1, kind: input, shape index: {}]   ;;  %s15077_s2 = inlined_call_operand.vmem [shape: f32[1,32], index: 2, kind: input, shape index: {}]   ;;  %s15078_s3 = inlined_call_operand.vmem [shape: bf16[9,32,32], index: 3, kind: input, shape index: {}]   ;;  %s15079_s4 = inlined_call_operand.vmem [shape: f32[1,32], index: 4, kind: input, shape index: {}]   ;;  %s15080_s5 = inlined_call_operand.vmem [shape: bf16[4,32], index: 5, kind: input, shape index: {}]   ;;  %s15081_s6 = inlined_call_operand.vmem [shape: f32[4,1], index: 6, kind: input, shape index: {}]   ;;  %s15082_s7 = inlined_call_operand.hbm [shape: f32[2,4,400], index: 7, kind: output, shape index: {}]  }
   0x1   :  { %14 = vsyncpa [#allocation5 + $0x1], 0  ;;  %s11494_s24 = smov 0   ;;  %s11496_s25 = smov 0  }
   0x2   :  { %s11498_s26 = smov 0   ;;  %s11500_s27 = smov 0  }
   0x3 LB: > { %s11515_s28 = sadd.s32 4294967295, %s11448_s27   ;;  %s8595_s29 = sadd.s32 4294967294, %s11448_s27   ;;  %s11448_s27 = sphi %s11500_s27, %s15498_s27   ;;  %s11444_s26 = sphi %s11498_s26, %s15497_s26   ;;  %s11440_s25 = sphi %s11496_s25, %s15496_s25   ;;  %s11436_s24 = sphi %s11494_s24, %s15495_s24  }
   0x4   : > { %s11519_s30 = sadd.s32 1, %s11448_s27   ;;  %s179_s8 = sadd.s32 1, %s11444_s26 }
   0x5   : > { %s176_s9 = ssub.s32 %s11448_s27, %s11519_s30  ;;  %p189_p0 = scmp.ne.s32.totalorder %s11444_s26, %s11440_s25 }
   0x6   : > { %p177_p1 = scmp.eq.s32.totalorder %s176_s9, 0  ;;  %p190_p2 = scmp.eq.s32.totalorder %s11515_s28, 1 }
   0x7   : > { %p195_p3 = scmp.ne.s32.totalorder %s11440_s25, %s11436_s24  ;;  %p196_p4 = scmp.eq.s32.totalorder %s8595_s29, 1 }
   0x8   : > { %s11530_s10 = scalar_select %p177_p1, %s11444_s26, %s179_s8  }
   0x9   : > { %p11532_p5 = por %p190_p2, %p189_p0  ;;  %p11536_p6 = por %p196_p4, %p195_p3 }
   0xa   : > { %p8598_p7 = scmp.ge.s32.totalorder %s11448_s27, 1  ;;  %p241_p8 = scmp.lt.s32.totalorder %s11448_s27, 3 }
   0xc   : > { %p242_p9 = pnand %p8598_p7, %p241_p8 }
   0xe   : > { %245 = sbr.rel (%p242_p9) target bundleno = 2563 (0xa03), region = 48 }
  0x15   : > { %vm704_vm0 = vcmask 1044480   ;;  %v15098_v0 = vmov 0.0   ;;  %v11212_v1 = vld [vmem:[%s15076_s1 + $0x8] sm:$0x1f]   ;;  %s273_s15 = smul.u32 50, %s11515_s28  ;;  %vm11451_vm1 = vmmov 0  }
  0x16   : > { %9585 = vmatprep.subr.bf16.mxu0 %v15098_v0  ;;  %10839 = vmatprep.subr.bf16.mxu1 %v15098_v0  ;;  %v706_v2 = vsel %vm704_vm0, %v11212_v1, 0  ;;  %vm445_vm2 = vsmask.f32 7424  ;;  %vm634_vm3 = vcmask 80896   ;;  %v11230_v26 = vld [vmem:[%s15076_s1] sm:$0x1f]  }
  0x17   : > { %9587 = vmatprep.mubr.msk.bf16.mxu0 %vm11451_vm1, %v15098_v0  ;;  %9901 = vmatprep.mubr.msk.bf16.mxu1 %vm11451_vm1, %v15098_v0  ;;  %p274_p10 = scmp.lt.s32.totalorder %s273_s15, 99  ;;  %v980_v30 = vsel %vm704_vm0, %v11230_v26, 0  ;;  %vm1753_vm4 = vcmask 1045504   ;;  %vm1205_vm5 = vcmask 1046528   ;;  %vm2144_vm6 = vsmask.f32 5376 }
  0x18   : > { %9586 = vmatpush3.bf16.msra.mxu0 %v706_v2  ;;  %vm4594_vm7 = vcmask 261120   ;;  %vm7367_vm8 = vsmask.f32 3328  ;;  %vm7014_vm9 = vcmask 1043456   ;;  %vm7869_vm10 = vcmask 1042432   ;;  %s11453_s22 = smov [#allocation4]  }
  0x19   : > { %s15500_s15 = smov (!%p274_p10, %s273_s15), 99  ;;  %9679 = vmatprep.subr.bf16.mxu0 %v15098_v0  ;;  %vm4617_vm11 = vcmask 256000   ;;  %vm8341_vm12 = vcmask 259072   ;;  %vm8519_vm13 = vcmask 486400   ;;  %s11390_s23 = sshll.u32 %s11453_s22, 4  ;;  %s11391_s23 = int_to_ptr.vmem [resolvable:$false] %s11390_s23 }
  0x1a   : > { %s8600_s16 = sshll.u32 %s15500_s15, 2  ;;  %s9147_s15 = sshll.u32 %s11515_s28, 8 }
  0x1b   : > { %s11557_s19 = scalar_lea.vmem %s15075_s0, %s8600_s16  ;;  %s15033_s20 = scalar_lea.hbm %s15082_s7, %s9147_s15 }
  0x1c   : > { %v281_v3 = vld [vmem:[%s11557_s19] sm:$0xf]  ;;  %v282_v4 = vld [vmem:[%s11557_s19 + $0x4] sm:$0xf]  ;;  %v11564_v6 = vld [vmem:[%s11557_s19 + $0x8] sm:$0xff]   ;;  %s11392_s29 = scalar_lea.vmem %s11391_s23, 512 }
  0x1d   : > { %v11561_v5 = vcombine.low %v281_v3, %v282_v4  ;;  %v454_v9 = vshll.u32 %v11564_v6, 16  ;;  %v11570_v10 = vld [vmem:[%s11557_s19 + $0x10] sm:$0xff]   ;;  %v458_v14 = vshrl.u32 %v11564_v6, 16  ;;  %v11579_v19 = vld [vmem:[%s11557_s19 + $0x18] sm:$0xff]   ;;  %v11588_v25 = vld [vmem:[%s11557_s19 + $0x20] sm:$0xff]  }
  0x1e   : > { %v462_v15 = vshll.u32 %v11570_v10, 16  ;;  %v466_v21 = vshrl.u32 %v11570_v10, 16  ;;  %v470_v22 = vshll.u32 %v11579_v19, 16  ;;  %v474_v28 = vshrl.u32 %v11579_v19, 16  ;;  %v11602_v33 = vld [vmem:[%s11557_s19 + $0x28] sm:$0xff]   ;;  %v11608_v37 = vld [vmem:[%s11557_s19 + $0x30] sm:$0xff]  }
  0x1f   : > { %v447_v7 = vshrl.u32 %v11561_v5, 16  ;;  %v449_v8 = vshll.u32 %v11561_v5, 16  ;;  %v456_v12 = vrot.slane %v454_v9, 1  ;;  %v478_v29 = vshll.u32 %v11588_v25, 16  ;;  %v11611_v38 = vld [vmem:[%s11557_s19 + $0x38] sm:$0xff]   ;;  %v11619_v43 = vld [vmem:[%s11557_s19 + $0x40] sm:$0xff]  }
  0x20   : > { %v464_v18 = vrot.slane %v462_v15, 1  ;;  %v472_v24 = vrot.slane %v470_v22, 1  ;;  %v482_v34 = vshrl.u32 %v11588_v25, 16  ;;  %v486_v36 = vshll.u32 %v11602_v33, 16  ;;  %v11630_v51 = vld [vmem:[%s11557_s19 + $0x48] sm:$0xff]   ;;  %v11636_v56 = vld [vmem:[%s11557_s19 + $0x50] sm:$0xff]  }
  0x21   : > { %v451_v11 = vrot.slane %v449_v8, 1  ;;  %v460_v17 = vor.u32 %v458_v14, %v456_v12  ;;  %v480_v32 = vrot.slane %v478_v29, 1  ;;  %v490_v41 = vshrl.u32 %v11602_v33, 16  ;;  %v11656_v8 = vld [vmem:[%s11557_s19 + $0x58] sm:$0xff]   ;;  %v11665_v15 = vld [vmem:[%s11557_s19 + $0x60] sm:$0xff]   ;;  %v11674_v22 = vld [vmem:[%s11557_s19 + $0x68] sm:$0xff]  }
  0x22   : > { %v468_v23 = vor.u32 %v466_v21, %v464_v18  ;;  %v476_v31 = vor.u32 %v474_v28, %v472_v24  ;;  %v488_v40 = vrot.slane %v486_v36, 1  ;;  %v494_v42 = vshll.u32 %v11608_v37, 16  ;;  %v11683_v29 = vld [vmem:[%s11557_s19 + $0x70] sm:$0xff]   ;;  %v11692_v36 = vld [vmem:[%s11557_s19 + $0x78] sm:$0xff]  }
  0x23   : > { %v452_v13 = vor.u32 %v451_v11, %v447_v7  ;;  %v465_v20 = vsel %vm445_vm2, %v460_v17, %v464_v18  ;;  %v484_v39 = vor.u32 %v482_v34, %v480_v32  ;;  %v498_v45 = vshrl.u32 %v11608_v37, 16 }
  0x24   : > { %v473_v27 = vsel %vm445_vm2, %v468_v23, %v472_v24  ;;  %v481_v35 = vsel %vm445_vm2, %v476_v31, %v480_v32  ;;  %v502_v46 = vshll.u32 %v11611_v38, 16  ;;  %v492_v47 = vor.u32 %v490_v41, %v488_v40 }
  0x25   : > { %v457_v16 = vsel %vm445_vm2, %v452_v13, %v456_v12  ;;  %v489_v44 = vsel %vm445_vm2, %v484_v39, %v488_v40  ;;  %v496_v48 = vrot.slane %v494_v42, 1  ;;  %v506_v49 = vshrl.u32 %v11611_v38, 16 }
  0x26   : > { %9588 = vmatmul.mubr.msk.bf16.vlgmr.msra.gmra.mrb[0].mxu0 %vm634_vm3, %v457_v16  ;;  %v510_v50 = vshll.u32 %v11619_v43, 16  ;;  %v504_v52 = vrot.slane %v502_v46, 1  ;;  %v514_v53 = vshrl.u32 %v11619_v43, 16  ;;  %v518_v55 = vshll.u32 %v11630_v51, 16 }
  0x27   : > { %9591 = vmatprep.mubr.msk.bf16.mxu0 %vm11451_vm1, %v15098_v0  ;;  %9680 = vmatpush3.bf16.msra.mxu0 %v980_v30  ;;  %v497_v54 = vsel %vm445_vm2, %v492_v47, %v496_v48  ;;  %v522_v58 = vshrl.u32 %v11630_v51, 16  ;;  %v500_v59 = vor.u32 %v498_v45, %v496_v48  ;;  %v526_v61 = vshll.u32 %v11636_v56, 16  ;;  %v11701_v45 = vld [vmem:[%s11557_s19 + $0x80] sm:$0xff]  }
  0x28   : > { %9773 = vmatprep.subr.bf16.mxu0 %v15098_v0  ;;  %v512_v57 = vrot.slane %v510_v50, 1  ;;  %v520_v60 = vrot.slane %v518_v55, 1  ;;  %v508_v63 = vor.u32 %v506_v49, %v504_v52  ;;  %v530_v11 = vshrl.u32 %v11636_v56, 16 }
  0x29   : > { %v505_v62 = vsel %vm445_vm2, %v500_v59, %v504_v52  ;;  %v528_v7 = vrot.slane %v526_v61, 1  ;;  %v534_v12 = vshll.u32 %v11656_v8, 16  ;;  %v538_v17 = vshrl.u32 %v11656_v8, 16  ;;  %v11710_v52 = vld [vmem:[%s11557_s19 + $0x88] sm:$0xff]   ;;  %v11719_v59 = vld [vmem:[%s11557_s19 + $0x90] sm:$0xff]  }
  0x2a   : > { %v513_v1 = vsel %vm445_vm2, %v508_v63, %v512_v57  ;;  %v516_v2 = vor.u32 %v514_v53, %v512_v57  ;;  %v524_v4 = vor.u32 %v522_v58, %v520_v60  ;;  %v542_v18 = vshll.u32 %v11665_v15, 16 }
  0x2b   : > { %v532_v13 = vor.u32 %v530_v11, %v528_v7  ;;  %v536_v14 = vrot.slane %v534_v12, 1  ;;  %v546_v24 = vshrl.u32 %v11665_v15, 16  ;;  %v550_v26 = vshll.u32 %v11674_v22, 16  ;;  %v11737_v12 = vld [vmem:[%s11557_s19 + $0xa0] sm:$0xff]  }
  0x2c   : > { %v521_v3 = vsel %vm445_vm2, %v516_v2, %v520_v60  ;;  %v529_v9 = vsel %vm445_vm2, %v524_v4, %v528_v7  ;;  %v544_v21 = vrot.slane %v542_v18, 1  ;;  %v554_v31 = vshrl.u32 %v11674_v22, 16  ;;  %v11728_v2 = vld [vmem:[%s11557_s19 + $0x98] sm:$0xff]  }
  0x2d   : > { %v537_v16 = vsel %vm445_vm2, %v532_v13, %v536_v14  ;;  %v552_v28 = vrot.slane %v550_v26, 1  ;;  %v558_v32 = vshll.u32 %v11683_v29, 16  ;;  %v562_v40 = vshrl.u32 %v11683_v29, 16 }
  0x2e   : > { %9592 = vmatmul.mubr.msk.bf16.gmra.mrb[4].mxu0 %vm634_vm3, %v465_v20  ;;  %v540_v20 = vor.u32 %v538_v17, %v536_v14  ;;  %v566_v41 = vshll.u32 %v11692_v36, 16  ;;  %v570_v47 = vshrl.u32 %v11692_v36, 16  ;;  %v574_v48 = vshll.u32 %v11701_v45, 16 }
  0x2f   : > { %9595 = vmatprep.mubr.msk.bf16.mxu0 %vm11451_vm1, %v15098_v0  ;;  %v556_v34 = vor.u32 %v554_v31, %v552_v28  ;;  %v582_v55 = vshll.u32 %v11710_v52, 16  ;;  %v586_v61 = vshrl.u32 %v11710_v52, 16  ;;  %v594_v4 = vshrl.u32 %v11719_v59, 16 }
  0x30   : > { %v545_v23 = vsel %vm445_vm2, %v540_v20, %v544_v21  ;;  %v576_v50 = vrot.slane %v574_v48, 1  ;;  %v598_v7 = vshll.u32 %v11728_v2, 16  ;;  %v602_v14 = vshrl.u32 %v11728_v2, 16  ;;  %v11746_v20 = vld [vmem:[%s11557_s19 + $0xa8] sm:$0xff]  }
  0x31   : > { %v584_v58 = vrot.slane %v582_v55, 1  ;;  %v618_v31 = vshrl.u32 %v11746_v20, 16 }
  0x32   : > { %v600_v11 = vrot.slane %v598_v7, 1 }
  0x33   : > { %v588_v63 = vor.u32 %v586_v61, %v584_v58 }
  0x34   : > { %v604_v17 = vor.u32 %v602_v14, %v600_v11 }
  0x36   : > { %9596 = vmatmul.mubr.msk.bf16.gmra.mrb[8].mxu0 %vm634_vm3, %v473_v27  ;;  %v548_v27 = vor.u32 %v546_v24, %v544_v21  ;;  %v614_v24 = vshll.u32 %v11746_v20, 16 }
  0x37   : > { %9599 = vmatprep.mubr.msk.bf16.mxu0 %vm11451_vm1, %v15098_v0 }
  0x38   : > { %v553_v30 = vsel %vm445_vm2, %v548_v27, %v552_v28  ;;  %v616_v27 = vrot.slane %v614_v24, 1  ;;  %v11755_v28 = vld [vmem:[%s11557_s19 + $0xb0] ss:$0 sps:$4 sm:$0xff]  }
  0x39   : > { %15127 = vst [vmem:[#allocation7_spill] sm:$0xff] %v11755_v28 }
  0x3e   : > { %9600 = vmatmul.mubr.msk.bf16.gmra.mrb[12].mxu0 %vm634_vm3, %v481_v35  ;;  %v560_v35 = vrot.slane %v558_v32, 1  ;;  %v622_v32 = vshll.u32 %v11755_v28, 16 }
  0x3f   : > { %9603 = vmatprep.mubr.msk.bf16.mxu0 %vm11451_vm1, %v15098_v0 }
  0x40   : > { %v561_v39 = vsel %vm445_vm2, %v556_v34, %v560_v35  ;;  %v564_v42 = vor.u32 %v562_v40, %v560_v35  ;;  %v620_v34 = vor.u32 %v618_v31, %v616_v27  ;;  %v624_v35 = vrot.slane %v622_v32, 1 }
  0x41   : > { %v626_v40 = vshrl.u32 %v11755_v28, 16 }
  0x46   : > { %9604 = vmatmul.mubr.msk.bf16.gmra.mrb[16].mxu0 %vm634_vm3, %v489_v44  ;;  %v568_v44 = vrot.slane %v566_v41, 1  ;;  %v628_v41 = vor.u32 %v626_v40, %v624_v35 }
  0x47   : > { %9607 = vmatprep.mubr.msk.bf16.mxu0 %vm11451_vm1, %v15098_v0 }
  0x48   : > { %v569_v46 = vsel %vm445_vm2, %v564_v42, %v568_v44  ;;  %v572_v49 = vor.u32 %v570_v47, %v568_v44  ;;  %v11237_v42 = vld [vmem:[%s15076_s1 + $0x10] sm:$0x1f]  }
  0x49   : > { %v1326_v44 = vsel %vm704_vm0, %v11237_v42, 0 }
  0x4a   : > { %v577_v53 = vsel %vm445_vm2, %v572_v49, %v576_v50 }
  0x4e   : > { %9608 = vmatmul.mubr.msk.bf16.gmra.mrb[20].mxu0 %vm634_vm3, %v497_v54  ;;  %v578_v54 = vshrl.u32 %v11701_v45, 16 }
  0x4f   : > { %9611 = vmatprep.mubr.msk.bf16.mxu0 %vm11451_vm1, %v15098_v0 }
  0x50   : > { %v580_v57 = vor.u32 %v578_v54, %v576_v50 }
  0x52   : > { %v585_v60 = vsel %vm445_vm2, %v580_v57, %v584_v58 }
  0x56   : > { %9612 = vmatmul.mubr.msk.bf16.gmra.mrb[24].mxu0 %vm634_vm3, %v505_v62  ;;  %v590_v62 = vshll.u32 %v11719_v59, 16 }
  0x57   : > { %9615 = vmatprep.mubr.msk.bf16.mxu0 %vm11451_vm1, %v15098_v0 }
  0x5e   : > { %9616 = vmatmul.mubr.msk.bf16.gmra.mrb[28].mxu0 %vm634_vm3, %v513_v1  ;;  %v592_v1 = vrot.slane %v590_v62, 1 }
  0x5f   : > { %9619 = vmatprep.mubr.msk.bf16.mxu0 %vm11451_vm1, %v15098_v0 }
  0x66   : > { %9620 = vmatmul.mubr.msk.bf16.gmra.mrb[32].mxu0 %vm634_vm3, %v521_v3  ;;  %v593_v3 = vsel %vm445_vm2, %v588_v63, %v592_v1 }
  0x67   : > { %9623 = vmatprep.mubr.msk.bf16.mxu0 %vm11451_vm1, %v15098_v0 }
  0x6e   : > { %9624 = vmatmul.mubr.msk.bf16.gmra.mrb[36].mxu0 %vm634_vm3, %v529_v9  ;;  %v596_v9 = vor.u32 %v594_v4, %v592_v1 }
  0x6f   : > { %9627 = vmatprep.mubr.msk.bf16.mxu0 %vm11451_vm1, %v15098_v0 }
  0x70   : > { %v601_v13 = vsel %vm445_vm2, %v596_v9, %v600_v11 }
  0x76   : > { %9628 = vmatmul.mubr.msk.bf16.gmra.mrb[40].mxu0 %vm634_vm3, %v537_v16  ;;  %v606_v16 = vshll.u32 %v11737_v12, 16 }
  0x77   : > { %9631 = vmatprep.mubr.msk.bf16.mxu0 %vm11451_vm1, %v15098_v0 }
  0x78   : > { %v608_v18 = vrot.slane %v606_v16, 1 }
  0x7a   : > { %v609_v21 = vsel %vm445_vm2, %v604_v17, %v608_v18 }
  0x7e   : > { %9632 = vmatmul.mubr.msk.bf16.gmra.mrb[44].mxu0 %vm634_vm3, %v545_v23  ;;  %v610_v23 = vshrl.u32 %v11737_v12, 16 }
  0x7f   : > { %9635 = vmatprep.mubr.msk.bf16.mxu0 %vm11451_vm1, %v15098_v0 }
  0x80   : > { %v612_v26 = vor.u32 %v610_v23, %v608_v18 }
  0x86   : > { %9636 = vmatmul.mubr.msk.bf16.gmra.mrb[48].mxu0 %vm634_vm3, %v553_v30  ;;  %v617_v30 = vsel %vm445_vm2, %v612_v26, %v616_v27 }
  0x87   : > { %9639 = vmatprep.mubr.msk.bf16.mxu0 %vm11451_vm1, %v15098_v0 }
  0x8e   : > { %9640 = vmatmul.mubr.msk.bf16.gmra.mrb[52].mxu0 %vm634_vm3, %v561_v39  ;;  %v625_v39 = vsel %vm445_vm2, %v620_v34, %v624_v35 }
  0x8f   : > { %9643 = vmatprep.mubr.msk.bf16.mxu0 %vm11451_vm1, %v15098_v0 }
  0x96   : > { %9644 = vmatmul.mubr.msk.bf16.gmra.mrb[56].mxu0 %vm634_vm3, %v569_v46 }
  0x97   : > { %9647 = vmatprep.mubr.msk.bf16.mxu0 %vm11451_vm1, %v15098_v0 }
  0x9e   : > { %9648 = vmatmul.mubr.msk.bf16.gmra.mrb[60].mxu0 %vm634_vm3, %v577_v53 }
  0x9f   : > { %9651 = vmatprep.mubr.msk.bf16.mxu0 %vm11451_vm1, %v15098_v0 }
  0xa6   : > { %9652 = vmatmul.mubr.msk.bf16.gmra.mrb[64].mxu0 %vm634_vm3, %v585_v60 }
  0xa7   : > { %9655 = vmatprep.mubr.msk.bf16.mxu0 %vm11451_vm1, %v15098_v0 }
  0xae   : > { %9656 = vmatmul.mubr.msk.bf16.gmra.mrb[68].mxu0 %vm634_vm3, %v593_v3 }
  0xaf   : > { %9659 = vmatprep.mubr.msk.bf16.mxu0 %vm11451_vm1, %v15098_v0 }
  0xb6   : > { %9660 = vmatmul.mubr.msk.bf16.gmra.mrb[72].mxu0 %vm634_vm3, %v601_v13 }
  0xb7   : > { %9663 = vmatprep.mubr.msk.bf16.mxu0 %vm11451_vm1, %v15098_v0 }
  0xbe   : > { %9664 = vmatmul.mubr.msk.bf16.gmra.mrb[76].mxu0 %vm634_vm3, %v609_v21 }
  0xbf   : > { %9667 = vmatprep.mubr.msk.bf16.mxu0 %vm11451_vm1, %v15098_v0 }
  0xc6   : > { %9668 = vmatmul.mubr.msk.bf16.gmra.mrb[80].mxu0 %vm634_vm3, %v617_v30 }
  0xc7   : > { %9671 = vmatprep.mubr.msk.bf16.mxu0 %vm11451_vm1, %v15098_v0 }
  0xce   : > { %9672 = vmatmul.mubr.msk.bf16.gmra.mrb[84].mxu0 %vm634_vm3, %v625_v39 }
  0xcf   : > { %9675 = vmatprep.mubr.msk.bf16.mxu0 %vm11451_vm1, %v15098_v0 }
  0xd6   : > { %9676 = vmatmul.mubr.msk.bf16.gmra.mrb[88].mxu0 %vm634_vm3, %v628_v41 }
  0xd7   : > { %9681 = vmatprep.mubr.msk.bf16.mxu0 %vm11451_vm1, %v15098_v0 }
  0xde   : > { %9682 = vmatmul.mubr.msk.bf16.vlgmr.msra.gmra.mrb[92].mxu0 %vm634_vm3, %v11561_v5 }
  0xdf   : > { %9685 = vmatprep.mubr.msk.bf16.mxu0 %vm11451_vm1, %v15098_v0  ;;  %9774 = vmatpush3.bf16.msra.mxu0 %v1326_v44  ;;  %v11240_v44 = vld [vmem:[%s15076_s1 + $0x18] sm:$0x1f]  }
  0xe0   : > { %9867 = vmatprep.subr.bf16.mxu0 %v15098_v0 }
  0xe6   : > { %9686 = vmatmul.mubr.msk.bf16.gmra.mrb[96].mxu0 %vm634_vm3, %v11564_v6 }
  0xe7   : > { %9689 = vmatprep.mubr.msk.bf16.mxu0 %vm11451_vm1, %v15098_v0 }
  0xee   : > { %9690 = vmatmul.mubr.msk.bf16.gmra.mrb[100].mxu0 %vm634_vm3, %v11570_v10 }
  0xef   : > { %9693 = vmatprep.mubr.msk.bf16.mxu0 %vm11451_vm1, %v15098_v0 }
  0xf6   : > { %9694 = vmatmul.mubr.msk.bf16.gmra.mrb[104].mxu0 %vm634_vm3, %v11579_v19 }
  0xf7   : > { %9697 = vmatprep.mubr.msk.bf16.mxu0 %vm11451_vm1, %v15098_v0 }
  0xf9   : > { %v11792_v5 = vpop.f32.mrb[0].mxu0 }
  0xfa   : > { %v9589_v46 = vpop.f32.mrb[1].mxu0 }
  0xfb   : > { %v11794_v47 = vpop.f32.mrb[2].mxu0 }
  0xfc   : > { %v9590_v6 = vpop.f32.mrb[3].mxu0 }
  0xfd   : > { %v11888_v6 = vld [vmem:[%s11557_s19 + $0x48] sm:$0xff]  }
  0xfe   : > { %9698 = vmatmul.mubr.msk.bf16.gmra.mrb[108].mxu0 %vm634_vm3, %v11588_v25  ;;  %15128 = vst [vmem:[#allocation8_spill] sm:$0xff] %v11888_v6 }
  0xff   : > { %9701 = vmatprep.mubr.msk.bf16.mxu0 %vm11451_vm1, %v15098_v0 }
 0x101   : > { %v11800_v10 = vpop.f32.mrb[4].mxu0 }
 0x102   : > { %v9593_v48 = vpop.f32.mrb[5].mxu0 }
 0x103   : > { %v11802_v49 = vpop.f32.mrb[6].mxu0  ;;  %v11891_v48 = vld [vmem:[%s11557_s19 + $0x50] sm:$0xff]  }
 0x104   : > { %v9594_v19 = vpop.f32.mrb[7].mxu0  ;;  %15129 = vst [vmem:[#allocation9_spill] sm:$0xff] %v11891_v48 }
 0x106   : > { %9702 = vmatmul.mubr.msk.bf16.gmra.mrb[112].mxu0 %vm634_vm3, %v11602_v33 }
 0x107   : > { %9705 = vmatprep.mubr.msk.bf16.mxu0 %vm11451_vm1, %v15098_v0 }
 0x109   : > { %v11808_v50 = vpop.f32.mrb[8].mxu0 }
 0x10a   : > { %v9597_v53 = vpop.f32.mrb[9].mxu0 }
 0x10b   : > { %v11810_v54 = vpop.f32.mrb[10].mxu0  ;;  %v11894_v53 = vsel %vm704_vm0, %v11240_v44, 0 }
 0x10c   : > { %v9598_v25 = vpop.f32.mrb[11].mxu0  ;;  %10840 = vmatpush3.bf16.msra.mxu1 %v11894_v53 }
 0x10d   : > { %v15083_v25 = vrot.slane %v11888_v6, 2  ;;  %10055 = vmatprep.subr.bf16.mxu1 %v15098_v0 }
 0x10e   : > { %9706 = vmatmul.mubr.msk.bf16.gmra.mrb[116].mxu0 %vm634_vm3, %v11608_v37 }
 0x10f   : > { %9709 = vmatprep.mubr.msk.bf16.mxu0 %vm11451_vm1, %v15098_v0 }
 0x111   : > { %v11816_v55 = vpop.f32.mrb[12].mxu0 }
 0x112   : > { %v9601_v57 = vpop.f32.mrb[13].mxu0 }
 0x113   : > { %v11818_v58 = vpop.f32.mrb[14].mxu0  ;;  %v1771_v57 = vrot.slane %v11891_v48, 2  ;;  %v11314_v48 = vld [vmem:[%s11557_s19 + $0x4] sm:$0xf] }
 0x114   : > { %v9602_v60 = vpop.f32.mrb[15].mxu0 }
 0x115   : > { %v1772_v60 = vsel %vm1753_vm4, %v15083_v25, %v1771_v57 }
 0x116   : > { %9710 = vmatmul.mubr.msk.bf16.gmra.mrb[120].mxu0 %vm634_vm3, %v11611_v38  ;;  %9902 = vmatmul.mubr.msk.bf16.vlgmr.msra.gmra.mrb[0].mxu1 %vm634_vm3, %v1772_v60 }
 0x117   : > { %9713 = vmatprep.mubr.msk.bf16.mxu0 %vm11451_vm1, %v15098_v0  ;;  %9905 = vmatprep.mubr.msk.bf16.mxu1 %vm11451_vm1, %v15098_v0 }
 0x119   : > { %v11824_v61 = vpop.f32.mrb[16].mxu0 }
 0x11a   : > { %v9605_v62 = vpop.f32.mrb[17].mxu0 }
 0x11b   : > { %v11826_v63 = vpop.f32.mrb[18].mxu0 }
 0x11c   : > { %v9606_v1 = vpop.f32.mrb[19].mxu0 }
 0x11e   : > { %9714 = vmatmul.mubr.msk.bf16.gmra.mrb[124].mxu0 %vm634_vm3, %v11619_v43 }
 0x11f   : > { %9717 = vmatprep.mubr.msk.bf16.mxu0 %vm11451_vm1, %v15098_v0 }
 0x121   : > { %v11832_v3 = vpop.f32.mrb[20].mxu0 }
 0x122   : > { %v9609_v4 = vpop.f32.mrb[21].mxu0 }
 0x123   : > { %v11834_v7 = vpop.f32.mrb[22].mxu0 }
 0x124   : > { %v9610_v38 = vpop.f32.mrb[23].mxu0 }
 0x125   : > { %v11915_v38 = vld [vmem:[%s11557_s19 + $0x58] sm:$0xff]  }
 0x126   : > { %9718 = vmatmul.mubr.msk.bf16.gmra.mrb[128].mxu0 %vm634_vm3, %v11630_v51  ;;  %15130 = vst [vmem:[#allocation10_spill] sm:$0xff] %v11915_v38 }
 0x127   : > { %9721 = vmatprep.mubr.msk.bf16.mxu0 %vm11451_vm1, %v15098_v0 }
 0x129   : > { %v11840_v9 = vpop.f32.mrb[24].mxu0 }
 0x12a   : > { %v9613_v11 = vpop.f32.mrb[25].mxu0 }
 0x12b   : > { %v11842_v13 = vpop.f32.mrb[26].mxu0 }
 0x12c   : > { %v9614_v43 = vpop.f32.mrb[27].mxu0 }
 0x12d   : > { %v1773_v43 = vrot.slane %v11915_v38, 2  ;;  %v11238_v38 = vld [vmem:[%s11557_s19 + $0xb0] ss:$0 sps:$4 sm:$0x77]  }
 0x12e   : > { %9722 = vmatmul.mubr.msk.bf16.gmra.mrb[132].mxu0 %vm634_vm3, %v11636_v56 }
 0x12f   : > { %9725 = vmatprep.mubr.msk.bf16.mxu0 %vm11451_vm1, %v15098_v0 }
 0x131   : > { %v11848_v14 = vpop.f32.mrb[28].mxu0 }
 0x132   : > { %v9617_v16 = vpop.f32.mrb[29].mxu0 }
 0x133   : > { %v11850_v17 = vpop.f32.mrb[30].mxu0  ;;  %v1774_v16 = vsel %vm1753_vm4, %v1771_v57, %v1773_v43  ;;  %v11947_v57 = vld [vmem:[%s11557_s19 + $0x68] sm:$0xff]  }
 0x134   : > { %v9618_v18 = vpop.f32.mrb[31].mxu0  ;;  %9906 = vmatmul.mubr.msk.bf16.gmra.mrb[4].mxu1 %vm634_vm3, %v1774_v16  ;;  %15132 = vst [vmem:[#allocation12_spill] sm:$0xff] %v11947_v57 }
 0x135   : > { %9909 = vmatprep.mubr.msk.bf16.mxu1 %vm11451_vm1, %v15098_v0 }
 0x136   : > { %9726 = vmatmul.mubr.msk.bf16.gmra.mrb[136].mxu0 %vm634_vm3, %v11656_v8 }
 0x137   : > { %9729 = vmatprep.mubr.msk.bf16.mxu0 %vm11451_vm1, %v15098_v0 }
 0x139   : > { %v11856_v21 = vpop.f32.mrb[32].mxu0 }
 0x13a   : > { %v9621_v23 = vpop.f32.mrb[33].mxu0 }
 0x13b   : > { %v11858_v24 = vpop.f32.mrb[34].mxu0 }
 0x13c   : > { %v9622_v26 = vpop.f32.mrb[35].mxu0 }
 0x13e   : > { %9730 = vmatmul.mubr.msk.bf16.gmra.mrb[140].mxu0 %vm634_vm3, %v11665_v15 }
 0x13f   : > { %9733 = vmatprep.mubr.msk.bf16.mxu0 %vm11451_vm1, %v15098_v0 }
 0x141   : > { %v11864_v27 = vpop.f32.mrb[36].mxu0 }
 0x142   : > { %v9625_v30 = vpop.f32.mrb[37].mxu0 }
 0x143   : > { %v11866_v31 = vpop.f32.mrb[38].mxu0  ;;  %v11931_v30 = vld [vmem:[%s11557_s19 + $0x60] sm:$0xff]  }
 0x144   : > { %v9626_v32 = vpop.f32.mrb[39].mxu0  ;;  %15131 = vst [vmem:[#allocation11_spill] sm:$0xff] %v11931_v30 }
 0x146   : > { %9734 = vmatmul.mubr.msk.bf16.gmra.mrb[144].mxu0 %vm634_vm3, %v11674_v22 }
 0x147   : > { %9737 = vmatprep.mubr.msk.bf16.mxu0 %vm11451_vm1, %v15098_v0 }
 0x149   : > { %v11872_v34 = vpop.f32.mrb[40].mxu0 }
 0x14a   : > { %v9629_v35 = vpop.f32.mrb[41].mxu0 }
 0x14b   : > { %v11874_v39 = vpop.f32.mrb[42].mxu0  ;;  %v1775_v35 = vrot.slane %v11931_v30, 2 }
 0x14c   : > { %v9630_v40 = vpop.f32.mrb[43].mxu0 }
 0x14d   : > { %v1776_v40 = vsel %vm1753_vm4, %v1773_v43, %v1775_v35 }
 0x14e   : > { %9738 = vmatmul.mubr.msk.bf16.gmra.mrb[148].mxu0 %vm634_vm3, %v11683_v29  ;;  %9910 = vmatmul.mubr.msk.bf16.gmra.mrb[8].mxu1 %vm634_vm3, %v1776_v40 }
 0x14f   : > { %9741 = vmatprep.mubr.msk.bf16.mxu0 %vm11451_vm1, %v15098_v0  ;;  %9913 = vmatprep.mubr.msk.bf16.mxu1 %vm11451_vm1, %v15098_v0 }
 0x151   : > { %v11880_v41 = vpop.f32.mrb[44].mxu0 }
 0x152   : > { %v9633_v42 = vpop.f32.mrb[45].mxu0 }
 0x153   : > { %v11885_v46 = vpop.f32.mrb[46].mxu0 }
 0x154   : > { %v9634_v19 = vpop.f32.mrb[47].mxu0 }
 0x156   : > { %9742 = vmatmul.mubr.msk.bf16.gmra.mrb[152].mxu0 %vm634_vm3, %v11692_v36 }
 0x157   : > { %9745 = vmatprep.mubr.msk.bf16.mxu0 %vm11451_vm1, %v15098_v0 }
 0x159   : > { %v11908_v62 = vpop.f32.mrb[48].mxu0 }
 0x15a   : > { %v9637_v1 = vpop.f32.mrb[49].mxu0 }
 0x15b   : > { %v11912_v4 = vpop.f32.mrb[50].mxu0  ;;  %v1777_v1 = vrot.slane %v11947_v57, 2 }
 0x15c   : > { %v9638_v11 = vpop.f32.mrb[51].mxu0 }
 0x15d   : > { %v1778_v11 = vsel %vm1753_vm4, %v1775_v35, %v1777_v1 }
 0x15e   : > { %9746 = vmatmul.mubr.msk.bf16.gmra.mrb[156].mxu0 %vm634_vm3, %v11701_v45  ;;  %9914 = vmatmul.mubr.msk.bf16.gmra.mrb[12].mxu1 %vm634_vm3, %v1778_v11 }
 0x15f   : > { %9749 = vmatprep.mubr.msk.bf16.mxu0 %vm11451_vm1, %v15098_v0  ;;  %9917 = vmatprep.mubr.msk.bf16.mxu1 %vm11451_vm1, %v15098_v0 }
 0x161   : > { %v11924_v18 = vpop.f32.mrb[52].mxu0 }
 0x162   : > { %v9641_v23 = vpop.f32.mrb[53].mxu0 }
 0x163   : > { %v11928_v26 = vpop.f32.mrb[54].mxu0 }
 0x164   : > { %v9642_v32 = vpop.f32.mrb[55].mxu0 }
 0x165   : > { %v11963_v32 = vld [vmem:[%s11557_s19 + $0x70] sm:$0xff]  }
 0x166   : > { %9750 = vmatmul.mubr.msk.bf16.gmra.mrb[160].mxu0 %vm634_vm3, %v11710_v52  ;;  %15133 = vst [vmem:[#allocation13_spill] sm:$0xff] %v11963_v32 }
 0x167   : > { %9753 = vmatprep.mubr.msk.bf16.mxu0 %vm11451_vm1, %v15098_v0 }
 0x169   : > { %v11940_v42 = vpop.f32.mrb[56].mxu0 }
 0x16a   : > { %v9645_v44 = vpop.f32.mrb[57].mxu0 }
 0x16b   : > { %v11944_v19 = vpop.f32.mrb[58].mxu0  ;;  %v1779_v44 = vrot.slane %v11963_v32, 2 }
 0x16c   : > { %v9646_v60 = vpop.f32.mrb[59].mxu0 }
 0x16d   : > { %v1780_v35 = vsel %vm1753_vm4, %v1777_v1, %v1779_v44 }
 0x16e   : > { %9754 = vmatmul.mubr.msk.bf16.gmra.mrb[164].mxu0 %vm634_vm3, %v11719_v59  ;;  %9918 = vmatmul.mubr.msk.bf16.gmra.mrb[16].mxu1 %vm634_vm3, %v1780_v35 }
 0x16f   : > { %9757 = vmatprep.mubr.msk.bf16.mxu0 %vm11451_vm1, %v15098_v0  ;;  %9921 = vmatprep.mubr.msk.bf16.mxu1 %vm11451_vm1, %v15098_v0 }
 0x171   : > { %v11956_v43 = vpop.f32.mrb[60].mxu0 }
 0x172   : > { %v9649_v16 = vpop.f32.mrb[61].mxu0 }
 0x173   : > { %v11960_v23 = vpop.f32.mrb[62].mxu0 }
 0x174   : > { %v9650_v40 = vpop.f32.mrb[63].mxu0 }
 0x175   : > { %v11979_v40 = vld [vmem:[%s11557_s19 + $0x78] sm:$0xff]  }
 0x176   : > { %9758 = vmatmul.mubr.msk.bf16.gmra.mrb[168].mxu0 %vm634_vm3, %v11728_v2  ;;  %15134 = vst [vmem:[#allocation14_spill] sm:$0xff] %v11979_v40  ;;  %v1781_v32 = vrot.slane %v11979_v40, 2  ;;  %v11995_v40 = vld [vmem:[%s11557_s19 + $0x80] sm:$0xff]  }
 0x177   : > { %9761 = vmatprep.mubr.msk.bf16.mxu0 %vm11451_vm1, %v15098_v0  ;;  %15137 = vst [vmem:[#allocation17_spill] sm:$0xff] %v11995_v40  ;;  %v1783_v30 = vrot.slane %v11995_v40, 2 }
 0x178   : > { %v1782_v1 = vsel %vm1753_vm4, %v1779_v44, %v1781_v32 }
 0x179   : > { %v11972_v60 = vpop.f32.mrb[64].mxu0  ;;  %9922 = vmatmul.mubr.msk.bf16.gmra.mrb[20].mxu1 %vm634_vm3, %v1782_v1  ;;  %v1784_v44 = vsel %vm1753_vm4, %v1781_v32, %v1783_v30  ;;  %v1198_v1 = vld [vmem:[%s11557_s19] sm:$0xe] }
 0x17a   : > { %v9653_v11 = vpop.f32.mrb[65].mxu0  ;;  %9925 = vmatprep.mubr.msk.bf16.mxu1 %vm11451_vm1, %v15098_v0  ;;  %v8677_v6 = vcombine.low %v1198_v1, %v11314_v48 }
 0x17b   : > { %v11976_v16 = vpop.f32.mrb[66].mxu0 }
 0x17c   : > { %v9654_v25 = vpop.f32.mrb[67].mxu0 }
 0x17e   : > { %9762 = vmatmul.mubr.msk.bf16.gmra.mrb[172].mxu0 %vm634_vm3, %v11737_v12 }
 0x17f   : > { %9765 = vmatprep.mubr.msk.bf16.mxu0 %vm11451_vm1, %v15098_v0 }
 0x181   : > { %v11988_v35 = vpop.f32.mrb[68].mxu0  ;;  %9926 = vmatmul.mubr.msk.bf16.gmra.mrb[24].mxu1 %vm634_vm3, %v1784_v44  ;;  %v1206_v44 = vrot.slane %v8677_v6, 1 }
 0x182   : > { %15135 = vst [vmem:[#allocation15_spill] sm:$0xff] %v11988_v35  ;;  %v9657_v25 = vpop.f32.mrb[69].mxu0  ;;  %9929 = vmatprep.mubr.msk.bf16.mxu1 %vm11451_vm1, %v15098_v0 }
 0x183   : > { %v11992_v11 = vpop.f32.mrb[70].mxu0 }
 0x184   : > { %15136 = vst [vmem:[#allocation16_spill] sm:$0xff] %v11992_v11  ;;  %v9658_v57 = vpop.f32.mrb[71].mxu0  ;;  %v12014_v11 = vld [vmem:[%s11557_s19 + $0x88] sm:$0xff]  }
 0x185   : > { %15139 = vst [vmem:[#allocation19_spill] sm:$0xff] %v12014_v11  ;;  %v1785_v32 = vrot.slane %v12014_v11, 2  ;;  %v12031_v11 = vld [vmem:[%s11557_s19 + $0x90] sm:$0xff]  }
 0x186   : > { %9766 = vmatmul.mubr.msk.bf16.gmra.mrb[176].mxu0 %vm634_vm3, %v11746_v20  ;;  %15142 = vst [vmem:[#allocation22_spill] sm:$0xff] %v12031_v11 }
 0x187   : > { %9769 = vmatprep.mubr.msk.bf16.mxu0 %vm11451_vm1, %v15098_v0  ;;  %v1786_v28 = vsel %vm1753_vm4, %v1783_v30, %v1785_v32 }
 0x189   : > { %v12005_v25 = vpop.f32.mrb[72].mxu0  ;;  %9930 = vmatmul.mubr.msk.bf16.gmra.mrb[28].mxu1 %vm634_vm3, %v1786_v28  ;;  %v11316_v28 = vld [vmem:[%s11557_s19 + $0x10] sm:$0xff]  }
 0x18a   : > { %15138 = vst [vmem:[#allocation18_spill] sm:$0xff] %v12005_v25  ;;  %v9661_v57 = vpop.f32.mrb[73].mxu0  ;;  %v11315_v25 = vld [vmem:[%s11557_s19 + $0x8] sm:$0xff]   ;;  %9933 = vmatprep.mubr.msk.bf16.mxu1 %vm11451_vm1, %v15098_v0  ;;  %v1209_v30 = vrot.slane %v11316_v28, 1  ;;  %v12050_v28 = vld [vmem:[%s11557_s19 + $0x98] sm:$0xff]  }
 0x18b   : > { %v12010_v40 = vpop.f32.mrb[74].mxu0  ;;  %v1207_v57 = vrot.slane %v11315_v25, 1  ;;  %v1787_v25 = vrot.slane %v12031_v11, 2  ;;  %15145 = vst [vmem:[#allocation25_spill] sm:$0xff] %v12050_v28 }
 0x18c   : > { %v9662_v35 = vpop.f32.mrb[75].mxu0 }
 0x18d   : > { %v1210_v11 = vsel %vm1205_vm5, %v1207_v57, %v1209_v30 }
 0x18e   : > { %9770 = vmatmul.mubr.msk.bf16.gmra.mrb[180].mxu0 %vm634_vm3, %v11238_v38  ;;  %v1208_v38 = vsel %vm1205_vm5, %v1206_v44, %v1207_v57 }
 0x18f   : > { %9775 = vmatprep.mubr.msk.bf16.mxu0 %vm11451_vm1, %v15098_v0 }
 0x191   : > { %v12023_v48 = vpop.f32.mrb[76].mxu0 }
 0x192   : > { %15140 = vst [vmem:[#allocation20_spill] sm:$0xff] %v12023_v48  ;;  %v9665_v35 = vpop.f32.mrb[77].mxu0 }
 0x193   : > { %v12027_v1 = vpop.f32.mrb[78].mxu0  ;;  %v1788_v35 = vsel %vm1753_vm4, %v1785_v32, %v1787_v25  ;;  %v1789_v32 = vrot.slane %v12050_v28, 2  ;;  %v12067_v28 = vld [vmem:[%s11557_s19 + $0xa0] sm:$0xff]  }
 0x194   : > { %15141 = vst [vmem:[#allocation21_spill] sm:$0xff] %v12027_v1  ;;  %v9666_v6 = vpop.f32.mrb[79].mxu0  ;;  %9934 = vmatmul.mubr.msk.bf16.gmra.mrb[32].mxu1 %vm634_vm3, %v1788_v35  ;;  %v11317_v35 = vld [vmem:[%s11557_s19 + $0x18] sm:$0xff]   ;;  %15148 = vst [vmem:[#allocation28_spill] sm:$0xff] %v12067_v28 }
 0x195   : > { %9937 = vmatprep.mubr.msk.bf16.mxu1 %vm11451_vm1, %v15098_v0 }
 0x196   : > { %9776 = vmatmul.mubr.msk.bf16.vlgmr.msra.gmra.mrb[184].mxu0 %vm634_vm3, %v1208_v38 }
 0x197   : > { %9779 = vmatprep.mubr.msk.bf16.mxu0 %vm11451_vm1, %v15098_v0  ;;  %9868 = vmatpush3.bf16.msra.mxu0 %v11894_v53 }
 0x198   : > { %9961 = vmatprep.subr.bf16.mxu0 %v15098_v0 }
 0x199   : > { %v12042_v44 = vpop.f32.mrb[80].mxu0 }
 0x19a   : > { %15143 = vst [vmem:[#allocation23_spill] sm:$0xff] %v12042_v44  ;;  %v9669_v38 = vpop.f32.mrb[81].mxu0  ;;  %v1211_v44 = vrot.slane %v11317_v35, 1  ;;  %v1791_v35 = vrot.slane %v12067_v28, 2 }
 0x19b   : > { %v12046_v6 = vpop.f32.mrb[82].mxu0  ;;  %v1790_v38 = vsel %vm1753_vm4, %v1787_v25, %v1789_v32  ;;  %v11318_v25 = vld [vmem:[%s11557_s19 + $0x20] sm:$0xff]  }
 0x19c   : > { %15144 = vst [vmem:[#allocation24_spill] sm:$0xff] %v12046_v6  ;;  %v9670_v53 = vpop.f32.mrb[83].mxu0  ;;  %9938 = vmatmul.mubr.msk.bf16.gmra.mrb[36].mxu1 %vm634_vm3, %v1790_v38  ;;  %v1213_v38 = vrot.slane %v11318_v25, 1 }
 0x19d   : > { %9941 = vmatprep.mubr.msk.bf16.mxu1 %vm11451_vm1, %v15098_v0 }
 0x19e   : > { %9780 = vmatmul.mubr.msk.bf16.gmra.mrb[188].mxu0 %vm634_vm3, %v1210_v11  ;;  %v1212_v11 = vsel %vm1205_vm5, %v1209_v30, %v1211_v44  ;;  %v1214_v28 = vsel %vm1205_vm5, %v1211_v44, %v1213_v38 }
 0x19f   : > { %9783 = vmatprep.mubr.msk.bf16.mxu0 %vm11451_vm1, %v15098_v0 }
 0x1a1   : > { %v12059_v6 = vpop.f32.mrb[84].mxu0 }
 0x1a2   : > { %15146 = vst [vmem:[#allocation26_spill] sm:$0xff] %v12059_v6  ;;  %v9673_v57 = vpop.f32.mrb[85].mxu0  ;;  %v1792_v6 = vsel %vm1753_vm4, %v1789_v32, %v1791_v35 }
 0x1a3   : > { %v12063_v53 = vpop.f32.mrb[86].mxu0 }
 0x1a4   : > { %15147 = vst [vmem:[#allocation27_spill] sm:$0xff] %v12063_v53  ;;  %v9674_v1 = vpop.f32.mrb[87].mxu0  ;;  %9942 = vmatmul.mubr.msk.bf16.gmra.mrb[40].mxu1 %vm634_vm3, %v1792_v6  ;;  %v1215_v6 = vrot.slane %v11602_v33, 1 }
 0x1a5   : > { %9945 = vmatprep.mubr.msk.bf16.mxu1 %vm11451_vm1, %v15098_v0 }
 0x1a6   : > { %9784 = vmatmul.mubr.msk.bf16.gmra.mrb[192].mxu0 %vm634_vm3, %v1212_v11  ;;  %v11254_v11 = vld [vmem:[%s11557_s19 + $0xa8] sm:$0xff]  }
 0x1a7   : > { %9787 = vmatprep.mubr.msk.bf16.mxu0 %vm11451_vm1, %v15098_v0  ;;  %v1793_v48 = vrot.slane %v11254_v11, 2 }
 0x1a9   : > { %v12076_v57 = vpop.f32.mrb[88].mxu0  ;;  %v1794_v32 = vsel %vm1753_vm4, %v1791_v35, %v1793_v48 }
 0x1aa   : > { %v9677_v30 = vpop.f32.mrb[89].mxu0 }
 0x1ab   : > { %v921_v1 = vpop.f32.mrb[90].mxu0 }
 0x1ac   : > { %v9678_v53 = vpop.f32.mrb[91].mxu0  ;;  %9946 = vmatmul.mubr.msk.bf16.gmra.mrb[44].mxu1 %vm634_vm3, %v1794_v32  ;;  %v11255_v1 = vld [vmem:[%s11557_s19 + $0xb0] sm:$0xff]  }
 0x1ad   : > { %9949 = vmatprep.mubr.msk.bf16.mxu1 %vm11451_vm1, %v15098_v0  ;;  %v1795_v11 = vrot.slane %v11255_v1, 2 }
 0x1ae   : > { %9788 = vmatmul.mubr.msk.bf16.gmra.mrb[196].mxu0 %vm634_vm3, %v1214_v28  ;;  %v1216_v28 = vsel %vm1205_vm5, %v1213_v38, %v1215_v6 }
 0x1af   : > { %9791 = vmatprep.mubr.msk.bf16.mxu0 %vm11451_vm1, %v15098_v0  ;;  %v1796_v32 = vsel %vm1753_vm4, %v1793_v48, %v1795_v11 }
 0x1b1   : > { %v1016_v25 = vpop.f32.mrb[92].mxu0 }
 0x1b2   : > { %v12091_v44 = vadd.f32 %v1016_v25, %v11792_v5  ;;  %v9683_v53 = vpop.f32.mrb[93].mxu0  ;;  %v1217_v5 = vrot.slane %v11608_v37, 1 }
 0x1b3   : > { %v1019_v30 = vpop.f32.mrb[94].mxu0  ;;  %v1633_v53 = vld [vmem:[%s11557_s19 + $0xb8] sm:$0xf] }
 0x1b4   : > { %v12096_v33 = vadd.f32 %v1019_v30, %v11794_v47  ;;  %v9684_v35 = vpop.f32.mrb[95].mxu0  ;;  %9950 = vmatmul.mubr.msk.bf16.gmra.mrb[48].mxu1 %vm634_vm3, %v1796_v32  ;;  %v1634_v30 = vld [vmem:[%s11557_s19 + $0xbc] sm:$0x1]  ;;  %v1218_v1 = vsel %vm1205_vm5, %v1215_v6, %v1217_v5 }
 0x1b5   : > { %9953 = vmatprep.mubr.msk.bf16.mxu1 %vm11451_vm1, %v15098_v0  ;;  %v8726_v35 = vcombine.low %v1633_v53, %v1634_v30 }
 0x1b6   : > { %15149 = vst [vmem:[#allocation29_spill] sm:$0xff] %v12096_v33  ;;  %9792 = vmatmul.mubr.msk.bf16.gmra.mrb[200].mxu0 %vm634_vm3, %v1216_v28 }
 0x1b7   : > { %9795 = vmatprep.mubr.msk.bf16.mxu0 %vm11451_vm1, %v15098_v0  ;;  %v1797_v33 = vrot.slane %v8726_v35, 2 }
 0x1b9   : > { %v1024_v25 = vpop.f32.mrb[96].mxu0 }
 0x1ba   : > { %v12107_v47 = vadd.f32 %v1024_v25, %v11800_v10  ;;  %v9687_v38 = vpop.f32.mrb[97].mxu0  ;;  %v11319_v10 = vld [vmem:[%s11557_s19 + $0x38] sm:$0xff]   ;;  %v1798_v25 = vsel %vm1753_vm4, %v1795_v11, %v1797_v33  ;;  %v11320_v11 = vld [vmem:[%s11557_s19 + $0x40] sm:$0xff]  }
 0x1bb   : > { %v1027_v28 = vpop.f32.mrb[98].mxu0  ;;  %v1219_v32 = vrot.slane %v11319_v10, 1  ;;  %v1221_v35 = vrot.slane %v11320_v11, 1  ;;  %v1225_v11 = vrot.slane %v11636_v56, 1 }
 0x1bc   : > { %v12113_v37 = vadd.f32 %v1027_v28, %v11802_v49  ;;  %v9688_v48 = vpop.f32.mrb[99].mxu0  ;;  %9954 = vmatmul.mubr.msk.bf16.gmra.mrb[52].mxu1 %vm634_vm3, %v1798_v25 }
 0x1bd   : > { %9957 = vmatprep.mubr.msk.bf16.mxu1 %vm11451_vm1, %v15098_v0  ;;  %v1220_v30 = vsel %vm1205_vm5, %v1217_v5, %v1219_v32  ;;  %v1222_v10 = vsel %vm1205_vm5, %v1219_v32, %v1221_v35 }
 0x1be   : > { %9796 = vmatmul.mubr.msk.bf16.gmra.mrb[204].mxu0 %vm634_vm3, %v1218_v1 }
 0x1bf   : > { %9799 = vmatprep.mubr.msk.bf16.mxu0 %vm11451_vm1, %v15098_v0 }
 0x1c1   : > { %v1032_v38 = vpop.f32.mrb[100].mxu0 }
 0x1c2   : > { %v12124_v49 = vadd.f32 %v1032_v38, %v11808_v50  ;;  %v9691_v6 = vpop.f32.mrb[101].mxu0 }
 0x1c3   : > { %v1035_v53 = vpop.f32.mrb[102].mxu0 }
 0x1c4   : > { %v12128_v28 = vadd.f32 %v1035_v53, %v11810_v54  ;;  %v9692_v1 = vpop.f32.mrb[103].mxu0  ;;  %9958 = vmatmul.mubr.msk.bf16.gmra.mrb[56].mxu1 %vm634_vm3, %v1797_v33  ;;  %v1223_v33 = vrot.slane %v11630_v51, 1 }
 0x1c5   : > { %10057 = vmatprep.mubr.msk.bf16.mxu1 %vm11451_vm1, %v15098_v0 }
 0x1c6   : > { %9800 = vmatmul.mubr.msk.bf16.gmra.mrb[208].mxu0 %vm634_vm3, %v1220_v30  ;;  %v1224_v1 = vsel %vm1205_vm5, %v1221_v35, %v1223_v33 }
 0x1c7   : > { %9803 = vmatprep.mubr.msk.bf16.mxu0 %vm11451_vm1, %v15098_v0 }
 0x1c9   : > { %v1040_v48 = vpop.f32.mrb[104].mxu0 }
 0x1ca   : > { %v12138_v50 = vadd.f32 %v1040_v48, %v11816_v55  ;;  %v9695_v5 = vpop.f32.mrb[105].mxu0 }
 0x1cb   : > { %v1043_v54 = vpop.f32.mrb[106].mxu0 }
 0x1cc   : > { %v12142_v25 = vadd.f32 %v1043_v54, %v11818_v58  ;;  %v9696_v38 = vpop.f32.mrb[107].mxu0  ;;  %v1226_v54 = vsel %vm1205_vm5, %v1223_v33, %v1225_v11 }
 0x1ce   : > { %9804 = vmatmul.mubr.msk.bf16.gmra.mrb[212].mxu0 %vm634_vm3, %v1222_v10  ;;  %v1227_v10 = vrot.slane %v11656_v8, 1 }
 0x1cf   : > { %9807 = vmatprep.mubr.msk.bf16.mxu0 %vm11451_vm1, %v15098_v0 }
 0x1d1   : > { %v1048_v6 = vpop.f32.mrb[108].mxu0 }
 0x1d2   : > { %v12149_v53 = vadd.f32 %v1048_v6, %v11824_v61  ;;  %v9699_v55 = vpop.f32.mrb[109].mxu0 }
 0x1d3   : > { %v1051_v30 = vpop.f32.mrb[110].mxu0  ;;  %v1228_v55 = vsel %vm1205_vm5, %v1225_v11, %v1227_v10 }
 0x1d4   : > { %v12153_v32 = vadd.f32 %v1051_v30, %v11826_v63  ;;  %v9700_v58 = vpop.f32.mrb[111].mxu0  ;;  %v1229_v30 = vrot.slane %v11665_v15, 1 }
 0x1d6   : > { %9808 = vmatmul.mubr.msk.bf16.gmra.mrb[216].mxu0 %vm634_vm3, %v1224_v1 }
 0x1d7   : > { %9811 = vmatprep.mubr.msk.bf16.mxu0 %vm11451_vm1, %v15098_v0 }
 0x1d9   : > { %v1056_v51 = vpop.f32.mrb[112].mxu0 }
 0x1da   : > { %v12160_v48 = vadd.f32 %v1056_v51, %v11832_v3  ;;  %v9703_v61 = vpop.f32.mrb[113].mxu0  ;;  %v1230_v51 = vsel %vm1205_vm5, %v1227_v10, %v1229_v30 }
 0x1db   : > { %v1059_v5 = vpop.f32.mrb[114].mxu0  ;;  %v1231_v61 = vrot.slane %v11674_v22, 1 }
 0x1dc   : > { %v12164_v35 = vadd.f32 %v1059_v5, %v11834_v7  ;;  %v9704_v63 = vpop.f32.mrb[115].mxu0 }
 0x1dd   : > { %v1232_v63 = vsel %vm1205_vm5, %v1229_v30, %v1231_v61 }
 0x1de   : > { %9812 = vmatmul.mubr.msk.bf16.gmra.mrb[220].mxu0 %vm634_vm3, %v1226_v54 }
 0x1df   : > { %9815 = vmatprep.mubr.msk.bf16.mxu0 %vm11451_vm1, %v15098_v0 }
 0x1e1   : > { %v1064_v56 = vpop.f32.mrb[116].mxu0 }
 0x1e2   : > { %v12171_v38 = vadd.f32 %v1064_v56, %v11840_v9  ;;  %v9707_v3 = vpop.f32.mrb[117].mxu0  ;;  %v1233_v56 = vrot.slane %v11683_v29, 1  ;;  %v1235_v29 = vrot.slane %v11692_v36, 1  ;;  %v1237_v36 = vrot.slane %v11701_v45, 1 }
 0x1e3   : > { %v1067_v6 = vpop.f32.mrb[118].mxu0 }
 0x1e4   : > { %v12175_v33 = vadd.f32 %v1067_v6, %v11842_v13  ;;  %v9708_v7 = vpop.f32.mrb[119].mxu0 }
 0x1e6   : > { %9816 = vmatmul.mubr.msk.bf16.gmra.mrb[224].mxu0 %vm634_vm3, %v1228_v55  ;;  %v1234_v55 = vsel %vm1205_vm5, %v1231_v61, %v1233_v56  ;;  %v12226_v61 = vld [vmem:[%s11557_s19 + $0xc] sm:$0xf] }
 0x1e7   : > { %9819 = vmatprep.mubr.msk.bf16.mxu0 %vm11451_vm1, %v15098_v0 }
 0x1e9   : > { %v1072_v8 = vpop.f32.mrb[120].mxu0 }
 0x1ea   : > { %v12182_v1 = vadd.f32 %v1072_v8, %v11848_v14  ;;  %v9711_v9 = vpop.f32.mrb[121].mxu0 }
 0x1eb   : > { %v1075_v58 = vpop.f32.mrb[122].mxu0 }
 0x1ec   : > { %v12186_v11 = vadd.f32 %v1075_v58, %v11850_v17  ;;  %v9712_v13 = vpop.f32.mrb[123].mxu0 }
 0x1ee   : > { %9820 = vmatmul.mubr.msk.bf16.gmra.mrb[228].mxu0 %vm634_vm3, %v1230_v51 }
 0x1ef   : > { %9823 = vmatprep.mubr.msk.bf16.mxu0 %vm11451_vm1, %v15098_v0 }
 0x1f1   : > { %v1080_v15 = vpop.f32.mrb[124].mxu0 }
 0x1f2   : > { %v12193_v5 = vadd.f32 %v1080_v15, %v11856_v21  ;;  %v9715_v14 = vpop.f32.mrb[125].mxu0 }
 0x1f3   : > { %v1083_v54 = vpop.f32.mrb[126].mxu0  ;;  %v2689_v14 = vld [vmem:[%s11557_s19 + $0x8] sm:$0x8] }
 0x1f4   : > { %v12197_v10 = vadd.f32 %v1083_v54, %v11858_v24  ;;  %v9716_v17 = vpop.f32.mrb[127].mxu0 }
 0x1f5   : > { %v12237_v17 = vld [vmem:[%s11557_s19 + $0x10] sm:$0xff]  }
 0x1f6   : > { %9824 = vmatmul.mubr.msk.bf16.gmra.mrb[232].mxu0 %vm634_vm3, %v1232_v63  ;;  %v1238_v63 = vsel %vm1205_vm5, %v1235_v29, %v1237_v36 }
 0x1f7   : > { %9827 = vmatprep.mubr.msk.bf16.mxu0 %vm11451_vm1, %v15098_v0 }
 0x1f9   : > { %v1088_v22 = vpop.f32.mrb[128].mxu0 }
 0x1fa   : > { %v12204_v3 = vadd.f32 %v1088_v22, %v11864_v27  ;;  %v9719_v21 = vpop.f32.mrb[129].mxu0 }
 0x1fb   : > { %v1091_v6 = vpop.f32.mrb[130].mxu0 }
 0x1fc   : > { %v12208_v7 = vadd.f32 %v1091_v6, %v11866_v31  ;;  %v9720_v24 = vpop.f32.mrb[131].mxu0  ;;  %v1236_v31 = vsel %vm1205_vm5, %v1233_v56, %v1235_v29  ;;  %v8780_v56 = vcombine.low %v2689_v14, %v12226_v61  ;;  %v2698_v6 = vrot.slane %v12237_v17, 3 }
 0x1fe   : > { %9828 = vmatmul.mubr.msk.bf16.gmra.mrb[236].mxu0 %vm634_vm3, %v1234_v55  ;;  %v2697_v21 = vrot.slane %v8780_v56, 3  ;;  %v1239_v55 = vrot.slane %v11710_v52, 1 }
 0x1ff   : > { %9831 = vmatprep.mubr.msk.bf16.mxu0 %vm11451_vm1, %v15098_v0 }
 0x201   : > { %v1096_v30 = vpop.f32.mrb[132].mxu0 }
 0x202   : > { %v12215_v27 = vadd.f32 %v1096_v30, %v11872_v34  ;;  %v9723_v8 = vpop.f32.mrb[133].mxu0 }
 0x203   : > { %v1099_v9 = vpop.f32.mrb[134].mxu0 }
 0x204   : > { %v12219_v58 = vadd.f32 %v1099_v9, %v11874_v39  ;;  %v9724_v51 = vpop.f32.mrb[135].mxu0  ;;  %v11266_v39 = vld [vmem:[%s15076_s1 + $0x28] sm:$0x1f]   ;;  %v1240_v9 = vsel %vm1205_vm5, %v1237_v36, %v1239_v55 }
 0x206   : > { %9832 = vmatmul.mubr.msk.bf16.gmra.mrb[240].mxu0 %vm634_vm3, %v1236_v31  ;;  %v12259_v31 = vld [vmem:[%s11557_s19 + $0x18] sm:$0xff]  }
 0x207   : > { %9835 = vmatprep.mubr.msk.bf16.mxu0 %vm11451_vm1, %v15098_v0 }
 0x209   : > { %v1104_v13 = vpop.f32.mrb[136].mxu0 }
 0x20a   : > { %v12229_v34 = vadd.f32 %v1104_v13, %v11880_v41  ;;  %v9727_v15 = vpop.f32.mrb[137].mxu0  ;;  %v2817_v41 = vsel %vm704_vm0, %v11266_v39, 0  ;;  %v2700_v13 = vrot.slane %v12259_v31, 3 }
 0x20b   : > { %v1107_v54 = vpop.f32.mrb[138].mxu0  ;;  %10056 = vmatpush3.bf16.msra.mxu1 %v2817_v41  ;;  %v1243_v41 = vrot.slane %v11728_v2, 1  ;;  %v12297_v2 = vld [vmem:[%s11557_s19 + $0x28] sm:$0xff]  }
 0x20c   : > { %v12241_v45 = vadd.f32 %v1107_v54, %v11885_v46  ;;  %v9728_v22 = vpop.f32.mrb[139].mxu0  ;;  %10243 = vmatprep.subr.bf16.mxu1 %v15098_v0  ;;  %v2699_v46 = vsel %vm704_vm0, %v2697_v21, %v2698_v6  ;;  %v2701_v15 = vsel %vm704_vm0, %v2698_v6, %v2700_v13 }
 0x20e   : > { %9836 = vmatmul.mubr.msk.bf16.gmra.mrb[244].mxu0 %vm634_vm3, %v1238_v63  ;;  %10058 = vmatmul.mubr.msk.bf16.vlgmr.msra.gmra.mrb[60].mxu1 %vm634_vm3, %v2699_v46  ;;  %v12278_v63 = vld [vmem:[%s11557_s19 + $0x20] sm:$0xff]  }
 0x20f   : > { %9839 = vmatprep.mubr.msk.bf16.mxu0 %vm11451_vm1, %v15098_v0  ;;  %10061 = vmatprep.mubr.msk.bf16.mxu1 %vm11451_vm1, %v15098_v0  ;;  %v2702_v22 = vrot.slane %v12278_v63, 3 }
 0x211   : > { %v1112_v24 = vpop.f32.mrb[140].mxu0 }
 0x212   : > { %v12255_v29 = vadd.f32 %v1112_v24, %v11908_v62  ;;  %v9731_v30 = vpop.f32.mrb[141].mxu0  ;;  %v1241_v62 = vrot.slane %v11719_v59, 1 }
 0x213   : > { %v1115_v8 = vpop.f32.mrb[142].mxu0 }
 0x214   : > { %v12262_v52 = vadd.f32 %v1115_v8, %v11912_v4  ;;  %v9732_v51 = vpop.f32.mrb[143].mxu0  ;;  %v1242_v54 = vsel %vm1205_vm5, %v1239_v55, %v1241_v62  ;;  %v1244_v55 = vsel %vm1205_vm5, %v1241_v62, %v1243_v41  ;;  %v2704_v8 = vrot.slane %v12297_v2, 3 }
 0x216   : > { %9840 = vmatmul.mubr.msk.bf16.gmra.mrb[248].mxu0 %vm634_vm3, %v1240_v9  ;;  %10062 = vmatmul.mubr.msk.bf16.gmra.mrb[64].mxu1 %vm634_vm3, %v2701_v15  ;;  %v2705_v9 = vsel %vm704_vm0, %v2702_v22, %v2704_v8 }
 0x217   : > { %9843 = vmatprep.mubr.msk.bf16.mxu0 %vm11451_vm1, %v15098_v0  ;;  %10065 = vmatprep.mubr.msk.bf16.mxu1 %vm11451_vm1, %v15098_v0 }
 0x219   : > { %v1120_v36 = vpop.f32.mrb[144].mxu0 }
 0x21a   : > { %v12274_v4 = vadd.f32 %v1120_v36, %v11924_v18  ;;  %v9735_v39 = vpop.f32.mrb[145].mxu0  ;;  %v2703_v18 = vsel %vm704_vm0, %v2700_v13, %v2702_v22  ;;  %v12316_v36 = vld [vmem:[%s11557_s19 + $0x30] sm:$0xff]  }
 0x21b   : > { %v1123_v14 = vpop.f32.mrb[146].mxu0  ;;  %v12318_v39 = vpop.f32.mrb[0].mxu1  ;;  %v2706_v22 = vrot.slane %v12316_v36, 3 }
 0x21c   : > { %15150 = vst [vmem:[#allocation30_spill] sm:$0xff] %v12274_v4  ;;  %v12281_v59 = vadd.f32 %v1123_v14, %v11928_v26  ;;  %v9736_v56 = vpop.f32.mrb[147].mxu0 }
 0x21e   : > { %15151 = vst [vmem:[#allocation31_spill] sm:$0xff] %v12281_v59  ;;  %9844 = vmatmul.mubr.msk.bf16.gmra.mrb[252].mxu0 %vm634_vm3, %v1242_v54  ;;  %10066 = vmatmul.mubr.msk.bf16.gmra.mrb[68].mxu1 %vm634_vm3, %v2703_v18  ;;  %v9903_v54 = vpop.f32.mrb[1].mxu1  ;;  %v2707_v18 = vsel %vm704_vm0, %v2704_v8, %v2706_v22 }
 0x21f   : > { %9847 = vmatprep.mubr.msk.bf16.mxu0 %vm11451_vm1, %v15098_v0  ;;  %10069 = vmatprep.mubr.msk.bf16.mxu1 %vm11451_vm1, %v15098_v0  ;;  %v12323_v56 = vpop.f32.mrb[2].mxu1  ;;  %v15159_v54 = vld [vmem:[#allocation15_spill] sm:$0xff] }
 0x221   : > { %v1128_v21 = vpop.f32.mrb[148].mxu0 }
 0x222   : > { %v12293_v26 = vadd.f32 %v1128_v21, %v11940_v42  ;;  %v9739_v6 = vpop.f32.mrb[149].mxu0  ;;  %v1245_v42 = vrot.slane %v11737_v12, 1 }
 0x223   : > { %v1131_v46 = vpop.f32.mrb[150].mxu0 }
 0x224   : > { %15152 = vst [vmem:[#allocation32_spill] sm:$0xff] %v12293_v26  ;;  %v12300_v24 = vadd.f32 %v1131_v46, %v11944_v19  ;;  %v9740_v30 = vpop.f32.mrb[151].mxu0  ;;  %v1246_v15 = vsel %vm1205_vm5, %v1243_v41, %v1245_v42  ;;  %v1247_v41 = vrot.slane %v11746_v20, 1  ;;  %v15171_v26 = vld [vmem:[#allocation9_spill] sm:$0xff] }
 0x225   : > { %v12339_v30 = vld [vmem:[%s11557_s19 + $0x38] sm:$0xff]  }
 0x226   : > { %15153 = vst [vmem:[#allocation33_spill] sm:$0xff] %v12300_v24  ;;  %9848 = vmatmul.mubr.msk.bf16.gmra.mrb[0].mxu0 %vm634_vm3, %v1244_v55  ;;  %10070 = vmatmul.mubr.msk.bf16.gmra.mrb[72].mxu1 %vm634_vm3, %v2705_v9  ;;  %v1248_v46 = vsel %vm1205_vm5, %v1245_v42, %v1247_v41 }
 0x227   : > { %9851 = vmatprep.mubr.msk.bf16.mxu0 %vm11451_vm1, %v15098_v0  ;;  %10073 = vmatprep.mubr.msk.bf16.mxu1 %vm11451_vm1, %v15098_v0 }
 0x229   : > { %v1136_v51 = vpop.f32.mrb[152].mxu0 }
 0x22a   : > { %v12312_v19 = vadd.f32 %v1136_v51, %v11956_v43  ;;  %v9743_v13 = vpop.f32.mrb[153].mxu0  ;;  %v9904_v43 = vpop.f32.mrb[3].mxu1 }
 0x22b   : > { %v1139_v62 = vpop.f32.mrb[154].mxu0  ;;  %v12341_v9 = vpop.f32.mrb[4].mxu1 }
 0x22c   : > { %15154 = vst [vmem:[#allocation34_spill] sm:$0xff] %v12312_v19  ;;  %v12321_v12 = vadd.f32 %v1139_v62, %v11960_v23  ;;  %v9744_v14 = vpop.f32.mrb[155].mxu0  ;;  %v9907_v51 = vpop.f32.mrb[5].mxu1  ;;  %v2708_v62 = vrot.slane %v12339_v30, 3 }
 0x22d   : > { %v12346_v13 = vpop.f32.mrb[6].mxu1 }
 0x22e   : > { %15155 = vst [vmem:[#allocation35_spill] sm:$0xff] %v12321_v12  ;;  %9852 = vmatmul.mubr.msk.bf16.gmra.mrb[4].mxu0 %vm634_vm3, %v1246_v15  ;;  %10074 = vmatmul.mubr.msk.bf16.gmra.mrb[76].mxu1 %vm634_vm3, %v2707_v18  ;;  %v15158_v15 = vld [vmem:[#allocation7_spill] sm:$0xff]  ;;  %v2709_v42 = vsel %vm704_vm0, %v2706_v22, %v2708_v62 }
 0x22f   : > { %9855 = vmatprep.mubr.msk.bf16.mxu0 %vm11451_vm1, %v15098_v0  ;;  %10077 = vmatprep.mubr.msk.bf16.mxu1 %vm11451_vm1, %v15098_v0  ;;  %v1249_v14 = vrot.slane %v15158_v15, 1 }
 0x231   : > { %v1144_v23 = vpop.f32.mrb[156].mxu0 }
 0x232   : > { %v12335_v21 = vadd.f32 %v1144_v23, %v11972_v60  ;;  %v9747_v6 = vpop.f32.mrb[157].mxu0  ;;  %v9908_v60 = vpop.f32.mrb[7].mxu1  ;;  %v12361_v23 = vld [vmem:[%s11557_s19 + $0x40] sm:$0xff]  }
 0x233   : > { %v1147_v55 = vpop.f32.mrb[158].mxu0 }
 0x234   : > { %15156 = vst [vmem:[#allocation36_spill] sm:$0xff] %v12335_v21  ;;  %v12344_v20 = vadd.f32 %v1147_v55, %v11976_v16  ;;  %v9748_v8 = vpop.f32.mrb[159].mxu0  ;;  %v1250_v55 = vsel %vm1205_vm5, %v1247_v41, %v1249_v14  ;;  %v1589_v41 = vld [vmem:[%s11557_s19 + $0x8] sm:$0xc] }
 0x235   : > { %v15161_v8 = vld [vmem:[#allocation16_spill] sm:$0xff] }
 0x236   : > { %15157 = vst [vmem:[#allocation37_spill] sm:$0xff] %v12344_v20  ;;  %9856 = vmatmul.mubr.msk.bf16.gmra.mrb[8].mxu0 %vm634_vm3, %v1248_v46  ;;  %10078 = vmatmul.mubr.msk.bf16.gmra.mrb[80].mxu1 %vm634_vm3, %v2709_v42  ;;  %v12364_v46 = vpop.f32.mrb[8].mxu1  ;;  %v2710_v42 = vrot.slane %v12361_v23, 3  ;;  %v15166_v20 = vld [vmem:[#allocation8_spill] sm:$0xff] }
 0x237   : > { %9859 = vmatprep.mubr.msk.bf16.mxu0 %vm11451_vm1, %v15098_v0  ;;  %10081 = vmatprep.mubr.msk.bf16.mxu1 %vm11451_vm1, %v15098_v0  ;;  %v9911_v60 = vpop.f32.mrb[9].mxu1  ;;  %v2712_v21 = vrot.slane %v15166_v20, 3 }
 0x238   : > { %v12369_v15 = vpop.f32.mrb[10].mxu1 }
 0x239   : > { %v1152_v16 = vpop.f32.mrb[160].mxu0 }
 0x23a   : > { %v12358_v43 = vadd.f32 %v1152_v16, %v15159_v54  ;;  %v9751_v18 = vpop.f32.mrb[161].mxu0  ;;  %v9912_v16 = vpop.f32.mrb[11].mxu1  ;;  %v2711_v54 = vsel %vm704_vm0, %v2708_v62, %v2710_v42 }
 0x23b   : > { %v1155_v6 = vpop.f32.mrb[162].mxu0  ;;  %v12386_v16 = vpop.f32.mrb[12].mxu1 }
 0x23c   : > { %15160 = vst [vmem:[#allocation7_spill] sm:$0xff] %v12358_v43  ;;  %v12367_v22 = vadd.f32 %v1155_v6, %v15161_v8  ;;  %v9752_v51 = vpop.f32.mrb[163].mxu0  ;;  %v15163_v6 = vld [vmem:[#allocation18_spill] sm:$0xff]  ;;  %v9915_v43 = vpop.f32.mrb[13].mxu1 }
 0x23e   : > { %15162 = vst [vmem:[#allocation15_spill] sm:$0xff] %v12367_v22  ;;  %9860 = vmatmul.mubr.msk.bf16.gmra.mrb[12].mxu0 %vm634_vm3, %v1250_v55  ;;  %10082 = vmatmul.mubr.msk.bf16.gmra.mrb[84].mxu1 %vm634_vm3, %v2711_v54  ;;  %v12384_v55 = vcombine.low %v1589_v41, %v12226_v61  ;;  %v12391_v54 = vpop.f32.mrb[14].mxu1  ;;  %v1755_v41 = vrot.slane %v12237_v17, 2 }
 0x23f   : > { %9863 = vmatprep.mubr.msk.bf16.mxu0 %vm11451_vm1, %v15098_v0  ;;  %10085 = vmatprep.mubr.msk.bf16.mxu1 %vm11451_vm1, %v15098_v0 }
 0x240   : > { %v1754_v61 = vrot.slane %v12384_v55, 2 }
 0x241   : > { %v1160_v18 = vpop.f32.mrb[164].mxu0 }
 0x242   : > { %v12381_v8 = vadd.f32 %v1160_v18, %v15163_v6  ;;  %v9755_v51 = vpop.f32.mrb[165].mxu0  ;;  %v9916_v18 = vpop.f32.mrb[15].mxu1  ;;  %v2713_v6 = vsel %vm704_vm0, %v2710_v42, %v2712_v21  ;;  %v15169_v42 = vld [vmem:[#allocation21_spill] sm:$0xff] }
 0x243   : > { %v1163_v60 = vpop.f32.mrb[166].mxu0  ;;  %v1756_v18 = vsel %vm1753_vm4, %v1754_v61, %v1755_v41  ;;  %v1757_v61 = vrot.slane %v12259_v31, 2 }
 0x244   : > { %15164 = vst [vmem:[#allocation16_spill] sm:$0xff] %v12381_v8  ;;  %v12389_v22 = vadd.f32 %v1163_v60, %v12010_v40  ;;  %v9756_v62 = vpop.f32.mrb[167].mxu0  ;;  %v11265_v40 = vld [vmem:[%s15076_s1 + $0x20] sm:$0x1f]  }
 0x245   : > { %v2426_v19 = vsel %vm704_vm0, %v11265_v40, 0 }
 0x246   : > { %15165 = vst [vmem:[#allocation18_spill] sm:$0xff] %v12389_v22  ;;  %9864 = vmatmul.mubr.msk.bf16.gmra.mrb[16].mxu0 %vm634_vm3, %v1249_v14  ;;  %10086 = vmatmul.mubr.msk.bf16.gmra.mrb[88].mxu1 %vm634_vm3, %v2713_v6  ;;  %v15167_v14 = vld [vmem:[#allocation20_spill] sm:$0xff]  ;;  %v12410_v22 = vpop.f32.mrb[16].mxu1 }
 0x247   : > { %9869 = vmatprep.mubr.msk.bf16.mxu0 %vm11451_vm1, %v15098_v0  ;;  %10089 = vmatprep.mubr.msk.bf16.mxu1 %vm11451_vm1, %v15098_v0  ;;  %v9919_v6 = vpop.f32.mrb[17].mxu1  ;;  %v2714_v0 = vrot.slane %v15171_v26, 3  ;;  %v15173_v26 = vld [vmem:[#allocation23_spill] sm:$0xff] }
 0x248   : > { %v12416_v24 = vpop.f32.mrb[18].mxu1 }
 0x249   : > { %v1168_v43 = vpop.f32.mrb[168].mxu0 }
 0x24a   : > { %v12407_v51 = vadd.f32 %v1168_v43, %v15167_v14  ;;  %v9759_v60 = vpop.f32.mrb[169].mxu0  ;;  %v9920_v43 = vpop.f32.mrb[19].mxu1  ;;  %v15172_v14 = vmov 0.0  }
 0x24b   : > { %v1171_v62 = vpop.f32.mrb[170].mxu0  ;;  %v2715_v60 = vsel %vm704_vm0, %v2712_v21, %v2714_v0 }
 0x24c   : > { %15168 = vst [vmem:[#allocation8_spill] sm:$0xff] %v12407_v51  ;;  %v12413_v8 = vadd.f32 %v1171_v62, %v15169_v42  ;;  %v9760_v12 = vpop.f32.mrb[171].mxu0  ;;  %v1758_v42 = vsel %vm1753_vm4, %v1755_v41, %v1757_v61  ;;  %v12432_v6 = vpop.f32.mrb[20].mxu1  ;;  %v15179_v51 = vld [vmem:[#allocation10_spill] sm:$0xff] }
 0x24d   : > { %15175 = vst [vmem:[#allocation9_spill] sm:$0xff] %v12432_v6  ;;  %v2716_v59 = vrot.slane %v15179_v51, 3 }
 0x24e   : > { %15170 = vst [vmem:[#allocation20_spill] sm:$0xff] %v12413_v8  ;;  %9870 = vmatmul.mubr.msk.bf16.vlgmr.msra.gmra.mrb[20].mxu0 %vm634_vm3, %v1756_v18  ;;  %10090 = vmatmul.mubr.msk.bf16.gmra.mrb[92].mxu1 %vm634_vm3, %v2715_v60  ;;  %v9923_v60 = vpop.f32.mrb[21].mxu1 }
 0x24f   : > { %9873 = vmatprep.mubr.msk.bf16.mxu0 %vm11451_vm1, %v15172_v14  ;;  %9962 = vmatpush3.bf16.msra.mxu0 %v2426_v19  ;;  %v15176_v19 = vld [vmem:[#allocation24_spill] sm:$0xff]  ;;  %v12437_v8 = vpop.f32.mrb[22].mxu1  ;;  %v2717_v41 = vsel %vm704_vm0, %v2714_v0, %v2716_v59 }
 0x250   : > { %10149 = vmatprep.subr.bf16.mxu0 %v15172_v14  ;;  %10093 = vmatprep.mubr.msk.bf16.mxu1 %vm11451_vm1, %v15172_v14  ;;  %15178 = vst [vmem:[#allocation24_spill] sm:$0xff] %v12437_v8  ;;  %v9924_v4 = vpop.f32.mrb[23].mxu1 }
 0x251   : > { %v1176_v12 = vpop.f32.mrb[172].mxu0 }
 0x252   : > { %v12429_v40 = vadd.f32 %v1176_v12, %v15173_v26  ;;  %v9763_v62 = vpop.f32.mrb[173].mxu0  ;;  %v1759_v12 = vrot.slane %v12278_v63, 2 }
 0x253   : > { %v1179_v18 = vpop.f32.mrb[174].mxu0  ;;  %v15180_v62 = vld [vmem:[#allocation26_spill] sm:$0xff] }
 0x254   : > { %15174 = vst [vmem:[#allocation21_spill] sm:$0xff] %v12429_v40  ;;  %v12435_v43 = vadd.f32 %v1179_v18, %v15176_v19  ;;  %v9764_v21 = vpop.f32.mrb[175].mxu0  ;;  %v1760_v4 = vsel %vm1753_vm4, %v1757_v61, %v1759_v12 }
 0x255   : > { %v15182_v21 = vld [vmem:[#allocation27_spill] sm:$0xff] }
 0x256   : > { %15177 = vst [vmem:[#allocation23_spill] sm:$0xff] %v12435_v43  ;;  %9874 = vmatmul.mubr.msk.bf16.gmra.mrb[24].mxu0 %vm634_vm3, %v1758_v42  ;;  %10094 = vmatmul.mubr.msk.bf16.gmra.mrb[96].mxu1 %vm634_vm3, %v2717_v41  ;;  %v12452_v42 = vpop.f32.mrb[24].mxu1  ;;  %v15184_v41 = vld [vmem:[#allocation11_spill] sm:$0xff] }
 0x257   : > { %9877 = vmatprep.mubr.msk.bf16.mxu0 %vm11451_vm1, %v15172_v14  ;;  %10097 = vmatprep.mubr.msk.bf16.mxu1 %vm11451_vm1, %v15172_v14  ;;  %v9927_v0 = vpop.f32.mrb[25].mxu1  ;;  %v2718_v8 = vrot.slane %v15184_v41, 3 }
 0x258   : > { %v12457_v40 = vpop.f32.mrb[26].mxu1 }
 0x259   : > { %v1184_v26 = vpop.f32.mrb[176].mxu0  ;;  %v9928_v6 = vpop.f32.mrb[27].mxu1  ;;  %v2719_v61 = vsel %vm704_vm0, %v2716_v59, %v2718_v8  ;;  %v15188_v59 = vld [vmem:[#allocation12_spill] sm:$0xff] }
 0x25a   : > { %v12449_v18 = vadd.f32 %v1184_v26, %v15180_v62  ;;  %v9767_v51 = vpop.f32.mrb[177].mxu0  ;;  %v1761_v26 = vrot.slane %v12297_v2, 2 }
 0x25b   : > { %v1187_v19 = vpop.f32.mrb[178].mxu0 }
 0x25c   : > { %15181 = vst [vmem:[#allocation10_spill] sm:$0xff] %v12449_v18  ;;  %v12455_v60 = vadd.f32 %v1187_v19, %v15182_v21  ;;  %v9768_v43 = vpop.f32.mrb[179].mxu0  ;;  %v1762_v6 = vsel %vm1753_vm4, %v1759_v12, %v1761_v26 }
 0x25e   : > { %15183 = vst [vmem:[#allocation26_spill] sm:$0xff] %v12455_v60  ;;  %9878 = vmatmul.mubr.msk.bf16.gmra.mrb[28].mxu0 %vm634_vm3, %v1760_v4  ;;  %10098 = vmatmul.mubr.msk.bf16.gmra.mrb[100].mxu1 %vm634_vm3, %v2719_v61  ;;  %v12472_v4 = vpop.f32.mrb[28].mxu1  ;;  %v2720_v60 = vrot.slane %v15188_v59, 3  ;;  %v15190_v59 = vld [vmem:[#allocation29_spill] sm:$0xff] }
 0x25f   : > { %9881 = vmatprep.mubr.msk.bf16.mxu0 %vm11451_vm1, %v15172_v14  ;;  %10101 = vmatprep.mubr.msk.bf16.mxu1 %vm11451_vm1, %v15172_v14  ;;  %15186 = vst [vmem:[#allocation11_spill] sm:$0xff] %v12472_v4  ;;  %v9931_v0 = vpop.f32.mrb[29].mxu1 }
 0x260   : > { %v12474_v41 = vpop.f32.mrb[30].mxu1 }
 0x261   : > { %v1192_v62 = vpop.f32.mrb[180].mxu0  ;;  %15187 = vst [vmem:[#allocation38_spill] sm:$0xff] %v12474_v41  ;;  %v9932_v61 = vpop.f32.mrb[31].mxu1 }
 0x262   : > { %v12469_v43 = vadd.f32 %v1192_v62, %v12076_v57  ;;  %v9771_v51 = vpop.f32.mrb[181].mxu0  ;;  %v1763_v57 = vrot.slane %v12316_v36, 2  ;;  %v2721_v62 = vsel %vm704_vm0, %v2718_v8, %v2720_v60 }
 0x263   : > { %v1195_v19 = vpop.f32.mrb[182].mxu0 }
 0x264   : > { %15185 = vst [vmem:[#allocation27_spill] sm:$0xff] %v12469_v43  ;;  %v9772_v21 = vpop.f32.mrb[183].mxu0 }
 0x266   : > { %9882 = vmatmul.mubr.msk.bf16.gmra.mrb[32].mxu0 %vm634_vm3, %v1762_v6  ;;  %10102 = vmatmul.mubr.msk.bf16.gmra.mrb[104].mxu1 %vm634_vm3, %v2721_v62  ;;  %v1764_v6 = vsel %vm1753_vm4, %v1761_v26, %v1763_v57  ;;  %v15192_v62 = vld [vmem:[#allocation13_spill] sm:$0xff] }
 0x267   : > { %9885 = vmatprep.mubr.msk.bf16.mxu0 %vm11451_vm1, %v15172_v14  ;;  %10105 = vmatprep.mubr.msk.bf16.mxu1 %vm11451_vm1, %v15172_v14  ;;  %v12489_v0 = vpop.f32.mrb[32].mxu1  ;;  %v2722_v41 = vrot.slane %v15192_v62, 3 }
 0x268   : > { %v9935_v8 = vpop.f32.mrb[33].mxu1 }
 0x269   : > { %v1362_v12 = vpop.f32.mrb[184].mxu0  ;;  %v12494_v18 = vpop.f32.mrb[34].mxu1  ;;  %v2723_v26 = vsel %vm704_vm0, %v2720_v60, %v2722_v41 }
 0x26a   : > { %v12486_v51 = vadd.f32 %v1362_v12, %v12091_v44  ;;  %v9777_v19 = vpop.f32.mrb[185].mxu0  ;;  %v9936_v4 = vpop.f32.mrb[35].mxu1  ;;  %v1765_v44 = vrot.slane %v12339_v30, 2 }
 0x26b   : > { %v1365_v21 = vpop.f32.mrb[186].mxu0 }
 0x26c   : > { %15189 = vst [vmem:[#allocation12_spill] sm:$0xff] %v12486_v51  ;;  %v12492_v61 = vadd.f32 %v1365_v21, %v15190_v59  ;;  %v9778_v43 = vpop.f32.mrb[187].mxu0  ;;  %v1766_v4 = vsel %vm1753_vm4, %v1763_v57, %v1765_v44 }
 0x26e   : > { %15191 = vst [vmem:[#allocation29_spill] sm:$0xff] %v12492_v61  ;;  %9886 = vmatmul.mubr.msk.bf16.gmra.mrb[36].mxu0 %vm634_vm3, %v1764_v6  ;;  %10106 = vmatmul.mubr.msk.bf16.gmra.mrb[108].mxu1 %vm634_vm3, %v2723_v26  ;;  %v15196_v26 = vld [vmem:[#allocation14_spill] sm:$0xff] }
 0x26f   : > { %9889 = vmatprep.mubr.msk.bf16.mxu0 %vm11451_vm1, %v15172_v14  ;;  %10109 = vmatprep.mubr.msk.bf16.mxu1 %vm11451_vm1, %v15172_v14  ;;  %v12509_v6 = vpop.f32.mrb[36].mxu1  ;;  %v2724_v61 = vrot.slane %v15196_v26, 3 }
 0x270   : > { %v9939_v60 = vpop.f32.mrb[37].mxu1 }
 0x271   : > { %v1370_v12 = vpop.f32.mrb[188].mxu0  ;;  %v12514_v62 = vpop.f32.mrb[38].mxu1  ;;  %v2725_v57 = vsel %vm704_vm0, %v2722_v41, %v2724_v61 }
 0x272   : > { %v12506_v43 = vadd.f32 %v1370_v12, %v12107_v47  ;;  %v9781_v19 = vpop.f32.mrb[189].mxu0  ;;  %15195 = vst [vmem:[#allocation40_spill] sm:$0xff] %v12514_v62  ;;  %v9940_v51 = vpop.f32.mrb[39].mxu1  ;;  %v1767_v47 = vrot.slane %v12361_v23, 2 }
 0x273   : > { %v1373_v21 = vpop.f32.mrb[190].mxu0 }
 0x274   : > { %15193 = vst [vmem:[#allocation13_spill] sm:$0xff] %v12506_v43  ;;  %v12512_v59 = vadd.f32 %v1373_v21, %v12113_v37  ;;  %v9782_v8 = vpop.f32.mrb[191].mxu0  ;;  %v1768_v51 = vsel %vm1753_vm4, %v1765_v44, %v1767_v47  ;;  %v2154_v44 = vshrl.u32 %v12237_v17, 16 }
 0x276   : > { %15194 = vst [vmem:[#allocation39_spill] sm:$0xff] %v12512_v59  ;;  %9890 = vmatmul.mubr.msk.bf16.gmra.mrb[40].mxu0 %vm634_vm3, %v1766_v4  ;;  %10110 = vmatmul.mubr.msk.bf16.gmra.mrb[112].mxu1 %vm634_vm3, %v2725_v57  ;;  %v15201_v57 = vld [vmem:[#allocation17_spill] sm:$0xff] }
 0x277   : > { %9893 = vmatprep.mubr.msk.bf16.mxu0 %vm11451_vm1, %v15172_v14  ;;  %10113 = vmatprep.mubr.msk.bf16.mxu1 %vm11451_vm1, %v15172_v14  ;;  %v12529_v4 = vpop.f32.mrb[40].mxu1  ;;  %v2726_v59 = vrot.slane %v15201_v57, 3 }
 0x278   : > { %15198 = vst [vmem:[#allocation41_spill] sm:$0xff] %v12529_v4  ;;  %v9943_v41 = vpop.f32.mrb[41].mxu1 }
 0x279   : > { %v1378_v37 = vpop.f32.mrb[192].mxu0  ;;  %v12534_v26 = vpop.f32.mrb[42].mxu1 }
 0x27a   : > { %v12526_v12 = vadd.f32 %v1378_v37, %v12124_v49  ;;  %v9785_v19 = vpop.f32.mrb[193].mxu0  ;;  %15200 = vst [vmem:[#allocation43_spill] sm:$0xff] %v12534_v26  ;;  %v2146_v49 = vshrl.u32 %v12384_v55, 16  ;;  %v2149_v37 = vshll.u32 %v12384_v55, 16 }
 0x27b   : > { %v1381_v21 = vpop.f32.mrb[194].mxu0  ;;  %v9944_v19 = vpop.f32.mrb[43].mxu1 }
 0x27c   : > { %15197 = vst [vmem:[#allocation14_spill] sm:$0xff] %v12526_v12  ;;  %v12532_v8 = vadd.f32 %v1381_v21, %v12128_v28  ;;  %v9786_v60 = vpop.f32.mrb[195].mxu0  ;;  %v2157_v28 = vshll.u32 %v12237_v17, 16  ;;  %v2727_v21 = vsel %vm704_vm0, %v2724_v61, %v2726_v59  ;;  %v2148_v41 = vrot.slane %v2146_v49, 2 }
 0x27d   : > { %v2151_v57 = vrot.slane %v2149_v37, 3  ;;  %v15202_v19 = vrot.slane %v15166_v20, 2  ;;  %v2156_v17 = vrot.slane %v2154_v44, 2  ;;  %v2163_v37 = vshrl.u32 %v12259_v31, 16 }
 0x27e   : > { %15199 = vst [vmem:[#allocation42_spill] sm:$0xff] %v12532_v8  ;;  %9894 = vmatmul.mubr.msk.bf16.gmra.mrb[44].mxu0 %vm634_vm3, %v1768_v51  ;;  %10114 = vmatmul.mubr.msk.bf16.gmra.mrb[116].mxu1 %vm634_vm3, %v2727_v21  ;;  %v2159_v43 = vrot.slane %v2157_v28, 3  ;;  %v2166_v44 = vshll.u32 %v12259_v31, 16 }
 0x27f   : > { %9897 = vmatprep.mubr.msk.bf16.mxu0 %vm11451_vm1, %v15172_v14  ;;  %10117 = vmatprep.mubr.msk.bf16.mxu1 %vm11451_vm1, %v15172_v14  ;;  %v1770_v8 = vsel %vm1753_vm4, %v1767_v47, %v15202_v19  ;;  %v12554_v61 = vpop.f32.mrb[44].mxu1  ;;  %v2152_v49 = vor.u32 %v2151_v57, %v2148_v41  ;;  %v2165_v28 = vrot.slane %v2163_v37, 2  ;;  %v2172_v37 = vshrl.u32 %v12278_v63, 16 }
 0x280   : > { %v9947_v4 = vpop.f32.mrb[45].mxu1  ;;  %v2160_v47 = vor.u32 %v2159_v43, %v2156_v17 }
 0x281   : > { %v1386_v60 = vpop.f32.mrb[196].mxu0  ;;  %v12559_v62 = vpop.f32.mrb[46].mxu1 }
 0x282   : > { %v12549_v51 = vadd.f32 %v1386_v60, %v12138_v50  ;;  %v9789_v55 = vpop.f32.mrb[197].mxu0  ;;  %v15203_v50 = vld [vmem:[#allocation19_spill] sm:$0xff]  ;;  %v9948_v20 = vpop.f32.mrb[47].mxu1  ;;  %v2161_v31 = vsel %vm2144_vm6, %v2152_v49, %v2160_v47 }
 0x283   : > { %v1389_v12 = vpop.f32.mrb[198].mxu0  ;;  %v2728_v60 = vrot.slane %v15203_v50, 3  ;;  %v15204_v20 = vld [vmem:[#allocation22_spill] sm:$0xff] }
 0x284   : > { %v12557_v21 = vadd.f32 %v1389_v12, %v12142_v25  ;;  %v9790_v26 = vpop.f32.mrb[199].mxu0  ;;  %v11268_v12 = vld [vmem:[%s15076_s1 + $0x30] sm:$0x1f]  }
 0x285   : > { %v2729_v25 = vsel %vm704_vm0, %v2726_v59, %v2728_v60  ;;  %v2168_v59 = vrot.slane %v2166_v44, 3  ;;  %v3316_v19 = vsel %vm704_vm0, %v11268_v12, 0 }
 0x286   : > { %9898 = vmatmul.mubr.msk.bf16.gmra.mrb[48].mxu0 %vm634_vm3, %v1770_v8  ;;  %10118 = vmatmul.mubr.msk.bf16.gmra.mrb[120].mxu1 %vm634_vm3, %v2729_v25 }
 0x287   : > { %9963 = vmatprep.mubr.msk.bf16.mxu0 %vm11451_vm1, %v15172_v14  ;;  %10121 = vmatprep.mubr.msk.bf16.mxu1 %vm11451_vm1, %v15172_v14  ;;  %v12578_v55 = vpop.f32.mrb[48].mxu1  ;;  %v2169_v49 = vor.u32 %v2168_v59, %v2165_v28  ;;  %v2174_v28 = vrot.slane %v2172_v37, 2  ;;  %v2181_v37 = vshrl.u32 %v12297_v2, 16 }
 0x288   : > { %v9951_v17 = vpop.f32.mrb[49].mxu1 }
 0x289   : > { %v1394_v4 = vpop.f32.mrb[200].mxu0  ;;  %v12584_v50 = vpop.f32.mrb[50].mxu1 }
 0x28a   : > { %v12575_v8 = vadd.f32 %v1394_v4, %v12149_v53  ;;  %v9793_v43 = vpop.f32.mrb[201].mxu0  ;;  %v2730_v53 = vrot.slane %v15204_v20, 3  ;;  %v9952_v25 = vpop.f32.mrb[51].mxu1  ;;  %v15205_v20 = vld [vmem:[#allocation25_spill] sm:$0xff] }
 0x28b   : > { %v1397_v26 = vpop.f32.mrb[202].mxu0  ;;  %v2732_v25 = vrot.slane %v15205_v20, 3  ;;  %v15206_v20 = vld [vmem:[#allocation28_spill] sm:$0xff] }
 0x28c   : > { %v12581_v41 = vadd.f32 %v1397_v26, %v12153_v32  ;;  %v9794_v57 = vpop.f32.mrb[203].mxu0  ;;  %v2175_v32 = vshll.u32 %v12278_v63, 16  ;;  %v2731_v44 = vsel %vm704_vm0, %v2728_v60, %v2730_v53 }
 0x28e   : > { %9964 = vmatmul.mubr.msk.bf16.vlgmr.msra.gmra.mrb[52].mxu0 %vm634_vm3, %v2161_v31  ;;  %10122 = vmatmul.mubr.msk.bf16.gmra.mrb[124].mxu1 %vm634_vm3, %v2731_v44  ;;  %v2170_v31 = vsel %vm2144_vm6, %v2160_v47, %v2169_v49  ;;  %v2177_v63 = vrot.slane %v2175_v32, 3  ;;  %v2184_v32 = vshll.u32 %v12297_v2, 16 }
 0x28f   : > { %9967 = vmatprep.mubr.msk.bf16.mxu0 %vm11451_vm1, %v15172_v14  ;;  %10150 = vmatpush3.bf16.msra.mxu0 %v3316_v19  ;;  %v12601_v59 = vpop.f32.mrb[52].mxu1 }
 0x290   : > { %10337 = vmatprep.subr.bf16.mxu0 %v15172_v14  ;;  %10125 = vmatprep.mubr.msk.bf16.mxu1 %vm11451_vm1, %v15172_v14  ;;  %v9955_v19 = vpop.f32.mrb[53].mxu1  ;;  %v2178_v47 = vor.u32 %v2177_v63, %v2174_v28  ;;  %v2183_v28 = vrot.slane %v2181_v37, 2  ;;  %v2186_v63 = vrot.slane %v2184_v32, 3  ;;  %v2190_v37 = vshrl.u32 %v12316_v36, 16 }
 0x291   : > { %v1402_v12 = vpop.f32.mrb[204].mxu0  ;;  %v12606_v17 = vpop.f32.mrb[54].mxu1  ;;  %v2193_v32 = vshll.u32 %v12316_v36, 16 }
 0x292   : > { %v12598_v4 = vadd.f32 %v1402_v12, %v12160_v48  ;;  %v9797_v43 = vpop.f32.mrb[205].mxu0  ;;  %v9956_v48 = vpop.f32.mrb[55].mxu1 }
 0x293   : > { %v1405_v26 = vpop.f32.mrb[206].mxu0  ;;  %v2734_v48 = vrot.slane %v15206_v20, 3 }
 0x294   : > { %v12604_v60 = vadd.f32 %v1405_v26, %v12164_v35  ;;  %v9798_v57 = vpop.f32.mrb[207].mxu0  ;;  %v2733_v35 = vsel %vm704_vm0, %v2730_v53, %v2732_v25 }
 0x296   : > { %9968 = vmatmul.mubr.msk.bf16.gmra.mrb[56].mxu0 %vm634_vm3, %v2170_v31  ;;  %10126 = vmatmul.mubr.msk.bf16.gmra.mrb[128].mxu1 %vm634_vm3, %v2733_v35  ;;  %v2179_v31 = vsel %vm2144_vm6, %v2169_v49, %v2178_v47  ;;  %v2187_v49 = vor.u32 %v2186_v63, %v2183_v28  ;;  %v2192_v28 = vrot.slane %v2190_v37, 2  ;;  %v2195_v63 = vrot.slane %v2193_v32, 3 }
 0x297   : > { %9971 = vmatprep.mubr.msk.bf16.mxu0 %vm11451_vm1, %v15172_v14  ;;  %10129 = vmatprep.mubr.msk.bf16.mxu1 %vm11451_vm1, %v15172_v14  ;;  %v12622_v57 = vpop.f32.mrb[56].mxu1 }
 0x298   : > { %v9959_v19 = vpop.f32.mrb[57].mxu1 }
 0x299   : > { %v1410_v44 = vpop.f32.mrb[208].mxu0  ;;  %v2089_v35 = vpop.f32.mrb[58].mxu1 }
 0x29a   : > { %v12619_v12 = vadd.f32 %v1410_v44, %v12171_v38  ;;  %v9801_v43 = vpop.f32.mrb[209].mxu0  ;;  %v9960_v38 = vpop.f32.mrb[59].mxu1  ;;  %v2199_v35 = vshrl.u32 %v12339_v30, 16 }
 0x29b   : > { %v1413_v26 = vpop.f32.mrb[210].mxu0 }
 0x29c   : > { %v12625_v2 = vadd.f32 %v1413_v26, %v12175_v33  ;;  %v9802_v53 = vpop.f32.mrb[211].mxu0  ;;  %v2735_v33 = vsel %vm704_vm0, %v2732_v25, %v2734_v48  ;;  %v12645_v25 = vld [vmem:[%s11557_s19 + $0xa8] sm:$0xff]  }
 0x29d   : > { %v2188_v53 = vsel %vm2144_vm6, %v2178_v47, %v2187_v49  ;;  %v2736_v20 = vrot.slane %v12645_v25, 3  ;;  %v2202_v47 = vshll.u32 %v12339_v30, 16 }
 0x29e   : > { %9972 = vmatmul.mubr.msk.bf16.gmra.mrb[60].mxu0 %vm634_vm3, %v2179_v31  ;;  %10130 = vmatmul.mubr.msk.bf16.gmra.mrb[132].mxu1 %vm634_vm3, %v2735_v33 }
 0x29f   : > { %9975 = vmatprep.mubr.msk.bf16.mxu0 %vm11451_vm1, %v15172_v14  ;;  %10133 = vmatprep.mubr.msk.bf16.mxu1 %vm11451_vm1, %v15172_v14  ;;  %v2737_v38 = vsel %vm704_vm0, %v2734_v48, %v2736_v20 }
 0x2a1   : > { %v1418_v44 = vpop.f32.mrb[212].mxu0 }
 0x2a2   : > { %v12638_v43 = vadd.f32 %v1418_v44, %v12182_v1  ;;  %v9805_v26 = vpop.f32.mrb[213].mxu0  ;;  %v2196_v1 = vor.u32 %v2195_v63, %v2192_v28  ;;  %v12664_v28 = vld [vmem:[%s11557_s19 + $0xb0] sm:$0xff]  }
 0x2a3   : > { %v1421_v31 = vpop.f32.mrb[214].mxu0  ;;  %v2201_v26 = vrot.slane %v2199_v35, 2  ;;  %v2738_v63 = vrot.slane %v12664_v28, 3  ;;  %v2137_v35 = vld [vmem:[%s11557_s19 + $0xbc] sm:$0x3] }
 0x2a4   : > { %v12642_v19 = vadd.f32 %v1421_v31, %v12186_v11  ;;  %v9806_v36 = vpop.f32.mrb[215].mxu0  ;;  %v2197_v44 = vsel %vm2144_vm6, %v2187_v49, %v2196_v1  ;;  %v2204_v31 = vrot.slane %v2202_v47, 3 }
 0x2a5   : > { %v2211_v36 = vshll.u32 %v12361_v23, 16 }
 0x2a6   : > { %9976 = vmatmul.mubr.msk.bf16.gmra.mrb[64].mxu0 %vm634_vm3, %v2188_v53  ;;  %10134 = vmatmul.mubr.msk.bf16.gmra.mrb[136].mxu1 %vm634_vm3, %v2737_v38  ;;  %v2205_v49 = vor.u32 %v2204_v31, %v2201_v26 }
 0x2a7   : > { %9979 = vmatprep.mubr.msk.bf16.mxu0 %vm11451_vm1, %v15172_v14  ;;  %10137 = vmatprep.mubr.msk.bf16.mxu1 %vm11451_vm1, %v15172_v14 }
 0x2a9   : > { %v1426_v11 = vpop.f32.mrb[216].mxu0 }
 0x2aa   : > { %v1560_v37 = vadd.f32 %v1426_v11, %v12193_v5  ;;  %v9809_v32 = vpop.f32.mrb[217].mxu0  ;;  %v11323_v11 = vld [vmem:[%s11557_s19 + $0xb8] sm:$0xf] }
 0x2ab   : > { %v1429_v33 = vpop.f32.mrb[218].mxu0 }
 0x2ac   : > { %v1561_v53 = vadd.f32 %v1429_v33, %v12197_v10  ;;  %v9810_v30 = vpop.f32.mrb[219].mxu0  ;;  %v12661_v48 = vadd.f32 %v12318_v39, %v1560_v37  ;;  %v2208_v10 = vshrl.u32 %v12361_v23, 16  ;;  %v2739_v39 = vsel %vm704_vm0, %v2736_v20, %v2738_v63 }
 0x2ad   : > { %v12682_v37 = vcombine.low %v11323_v11, %v2137_v35  ;;  %v2206_v33 = vsel %vm2144_vm6, %v2196_v1, %v2205_v49 }
 0x2ae   : > { %9980 = vmatmul.mubr.msk.bf16.gmra.mrb[68].mxu0 %vm634_vm3, %v2197_v44  ;;  %v12669_v5 = vadd.f32 %v12323_v56, %v1561_v53  ;;  %10138 = vmatmul.mubr.msk.bf16.gmra.mrb[140].mxu1 %vm634_vm3, %v2739_v39  ;;  %v2210_v23 = vrot.slane %v2208_v10, 2  ;;  %v2213_v44 = vrot.slane %v2211_v36, 3 }
 0x2af   : > { %9983 = vmatprep.mubr.msk.bf16.mxu0 %vm11451_vm1, %v15172_v14  ;;  %10141 = vmatprep.mubr.msk.bf16.mxu1 %vm11451_vm1, %v15172_v14  ;;  %v2740_v53 = vrot.slane %v12682_v37, 3 }
 0x2b0   : > { %15207 = vst [vmem:[#allocation17_spill] sm:$0xff] %v12669_v5  ;;  %v2214_v1 = vor.u32 %v2213_v44, %v2210_v23  ;;  %v11325_v23 = vld [vmem:[%s11557_s19 + $0x50] sm:$0xff]  }
 0x2b1   : > { %v1434_v47 = vpop.f32.mrb[220].mxu0  ;;  %v2226_v44 = vshrl.u32 %v11325_v23, 16 }
 0x2b2   : > { %v1562_v56 = vadd.f32 %v1434_v47, %v12204_v3  ;;  %v9813_v38 = vpop.f32.mrb[221].mxu0  ;;  %v11324_v3 = vld [vmem:[%s11557_s19 + $0x48] sm:$0xff]  }
 0x2b3   : > { %v1437_v32 = vpop.f32.mrb[222].mxu0  ;;  %v2217_v30 = vshrl.u32 %v11324_v3, 16  ;;  %v2220_v39 = vshll.u32 %v11324_v3, 16  ;;  %v2215_v38 = vsel %vm2144_vm6, %v2205_v49, %v2214_v1  ;;  %v2229_v49 = vshll.u32 %v11325_v23, 16  ;;  %v12722_v3 = vld [vmem:[%s11557_s19 + $0x1c] sm:$0xff]  }
 0x2b4   : > { %v1563_v20 = vadd.f32 %v1437_v32, %v12208_v7  ;;  %v9814_v26 = vpop.f32.mrb[223].mxu0  ;;  %v12687_v31 = vadd.f32 %v12341_v9, %v1562_v56  ;;  %v2741_v7 = vsel %vm704_vm0, %v2738_v63, %v2740_v53 }
 0x2b5   : > { %v2222_v47 = vrot.slane %v2220_v39, 3 }
 0x2b6   : > { %15208 = vst [vmem:[#allocation19_spill] sm:$0xff] %v12687_v31  ;;  %9984 = vmatmul.mubr.msk.bf16.gmra.mrb[72].mxu0 %vm634_vm3, %v2206_v33  ;;  %v12693_v35 = vadd.f32 %v12346_v13, %v1563_v20  ;;  %10142 = vmatmul.mubr.msk.bf16.gmra.mrb[144].mxu1 %vm634_vm3, %v2741_v7  ;;  %v2219_v13 = vrot.slane %v2217_v30, 2  ;;  %v3080_v20 = vld [vmem:[%s11557_s19 + $0x14] sm:$0xf] }
 0x2b7   : > { %9987 = vmatprep.mubr.msk.bf16.mxu0 %vm11451_vm1, %v15172_v14  ;;  %10145 = vmatprep.mubr.msk.bf16.mxu1 %vm11451_vm1, %v15172_v14 }
 0x2b8   : > { %15209 = vst [vmem:[#allocation22_spill] sm:$0xff] %v12693_v35  ;;  %v2223_v33 = vor.u32 %v2222_v47, %v2219_v13 }
 0x2b9   : > { %v1442_v9 = vpop.f32.mrb[224].mxu0 }
 0x2ba   : > { %v1564_v10 = vadd.f32 %v1442_v9, %v12215_v27  ;;  %v9817_v36 = vpop.f32.mrb[225].mxu0  ;;  %v3081_v27 = vld [vmem:[%s11557_s19 + $0x18] sm:$0xf]  ;;  %v2224_v7 = vsel %vm2144_vm6, %v2214_v1, %v2223_v33  ;;  %v2228_v9 = vrot.slane %v2226_v44, 2 }
 0x2bb   : > { %v1445_v56 = vpop.f32.mrb[226].mxu0  ;;  %v2231_v36 = vrot.slane %v2229_v49, 3  ;;  %v11326_v44 = vld [vmem:[%s11557_s19 + $0x58] sm:$0xff]  }
 0x2bc   : > { %v1565_v11 = vadd.f32 %v1445_v56, %v12219_v58  ;;  %v9818_v63 = vpop.f32.mrb[227].mxu0  ;;  %v12705_v32 = vadd.f32 %v12364_v46, %v1564_v10  ;;  %v12716_v58 = vcombine.low %v3080_v20, %v3081_v27  ;;  %v11269_v10 = vld [vmem:[%s15076_s1 + $0x38] sm:$0x1f]   ;;  %v3592_v56 = vshll.u32 %v12722_v3, 16 }
 0x2bd   : > { %v2235_v20 = vshrl.u32 %v11326_v44, 16  ;;  %v2238_v27 = vshll.u32 %v11326_v44, 16 }
 0x2be   : > { %15210 = vst [vmem:[#allocation25_spill] sm:$0xff] %v12705_v32  ;;  %9988 = vmatmul.mubr.msk.bf16.gmra.mrb[76].mxu0 %vm634_vm3, %v2215_v38  ;;  %v12712_v26 = vadd.f32 %v12369_v15, %v1565_v11  ;;  %10146 = vmatmul.mubr.msk.bf16.gmra.mrb[148].mxu1 %vm634_vm3, %v2740_v53  ;;  %v3588_v30 = vshll.u32 %v12716_v58, 16  ;;  %v3586_v13 = vshrl.u32 %v12716_v58, 16  ;;  %v3594_v23 = vrot.slane %v3592_v56, 1 }
 0x2bf   : > { %9991 = vmatprep.mubr.msk.bf16.mxu0 %vm11451_vm1, %v15172_v14  ;;  %10245 = vmatprep.mubr.msk.bf16.mxu1 %vm11451_vm1, %v15172_v14 }
 0x2c0   : > { %15211 = vst [vmem:[#allocation28_spill] sm:$0xff] %v12712_v26  ;;  %v3590_v47 = vrot.slane %v3588_v30, 1  ;;  %v12749_v30 = vld [vmem:[%s11557_s19 + $0x24] sm:$0xff]  }
 0x2c1   : > { %v1450_v46 = vpop.f32.mrb[228].mxu0 }
 0x2c2   : > { %v1566_v39 = vadd.f32 %v1450_v46, %v12229_v34  ;;  %v9821_v15 = vpop.f32.mrb[229].mxu0  ;;  %v3822_v34 = vsel %vm704_vm0, %v11269_v10, 0  ;;  %v3591_v63 = vor.u32 %v3590_v47, %v3586_v13 }
 0x2c3   : > { %v1453_v53 = vpop.f32.mrb[230].mxu0  ;;  %10244 = vmatpush3.bf16.msra.mxu1 %v3822_v34 }
 0x2c4   : > { %v1567_v38 = vadd.f32 %v1453_v53, %v12241_v45  ;;  %v9822_v11 = vpop.f32.mrb[231].mxu0  ;;  %v12735_v1 = vadd.f32 %v12386_v16, %v1566_v39  ;;  %v2232_v45 = vor.u32 %v2231_v36, %v2228_v9  ;;  %v3595_v46 = vsel %vm445_vm2, %v3591_v63, %v3594_v23 }
 0x2c5   : > { %v3596_v9 = vshrl.u32 %v12722_v3, 16  ;;  %v3599_v36 = vshll.u32 %v12749_v30, 16 }
 0x2c6   : > { %15212 = vst [vmem:[#allocation44_spill] sm:$0xff] %v12735_v1  ;;  %9992 = vmatmul.mubr.msk.bf16.gmra.mrb[80].mxu0 %vm634_vm3, %v2224_v7  ;;  %v12740_v49 = vadd.f32 %v12391_v54, %v1567_v38  ;;  %10246 = vmatmul.mubr.msk.bf16.vlgmr.msra.gmra.mrb[152].mxu1 %vm634_vm3, %v3595_v46  ;;  %v2237_v54 = vrot.slane %v2235_v20, 2  ;;  %v2240_v7 = vrot.slane %v2238_v27, 3  ;;  %v2233_v53 = vsel %vm2144_vm6, %v2223_v33, %v2232_v45  ;;  %v11327_v33 = vld [vmem:[%s11557_s19 + $0x60] sm:$0xff]   ;;  %v15216_v20 = vld [vmem:[#allocation30_spill] sm:$0xff] }
 0x2c7   : > { %9995 = vmatprep.mubr.msk.bf16.mxu0 %vm11451_vm1, %v15172_v14  ;;  %10249 = vmatprep.mubr.msk.bf16.mxu1 %vm11451_vm1, %v15172_v14  ;;  %v3598_v38 = vor.u32 %v3596_v9, %v3594_v23  ;;  %v2244_v63 = vshrl.u32 %v11327_v33, 16  ;;  %v2247_v44 = vshll.u32 %v11327_v33, 16  ;;  %v12771_v23 = vld [vmem:[%s11557_s19 + $0x2c] sm:$0xff]  }
 0x2c8   : > { %15213 = vst [vmem:[#allocation45_spill] sm:$0xff] %v12740_v49  ;;  %v2241_v11 = vor.u32 %v2240_v7, %v2237_v54  ;;  %v3603_v54 = vshrl.u32 %v12749_v30, 16  ;;  %v3606_v7 = vshll.u32 %v12771_v23, 16  ;;  %v11328_v33 = vld [vmem:[%s11557_s19 + $0x68] sm:$0xff]  }
 0x2c9   : > { %v1458_v16 = vpop.f32.mrb[232].mxu0 }
 0x2ca   : > { %v1568_v39 = vadd.f32 %v1458_v16, %v12255_v29  ;;  %v9825_v15 = vpop.f32.mrb[233].mxu0  ;;  %v3601_v29 = vrot.slane %v3599_v36, 1  ;;  %v2242_v46 = vsel %vm2144_vm6, %v2232_v45, %v2241_v11  ;;  %v15218_v36 = vld [vmem:[#allocation9_spill] sm:$0xff]  ;;  %v2253_v45 = vshrl.u32 %v11328_v33, 16 }
 0x2cb   : > { %v1461_v10 = vpop.f32.mrb[234].mxu0  ;;  %v2249_v15 = vrot.slane %v2247_v44, 3 }
 0x2cc   : > { %v1569_v13 = vadd.f32 %v1461_v10, %v12262_v52  ;;  %v9826_v47 = vpop.f32.mrb[235].mxu0  ;;  %v12757_v56 = vadd.f32 %v12410_v22, %v1568_v39  ;;  %v3602_v52 = vsel %vm445_vm2, %v3598_v38, %v3601_v29  ;;  %v2246_v39 = vrot.slane %v2244_v63, 2  ;;  %v15217_v10 = vld [vmem:[#allocation31_spill] sm:$0xff]  ;;  %v15220_v63 = vld [vmem:[#allocation24_spill] sm:$0xff] }
 0x2cd   : > { %v3605_v47 = vor.u32 %v3603_v54, %v3601_v29  ;;  %v3608_v38 = vrot.slane %v3606_v7, 1  ;;  %v12793_v29 = vld [vmem:[%s11557_s19 + $0x34] sm:$0xff]   ;;  %v2255_v54 = vrot.slane %v2253_v45, 2 }
 0x2ce   : > { %15214 = vst [vmem:[#allocation46_spill] sm:$0xff] %v12757_v56  ;;  %9996 = vmatmul.mubr.msk.bf16.gmra.mrb[84].mxu0 %vm634_vm3, %v2233_v53  ;;  %v12761_v34 = vadd.f32 %v12416_v24, %v1569_v13  ;;  %10250 = vmatmul.mubr.msk.bf16.gmra.mrb[156].mxu1 %vm634_vm3, %v3602_v52  ;;  %v2256_v52 = vshll.u32 %v11328_v33, 16 }
 0x2cf   : > { %9999 = vmatprep.mubr.msk.bf16.mxu0 %vm11451_vm1, %v15172_v14  ;;  %10253 = vmatprep.mubr.msk.bf16.mxu1 %vm11451_vm1, %v15172_v14 }
 0x2d0   : > { %15215 = vst [vmem:[#allocation47_spill] sm:$0xff] %v12761_v34  ;;  %v2258_v7 = vrot.slane %v2256_v52, 3 }
 0x2d1   : > { %v1466_v22 = vpop.f32.mrb[236].mxu0 }
 0x2d2   : > { %v1570_v24 = vadd.f32 %v1466_v22, %v15216_v20  ;;  %v9829_v27 = vpop.f32.mrb[237].mxu0  ;;  %v2250_v22 = vor.u32 %v2249_v15, %v2246_v39  ;;  %v3609_v20 = vsel %vm445_vm2, %v3605_v47, %v3608_v38  ;;  %v3610_v39 = vshrl.u32 %v12771_v23, 16 }
 0x2d3   : > { %v1469_v16 = vpop.f32.mrb[238].mxu0  ;;  %v15222_v27 = vld [vmem:[#allocation32_spill] sm:$0xff]  ;;  %v3613_v15 = vshll.u32 %v12793_v29, 16  ;;  %v2259_v45 = vor.u32 %v2258_v7, %v2255_v54  ;;  %v15226_v54 = vld [vmem:[#allocation34_spill] sm:$0xff] }
 0x2d4   : > { %v1571_v53 = vadd.f32 %v1469_v16, %v15217_v10  ;;  %v9830_v9 = vpop.f32.mrb[239].mxu0  ;;  %v12779_v13 = vadd.f32 %v15218_v36, %v1570_v24 }
 0x2d5   : > { %v15223_v9 = vld [vmem:[#allocation33_spill] sm:$0xff]  ;;  %v2260_v7 = vsel %vm2144_vm6, %v2250_v22, %v2259_v45 }
 0x2d6   : > { %15219 = vst [vmem:[#allocation30_spill] sm:$0xff] %v12779_v13  ;;  %10000 = vmatmul.mubr.msk.bf16.gmra.mrb[88].mxu0 %vm634_vm3, %v2242_v46  ;;  %v12784_v44 = vadd.f32 %v15220_v63, %v1571_v53  ;;  %10254 = vmatmul.mubr.msk.bf16.gmra.mrb[160].mxu1 %vm634_vm3, %v3609_v20  ;;  %v2251_v53 = vsel %vm2144_vm6, %v2241_v11, %v2250_v22  ;;  %v3615_v20 = vrot.slane %v3613_v15, 1  ;;  %v11329_v11 = vld [vmem:[%s11557_s19 + $0x70] sm:$0xff]  }
 0x2d7   : > { %10003 = vmatprep.mubr.msk.bf16.mxu0 %vm11451_vm1, %v15172_v14  ;;  %10257 = vmatprep.mubr.msk.bf16.mxu1 %vm11451_vm1, %v15172_v14  ;;  %v3612_v63 = vor.u32 %v3610_v39, %v3608_v38  ;;  %v12815_v38 = vld [vmem:[%s11557_s19 + $0x3c] sm:$0xff]  }
 0x2d8   : > { %15221 = vst [vmem:[#allocation31_spill] sm:$0xff] %v12784_v44 }
 0x2d9   : > { %v1474_v24 = vpop.f32.mrb[240].mxu0 }
 0x2da   : > { %v1572_v46 = vadd.f32 %v1474_v24, %v15222_v27  ;;  %v9833_v16 = vpop.f32.mrb[241].mxu0  ;;  %v2262_v24 = vshrl.u32 %v11329_v11, 16  ;;  %v2265_v27 = vshll.u32 %v11329_v11, 16 }
 0x2db   : > { %v1477_v10 = vpop.f32.mrb[242].mxu0  ;;  %v3616_v16 = vsel %vm445_vm2, %v3612_v63, %v3615_v20 }
 0x2dc   : > { %v1573_v36 = vadd.f32 %v1477_v10, %v15223_v9  ;;  %v9834_v47 = vpop.f32.mrb[243].mxu0  ;;  %v12801_v33 = vadd.f32 %v12452_v42, %v1572_v46  ;;  %v2267_v39 = vrot.slane %v2265_v27, 3  ;;  %v3617_v9 = vshrl.u32 %v12793_v29, 16 }
 0x2dd   : > { %v15227_v47 = vld [vmem:[#allocation11_spill] sm:$0xff] }
 0x2de   : > { %15224 = vst [vmem:[#allocation9_spill] sm:$0xff] %v12801_v33  ;;  %10004 = vmatmul.mubr.msk.bf16.gmra.mrb[92].mxu0 %vm634_vm3, %v2251_v53  ;;  %v12805_v52 = vadd.f32 %v12457_v40, %v1573_v36  ;;  %10258 = vmatmul.mubr.msk.bf16.gmra.mrb[164].mxu1 %vm634_vm3, %v3616_v16  ;;  %v2264_v53 = vrot.slane %v2262_v24, 2  ;;  %v3620_v36 = vshll.u32 %v12815_v38, 16  ;;  %v15229_v16 = vld [vmem:[#allocation35_spill] sm:$0xff]  ;;  %v3619_v22 = vor.u32 %v3617_v9, %v3615_v20  ;;  %v15230_v24 = vld [vmem:[#allocation38_spill] sm:$0xff]  ;;  %v11330_v33 = vld [vmem:[%s11557_s19 + $0x78] sm:$0xff]  }
 0x2df   : > { %10007 = vmatprep.mubr.msk.bf16.mxu0 %vm11451_vm1, %v15172_v14  ;;  %10261 = vmatprep.mubr.msk.bf16.mxu1 %vm11451_vm1, %v15172_v14  ;;  %v2271_v44 = vshrl.u32 %v11330_v33, 16  ;;  %v2274_v13 = vshll.u32 %v11330_v33, 16  ;;  %v12841_v20 = vld [vmem:[%s11557_s19 + $0x44] sm:$0xff]  }
 0x2e0   : > { %15225 = vst [vmem:[#allocation24_spill] sm:$0xff] %v12805_v52 }
 0x2e1   : > { %v1482_v42 = vpop.f32.mrb[244].mxu0  ;;  %v12819_v15 = vpop.f32.mrb[60].mxu1  ;;  %v2276_v33 = vrot.slane %v2274_v13, 3 }
 0x2e2   : > { %v9837_v46 = vpop.f32.mrb[245].mxu0  ;;  %v1574_v40 = vadd.f32 %v1482_v42, %v15226_v54  ;;  %v10059_v52 = vpop.f32.mrb[61].mxu1  ;;  %v3622_v54 = vrot.slane %v3620_v36, 1 }
 0x2e3   : > { %v1485_v10 = vpop.f32.mrb[246].mxu0  ;;  %v12827_v42 = vpop.f32.mrb[62].mxu1 }
 0x2e4   : > { %v12824_v63 = vadd.f32 %v15227_v47, %v1574_v40  ;;  %v9838_v11 = vpop.f32.mrb[247].mxu0  ;;  %v1575_v46 = vadd.f32 %v1485_v10, %v15229_v16  ;;  %v10060_v34 = vpop.f32.mrb[63].mxu1  ;;  %v2268_v40 = vor.u32 %v2267_v39, %v2264_v53  ;;  %v3623_v52 = vsel %vm445_vm2, %v3619_v22, %v3622_v54 }
 0x2e5   : > { %v2273_v47 = vrot.slane %v2271_v44, 2  ;;  %v3624_v39 = vshrl.u32 %v12815_v38, 16  ;;  %v3627_v16 = vshll.u32 %v12841_v20, 16 }
 0x2e6   : > { %15228 = vst [vmem:[#allocation32_spill] sm:$0xff] %v12824_v63  ;;  %v12830_v27 = vadd.f32 %v15230_v24, %v1575_v46  ;;  %10008 = vmatmul.mubr.msk.bf16.gmra.mrb[96].mxu0 %vm634_vm3, %v2260_v7  ;;  %10262 = vmatmul.mubr.msk.bf16.gmra.mrb[168].mxu1 %vm634_vm3, %v3623_v52  ;;  %v15232_v7 = vld [vmem:[#allocation36_spill] sm:$0xff]  ;;  %v2269_v11 = vsel %vm2144_vm6, %v2259_v45, %v2268_v40  ;;  %v15234_v24 = vld [vmem:[#allocation37_spill] sm:$0xff]  ;;  %v11332_v63 = vld [vmem:[%s11557_s19 + $0x88] sm:$0xff]  }
 0x2e7   : > { %10011 = vmatprep.mubr.msk.bf16.mxu0 %vm11451_vm1, %v15172_v14  ;;  %10265 = vmatprep.mubr.msk.bf16.mxu1 %vm11451_vm1, %v15172_v14  ;;  %v3626_v13 = vor.u32 %v3624_v39, %v3622_v54  ;;  %v2289_v56 = vshrl.u32 %v11332_v63, 16  ;;  %v2292_v49 = vshll.u32 %v11332_v63, 16 }
 0x2e8   : > { %15231 = vst [vmem:[#allocation33_spill] sm:$0xff] %v12830_v27 }
 0x2e9   : > { %v1490_v10 = vpop.f32.mrb[248].mxu0  ;;  %v12845_v53 = vpop.f32.mrb[64].mxu1  ;;  %v2294_v63 = vrot.slane %v2292_v49, 3 }
 0x2ea   : > { %v9841_v9 = vpop.f32.mrb[249].mxu0  ;;  %v1576_v36 = vadd.f32 %v1490_v10, %v15232_v7  ;;  %v3629_v10 = vrot.slane %v3627_v16, 1  ;;  %v2277_v7 = vor.u32 %v2276_v33, %v2273_v47 }
 0x2eb   : > { %v1493_v34 = vpop.f32.mrb[250].mxu0  ;;  %v10063_v9 = vpop.f32.mrb[65].mxu1 }
 0x2ec   : > { %v12850_v46 = vadd.f32 %v12489_v0, %v1576_v36  ;;  %v9842_v22 = vpop.f32.mrb[251].mxu0  ;;  %v1577_v52 = vadd.f32 %v1493_v34, %v15234_v24  ;;  %v12853_v44 = vpop.f32.mrb[66].mxu1  ;;  %v11331_v0 = vld [vmem:[%s11557_s19 + $0x80] sm:$0xff]   ;;  %v3630_v34 = vsel %vm445_vm2, %v3626_v13, %v3629_v10  ;;  %v3631_v9 = vshrl.u32 %v12841_v20, 16 }
 0x2ed   : > { %v10064_v27 = vpop.f32.mrb[67].mxu1  ;;  %v2280_v36 = vshrl.u32 %v11331_v0, 16  ;;  %v2283_v22 = vshll.u32 %v11331_v0, 16 }
 0x2ee   : > { %15233 = vst [vmem:[#allocation34_spill] sm:$0xff] %v12850_v46  ;;  %v12856_v45 = vadd.f32 %v12494_v18, %v1577_v52  ;;  %10012 = vmatmul.mubr.msk.bf16.gmra.mrb[100].mxu0 %vm634_vm3, %v2269_v11  ;;  %10266 = vmatmul.mubr.msk.bf16.gmra.mrb[172].mxu1 %vm634_vm3, %v3630_v34  ;;  %v12867_v18 = vld [vmem:[%s11557_s19 + $0x4c] sm:$0xff]   ;;  %v2278_v27 = vsel %vm2144_vm6, %v2268_v40, %v2277_v7 }
 0x2ef   : > { %10015 = vmatprep.mubr.msk.bf16.mxu0 %vm11451_vm1, %v15172_v14  ;;  %10269 = vmatprep.mubr.msk.bf16.mxu1 %vm11451_vm1, %v15172_v14  ;;  %v15236_v11 = vld [vmem:[#allocation7_spill] sm:$0xff]  ;;  %v2282_v39 = vrot.slane %v2280_v36, 2  ;;  %v2285_v16 = vrot.slane %v2283_v22, 3  ;;  %v3634_v13 = vshll.u32 %v12867_v18, 16  ;;  %v3633_v40 = vor.u32 %v3631_v9, %v3629_v10  ;;  %v15239_v36 = vld [vmem:[#allocation40_spill] sm:$0xff] }
 0x2f0   : > { %15235 = vst [vmem:[#allocation11_spill] sm:$0xff] %v12856_v45  ;;  %v15238_v45 = vld [vmem:[#allocation15_spill] sm:$0xff]  ;;  %v2291_v9 = vrot.slane %v2289_v56, 2 }
 0x2f1   : > { %v1498_v24 = vpop.f32.mrb[252].mxu0  ;;  %v12871_v52 = vpop.f32.mrb[68].mxu1  ;;  %v12893_v10 = vld [vmem:[%s11557_s19 + $0x54] sm:$0xff]  }
 0x2f2   : > { %v9845_v54 = vpop.f32.mrb[253].mxu0  ;;  %v1578_v47 = vadd.f32 %v1498_v24, %v15236_v11  ;;  %v10067_v46 = vpop.f32.mrb[69].mxu1  ;;  %v3636_v11 = vrot.slane %v3634_v13, 1 }
 0x2f3   : > { %v1501_v33 = vpop.f32.mrb[254].mxu0  ;;  %v12879_v24 = vpop.f32.mrb[70].mxu1 }
 0x2f4   : > { %v12876_v0 = vadd.f32 %v12509_v6, %v1578_v47  ;;  %v9846_v34 = vpop.f32.mrb[255].mxu0  ;;  %v1579_v54 = vadd.f32 %v1501_v33, %v15238_v45  ;;  %v10068_v1 = vpop.f32.mrb[71].mxu1  ;;  %v2286_v6 = vor.u32 %v2285_v16, %v2282_v39  ;;  %v3637_v46 = vsel %vm445_vm2, %v3633_v40, %v3636_v11 }
 0x2f5   : > { %v3638_v16 = vshrl.u32 %v12867_v18, 16  ;;  %v3641_v34 = vshll.u32 %v12893_v10, 16 }
 0x2f6   : > { %15237 = vst [vmem:[#allocation35_spill] sm:$0xff] %v12876_v0  ;;  %v12882_v22 = vadd.f32 %v15239_v36, %v1579_v54  ;;  %10016 = vmatmul.mubr.msk.bf16.gmra.mrb[104].mxu0 %vm634_vm3, %v2278_v27  ;;  %10270 = vmatmul.mubr.msk.bf16.gmra.mrb[176].mxu1 %vm634_vm3, %v3637_v46  ;;  %v15241_v27 = vld [vmem:[#allocation16_spill] sm:$0xff]  ;;  %v2287_v13 = vsel %vm2144_vm6, %v2277_v7, %v2286_v6  ;;  %v15242_v54 = vld [vmem:[#allocation41_spill] sm:$0xff]  ;;  %v15244_v46 = vld [vmem:[#allocation18_spill] sm:$0xff] }
 0x2f7   : > { %10019 = vmatprep.mubr.msk.bf16.mxu0 %vm11451_vm1, %v15172_v14  ;;  %10273 = vmatprep.mubr.msk.bf16.mxu1 %vm11451_vm1, %v15172_v14  ;;  %v3640_v49 = vor.u32 %v3638_v16, %v3636_v11  ;;  %v15245_v7 = vld [vmem:[#allocation43_spill] sm:$0xff]  ;;  %v2295_v0 = vor.u32 %v2294_v63, %v2291_v9  ;;  %v12919_v11 = vld [vmem:[%s11557_s19 + $0x5c] sm:$0xff]  }
 0x2f8   : > { %15240 = vst [vmem:[#allocation38_spill] sm:$0xff] %v12882_v22 }
 0x2f9   : > { %v1506_v45 = vpop.f32.mrb[0].mxu0  ;;  %v12897_v39 = vpop.f32.mrb[72].mxu1 }
 0x2fa   : > { %v9849_v47 = vpop.f32.mrb[1].mxu0  ;;  %v1580_v33 = vadd.f32 %v1506_v45, %v15241_v27  ;;  %v10071_v22 = vpop.f32.mrb[73].mxu1  ;;  %v3643_v45 = vrot.slane %v3641_v34, 1 }
 0x2fb   : > { %v1509_v1 = vpop.f32.mrb[2].mxu0  ;;  %v12905_v56 = vpop.f32.mrb[74].mxu1 }
 0x2fc   : > { %v12902_v40 = vadd.f32 %v15242_v54, %v1580_v33  ;;  %v9850_v36 = vpop.f32.mrb[3].mxu0  ;;  %v1581_v47 = vadd.f32 %v1509_v1, %v15244_v46  ;;  %v10072_v26 = vpop.f32.mrb[75].mxu1  ;;  %v11333_v33 = vld [vmem:[%s11557_s19 + $0x90] sm:$0xff]   ;;  %v3644_v22 = vsel %vm445_vm2, %v3640_v49, %v3643_v45  ;;  %v3645_v49 = vshrl.u32 %v12893_v10, 16 }
 0x2fd   : > { %v2298_v54 = vshrl.u32 %v11333_v33, 16  ;;  %v2301_v36 = vshll.u32 %v11333_v33, 16  ;;  %v2296_v26 = vsel %vm2144_vm6, %v2286_v6, %v2295_v0 }
 0x2fe   : > { %15243 = vst [vmem:[#allocation36_spill] sm:$0xff] %v12902_v40  ;;  %v12908_v27 = vadd.f32 %v15245_v7, %v1581_v47  ;;  %10020 = vmatmul.mubr.msk.bf16.gmra.mrb[108].mxu0 %vm634_vm3, %v2287_v13  ;;  %10274 = vmatmul.mubr.msk.bf16.gmra.mrb[180].mxu1 %vm634_vm3, %v3644_v22  ;;  %v15247_v13 = vld [vmem:[#allocation8_spill] sm:$0xff]  ;;  %v3648_v7 = vshll.u32 %v12919_v11, 16  ;;  %v3647_v6 = vor.u32 %v3645_v49, %v3643_v45 }
 0x2ff   : > { %10023 = vmatprep.mubr.msk.bf16.mxu0 %vm11451_vm1, %v15172_v14  ;;  %10277 = vmatprep.mubr.msk.bf16.mxu1 %vm11451_vm1, %v15172_v14  ;;  %v2300_v34 = vrot.slane %v2298_v54, 2  ;;  %v2303_v46 = vrot.slane %v2301_v36, 3  ;;  %v11334_v36 = vld [vmem:[%s11557_s19 + $0x98] sm:$0xff]  }
 0x300   : > { %15246 = vst [vmem:[#allocation37_spill] sm:$0xff] %v12908_v27  ;;  %v15249_v27 = vld [vmem:[#allocation20_spill] sm:$0xff]  ;;  %v2307_v32 = vshrl.u32 %v11334_v36, 16  ;;  %v2310_v35 = vshll.u32 %v11334_v36, 16  ;;  %v15253_v36 = vld [vmem:[#allocation23_spill] sm:$0xff] }
 0x301   : > { %v1514_v1 = vpop.f32.mrb[4].mxu0  ;;  %v12923_v47 = vpop.f32.mrb[76].mxu1 }
 0x302   : > { %v9853_v16 = vpop.f32.mrb[5].mxu0  ;;  %v1582_v9 = vadd.f32 %v1514_v1, %v15247_v13  ;;  %v10075_v40 = vpop.f32.mrb[77].mxu1  ;;  %v3650_v13 = vrot.slane %v3648_v7, 1  ;;  %v2312_v49 = vrot.slane %v2310_v35, 3 }
 0x303   : > { %v1517_v63 = vpop.f32.mrb[6].mxu0  ;;  %v12931_v1 = vpop.f32.mrb[78].mxu1 }
 0x304   : > { %v12928_v33 = vadd.f32 %v12554_v61, %v1582_v9  ;;  %v9854_v22 = vpop.f32.mrb[7].mxu0  ;;  %v1583_v16 = vadd.f32 %v1517_v63, %v15249_v27  ;;  %v10076_v31 = vpop.f32.mrb[79].mxu1  ;;  %v2304_v61 = vor.u32 %v2303_v46, %v2300_v34  ;;  %v3651_v40 = vsel %vm445_vm2, %v3647_v6, %v3650_v13  ;;  %v15251_v9 = vld [vmem:[#allocation21_spill] sm:$0xff] }
 0x305   : > { %v2309_v63 = vrot.slane %v2307_v32, 2  ;;  %v3652_v46 = vshrl.u32 %v12919_v11, 16 }
 0x306   : > { %15248 = vst [vmem:[#allocation7_spill] sm:$0xff] %v12928_v33  ;;  %v12934_v54 = vadd.f32 %v12559_v62, %v1583_v16  ;;  %10024 = vmatmul.mubr.msk.bf16.gmra.mrb[112].mxu0 %vm634_vm3, %v2296_v26  ;;  %10278 = vmatmul.mubr.msk.bf16.gmra.mrb[184].mxu1 %vm634_vm3, %v3651_v40  ;;  %v12945_v62 = vld [vmem:[%s11557_s19 + $0x64] sm:$0xff]   ;;  %v2305_v7 = vsel %vm2144_vm6, %v2295_v0, %v2304_v61  ;;  %v2328_v33 = vshll.u32 %v12645_v25, 16 }
 0x307   : > { %10027 = vmatprep.mubr.msk.bf16.mxu0 %vm11451_vm1, %v15172_v14  ;;  %10281 = vmatprep.mubr.msk.bf16.mxu1 %vm11451_vm1, %v15172_v14  ;;  %v3655_v22 = vshll.u32 %v12945_v62, 16  ;;  %v3654_v35 = vor.u32 %v3652_v46, %v3650_v13 }
 0x308   : > { %15250 = vst [vmem:[#allocation15_spill] sm:$0xff] %v12934_v54 }
 0x309   : > { %v1522_v27 = vpop.f32.mrb[8].mxu0  ;;  %v12949_v34 = vpop.f32.mrb[80].mxu1 }
 0x30a   : > { %v9857_v45 = vpop.f32.mrb[9].mxu0  ;;  %v1584_v26 = vadd.f32 %v1522_v27, %v15251_v9  ;;  %v3657_v27 = vrot.slane %v3655_v22, 1  ;;  %v2313_v9 = vor.u32 %v2312_v49, %v2309_v63 }
 0x30b   : > { %v1525_v31 = vpop.f32.mrb[10].mxu0  ;;  %v10079_v45 = vpop.f32.mrb[81].mxu1 }
 0x30c   : > { %v12954_v16 = vadd.f32 %v12578_v55, %v1584_v26  ;;  %v9858_v6 = vpop.f32.mrb[11].mxu0  ;;  %v1585_v40 = vadd.f32 %v1525_v31, %v15253_v36  ;;  %v12957_v32 = vpop.f32.mrb[82].mxu1  ;;  %v11335_v55 = vld [vmem:[%s11557_s19 + $0xa0] sm:$0xff]   ;;  %v3658_v31 = vsel %vm445_vm2, %v3654_v35, %v3657_v27  ;;  %v3659_v45 = vshrl.u32 %v12945_v62, 16 }
 0x30d   : > { %v10080_v54 = vpop.f32.mrb[83].mxu1  ;;  %v2316_v26 = vshrl.u32 %v11335_v55, 16  ;;  %v2319_v6 = vshll.u32 %v11335_v55, 16 }
 0x30e   : > { %15252 = vst [vmem:[#allocation40_spill] sm:$0xff] %v12954_v16  ;;  %v12960_v0 = vadd.f32 %v12584_v50, %v1585_v40  ;;  %10028 = vmatmul.mubr.msk.bf16.gmra.mrb[116].mxu0 %vm634_vm3, %v2305_v7  ;;  %10282 = vmatmul.mubr.msk.bf16.gmra.mrb[188].mxu1 %vm634_vm3, %v3658_v31  ;;  %v12971_v50 = vld [vmem:[%s11557_s19 + $0x6c] sm:$0xff]   ;;  %v2314_v54 = vsel %vm2144_vm6, %v2304_v61, %v2313_v9 }
 0x30f   : > { %10031 = vmatprep.mubr.msk.bf16.mxu0 %vm11451_vm1, %v15172_v14  ;;  %10285 = vmatprep.mubr.msk.bf16.mxu1 %vm11451_vm1, %v15172_v14  ;;  %v15255_v7 = vld [vmem:[#allocation10_spill] sm:$0xff]  ;;  %v2318_v46 = vrot.slane %v2316_v26, 2  ;;  %v2321_v22 = vrot.slane %v2319_v6, 3  ;;  %v3662_v35 = vshll.u32 %v12971_v50, 16  ;;  %v3661_v61 = vor.u32 %v3659_v45, %v3657_v27 }
 0x310   : > { %15254 = vst [vmem:[#allocation16_spill] sm:$0xff] %v12960_v0  ;;  %v15257_v0 = vld [vmem:[#allocation26_spill] sm:$0xff]  ;;  %v2325_v6 = vshrl.u32 %v12645_v25, 16  ;;  %v2330_v25 = vrot.slane %v2328_v33, 3 }
 0x311   : > { %v1530_v36 = vpop.f32.mrb[12].mxu0  ;;  %v12975_v40 = vpop.f32.mrb[84].mxu1 }
 0x312   : > { %v9861_v13 = vpop.f32.mrb[13].mxu0  ;;  %v1586_v63 = vadd.f32 %v1530_v36, %v15255_v7  ;;  %v3664_v7 = vrot.slane %v3662_v35, 1  ;;  %v2327_v45 = vrot.slane %v2325_v6, 2 }
 0x313   : > { %v1533_v49 = vpop.f32.mrb[14].mxu0  ;;  %v10083_v13 = vpop.f32.mrb[85].mxu1 }
 0x314   : > { %v12980_v55 = vadd.f32 %v12601_v59, %v1586_v63  ;;  %v9862_v31 = vpop.f32.mrb[15].mxu0  ;;  %v1587_v16 = vadd.f32 %v1533_v49, %v15257_v0  ;;  %v12983_v36 = vpop.f32.mrb[86].mxu1  ;;  %v2322_v0 = vor.u32 %v2321_v22, %v2318_v46  ;;  %v3665_v63 = vsel %vm445_vm2, %v3661_v61, %v3664_v7 }
 0x315   : > { %v10084_v59 = vpop.f32.mrb[87].mxu1  ;;  %v3666_v46 = vshrl.u32 %v12971_v50, 16  ;;  %v2331_v33 = vor.u32 %v2330_v25, %v2327_v45 }
 0x316   : > { %15256 = vst [vmem:[#allocation41_spill] sm:$0xff] %v12980_v55  ;;  %v12986_v26 = vadd.f32 %v12606_v17, %v1587_v16  ;;  %10032 = vmatmul.mubr.msk.bf16.gmra.mrb[120].mxu0 %vm634_vm3, %v2314_v54  ;;  %10286 = vmatmul.mubr.msk.bf16.gmra.mrb[192].mxu1 %vm634_vm3, %v3665_v63  ;;  %v12998_v17 = vld [vmem:[%s11557_s19 + $0x74] sm:$0xff]   ;;  %v2323_v31 = vsel %vm2144_vm6, %v2313_v9, %v2322_v0 }
 0x317   : > { %10035 = vmatprep.mubr.msk.bf16.mxu0 %vm11451_vm1, %v15172_v14  ;;  %10289 = vmatprep.mubr.msk.bf16.mxu1 %vm11451_vm1, %v15172_v14  ;;  %15259 = vst [vmem:[#allocation43_spill] sm:$0xff] %v12998_v17  ;;  %v15260_v54 = vld [vmem:[#allocation27_spill] sm:$0xff]  ;;  %v3669_v22 = vshll.u32 %v12998_v17, 16 }
 0x318   : > { %15258 = vst [vmem:[#allocation18_spill] sm:$0xff] %v12986_v26 }
 0x319   : > { %v1538_v27 = vpop.f32.mrb[16].mxu0  ;;  %v13002_v13 = vpop.f32.mrb[88].mxu1  ;;  %v3671_v6 = vrot.slane %v3669_v22, 1 }
 0x31a   : > { %v9865_v16 = vpop.f32.mrb[17].mxu0  ;;  %v1588_v49 = vadd.f32 %v1538_v27, %v15260_v54  ;;  %v10087_v63 = vpop.f32.mrb[89].mxu1  ;;  %v3668_v27 = vor.u32 %v3666_v46, %v3664_v7  ;;  %v2334_v54 = vshrl.u32 %v12664_v28, 16  ;;  %v13021_v7 = vld [vmem:[%s11557_s19 + $0x7c] sm:$0xff]   ;;  %v2332_v46 = vsel %vm2144_vm6, %v2322_v0, %v2331_v33 }
 0x31b   : > { %v1541_v35 = vpop.f32.mrb[18].mxu0  ;;  %v13009_v16 = vpop.f32.mrb[90].mxu1  ;;  %15262 = vst [vmem:[#allocation20_spill] sm:$0xff] %v13021_v7  ;;  %v2343_v0 = vshrl.u32 %v12682_v37, 16 }
 0x31c   : > { %v13007_v61 = vadd.f32 %v12622_v57, %v1588_v49  ;;  %v9866_v59 = vpop.f32.mrb[19].mxu0  ;;  %v10088_v9 = vpop.f32.mrb[91].mxu1  ;;  %v2337_v35 = vshll.u32 %v12664_v28, 16  ;;  %v3672_v57 = vsel %vm445_vm2, %v3668_v27, %v3671_v6  ;;  %v3673_v27 = vshrl.u32 %v12998_v17, 16 }
 0x31d   : > { %v2336_v59 = vrot.slane %v2334_v54, 2  ;;  %v3676_v9 = vshll.u32 %v13021_v7, 16 }
 0x31e   : > { %15261 = vst [vmem:[#allocation8_spill] sm:$0xff] %v13007_v61  ;;  %10036 = vmatmul.mubr.msk.bf16.gmra.mrb[124].mxu0 %vm634_vm3, %v2323_v31  ;;  %10290 = vmatmul.mubr.msk.bf16.gmra.mrb[196].mxu1 %vm634_vm3, %v3672_v57  ;;  %v15263_v31 = vld [vmem:[#allocation12_spill] sm:$0xff]  ;;  %v2339_v63 = vrot.slane %v2337_v35, 3  ;;  %v15265_v57 = vld [vmem:[#allocation29_spill] sm:$0xff]  ;;  %v2346_v35 = vshll.u32 %v12682_v37, 16 }
 0x31f   : > { %10039 = vmatprep.mubr.msk.bf16.mxu0 %vm11451_vm1, %v15172_v14  ;;  %10293 = vmatprep.mubr.msk.bf16.mxu1 %vm11451_vm1, %v15172_v14 }
 0x320   : > { %v2340_v17 = vor.u32 %v2339_v63, %v2336_v59  ;;  %v2348_v37 = vrot.slane %v2346_v35, 3  ;;  %v3680_v63 = vshrl.u32 %v13021_v7, 16 }
 0x321   : > { %v1910_v49 = vpop.f32.mrb[20].mxu0  ;;  %v13027_v28 = vpop.f32.mrb[92].mxu1 }
 0x322   : > { %v13024_v45 = vadd.f32 %v1910_v49, %v15263_v31  ;;  %v9871_v25 = vpop.f32.mrb[21].mxu0  ;;  %15264 = vst [vmem:[#allocation21_spill] sm:$0xff] %v13027_v28  ;;  %v10091_v55 = vpop.f32.mrb[93].mxu1  ;;  %v3675_v31 = vor.u32 %v3673_v27, %v3671_v6  ;;  %v2345_v6 = vrot.slane %v2343_v0, 2  ;;  %v15268_v27 = vld [vmem:[#allocation13_spill] sm:$0xff] }
 0x323   : > { %v1913_v22 = vpop.f32.mrb[22].mxu0  ;;  %v13034_v49 = vpop.f32.mrb[94].mxu1  ;;  %v3678_v25 = vrot.slane %v3676_v9, 1 }
 0x324   : > { %v13032_v61 = vadd.f32 %v1913_v22, %v15265_v57  ;;  %v9872_v26 = vpop.f32.mrb[23].mxu0  ;;  %15266 = vst [vmem:[#allocation23_spill] sm:$0xff] %v13034_v49  ;;  %v10092_v54 = vpop.f32.mrb[95].mxu1 }
 0x325   : > { %v3679_v22 = vsel %vm445_vm2, %v3675_v31, %v3678_v25  ;;  %v13046_v26 = vld [vmem:[%s11557_s19 + $0x84] sm:$0xff]   ;;  %v2341_v54 = vsel %vm2144_vm6, %v2331_v33, %v2340_v17  ;;  %v2349_v33 = vor.u32 %v2348_v37, %v2345_v6 }
 0x326   : > { %10040 = vmatmul.mubr.msk.bf16.gmra.mrb[128].mxu0 %vm634_vm3, %v2332_v46  ;;  %10294 = vmatmul.mubr.msk.bf16.gmra.mrb[200].mxu1 %vm634_vm3, %v3679_v22  ;;  %15267 = vst [vmem:[#allocation10_spill] sm:$0xff] %v13046_v26  ;;  %v3683_v31 = vshll.u32 %v13046_v26, 16  ;;  %v15269_v22 = vld [vmem:[#allocation39_spill] sm:$0xff] }
 0x327   : > { %10043 = vmatprep.mubr.msk.bf16.mxu0 %vm11451_vm1, %v15172_v14  ;;  %10297 = vmatprep.mubr.msk.bf16.mxu1 %vm11451_vm1, %v15172_v14  ;;  %v2350_v6 = vsel %vm2144_vm6, %v2340_v17, %v2349_v33 }
 0x329   : > { %v1918_v55 = vpop.f32.mrb[24].mxu0  ;;  %v13052_v59 = vpop.f32.mrb[96].mxu1 }
 0x32a   : > { %v13049_v46 = vadd.f32 %v1918_v55, %v15268_v27  ;;  %v9875_v9 = vpop.f32.mrb[25].mxu0  ;;  %v10095_v0 = vpop.f32.mrb[97].mxu1  ;;  %v3682_v55 = vor.u32 %v3680_v63, %v3678_v25  ;;  %v3685_v27 = vrot.slane %v3683_v31, 1  ;;  %v3687_v31 = vshrl.u32 %v13046_v26, 16 }
 0x32b   : > { %v1921_v57 = vpop.f32.mrb[26].mxu0  ;;  %v13059_v5 = vpop.f32.mrb[98].mxu1  ;;  %v15274_v0 = vld [vmem:[#allocation42_spill] sm:$0xff] }
 0x32c   : > { %v13057_v49 = vadd.f32 %v1921_v57, %v15269_v22  ;;  %v9876_v28 = vpop.f32.mrb[27].mxu0  ;;  %15270 = vst [vmem:[#allocation26_spill] sm:$0xff] %v13059_v5  ;;  %v10096_v35 = vpop.f32.mrb[99].mxu1  ;;  %v3686_v9 = vsel %vm445_vm2, %v3682_v55, %v3685_v27  ;;  %v15272_v57 = vld [vmem:[#allocation14_spill] sm:$0xff] }
 0x32d   : > { %v13069_v28 = vld [vmem:[%s11557_s19 + $0x8c] sm:$0xff]  }
 0x32e   : > { %10044 = vmatmul.mubr.msk.bf16.gmra.mrb[132].mxu0 %vm634_vm3, %v2341_v54  ;;  %10298 = vmatmul.mubr.msk.bf16.gmra.mrb[204].mxu1 %vm634_vm3, %v3686_v9  ;;  %15271 = vst [vmem:[#allocation27_spill] sm:$0xff] %v13069_v28  ;;  %v3690_v22 = vshll.u32 %v13069_v28, 16 }
 0x32f   : > { %10047 = vmatprep.mubr.msk.bf16.mxu0 %vm11451_vm1, %v15172_v14  ;;  %10301 = vmatprep.mubr.msk.bf16.mxu1 %vm11451_vm1, %v15172_v14 }
 0x331   : > { %v1926_v7 = vpop.f32.mrb[28].mxu0  ;;  %v13075_v37 = vpop.f32.mrb[100].mxu1 }
 0x332   : > { %v13072_v25 = vadd.f32 %v1926_v7, %v15272_v57  ;;  %v9879_v63 = vpop.f32.mrb[29].mxu0  ;;  %15273 = vst [vmem:[#allocation12_spill] sm:$0xff] %v13075_v37  ;;  %v10099_v9 = vpop.f32.mrb[101].mxu1  ;;  %v3689_v7 = vor.u32 %v3687_v31, %v3685_v27  ;;  %v3692_v57 = vrot.slane %v3690_v22, 1  ;;  %v3694_v22 = vshrl.u32 %v13069_v28, 16 }
 0x333   : > { %v1929_v54 = vpop.f32.mrb[30].mxu0  ;;  %v13082_v5 = vpop.f32.mrb[102].mxu1 }
 0x334   : > { %v13080_v55 = vadd.f32 %v1929_v54, %v15274_v0  ;;  %v9880_v35 = vpop.f32.mrb[31].mxu0  ;;  %15275 = vst [vmem:[#allocation29_spill] sm:$0xff] %v13082_v5  ;;  %v10100_v63 = vpop.f32.mrb[103].mxu1  ;;  %v3693_v17 = vsel %vm445_vm2, %v3689_v7, %v3692_v57  ;;  %v13092_v54 = vld [vmem:[%s11557_s19 + $0x94] sm:$0xff]   ;;  %v3696_v5 = vor.u32 %v3694_v22, %v3692_v57  ;;  %v13117_v57 = vld [vmem:[%s11557_s19 + $0x9c] sm:$0xff]  }
 0x335   : > { %15276 = vst [vmem:[#allocation13_spill] sm:$0xff] %v13092_v54  ;;  %v3697_v35 = vshll.u32 %v13092_v54, 16  ;;  %15278 = vst [vmem:[#allocation14_spill] sm:$0xff] %v13117_v57 }
 0x336   : > { %10048 = vmatmul.mubr.msk.bf16.gmra.mrb[136].mxu0 %vm634_vm3, %v2350_v6  ;;  %10302 = vmatmul.mubr.msk.bf16.gmra.mrb[208].mxu1 %vm634_vm3, %v3693_v17 }
 0x337   : > { %10051 = vmatprep.mubr.msk.bf16.mxu0 %vm11451_vm1, %v15172_v14  ;;  %10305 = vmatprep.mubr.msk.bf16.mxu1 %vm11451_vm1, %v15172_v14  ;;  %v3699_v37 = vrot.slane %v3697_v35, 1 }
 0x339   : > { %v1934_v26 = vpop.f32.mrb[32].mxu0  ;;  %v13097_v6 = vpop.f32.mrb[104].mxu1 }
 0x33a   : > { %v13095_v0 = vadd.f32 %v1934_v26, %v12549_v51  ;;  %v9883_v27 = vpop.f32.mrb[33].mxu0  ;;  %v10103_v63 = vpop.f32.mrb[105].mxu1  ;;  %v3700_v26 = vsel %vm445_vm2, %v3696_v5, %v3699_v37  ;;  %v3701_v5 = vshrl.u32 %v13092_v54, 16 }
 0x33b   : > { %v1937_v31 = vpop.f32.mrb[34].mxu0  ;;  %v13104_v17 = vpop.f32.mrb[106].mxu1  ;;  %v11286_v27 = vld [vmem:[%s15076_s1 + $0x40] sm:$0x1f]  }
 0x33c   : > { %v13102_v9 = vadd.f32 %v1937_v31, %v12557_v21  ;;  %v9884_v7 = vpop.f32.mrb[35].mxu0  ;;  %15277 = vst [vmem:[#allocation39_spill] sm:$0xff] %v13104_v17  ;;  %v10104_v51 = vpop.f32.mrb[107].mxu1 }
 0x33d   : > { %v3704_v7 = vshll.u32 %v13117_v57, 16 }
 0x33e   : > { %10052 = vmatmul.mubr.msk.bf16.gmra.mrb[140].mxu0 %vm634_vm3, %v2349_v33  ;;  %10306 = vmatmul.mubr.msk.bf16.gmra.mrb[212].mxu1 %vm634_vm3, %v3700_v26  ;;  %v4212_v26 = vsel %vm704_vm0, %v11286_v27, 0 }
 0x33f   : > { %10151 = vmatprep.mubr.msk.bf16.mxu0 %vm11451_vm1, %v15172_v14  ;;  %10309 = vmatprep.mubr.msk.bf16.mxu1 %vm11451_vm1, %v15172_v14 }
 0x341   : > { %v1942_v21 = vpop.f32.mrb[36].mxu0  ;;  %v13122_v35 = vpop.f32.mrb[108].mxu1 }
 0x342   : > { %v13120_v33 = vadd.f32 %v1942_v21, %v12575_v8  ;;  %v9887_v31 = vpop.f32.mrb[37].mxu0  ;;  %v10107_v28 = vpop.f32.mrb[109].mxu1  ;;  %v3703_v8 = vor.u32 %v3701_v5, %v3699_v37  ;;  %v3706_v21 = vrot.slane %v3704_v7, 1  ;;  %v3708_v5 = vshrl.u32 %v13117_v57, 16 }
 0x343   : > { %v1945_v22 = vpop.f32.mrb[38].mxu0  ;;  %v13130_v17 = vpop.f32.mrb[110].mxu1  ;;  %v13141_v28 = vld [vmem:[%s11557_s19 + $0xa4] sm:$0xff]  }
 0x344   : > { %v13127_v63 = vadd.f32 %v1945_v22, %v12581_v41  ;;  %v9888_v51 = vpop.f32.mrb[39].mxu0  ;;  %15279 = vst [vmem:[#allocation42_spill] sm:$0xff] %v13130_v17  ;;  %v10108_v31 = vpop.f32.mrb[111].mxu1  ;;  %v3707_v54 = vsel %vm445_vm2, %v3703_v8, %v3706_v21  ;;  %15280 = vst [vmem:[#allocation48_spill] sm:$0xff] %v13141_v28  ;;  %v3711_v7 = vshll.u32 %v13141_v28, 16 }
 0x345   : > { %v3710_v31 = vor.u32 %v3708_v5, %v3706_v21 }
 0x346   : > { %10152 = vmatmul.mubr.msk.bf16.vlgmr.msra.gmra.mrb[144].mxu0 %vm634_vm3, %v12716_v58  ;;  %10310 = vmatmul.mubr.msk.bf16.gmra.mrb[216].mxu1 %vm634_vm3, %v3707_v54  ;;  %v3713_v17 = vrot.slane %v3711_v7, 1  ;;  %v3715_v7 = vshrl.u32 %v13141_v28, 16 }
 0x347   : > { %10155 = vmatprep.mubr.msk.bf16.mxu0 %vm11451_vm1, %v15172_v14  ;;  %10338 = vmatpush3.bf16.msra.mxu0 %v4212_v26 }
 0x348   : > { %10313 = vmatprep.mubr.msk.bf16.mxu1 %vm11451_vm1, %v15172_v14  ;;  %v3717_v57 = vor.u32 %v3715_v7, %v3713_v17 }
 0x349   : > { %v1950_v41 = vpop.f32.mrb[40].mxu0  ;;  %v13146_v22 = vpop.f32.mrb[112].mxu1 }
 0x34a   : > { %v13144_v37 = vadd.f32 %v1950_v41, %v12598_v4  ;;  %v9891_v27 = vpop.f32.mrb[41].mxu0  ;;  %v10111_v26 = vpop.f32.mrb[113].mxu1  ;;  %v3714_v41 = vsel %vm445_vm2, %v3710_v31, %v3713_v17 }
 0x34b   : > { %v1953_v58 = vpop.f32.mrb[42].mxu0  ;;  %v13153_v8 = vpop.f32.mrb[114].mxu1 }
 0x34c   : > { %v13151_v54 = vadd.f32 %v1953_v58, %v12604_v60  ;;  %v9892_v51 = vpop.f32.mrb[43].mxu0  ;;  %15281 = vst [vmem:[#allocation49_spill] sm:$0xff] %v13153_v8  ;;  %v10112_v4 = vpop.f32.mrb[115].mxu1  ;;  %v13164_v60 = vld [vmem:[%s11557_s19 + $0xac] sm:$0xff]  }
 0x34d   : > { %15282 = vst [vmem:[#allocation50_spill] sm:$0xff] %v13164_v60  ;;  %v3718_v51 = vshll.u32 %v13164_v60, 16 }
 0x34e   : > { %10156 = vmatmul.mubr.msk.bf16.gmra.mrb[148].mxu0 %vm634_vm3, %v12722_v3  ;;  %10314 = vmatmul.mubr.msk.bf16.gmra.mrb[220].mxu1 %vm634_vm3, %v3714_v41 }
 0x34f   : > { %10159 = vmatprep.mubr.msk.bf16.mxu0 %vm11451_vm1, %v15172_v14  ;;  %10317 = vmatprep.mubr.msk.bf16.mxu1 %vm11451_vm1, %v15172_v14  ;;  %v3720_v8 = vrot.slane %v3718_v51, 1  ;;  %v3722_v51 = vshrl.u32 %v13164_v60, 16 }
 0x351   : > { %v1958_v27 = vpop.f32.mrb[44].mxu0  ;;  %v13169_v3 = vpop.f32.mrb[116].mxu1  ;;  %v3724_v28 = vor.u32 %v3722_v51, %v3720_v8 }
 0x352   : > { %v13167_v21 = vadd.f32 %v1958_v27, %v12619_v12  ;;  %v9895_v58 = vpop.f32.mrb[45].mxu0  ;;  %v10115_v4 = vpop.f32.mrb[117].mxu1  ;;  %v3721_v27 = vsel %vm445_vm2, %v3717_v57, %v3720_v8 }
 0x353   : > { %v1961_v5 = vpop.f32.mrb[46].mxu0  ;;  %v13176_v41 = vpop.f32.mrb[118].mxu1 }
 0x354   : > { %v13174_v26 = vadd.f32 %v1961_v5, %v12625_v2  ;;  %v9896_v31 = vpop.f32.mrb[47].mxu0  ;;  %v10116_v12 = vpop.f32.mrb[119].mxu1  ;;  %v13187_v2 = vld [vmem:[%s11557_s19 + $0xb4] sm:$0xff]  }
 0x355   : > { %v3725_v57 = vshll.u32 %v13187_v2, 16 }
 0x356   : > { %10160 = vmatmul.mubr.msk.bf16.gmra.mrb[152].mxu0 %vm634_vm3, %v12749_v30  ;;  %10318 = vmatmul.mubr.msk.bf16.gmra.mrb[224].mxu1 %vm634_vm3, %v3721_v27 }
 0x357   : > { %10163 = vmatprep.mubr.msk.bf16.mxu0 %vm11451_vm1, %v15172_v14  ;;  %10321 = vmatprep.mubr.msk.bf16.mxu1 %vm11451_vm1, %v15172_v14 }
 0x359   : > { %v1966_v58 = vpop.f32.mrb[48].mxu0  ;;  %v13192_v30 = vpop.f32.mrb[120].mxu1 }
 0x35a   : > { %v9899_v5 = vpop.f32.mrb[49].mxu0  ;;  %v13190_v17 = vadd.f32 %v1966_v58, %v12638_v43  ;;  %15283 = vst [vmem:[#allocation51_spill] sm:$0xff] %v13192_v30  ;;  %v10119_v12 = vpop.f32.mrb[121].mxu1 }
 0x35b   : > { %v1969_v7 = vpop.f32.mrb[50].mxu0  ;;  %v13199_v27 = vpop.f32.mrb[122].mxu1  ;;  %v3727_v5 = vrot.slane %v3725_v57, 1 }
 0x35c   : > { %v9900_v31 = vpop.f32.mrb[51].mxu0  ;;  %v13197_v4 = vadd.f32 %v1969_v7, %v12642_v19  ;;  %15284 = vst [vmem:[#allocation52_spill] sm:$0xff] %v13199_v27  ;;  %v10120_v43 = vpop.f32.mrb[123].mxu1  ;;  %v13210_v19 = vld [vmem:[%s11557_s19 + $0xbc] sm:$0xff]  }
 0x35d   : > { %v3728_v58 = vsel %vm445_vm2, %v3724_v28, %v3727_v5  ;;  %v3732_v12 = vshll.u32 %v13210_v19, 16 }
 0x35e   : > { %10164 = vmatmul.mubr.msk.bf16.gmra.mrb[156].mxu0 %vm634_vm3, %v12771_v23  ;;  %10322 = vmatmul.mubr.msk.bf16.gmra.mrb[228].mxu1 %vm634_vm3, %v3728_v58  ;;  %v3729_v23 = vshrl.u32 %v13187_v2, 16 }
 0x35f   : > { %10167 = vmatprep.mubr.msk.bf16.mxu0 %vm11451_vm1, %v15172_v14  ;;  %10325 = vmatprep.mubr.msk.bf16.mxu1 %vm11451_vm1, %v15172_v14  ;;  %v3734_v30 = vrot.slane %v3732_v12, 1 }
 0x361   : > { %v2462_v31 = vpop.f32.mrb[52].mxu0  ;;  %v13213_v57 = vpop.f32.mrb[124].mxu1 }
 0x362   : > { %v9965_v7 = vpop.f32.mrb[53].mxu0  ;;  %v2644_v8 = vadd.f32 %v2462_v31, %v13024_v45  ;;  %v10123_v60 = vpop.f32.mrb[125].mxu1 }
 0x363   : > { %v2465_v51 = vpop.f32.mrb[54].mxu0  ;;  %v13221_v27 = vpop.f32.mrb[126].mxu1  ;;  %v3731_v7 = vor.u32 %v3729_v23, %v3727_v5  ;;  %v11293_v60 = vld [vmem:[%s11557_s19 + $0xc4] ss:$0 sps:$4 sm:$0xff]  }
 0x364   : > { %v13218_v28 = vadd.f32 %v12819_v15, %v2644_v8  ;;  %v9966_v43 = vpop.f32.mrb[55].mxu0  ;;  %v2645_v58 = vadd.f32 %v2465_v51, %v13032_v61  ;;  %v10124_v31 = vpop.f32.mrb[127].mxu1  ;;  %v3740_v23 = vshll.u32 %v11293_v60, 16 }
 0x365   : > { %v3735_v15 = vsel %vm445_vm2, %v3731_v7, %v3734_v30 }
 0x366   : > { %v13224_v45 = vadd.f32 %v12827_v42, %v2645_v58  ;;  %10168 = vmatmul.mubr.msk.bf16.gmra.mrb[160].mxu0 %vm634_vm3, %v12793_v29  ;;  %10326 = vmatmul.mubr.msk.bf16.gmra.mrb[232].mxu1 %vm634_vm3, %v3735_v15  ;;  %v3736_v29 = vshrl.u32 %v13210_v19, 16 }
 0x367   : > { %10171 = vmatprep.mubr.msk.bf16.mxu0 %vm11451_vm1, %v15172_v14  ;;  %10329 = vmatprep.mubr.msk.bf16.mxu1 %vm11451_vm1, %v15172_v14 }
 0x368   : > { %15285 = vst [vmem:[#allocation53_spill] sm:$0xff] %v13224_v45  ;;  %v3738_v15 = vor.u32 %v3736_v29, %v3734_v30  ;;  %v3742_v45 = vrot.slane %v3740_v23, 1 }
 0x369   : > { %v2470_v61 = vpop.f32.mrb[56].mxu0  ;;  %v13236_v51 = vpop.f32.mrb[128].mxu1 }
 0x36a   : > { %v9969_v5 = vpop.f32.mrb[57].mxu0  ;;  %v2646_v42 = vadd.f32 %v2470_v61, %v13049_v46  ;;  %v10127_v7 = vpop.f32.mrb[129].mxu1 }
 0x36b   : > { %v2473_v8 = vpop.f32.mrb[58].mxu0  ;;  %v13243_v31 = vpop.f32.mrb[130].mxu1 }
 0x36c   : > { %v13240_v12 = vadd.f32 %v12845_v53, %v2646_v42  ;;  %v9970_v43 = vpop.f32.mrb[59].mxu0  ;;  %v2647_v58 = vadd.f32 %v2473_v8, %v13057_v49  ;;  %v10128_v46 = vpop.f32.mrb[131].mxu1  ;;  %v3743_v53 = vsel %vm445_vm2, %v3738_v15, %v3742_v45 }
 0x36d   : > { %v3744_v43 = vshrl.u32 %v11293_v60, 16 }
 0x36e   : > { %v13246_v5 = vadd.f32 %v12853_v44, %v2647_v58  ;;  %10172 = vmatmul.mubr.msk.bf16.gmra.mrb[164].mxu0 %vm634_vm3, %v12815_v38  ;;  %10330 = vmatmul.mubr.msk.bf16.gmra.mrb[236].mxu1 %vm634_vm3, %v3743_v53 }
 0x36f   : > { %10175 = vmatprep.mubr.msk.bf16.mxu0 %vm11451_vm1, %v15172_v14  ;;  %10333 = vmatprep.mubr.msk.bf16.mxu1 %vm11451_vm1, %v15172_v14 }
 0x371   : > { %v2478_v49 = vpop.f32.mrb[60].mxu0  ;;  %v13257_v42 = vpop.f32.mrb[132].mxu1 }
 0x372   : > { %v9973_v30 = vpop.f32.mrb[61].mxu0  ;;  %v2648_v61 = vadd.f32 %v2478_v49, %v13072_v25  ;;  %v10131_v23 = vpop.f32.mrb[133].mxu1  ;;  %v3746_v25 = vor.u32 %v3744_v43, %v3742_v45 }
 0x373   : > { %v2481_v44 = vpop.f32.mrb[62].mxu0  ;;  %v13263_v58 = vpop.f32.mrb[134].mxu1 }
 0x374   : > { %v13260_v38 = vadd.f32 %v12871_v52, %v2648_v61  ;;  %v9974_v8 = vpop.f32.mrb[63].mxu0  ;;  %v2649_v29 = vadd.f32 %v2481_v44, %v13080_v55  ;;  %v10132_v15 = vpop.f32.mrb[135].mxu1 }
 0x376   : > { %v13266_v7 = vadd.f32 %v12879_v24, %v2649_v29  ;;  %10176 = vmatmul.mubr.msk.bf16.gmra.mrb[168].mxu0 %vm634_vm3, %v12841_v20  ;;  %10334 = vmatmul.mubr.msk.bf16.gmra.mrb[240].mxu1 %vm634_vm3, %v3746_v25 }
 0x377   : > { %10179 = vmatprep.mubr.msk.bf16.mxu0 %vm11451_vm1, %v15172_v14 }
 0x379   : > { %v2486_v52 = vpop.f32.mrb[64].mxu0  ;;  %v13274_v53 = vpop.f32.mrb[136].mxu1 }
 0x37a   : > { %v9977_v46 = vpop.f32.mrb[65].mxu0  ;;  %v2650_v55 = vadd.f32 %v2486_v52, %v13095_v0  ;;  %v10135_v45 = vpop.f32.mrb[137].mxu1 }
 0x37b   : > { %v2489_v60 = vpop.f32.mrb[66].mxu0  ;;  %v13280_v30 = vpop.f32.mrb[138].mxu1 }
 0x37c   : > { %v13277_v24 = vadd.f32 %v12897_v39, %v2650_v55  ;;  %v9978_v49 = vpop.f32.mrb[67].mxu0  ;;  %v2651_v20 = vadd.f32 %v2489_v60, %v13102_v9  ;;  %v10136_v44 = vpop.f32.mrb[139].mxu1 }
 0x37e   : > { %v13283_v61 = vadd.f32 %v12905_v56, %v2651_v20  ;;  %10180 = vmatmul.mubr.msk.bf16.gmra.mrb[172].mxu0 %vm634_vm3, %v12867_v18 }
 0x37f   : > { %10183 = vmatprep.mubr.msk.bf16.mxu0 %vm11451_vm1, %v15172_v14 }
 0x381   : > { %v2494_v0 = vpop.f32.mrb[68].mxu0  ;;  %v13290_v23 = vpop.f32.mrb[140].mxu1 }
 0x382   : > { %v9981_v8 = vpop.f32.mrb[69].mxu0  ;;  %v2652_v39 = vadd.f32 %v2494_v0, %v13120_v33  ;;  %v10139_v25 = vpop.f32.mrb[141].mxu1 }
 0x383   : > { %v2497_v29 = vpop.f32.mrb[70].mxu0  ;;  %v13296_v15 = vpop.f32.mrb[142].mxu1 }
 0x384   : > { %v13293_v9 = vadd.f32 %v12923_v47, %v2652_v39  ;;  %v9982_v43 = vpop.f32.mrb[71].mxu0  ;;  %v2653_v56 = vadd.f32 %v2497_v29, %v13127_v63  ;;  %v10140_v52 = vpop.f32.mrb[143].mxu1 }
 0x386   : > { %v13299_v18 = vadd.f32 %v12931_v1, %v2653_v56  ;;  %10184 = vmatmul.mubr.msk.bf16.gmra.mrb[176].mxu0 %vm634_vm3, %v12893_v10 }
 0x387   : > { %10187 = vmatprep.mubr.msk.bf16.mxu0 %vm11451_vm1, %v15172_v14 }
 0x389   : > { %v2502_v33 = vpop.f32.mrb[72].mxu0  ;;  %v13306_v60 = vpop.f32.mrb[144].mxu1 }
 0x38a   : > { %v9985_v46 = vpop.f32.mrb[73].mxu0  ;;  %v2654_v47 = vadd.f32 %v2502_v33, %v13144_v37  ;;  %v10143_v20 = vpop.f32.mrb[145].mxu1 }
 0x38b   : > { %v2505_v55 = vpop.f32.mrb[74].mxu0  ;;  %v13312_v45 = vpop.f32.mrb[146].mxu1 }
 0x38c   : > { %v13309_v63 = vadd.f32 %v12949_v34, %v2654_v47  ;;  %v9986_v49 = vpop.f32.mrb[75].mxu0  ;;  %v2655_v1 = vadd.f32 %v2505_v55, %v13151_v54  ;;  %v10144_v44 = vpop.f32.mrb[147].mxu1 }
 0x38e   : > { %v13315_v10 = vadd.f32 %v12957_v32, %v2655_v1  ;;  %10188 = vmatmul.mubr.msk.bf16.gmra.mrb[180].mxu0 %vm634_vm3, %v12919_v11 }
 0x38f   : > { %10191 = vmatprep.mubr.msk.bf16.mxu0 %vm11451_vm1, %v15172_v14 }
 0x391   : > { %v2510_v37 = vpop.f32.mrb[76].mxu0  ;;  %v13322_v39 = vpop.f32.mrb[148].mxu1 }
 0x392   : > { %v9989_v0 = vpop.f32.mrb[77].mxu0  ;;  %v2656_v34 = vadd.f32 %v2510_v37, %v13167_v21  ;;  %v10147_v43 = vpop.f32.mrb[149].mxu1  ;;  %v15286_v37 = vld [vmem:[#allocation17_spill] sm:$0xff] }
 0x393   : > { %v2513_v8 = vpop.f32.mrb[78].mxu0  ;;  %v3032_v56 = vpop.f32.mrb[150].mxu1 }
 0x394   : > { %v13325_v54 = vadd.f32 %v12975_v40, %v2656_v34  ;;  %v9990_v29 = vpop.f32.mrb[79].mxu0  ;;  %v2657_v32 = vadd.f32 %v2513_v8, %v13174_v26  ;;  %v10148_v25 = vpop.f32.mrb[151].mxu1  ;;  %v15287_v34 = vld [vmem:[#allocation21_spill] sm:$0xff]  ;;  %v15290_v56 = vld [vmem:[#allocation43_spill] sm:$0xff] }
 0x396   : > { %v13329_v11 = vadd.f32 %v12983_v36, %v2657_v32  ;;  %10192 = vmatmul.mubr.msk.bf16.gmra.mrb[184].mxu0 %vm634_vm3, %v12945_v62 }
 0x397   : > { %10195 = vmatprep.mubr.msk.bf16.mxu0 %vm11451_vm1, %v15172_v14 }
 0x399   : > { %v2518_v21 = vpop.f32.mrb[80].mxu0  ;;  %v13336_v46 = vpop.f32.mrb[152].mxu1 }
 0x39a   : > { %v2658_v52 = vadd.f32 %v2518_v21, %v13190_v17  ;;  %v9993_v40 = vpop.f32.mrb[81].mxu0  ;;  %v10247_v55 = vpop.f32.mrb[153].mxu1  ;;  %v15291_v21 = vld [vmem:[#allocation19_spill] sm:$0xff] }
 0x39b   : > { %v2521_v33 = vpop.f32.mrb[82].mxu0  ;;  %v13342_v49 = vpop.f32.mrb[154].mxu1 }
 0x39c   : > { %v2659_v26 = vadd.f32 %v2521_v33, %v13197_v4  ;;  %v13340_v47 = vadd.f32 %v13002_v13, %v2658_v52  ;;  %v9994_v36 = vpop.f32.mrb[83].mxu0  ;;  %v10248_v17 = vpop.f32.mrb[155].mxu1 }
 0x39d   : > { %v15292_v36 = vld [vmem:[#allocation22_spill] sm:$0xff] }
 0x39e   : > { %v13345_v62 = vadd.f32 %v13009_v16, %v2659_v26  ;;  %10196 = vmatmul.mubr.msk.bf16.gmra.mrb[188].mxu0 %vm634_vm3, %v12971_v50  ;;  %v15288_v50 = vld [vmem:[#allocation23_spill] sm:$0xff] }
 0x39f   : > { %10199 = vmatprep.mubr.msk.bf16.mxu0 %vm11451_vm1, %v15172_v14 }
 0x3a1   : > { %v2526_v1 = vpop.f32.mrb[84].mxu0  ;;  %v13352_v44 = vpop.f32.mrb[156].mxu1 }
 0x3a2   : > { %v2660_v4 = vadd.f32 %v2526_v1, %v12661_v48  ;;  %v9997_v20 = vpop.f32.mrb[85].mxu0  ;;  %v10251_v29 = vpop.f32.mrb[157].mxu1 }
 0x3a3   : > { %v2529_v13 = vpop.f32.mrb[86].mxu0  ;;  %v13358_v32 = vpop.f32.mrb[158].mxu1  ;;  %v15297_v29 = vld [vmem:[#allocation25_spill] sm:$0xff] }
 0x3a4   : > { %v2661_v0 = vadd.f32 %v2529_v13, %v15286_v37  ;;  %v13356_v8 = vadd.f32 %v15287_v34, %v2660_v4  ;;  %v9998_v16 = vpop.f32.mrb[87].mxu0  ;;  %v10252_v48 = vpop.f32.mrb[159].mxu1  ;;  %v15294_v13 = vld [vmem:[#allocation26_spill] sm:$0xff] }
 0x3a6   : > { %v13361_v43 = vadd.f32 %v15288_v50, %v2661_v0  ;;  %10200 = vmatmul.mubr.msk.bf16.gmra.mrb[192].mxu0 %vm634_vm3, %v15290_v56  ;;  %v15296_v0 = vld [vmem:[#allocation20_spill] sm:$0xff] }
 0x3a7   : > { %10203 = vmatprep.mubr.msk.bf16.mxu0 %vm11451_vm1, %v15172_v14 }
 0x3a8   : > { %15289 = vst [vmem:[#allocation17_spill] sm:$0xff] %v13361_v43  ;;  %v15333_v43 = vld [vmem:[#allocation50_spill] sm:$0xff] }
 0x3a9   : > { %v2534_v25 = vpop.f32.mrb[88].mxu0  ;;  %v13368_v26 = vpop.f32.mrb[160].mxu1 }
 0x3aa   : > { %v2662_v52 = vadd.f32 %v2534_v25, %v15291_v21  ;;  %v10001_v40 = vpop.f32.mrb[89].mxu0  ;;  %v10255_v4 = vpop.f32.mrb[161].mxu1  ;;  %v15298_v25 = vld [vmem:[#allocation28_spill] sm:$0xff] }
 0x3ab   : > { %v2537_v33 = vpop.f32.mrb[90].mxu0  ;;  %v13374_v20 = vpop.f32.mrb[162].mxu1 }
 0x3ac   : > { %v2663_v55 = vadd.f32 %v2537_v33, %v15292_v36  ;;  %v13372_v17 = vadd.f32 %v13052_v59, %v2662_v52  ;;  %v10002_v1 = vpop.f32.mrb[91].mxu0  ;;  %v10256_v34 = vpop.f32.mrb[163].mxu1  ;;  %v15299_v52 = vld [vmem:[#allocation12_spill] sm:$0xff] }
 0x3ad   : > { %v15301_v1 = vld [vmem:[#allocation29_spill] sm:$0xff] }
 0x3ae   : > { %15293 = vst [vmem:[#allocation21_spill] sm:$0xff] %v13372_v17  ;;  %v13377_v37 = vadd.f32 %v15294_v13, %v2663_v55  ;;  %10204 = vmatmul.mubr.msk.bf16.gmra.mrb[196].mxu0 %vm634_vm3, %v15296_v0  ;;  %v15303_v13 = vld [vmem:[#allocation10_spill] sm:$0xff] }
 0x3af   : > { %10207 = vmatprep.mubr.msk.bf16.mxu0 %vm11451_vm1, %v15172_v14 }
 0x3b0   : > { %15295 = vst [vmem:[#allocation23_spill] sm:$0xff] %v13377_v37  ;;  %v15321_v37 = vld [vmem:[#allocation14_spill] sm:$0xff] }
 0x3b1   : > { %v2542_v16 = vpop.f32.mrb[92].mxu0  ;;  %v13384_v48 = vpop.f32.mrb[164].mxu1 }
 0x3b2   : > { %v2664_v50 = vadd.f32 %v2542_v16, %v15297_v29  ;;  %v10005_v56 = vpop.f32.mrb[93].mxu0  ;;  %v10259_v36 = vpop.f32.mrb[165].mxu1  ;;  %v15304_v16 = vld [vmem:[#allocation44_spill] sm:$0xff] }
 0x3b3   : > { %v2545_v59 = vpop.f32.mrb[94].mxu0  ;;  %v13390_v55 = vpop.f32.mrb[166].mxu1 }
 0x3b4   : > { %v2665_v21 = vadd.f32 %v2545_v59, %v15298_v25  ;;  %v13388_v40 = vadd.f32 %v15299_v52, %v2664_v50  ;;  %v10006_v33 = vpop.f32.mrb[95].mxu0  ;;  %v10260_v0 = vpop.f32.mrb[167].mxu1  ;;  %v15305_v25 = vld [vmem:[#allocation45_spill] sm:$0xff] }
 0x3b6   : > { %15300 = vst [vmem:[#allocation43_spill] sm:$0xff] %v13388_v40  ;;  %v13393_v4 = vadd.f32 %v15301_v1, %v2665_v21  ;;  %10208 = vmatmul.mubr.msk.bf16.gmra.mrb[200].mxu0 %vm634_vm3, %v15303_v13  ;;  %v15307_v13 = vld [vmem:[#allocation39_spill] sm:$0xff]  ;;  %v15315_v40 = vld [vmem:[#allocation13_spill] sm:$0xff] }
 0x3b7   : > { %10211 = vmatprep.mubr.msk.bf16.mxu0 %vm11451_vm1, %v15172_v14 }
 0x3b8   : > { %15302 = vst [vmem:[#allocation19_spill] sm:$0xff] %v13393_v4  ;;  %v15309_v4 = vld [vmem:[#allocation27_spill] sm:$0xff] }
 0x3b9   : > { %v2550_v34 = vpop.f32.mrb[96].mxu0  ;;  %v13400_v59 = vpop.f32.mrb[168].mxu1 }
 0x3ba   : > { %v2666_v29 = vadd.f32 %v2550_v34, %v15304_v16  ;;  %v10009_v56 = vpop.f32.mrb[97].mxu0  ;;  %v10263_v36 = vpop.f32.mrb[169].mxu1 }
 0x3bb   : > { %v2553_v50 = vpop.f32.mrb[98].mxu0  ;;  %v13406_v1 = vpop.f32.mrb[170].mxu1  ;;  %v15310_v56 = vld [vmem:[#allocation46_spill] sm:$0xff] }
 0x3bc   : > { %v2667_v52 = vadd.f32 %v2553_v50, %v15305_v25  ;;  %v13404_v33 = vadd.f32 %v13097_v6, %v2666_v29  ;;  %v10010_v21 = vpop.f32.mrb[99].mxu0  ;;  %v10264_v34 = vpop.f32.mrb[171].mxu1 }
 0x3bd   : > { %v15311_v21 = vld [vmem:[#allocation47_spill] sm:$0xff] }
 0x3be   : > { %15306 = vst [vmem:[#allocation22_spill] sm:$0xff] %v13404_v33  ;;  %v13409_v0 = vadd.f32 %v15307_v13, %v2667_v52  ;;  %10212 = vmatmul.mubr.msk.bf16.gmra.mrb[204].mxu0 %vm634_vm3, %v15309_v4  ;;  %v15313_v4 = vld [vmem:[#allocation42_spill] sm:$0xff] }
 0x3bf   : > { %10215 = vmatprep.mubr.msk.bf16.mxu0 %vm11451_vm1, %v15172_v14 }
 0x3c0   : > { %15308 = vst [vmem:[#allocation26_spill] sm:$0xff] %v13409_v0 }
 0x3c1   : > { %v2558_v16 = vpop.f32.mrb[100].mxu0  ;;  %v13416_v29 = vpop.f32.mrb[172].mxu1 }
 0x3c2   : > { %v2668_v50 = vadd.f32 %v2558_v16, %v15310_v56  ;;  %v10013_v25 = vpop.f32.mrb[101].mxu0  ;;  %v10267_v13 = vpop.f32.mrb[173].mxu1 }
 0x3c3   : > { %v2561_v6 = vpop.f32.mrb[102].mxu0  ;;  %v13422_v0 = vpop.f32.mrb[174].mxu1  ;;  %v15316_v25 = vld [vmem:[#allocation30_spill] sm:$0xff] }
 0x3c4   : > { %v2669_v36 = vadd.f32 %v2561_v6, %v15311_v21  ;;  %v13420_v33 = vadd.f32 %v13122_v35, %v2668_v50  ;;  %v10014_v52 = vpop.f32.mrb[103].mxu0  ;;  %v10268_v16 = vpop.f32.mrb[175].mxu1 }
 0x3c5   : > { %v15317_v52 = vld [vmem:[#allocation31_spill] sm:$0xff] }
 0x3c6   : > { %15312 = vst [vmem:[#allocation20_spill] sm:$0xff] %v13420_v33  ;;  %v13425_v34 = vadd.f32 %v15313_v4, %v2669_v36  ;;  %10216 = vmatmul.mubr.msk.bf16.gmra.mrb[208].mxu0 %vm634_vm3, %v15315_v40  ;;  %v15319_v40 = vld [vmem:[#allocation49_spill] sm:$0xff] }
 0x3c7   : > { %10219 = vmatprep.mubr.msk.bf16.mxu0 %vm11451_vm1, %v15172_v14 }
 0x3c8   : > { %15314 = vst [vmem:[#allocation25_spill] sm:$0xff] %v13425_v34 }
 0x3c9   : > { %v2566_v56 = vpop.f32.mrb[104].mxu0  ;;  %v13432_v50 = vpop.f32.mrb[176].mxu1 }
 0x3ca   : > { %v2670_v6 = vadd.f32 %v2566_v56, %v15316_v25  ;;  %v10017_v21 = vpop.f32.mrb[105].mxu0  ;;  %v10271_v4 = vpop.f32.mrb[177].mxu1 }
 0x3cb   : > { %v2569_v35 = vpop.f32.mrb[106].mxu0  ;;  %v13438_v34 = vpop.f32.mrb[178].mxu1  ;;  %v15322_v21 = vld [vmem:[#allocation9_spill] sm:$0xff] }
 0x3cc   : > { %v2671_v13 = vadd.f32 %v2569_v35, %v15317_v52  ;;  %v13436_v33 = vadd.f32 %v13146_v22, %v2670_v6  ;;  %v10018_v36 = vpop.f32.mrb[107].mxu0  ;;  %v10272_v56 = vpop.f32.mrb[179].mxu1 }
 0x3cd   : > { %v15323_v36 = vld [vmem:[#allocation24_spill] sm:$0xff] }
 0x3ce   : > { %15318 = vst [vmem:[#allocation28_spill] sm:$0xff] %v13436_v33  ;;  %v13441_v16 = vadd.f32 %v15319_v40, %v2671_v13  ;;  %10220 = vmatmul.mubr.msk.bf16.gmra.mrb[212].mxu0 %vm634_vm3, %v15321_v37  ;;  %v15326_v56 = vld [vmem:[#allocation48_spill] sm:$0xff] }
 0x3cf   : > { %10223 = vmatprep.mubr.msk.bf16.mxu0 %vm11451_vm1, %v15172_v14 }
 0x3d0   : > { %15320 = vst [vmem:[#allocation12_spill] sm:$0xff] %v13441_v16 }
 0x3d1   : > { %v2574_v25 = vpop.f32.mrb[108].mxu0  ;;  %v13448_v6 = vpop.f32.mrb[180].mxu1 }
 0x3d2   : > { %v2672_v35 = vadd.f32 %v2574_v25, %v15322_v21  ;;  %v10021_v52 = vpop.f32.mrb[109].mxu0  ;;  %v10275_v40 = vpop.f32.mrb[181].mxu1 }
 0x3d3   : > { %v2577_v22 = vpop.f32.mrb[110].mxu0  ;;  %v13454_v16 = vpop.f32.mrb[182].mxu1  ;;  %v15327_v52 = vld [vmem:[#allocation32_spill] sm:$0xff] }
 0x3d4   : > { %v2673_v4 = vadd.f32 %v2577_v22, %v15323_v36  ;;  %v13452_v33 = vadd.f32 %v13169_v3, %v2672_v35  ;;  %v10022_v13 = vpop.f32.mrb[111].mxu0  ;;  %v10276_v25 = vpop.f32.mrb[183].mxu1 }
 0x3d5   : > { %v15328_v13 = vld [vmem:[#allocation33_spill] sm:$0xff] }
 0x3d6   : > { %15324 = vst [vmem:[#allocation29_spill] sm:$0xff] %v13452_v33  ;;  %v13457_v37 = vadd.f32 %v13176_v41, %v2673_v4  ;;  %10224 = vmatmul.mubr.msk.bf16.gmra.mrb[216].mxu0 %vm634_vm3, %v15326_v56  ;;  %v15329_v33 = vld [vmem:[#allocation51_spill] sm:$0xff]  ;;  %v15331_v56 = vld [vmem:[#allocation52_spill] sm:$0xff] }
 0x3d7   : > { %10227 = vmatprep.mubr.msk.bf16.mxu0 %vm11451_vm1, %v15172_v14 }
 0x3d8   : > { %15325 = vst [vmem:[#allocation10_spill] sm:$0xff] %v13457_v37 }
 0x3d9   : > { %v2582_v21 = vpop.f32.mrb[112].mxu0  ;;  %v13464_v35 = vpop.f32.mrb[184].mxu1 }
 0x3da   : > { %v2674_v22 = vadd.f32 %v2582_v21, %v15327_v52  ;;  %v10025_v36 = vpop.f32.mrb[113].mxu0  ;;  %v10279_v4 = vpop.f32.mrb[185].mxu1 }
 0x3db   : > { %v2585_v3 = vpop.f32.mrb[114].mxu0  ;;  %v13470_v37 = vpop.f32.mrb[186].mxu1  ;;  %v15334_v36 = vld [vmem:[#allocation34_spill] sm:$0xff] }
 0x3dc   : > { %v2675_v40 = vadd.f32 %v2585_v3, %v15328_v13  ;;  %v13468_v17 = vadd.f32 %v15329_v33, %v2674_v22  ;;  %v10026_v41 = vpop.f32.mrb[115].mxu0  ;;  %v10280_v21 = vpop.f32.mrb[187].mxu1 }
 0x3dd   : > { %v15335_v41 = vld [vmem:[#allocation11_spill] sm:$0xff] }
 0x3de   : > { %15330 = vst [vmem:[#allocation44_spill] sm:$0xff] %v13468_v17  ;;  %v13473_v25 = vadd.f32 %v15331_v56, %v2675_v40  ;;  %10228 = vmatmul.mubr.msk.bf16.gmra.mrb[220].mxu0 %vm634_vm3, %v15333_v43 }
 0x3df   : > { %10231 = vmatprep.mubr.msk.bf16.mxu0 %vm11451_vm1, %v15172_v14 }
 0x3e0   : > { %15332 = vst [vmem:[#allocation45_spill] sm:$0xff] %v13473_v25 }
 0x3e1   : > { %v2590_v52 = vpop.f32.mrb[116].mxu0  ;;  %v13480_v22 = vpop.f32.mrb[188].mxu1 }
 0x3e2   : > { %v2676_v3 = vadd.f32 %v2590_v52, %v15334_v36  ;;  %v10029_v13 = vpop.f32.mrb[117].mxu0  ;;  %v10283_v56 = vpop.f32.mrb[189].mxu1  ;;  %v15338_v36 = vld [vmem:[#allocation35_spill] sm:$0xff] }
 0x3e3   : > { %v2593_v33 = vpop.f32.mrb[118].mxu0  ;;  %v13486_v25 = vpop.f32.mrb[190].mxu1 }
 0x3e4   : > { %v2677_v4 = vadd.f32 %v2593_v33, %v15335_v41  ;;  %v13484_v17 = vadd.f32 %v13213_v57, %v2676_v3  ;;  %v10030_v40 = vpop.f32.mrb[119].mxu0  ;;  %v10284_v21 = vpop.f32.mrb[191].mxu1  ;;  %v15339_v41 = vld [vmem:[#allocation38_spill] sm:$0xff] }
 0x3e6   : > { %15336 = vst [vmem:[#allocation39_spill] sm:$0xff] %v13484_v17  ;;  %v13489_v43 = vadd.f32 %v13221_v27, %v2677_v4  ;;  %10232 = vmatmul.mubr.msk.bf16.gmra.mrb[224].mxu0 %vm634_vm3, %v13187_v2 }
 0x3e7   : > { %10235 = vmatprep.mubr.msk.bf16.mxu0 %vm11451_vm1, %v15172_v14 }
 0x3e8   : > { %15337 = vst [vmem:[#allocation27_spill] sm:$0xff] %v13489_v43 }
 0x3e9   : > { %v2598_v52 = vpop.f32.mrb[120].mxu0  ;;  %v13496_v33 = vpop.f32.mrb[192].mxu1 }
 0x3ea   : > { %v2678_v13 = vadd.f32 %v2598_v52, %v15338_v36  ;;  %v10033_v57 = vpop.f32.mrb[121].mxu0  ;;  %v10287_v40 = vpop.f32.mrb[193].mxu1  ;;  %v4085_v36 = vld [vmem:[%s11557_s19 + $0x14] sm:$0xe] }
 0x3eb   : > { %v2601_v3 = vpop.f32.mrb[122].mxu0  ;;  %v13502_v56 = vpop.f32.mrb[194].mxu1  ;;  %v11336_v40 = vld [vmem:[%s11557_s19 + $0x18] sm:$0xf] }
 0x3ec   : > { %v2679_v27 = vadd.f32 %v2601_v3, %v15339_v41  ;;  %v13500_v4 = vadd.f32 %v13236_v51, %v2678_v13  ;;  %v10034_v2 = vpop.f32.mrb[123].mxu0  ;;  %15341 = vst [vmem:[#allocation47_spill] sm:$0xff] %v13502_v56  ;;  %v10288_v52 = vpop.f32.mrb[195].mxu1  ;;  %v15343_v3 = vld [vmem:[#allocation36_spill] sm:$0xff] }
 0x3ed   : > { %v11294_v13 = vld [vmem:[%s11557_s19 + $0xc4] ss:$0 sps:$4 sm:$0x77]  }
 0x3ee   : > { %15340 = vst [vmem:[#allocation46_spill] sm:$0xff] %v13500_v4  ;;  %v13505_v21 = vadd.f32 %v13243_v31, %v2679_v27  ;;  %10236 = vmatmul.mubr.msk.bf16.gmra.mrb[228].mxu0 %vm634_vm3, %v13210_v19  ;;  %v8883_v4 = vcombine.low %v4085_v36, %v11336_v40  ;;  %v15344_v31 = vld [vmem:[#allocation37_spill] sm:$0xff] }
 0x3ef   : > { %10239 = vmatprep.mubr.msk.bf16.mxu0 %vm11451_vm1, %v15172_v14 }
 0x3f0   : > { %15342 = vst [vmem:[#allocation42_spill] sm:$0xff] %v13505_v21  ;;  %v4092_v36 = vrot.slane %v8883_v4, 1 }
 0x3f1   : > { %v2606_v57 = vpop.f32.mrb[124].mxu0  ;;  %v13515_v43 = vpop.f32.mrb[196].mxu1 }
 0x3f2   : > { %v2680_v41 = vadd.f32 %v2606_v57, %v15343_v3  ;;  %v10037_v51 = vpop.f32.mrb[125].mxu0  ;;  %v10291_v21 = vpop.f32.mrb[197].mxu1  ;;  %v11337_v3 = vld [vmem:[%s11557_s19 + $0x1c] sm:$0xff]  }
 0x3f3   : > { %v2609_v2 = vpop.f32.mrb[126].mxu0  ;;  %v13521_v17 = vpop.f32.mrb[198].mxu1  ;;  %v4093_v51 = vrot.slane %v11337_v3, 1 }
 0x3f4   : > { %v2681_v27 = vadd.f32 %v2609_v2, %v15344_v31  ;;  %v13519_v19 = vadd.f32 %v13257_v42, %v2680_v41  ;;  %v10038_v52 = vpop.f32.mrb[127].mxu0  ;;  %v10292_v57 = vpop.f32.mrb[199].mxu1  ;;  %v15346_v42 = vld [vmem:[#allocation7_spill] sm:$0xff] }
 0x3f5   : > { %v4094_v31 = vsel %vm1205_vm5, %v4092_v36, %v4093_v51  ;;  %v11338_v36 = vld [vmem:[%s11557_s19 + $0x24] sm:$0xff]  }
 0x3f6   : > { %v13524_v56 = vadd.f32 %v13263_v58, %v2681_v27  ;;  %10240 = vmatmul.mubr.msk.bf16.gmra.mrb[232].mxu0 %vm634_vm3, %v11294_v13  ;;  %v15347_v58 = vld [vmem:[#allocation15_spill] sm:$0xff] }
 0x3f7   : > { %10339 = vmatprep.mubr.msk.bf16.mxu0 %vm11451_vm1, %v15172_v14 }
 0x3f8   : > { %15345 = vst [vmem:[#allocation13_spill] sm:$0xff] %v13524_v56 }
 0x3f9   : > { %v2614_v2 = vpop.f32.mrb[128].mxu0  ;;  %v13532_v52 = vpop.f32.mrb[200].mxu1 }
 0x3fa   : > { %v2682_v41 = vadd.f32 %v2614_v2, %v15346_v42  ;;  %v10041_v40 = vpop.f32.mrb[129].mxu0  ;;  %v10295_v56 = vpop.f32.mrb[201].mxu1  ;;  %v4095_v42 = vrot.slane %v11338_v36, 1 }
 0x3fb   : > { %v2617_v21 = vpop.f32.mrb[130].mxu0  ;;  %v13538_v4 = vpop.f32.mrb[202].mxu1 }
 0x3fc   : > { %v2683_v27 = vadd.f32 %v2617_v21, %v15347_v58  ;;  %v13536_v13 = vadd.f32 %v13274_v53, %v2682_v41  ;;  %v10042_v57 = vpop.f32.mrb[131].mxu0  ;;  %v10296_v2 = vpop.f32.mrb[203].mxu1  ;;  %v15350_v21 = vld [vmem:[#allocation40_spill] sm:$0xff]  ;;  %v4096_v56 = vsel %vm1205_vm5, %v4093_v51, %v4095_v42  ;;  %v11339_v51 = vld [vmem:[%s11557_s19 + $0x2c] sm:$0xff]  }
 0x3fe   : > { %15348 = vst [vmem:[#allocation30_spill] sm:$0xff] %v13536_v13  ;;  %v13541_v3 = vadd.f32 %v13280_v30, %v2683_v27  ;;  %10340 = vmatmul.mubr.msk.bf16.vlgmr.msra.gmra.mrb[236].mxu0 %vm634_vm3, %v4094_v31  ;;  %v15351_v30 = vld [vmem:[#allocation16_spill] sm:$0xff] }
 0x3ff   : > { %10343 = vmatprep.mubr.msk.bf16.mxu0 %vm11451_vm1, %v15172_v14 }
 0x400   : > { %15349 = vst [vmem:[#allocation31_spill] sm:$0xff] %v13541_v3 }
 0x401   : > { %v2622_v40 = vpop.f32.mrb[132].mxu0  ;;  %v13549_v57 = vpop.f32.mrb[204].mxu1 }
 0x402   : > { %v2684_v53 = vadd.f32 %v2622_v40, %v15350_v21  ;;  %v10045_v41 = vpop.f32.mrb[133].mxu0  ;;  %v10299_v3 = vpop.f32.mrb[205].mxu1  ;;  %v4097_v21 = vrot.slane %v11339_v51, 1 }
 0x403   : > { %v2625_v58 = vpop.f32.mrb[134].mxu0  ;;  %v13555_v13 = vpop.f32.mrb[206].mxu1 }
 0x404   : > { %v2685_v27 = vadd.f32 %v2625_v58, %v15351_v30  ;;  %v13553_v31 = vadd.f32 %v13290_v23, %v2684_v53  ;;  %v10046_v2 = vpop.f32.mrb[135].mxu0  ;;  %v10300_v40 = vpop.f32.mrb[207].mxu1  ;;  %v15354_v58 = vld [vmem:[#allocation41_spill] sm:$0xff]  ;;  %v4098_v3 = vsel %vm1205_vm5, %v4095_v42, %v4097_v21  ;;  %v11340_v42 = vld [vmem:[%s11557_s19 + $0x34] sm:$0xff]  }
 0x406   : > { %15352 = vst [vmem:[#allocation49_spill] sm:$0xff] %v13553_v31  ;;  %v13558_v36 = vadd.f32 %v13296_v15, %v2685_v27  ;;  %10344 = vmatmul.mubr.msk.bf16.gmra.mrb[240].mxu0 %vm634_vm3, %v4096_v56  ;;  %v15355_v15 = vld [vmem:[#allocation18_spill] sm:$0xff] }
 0x407   : > { %10347 = vmatprep.mubr.msk.bf16.mxu0 %vm11451_vm1, %v15172_v14 }
 0x408   : > { %15353 = vst [vmem:[#allocation14_spill] sm:$0xff] %v13558_v36 }
 0x409   : > { %v2630_v41 = vpop.f32.mrb[136].mxu0  ;;  %v13566_v2 = vpop.f32.mrb[208].mxu1 }
 0x40a   : > { %v2686_v23 = vadd.f32 %v2630_v41, %v15354_v58  ;;  %v10049_v53 = vpop.f32.mrb[137].mxu0  ;;  %v10303_v36 = vpop.f32.mrb[209].mxu1  ;;  %v4099_v58 = vrot.slane %v11340_v42, 1  ;;  %v11341_v42 = vld [vmem:[%s11557_s19 + $0x3c] sm:$0xff]  }
 0x40b   : > { %v2633_v30 = vpop.f32.mrb[138].mxu0  ;;  %v13572_v31 = vpop.f32.mrb[210].mxu1 }
 0x40c   : > { %v2687_v27 = vadd.f32 %v2633_v30, %v15355_v15  ;;  %v13570_v56 = vadd.f32 %v13306_v60, %v2686_v23  ;;  %v10050_v40 = vpop.f32.mrb[139].mxu0  ;;  %v10304_v41 = vpop.f32.mrb[211].mxu1  ;;  %v15358_v30 = vld [vmem:[#allocation8_spill] sm:$0xff]  ;;  %v4100_v36 = vsel %vm1205_vm5, %v4097_v21, %v4099_v58 }
 0x40e   : > { %15356 = vst [vmem:[#allocation9_spill] sm:$0xff] %v13570_v56  ;;  %v13575_v51 = vadd.f32 %v13312_v45, %v2687_v27  ;;  %10348 = vmatmul.mubr.msk.bf16.gmra.mrb[244].mxu0 %vm634_vm3, %v4098_v3 }
 0x40f   : > { %10351 = vmatprep.mubr.msk.bf16.mxu0 %vm11451_vm1, %v15172_v14 }
 0x410   : > { %15357 = vst [vmem:[#allocation24_spill] sm:$0xff] %v13575_v51 }
 0x411   : > { %v2638_v53 = vpop.f32.mrb[140].mxu0  ;;  %v13583_v40 = vpop.f32.mrb[212].mxu1 }
 0x412   : > { %v2688_v60 = vadd.f32 %v2638_v53, %v15358_v30  ;;  %v10053_v23 = vpop.f32.mrb[141].mxu0  ;;  %v10307_v27 = vpop.f32.mrb[213].mxu1  ;;  %v4101_v53 = vrot.slane %v11341_v42, 1 }
 0x413   : > { %v2641_v15 = vpop.f32.mrb[142].mxu0  ;;  %v13588_v41 = vpop.f32.mrb[214].mxu1 }
 0x414   : > { %v13586_v45 = vadd.f32 %v13322_v39, %v2688_v60  ;;  %v10054_v3 = vpop.f32.mrb[143].mxu0  ;;  %v10308_v51 = vpop.f32.mrb[215].mxu1  ;;  %v4102_v39 = vsel %vm1205_vm5, %v4099_v58, %v4101_v53  ;;  %v11342_v58 = vld [vmem:[%s11557_s19 + $0x44] sm:$0xff]  }
 0x415   : > { %v15360_v3 = vld [vmem:[#allocation53_spill] sm:$0xff] }
 0x416   : > { %15359 = vst [vmem:[#allocation48_spill] sm:$0xff] %v13586_v45  ;;  %10352 = vmatmul.mubr.msk.bf16.gmra.mrb[248].mxu0 %vm634_vm3, %v4100_v36 }
 0x417   : > { %10355 = vmatprep.mubr.msk.bf16.mxu0 %vm11451_vm1, %v15172_v14 }
 0x419   : > { %v3352_v30 = vpop.f32.mrb[144].mxu0  ;;  %v13596_v60 = vpop.f32.mrb[216].mxu1 }
 0x41a   : > { %v3534_v21 = vadd.f32 %v3352_v30, %v13218_v28  ;;  %v10153_v23 = vpop.f32.mrb[145].mxu0  ;;  %v10311_v45 = vpop.f32.mrb[217].mxu1  ;;  %v4103_v30 = vrot.slane %v11342_v58, 1 }
 0x41b   : > { %v3355_v15 = vpop.f32.mrb[146].mxu0  ;;  %v13602_v56 = vpop.f32.mrb[218].mxu1 }
 0x41c   : > { %v3535_v27 = vadd.f32 %v3355_v15, %v15360_v3  ;;  %v13600_v36 = vadd.f32 %v13336_v46, %v3534_v21  ;;  %v10154_v51 = vpop.f32.mrb[147].mxu0  ;;  %v10312_v28 = vpop.f32.mrb[219].mxu1  ;;  %v4104_v45 = vsel %vm1205_vm5, %v4101_v53, %v4103_v30  ;;  %v11343_v53 = vld [vmem:[%s11557_s19 + $0x4c] sm:$0xff]  }
 0x41e   : > { %v13605_v42 = vadd.f32 %v13342_v49, %v3535_v27  ;;  %10356 = vmatmul.mubr.msk.bf16.gmra.mrb[252].mxu0 %vm634_vm3, %v4102_v39 }
 0x41f   : > { %10359 = vmatprep.mubr.msk.bf16.mxu0 %vm11451_vm1, %v15172_v14 }
 0x421   : > { %v3360_v23 = vpop.f32.mrb[148].mxu0  ;;  %v13613_v3 = vpop.f32.mrb[220].mxu1 }
 0x422   : > { %v3536_v46 = vadd.f32 %v3360_v23, %v13240_v12  ;;  %v10157_v21 = vpop.f32.mrb[149].mxu0  ;;  %v10315_v51 = vpop.f32.mrb[221].mxu1  ;;  %v4105_v23 = vrot.slane %v11343_v53, 1 }
 0x423   : > { %v3363_v15 = vpop.f32.mrb[150].mxu0  ;;  %v13619_v28 = vpop.f32.mrb[222].mxu1 }
 0x424   : > { %v3537_v49 = vadd.f32 %v3363_v15, %v13246_v5  ;;  %v13617_v39 = vadd.f32 %v13352_v44, %v3536_v46  ;;  %v10158_v27 = vpop.f32.mrb[151].mxu0  ;;  %v10316_v12 = vpop.f32.mrb[223].mxu1  ;;  %v4106_v15 = vsel %vm1205_vm5, %v4103_v30, %v4105_v23  ;;  %v11344_v30 = vld [vmem:[%s11557_s19 + $0x54] sm:$0xff]  }
 0x426   : > { %v13622_v58 = vadd.f32 %v13358_v32, %v3537_v49  ;;  %10360 = vmatmul.mubr.msk.bf16.gmra.mrb[0].mxu0 %vm634_vm3, %v4104_v45 }
 0x427   : > { %10363 = vmatprep.mubr.msk.bf16.mxu0 %vm11451_vm1, %v15172_v14 }
 0x429   : > { %v3368_v5 = vpop.f32.mrb[152].mxu0  ;;  %v13630_v27 = vpop.f32.mrb[224].mxu1 }
 0x42a   : > { %v3538_v44 = vadd.f32 %v3368_v5, %v13260_v38  ;;  %v10161_v46 = vpop.f32.mrb[153].mxu0  ;;  %v10319_v51 = vpop.f32.mrb[225].mxu1  ;;  %v4107_v5 = vrot.slane %v11344_v30, 1 }
 0x42b   : > { %v3371_v21 = vpop.f32.mrb[154].mxu0  ;;  %v13636_v12 = vpop.f32.mrb[226].mxu1 }
 0x42c   : > { %v3539_v32 = vadd.f32 %v3371_v21, %v13266_v7  ;;  %v13634_v45 = vadd.f32 %v13368_v26, %v3538_v44  ;;  %v10162_v49 = vpop.f32.mrb[155].mxu0  ;;  %v10320_v38 = vpop.f32.mrb[227].mxu1  ;;  %v4108_v21 = vsel %vm1205_vm5, %v4105_v23, %v4107_v5  ;;  %v11345_v23 = vld [vmem:[%s11557_s19 + $0x5c] sm:$0xff]  }
 0x42e   : > { %v13639_v53 = vadd.f32 %v13374_v20, %v3539_v32  ;;  %10364 = vmatmul.mubr.msk.bf16.gmra.mrb[4].mxu0 %vm634_vm3, %v4106_v15 }
 0x42f   : > { %10367 = vmatprep.mubr.msk.bf16.mxu0 %vm11451_vm1, %v15172_v14 }
 0x431   : > { %v3376_v7 = vpop.f32.mrb[156].mxu0  ;;  %v13647_v49 = vpop.f32.mrb[228].mxu1 }
 0x432   : > { %v3540_v26 = vadd.f32 %v3376_v7, %v13277_v24  ;;  %v10165_v44 = vpop.f32.mrb[157].mxu0  ;;  %v10323_v51 = vpop.f32.mrb[229].mxu1  ;;  %v4109_v7 = vrot.slane %v11345_v23, 1 }
 0x433   : > { %v3379_v46 = vpop.f32.mrb[158].mxu0  ;;  %v13653_v38 = vpop.f32.mrb[230].mxu1 }
 0x434   : > { %v3541_v20 = vadd.f32 %v3379_v46, %v13283_v61  ;;  %v13651_v15 = vadd.f32 %v13384_v48, %v3540_v26  ;;  %v10166_v32 = vpop.f32.mrb[159].mxu0  ;;  %v10324_v24 = vpop.f32.mrb[231].mxu1  ;;  %v4110_v46 = vsel %vm1205_vm5, %v4107_v5, %v4109_v7  ;;  %v11346_v5 = vld [vmem:[%s11557_s19 + $0x64] sm:$0xff]  }
 0x436   : > { %v13656_v30 = vadd.f32 %v13390_v55, %v3541_v20  ;;  %10368 = vmatmul.mubr.msk.bf16.gmra.mrb[8].mxu0 %vm634_vm3, %v4108_v21 }
 0x437   : > { %10371 = vmatprep.mubr.msk.bf16.mxu0 %vm11451_vm1, %v15172_v14 }
 0x439   : > { %v3384_v61 = vpop.f32.mrb[160].mxu0  ;;  %v13664_v32 = vpop.f32.mrb[232].mxu1 }
 0x43a   : > { %v3542_v48 = vadd.f32 %v3384_v61, %v13293_v9  ;;  %v10169_v26 = vpop.f32.mrb[161].mxu0  ;;  %v10327_v51 = vpop.f32.mrb[233].mxu1  ;;  %v4111_v61 = vrot.slane %v11346_v5, 1 }
 0x43b   : > { %v3387_v44 = vpop.f32.mrb[162].mxu0  ;;  %v13670_v24 = vpop.f32.mrb[234].mxu1 }
 0x43c   : > { %v3543_v55 = vadd.f32 %v3387_v44, %v13299_v18  ;;  %v13668_v21 = vadd.f32 %v13400_v59, %v3542_v48  ;;  %v10170_v20 = vpop.f32.mrb[163].mxu0  ;;  %v10328_v9 = vpop.f32.mrb[235].mxu1  ;;  %v4112_v44 = vsel %vm1205_vm5, %v4109_v7, %v4111_v61  ;;  %v11347_v7 = vld [vmem:[%s11557_s19 + $0x6c] sm:$0xff]  }
 0x43e   : > { %v13673_v23 = vadd.f32 %v13406_v1, %v3543_v55  ;;  %10372 = vmatmul.mubr.msk.bf16.gmra.mrb[12].mxu0 %vm634_vm3, %v4110_v46 }
 0x43f   : > { %10375 = vmatprep.mubr.msk.bf16.mxu0 %vm11451_vm1, %v15172_v14 }
 0x441   : > { %v3392_v18 = vpop.f32.mrb[164].mxu0  ;;  %v13681_v20 = vpop.f32.mrb[236].mxu1 }
 0x442   : > { %v3544_v59 = vadd.f32 %v3392_v18, %v13309_v63  ;;  %v10173_v48 = vpop.f32.mrb[165].mxu0  ;;  %v10331_v51 = vpop.f32.mrb[237].mxu1  ;;  %v4113_v18 = vrot.slane %v11347_v7, 1 }
 0x443   : > { %v3395_v26 = vpop.f32.mrb[166].mxu0  ;;  %v13687_v9 = vpop.f32.mrb[238].mxu1 }
 0x444   : > { %v3545_v1 = vadd.f32 %v3395_v26, %v13315_v10  ;;  %v13685_v46 = vadd.f32 %v13416_v29, %v3544_v59  ;;  %v10174_v55 = vpop.f32.mrb[167].mxu0  ;;  %v10332_v63 = vpop.f32.mrb[239].mxu1  ;;  %v4114_v26 = vsel %vm1205_vm5, %v4111_v61, %v4113_v18  ;;  %v11348_v61 = vld [vmem:[%s11557_s19 + $0x74] sm:$0xff]  }
 0x446   : > { %v13690_v5 = vadd.f32 %v13422_v0, %v3545_v1  ;;  %10376 = vmatmul.mubr.msk.bf16.gmra.mrb[16].mxu0 %vm634_vm3, %v4112_v44 }
 0x447   : > { %10379 = vmatprep.mubr.msk.bf16.mxu0 %vm11451_vm1, %v15172_v14 }
 0x449   : > { %v3400_v10 = vpop.f32.mrb[168].mxu0  ;;  %v13698_v55 = vpop.f32.mrb[240].mxu1 }
 0x44a   : > { %v3546_v29 = vadd.f32 %v3400_v10, %v13325_v54  ;;  %v10177_v59 = vpop.f32.mrb[169].mxu0  ;;  %v10335_v51 = vpop.f32.mrb[241].mxu1  ;;  %v4115_v10 = vrot.slane %v11348_v61, 1  ;;  %v15361_v61 = vld [vmem:[#allocation17_spill] sm:$0xff] }
 0x44b   : > { %v3403_v48 = vpop.f32.mrb[170].mxu0  ;;  %v4037_v63 = vpop.f32.mrb[242].mxu1 }
 0x44c   : > { %v3547_v0 = vadd.f32 %v3403_v48, %v13329_v11  ;;  %v13702_v44 = vadd.f32 %v13432_v50, %v3546_v29  ;;  %v10178_v1 = vpop.f32.mrb[171].mxu0  ;;  %v10336_v54 = vpop.f32.mrb[243].mxu1  ;;  %v4116_v48 = vsel %vm1205_vm5, %v4113_v18, %v4115_v10 }
 0x44e   : > { %v13705_v7 = vadd.f32 %v13438_v34, %v3547_v0  ;;  %10380 = vmatmul.mubr.msk.bf16.gmra.mrb[20].mxu0 %vm634_vm3, %v4114_v26 }
 0x44f   : > { %10383 = vmatprep.mubr.msk.bf16.mxu0 %vm11451_vm1, %v15172_v14 }
 0x451   : > { %v3408_v59 = vpop.f32.mrb[172].mxu0 }
 0x452   : > { %v3548_v11 = vadd.f32 %v3408_v59, %v13340_v47  ;;  %v10181_v50 = vpop.f32.mrb[173].mxu0  ;;  %v11349_v47 = vld [vmem:[%s11557_s19 + $0x7c] sm:$0xff]  }
 0x453   : > { %v3411_v29 = vpop.f32.mrb[174].mxu0  ;;  %v4117_v51 = vrot.slane %v11349_v47, 1 }
 0x454   : > { %v3549_v1 = vadd.f32 %v3411_v29, %v13345_v62  ;;  %v13715_v34 = vadd.f32 %v13448_v6, %v3548_v11  ;;  %v10182_v26 = vpop.f32.mrb[175].mxu0 }
 0x455   : > { %v4118_v6 = vsel %vm1205_vm5, %v4115_v10, %v4117_v51 }
 0x456   : > { %v13718_v0 = vadd.f32 %v13454_v16, %v3549_v1  ;;  %10384 = vmatmul.mubr.msk.bf16.gmra.mrb[24].mxu0 %vm634_vm3, %v4116_v48  ;;  %v15362_v1 = vld [vmem:[#allocation21_spill] sm:$0xff] }
 0x457   : > { %10387 = vmatprep.mubr.msk.bf16.mxu0 %vm11451_vm1, %v15172_v14 }
 0x459   : > { %v3416_v63 = vpop.f32.mrb[176].mxu0 }
 0x45a   : > { %v3550_v18 = vadd.f32 %v3416_v63, %v13356_v8  ;;  %v10185_v54 = vpop.f32.mrb[177].mxu0  ;;  %v11350_v8 = vld [vmem:[%s11557_s19 + $0x84] sm:$0xff]   ;;  %v15363_v63 = vld [vmem:[#allocation23_spill] sm:$0xff] }
 0x45b   : > { %v3419_v62 = vpop.f32.mrb[178].mxu0  ;;  %v4119_v29 = vrot.slane %v11350_v8, 1 }
 0x45c   : > { %v3551_v59 = vadd.f32 %v3419_v62, %v15361_v61  ;;  %v13728_v16 = vadd.f32 %v13464_v35, %v3550_v18  ;;  %v10186_v11 = vpop.f32.mrb[179].mxu0 }
 0x45d   : > { %v4120_v35 = vsel %vm1205_vm5, %v4117_v51, %v4119_v29  ;;  %v15364_v11 = vld [vmem:[#allocation43_spill] sm:$0xff] }
 0x45e   : > { %v13731_v50 = vadd.f32 %v13470_v37, %v3551_v59  ;;  %10388 = vmatmul.mubr.msk.bf16.gmra.mrb[28].mxu0 %vm634_vm3, %v4118_v6  ;;  %v11351_v6 = vld [vmem:[%s11557_s19 + $0x8c] sm:$0xff]  }
 0x45f   : > { %10391 = vmatprep.mubr.msk.bf16.mxu0 %vm11451_vm1, %v15172_v14  ;;  %v4121_v61 = vrot.slane %v11351_v6, 1 }
 0x461   : > { %v3424_v48 = vpop.f32.mrb[180].mxu0 }
 0x462   : > { %v3552_v10 = vadd.f32 %v3424_v48, %v15362_v1  ;;  %v10189_v26 = vpop.f32.mrb[181].mxu0  ;;  %v15365_v1 = vld [vmem:[#allocation19_spill] sm:$0xff] }
 0x463   : > { %v3427_v47 = vpop.f32.mrb[182].mxu0 }
 0x464   : > { %v3553_v18 = vadd.f32 %v3427_v47, %v15363_v63  ;;  %v13741_v37 = vadd.f32 %v13480_v22, %v3552_v10  ;;  %v10190_v54 = vpop.f32.mrb[183].mxu0  ;;  %v4122_v22 = vsel %vm1205_vm5, %v4119_v29, %v4121_v61  ;;  %v15366_v47 = vld [vmem:[#allocation47_spill] sm:$0xff] }
 0x465   : > { %v11352_v63 = vld [vmem:[%s11557_s19 + $0x94] sm:$0xff]  }
 0x466   : > { %v13744_v62 = vadd.f32 %v13486_v25, %v3553_v18  ;;  %10392 = vmatmul.mubr.msk.bf16.gmra.mrb[32].mxu0 %vm634_vm3, %v4120_v35  ;;  %v4123_v18 = vrot.slane %v11352_v63, 1  ;;  %v11296_v29 = vld [vmem:[%s15078_s3 + $0x10] sm:$0xff]  }
 0x467   : > { %10395 = vmatprep.mubr.msk.bf16.mxu0 %vm11451_vm1, %v15172_v14  ;;  %10431 = vmatprep.subr.bf16.mxu1 %v11296_v29 }
 0x468   : > { %10432 = vmatpush3.bf16.msra.mxu1 %v11296_v29  ;;  %v15369_v29 = vld [vmem:[#allocation20_spill] sm:$0xff] }
 0x469   : > { %v3432_v59 = vpop.f32.mrb[184].mxu0 }
 0x46a   : > { %v3554_v51 = vadd.f32 %v3432_v59, %v15364_v11  ;;  %v10193_v8 = vpop.f32.mrb[185].mxu0 }
 0x46b   : > { %v3435_v48 = vpop.f32.mrb[186].mxu0  ;;  %v11297_v8 = vld [vmem:[%s15078_s3 + $0x18] sm:$0xff]  }
 0x46c   : > { %v3555_v10 = vadd.f32 %v3435_v48, %v15365_v1  ;;  %v13754_v25 = vadd.f32 %v13496_v33, %v3554_v51  ;;  %v10194_v26 = vpop.f32.mrb[187].mxu0  ;;  %v15367_v33 = vld [vmem:[#allocation22_spill] sm:$0xff]  ;;  %v4124_v51 = vsel %vm1205_vm5, %v4121_v61, %v4123_v18  ;;  %10433 = vmatprep.subr.bf16.mxu1 %v11297_v8  ;;  %v11353_v61 = vld [vmem:[%s11557_s19 + $0x9c] sm:$0xff]  }
 0x46d   : > { %v15368_v48 = vld [vmem:[#allocation26_spill] sm:$0xff]  ;;  %10434 = vmatpush3.bf16.msra.mxu1 %v11297_v8 }
 0x46e   : > { %v13757_v35 = vadd.f32 %v15366_v47, %v3555_v10  ;;  %10396 = vmatmul.mubr.msk.bf16.gmra.mrb[36].mxu0 %vm634_vm3, %v4122_v22  ;;  %v4125_v47 = vrot.slane %v11353_v61, 1  ;;  %v15371_v61 = vld [vmem:[#allocation28_spill] sm:$0xff] }
 0x46f   : > { %10399 = vmatprep.mubr.msk.bf16.mxu0 %vm11451_vm1, %v15172_v14 }
 0x471   : > { %v3440_v54 = vpop.f32.mrb[188].mxu0 }
 0x472   : > { %v3556_v6 = vadd.f32 %v3440_v54, %v15367_v33  ;;  %v10197_v59 = vpop.f32.mrb[189].mxu0 }
 0x473   : > { %v3443_v11 = vpop.f32.mrb[190].mxu0  ;;  %v15370_v59 = vld [vmem:[#allocation25_spill] sm:$0xff] }
 0x474   : > { %v3557_v22 = vadd.f32 %v3443_v11, %v15368_v48  ;;  %v13773_v1 = vadd.f32 %v13515_v43, %v3556_v6  ;;  %v10198_v10 = vpop.f32.mrb[191].mxu0  ;;  %v4126_v6 = vsel %vm1205_vm5, %v4123_v18, %v4125_v47  ;;  %v11354_v48 = vld [vmem:[%s11557_s19 + $0xa4] sm:$0xff]  }
 0x476   : > { %v13776_v26 = vadd.f32 %v13521_v17, %v3557_v22  ;;  %10400 = vmatmul.mubr.msk.bf16.gmra.mrb[40].mxu0 %vm634_vm3, %v4124_v51  ;;  %v4127_v22 = vrot.slane %v11354_v48, 1  ;;  %v15373_v48 = vld [vmem:[#allocation29_spill] sm:$0xff] }
 0x477   : > { %10403 = vmatprep.mubr.msk.bf16.mxu0 %vm11451_vm1, %v15172_v14 }
 0x479   : > { %v3448_v63 = vpop.f32.mrb[192].mxu0 }
 0x47a   : > { %v3558_v54 = vadd.f32 %v3448_v63, %v15369_v29  ;;  %v10201_v33 = vpop.f32.mrb[193].mxu0 }
 0x47b   : > { %v3451_v43 = vpop.f32.mrb[194].mxu0 }
 0x47c   : > { %v3559_v11 = vadd.f32 %v3451_v43, %v15370_v59  ;;  %v13786_v17 = vadd.f32 %v13532_v52, %v3558_v54  ;;  %v10202_v51 = vpop.f32.mrb[195].mxu0  ;;  %v4128_v52 = vsel %vm1205_vm5, %v4125_v47, %v4127_v22  ;;  %v15372_v54 = vld [vmem:[#allocation12_spill] sm:$0xff]  ;;  %v11355_v59 = vld [vmem:[%s11557_s19 + $0xac] sm:$0xff]  }
 0x47e   : > { %v13789_v8 = vadd.f32 %v13538_v4, %v3559_v11  ;;  %10404 = vmatmul.mubr.msk.bf16.gmra.mrb[44].mxu0 %vm634_vm3, %v4126_v6  ;;  %v4129_v11 = vrot.slane %v11355_v59, 1  ;;  %v15375_v59 = vld [vmem:[#allocation44_spill] sm:$0xff] }
 0x47f   : > { %10407 = vmatprep.mubr.msk.bf16.mxu0 %vm11451_vm1, %v15172_v14 }
 0x481   : > { %v3456_v10 = vpop.f32.mrb[196].mxu0 }
 0x482   : > { %v3560_v18 = vadd.f32 %v3456_v10, %v15371_v61  ;;  %v10205_v63 = vpop.f32.mrb[197].mxu0 }
 0x483   : > { %v3459_v29 = vpop.f32.mrb[198].mxu0 }
 0x484   : > { %v3561_v33 = vadd.f32 %v3459_v29, %v15372_v54  ;;  %v13799_v4 = vadd.f32 %v13549_v57, %v3560_v18  ;;  %v10206_v43 = vpop.f32.mrb[199].mxu0  ;;  %v4130_v57 = vsel %vm1205_vm5, %v4127_v22, %v4129_v11  ;;  %v15374_v18 = vld [vmem:[#allocation10_spill] sm:$0xff]  ;;  %v11356_v54 = vld [vmem:[%s11557_s19 + $0xb4] sm:$0xff]  }
 0x486   : > { %v13802_v6 = vadd.f32 %v13555_v13, %v3561_v33  ;;  %10408 = vmatmul.mubr.msk.bf16.gmra.mrb[48].mxu0 %vm634_vm3, %v4128_v52  ;;  %v4131_v33 = vrot.slane %v11356_v54, 1  ;;  %v15377_v54 = vld [vmem:[#allocation39_spill] sm:$0xff] }
 0x487   : > { %10411 = vmatprep.mubr.msk.bf16.mxu0 %vm11451_vm1, %v15172_v14 }
 0x489   : > { %v3464_v51 = vpop.f32.mrb[200].mxu0 }
 0x48a   : > { %v3562_v47 = vadd.f32 %v3464_v51, %v15373_v48  ;;  %v10209_v10 = vpop.f32.mrb[201].mxu0 }
 0x48b   : > { %v3467_v61 = vpop.f32.mrb[202].mxu0 }
 0x48c   : > { %v3563_v63 = vadd.f32 %v3467_v61, %v15374_v18  ;;  %v13812_v13 = vadd.f32 %v13566_v2, %v3562_v47  ;;  %v10210_v29 = vpop.f32.mrb[203].mxu0  ;;  %v4132_v2 = vsel %vm1205_vm5, %v4129_v11, %v4131_v33  ;;  %v15376_v47 = vld [vmem:[#allocation45_spill] sm:$0xff] }
 0x48d   : > { %v11357_v18 = vld [vmem:[%s11557_s19 + $0xbc] sm:$0xff]  }
 0x48e   : > { %v13815_v52 = vadd.f32 %v13572_v31, %v3563_v63  ;;  %10412 = vmatmul.mubr.msk.bf16.gmra.mrb[52].mxu0 %vm634_vm3, %v4130_v57  ;;  %v4133_v63 = vrot.slane %v11357_v18, 1  ;;  %v15379_v18 = vld [vmem:[#allocation46_spill] sm:$0xff] }
 0x48f   : > { %10415 = vmatprep.mubr.msk.bf16.mxu0 %vm11451_vm1, %v15172_v14 }
 0x491   : > { %v3472_v43 = vpop.f32.mrb[204].mxu0 }
 0x492   : > { %v3564_v22 = vadd.f32 %v3472_v43, %v15375_v59  ;;  %v10213_v51 = vpop.f32.mrb[205].mxu0 }
 0x493   : > { %v3475_v48 = vpop.f32.mrb[206].mxu0 }
 0x494   : > { %v3565_v10 = vadd.f32 %v3475_v48, %v15376_v47  ;;  %v13825_v31 = vadd.f32 %v13583_v40, %v3564_v22  ;;  %v10214_v61 = vpop.f32.mrb[207].mxu0  ;;  %v4134_v40 = vsel %vm1205_vm5, %v4131_v33, %v4133_v63  ;;  %v15378_v22 = vld [vmem:[#allocation27_spill] sm:$0xff]  ;;  %v11358_v47 = vld [vmem:[%s11557_s19 + $0xc4] ss:$0 sps:$4 sm:$0xff]   ;;  %s270_s19 = sand.u32 1, %s11440_s25  }
 0x495   : > { %s8599_s13 = sshll.u32 %s270_s19, 4  ;;  %s8522_s21 = scalar_lea.sflag [#allocation5], %s270_s19 }
 0x496   : > { %v13828_v57 = vadd.f32 %v13588_v41, %v3565_v10  ;;  %10416 = vmatmul.mubr.msk.bf16.gmra.mrb[56].mxu0 %vm634_vm3, %v4132_v2  ;;  %v4135_v10 = vrot.slane %v11358_v47, 1  ;;  %s272_s14 = scalar_lea.vmem [#allocation4], %s8599_s13 }
 0x497   : > { %10419 = vmatprep.mubr.msk.bf16.mxu0 %vm11451_vm1, %v15172_v14  ;;  %s8536_s16 = sshll.u32 %s272_s14, 4  ;;  %s15035_s16 = int_to_ptr.vmem [resolvable:$true] %s8536_s16 }
 0x498   : > { %s11386_s28 = scalar_lea.vmem %s15035_s16, 256  ;;  %p11393_p0 = scmp.lt.s32.totalorder %s15035_s16, %s11391_s23 }
 0x499   : > { %v3480_v29 = vpop.f32.mrb[208].mxu0  ;;  %p11387_p11 = scmp.ne.s32.totalorder %s15035_s16, %s11386_s28  ;;  %p11394_p1 = scmp.lt.s32.totalorder %s11392_s29, %s11386_s28 }
 0x49a   : > { %v3566_v11 = vadd.f32 %v3480_v29, %v15377_v54  ;;  %v10217_v43 = vpop.f32.mrb[209].mxu0 }
 0x49b   : > { %v3483_v59 = vpop.f32.mrb[210].mxu0  ;;  %v4136_v43 = vsel %vm1205_vm5, %v4133_v63, %v4135_v10  ;;  %v15381_v63 = vld [vmem:[#allocation13_spill] sm:$0xff]  ;;  %p11388_p12 = pnand %p11387_p11, %p11532_p5  ;;  %p11395_p2 = por %p11394_p1, %p11393_p0 }
 0x49c   : > { %v3567_v51 = vadd.f32 %v3483_v59, %v15378_v22  ;;  %v13838_v48 = vadd.f32 %v13596_v60, %v3566_v11  ;;  %v10218_v41 = vpop.f32.mrb[211].mxu0  ;;  %v15380_v60 = vld [vmem:[#allocation42_spill] sm:$0xff] }
 0x49d   : > { %p11389_p13 = pneg %p11388_p12 }
 0x49e   : > { %v13841_v2 = vadd.f32 %v13602_v56, %v3567_v51  ;;  %10420 = vmatmul.mubr.msk.bf16.gmra.mrb[60].mxu0 %vm634_vm3, %v4134_v40 }
 0x49f   : > { %10423 = vmatprep.mubr.msk.bf16.mxu0 %vm11451_vm1, %v15172_v14  ;;  %p11396_p3 = pnand %p11395_p2, %p11389_p13 }
 0x4a1   : > { %v3488_v61 = vpop.f32.mrb[212].mxu0 }
 0x4a2   : > { %v3568_v29 = vadd.f32 %v3488_v61, %v15379_v18  ;;  %v10221_v33 = vpop.f32.mrb[213].mxu0 }
 0x4a3   : > { %v3491_v54 = vpop.f32.mrb[214].mxu0  ;;  %v15382_v33 = vld [vmem:[#allocation30_spill] sm:$0xff] }
 0x4a4   : > { %v3569_v11 = vadd.f32 %v3491_v54, %v15380_v60  ;;  %v13851_v59 = vadd.f32 %v13613_v3, %v3568_v29  ;;  %v10222_v56 = vpop.f32.mrb[215].mxu0 }
 0x4a6   : > { %v13854_v40 = vadd.f32 %v13619_v28, %v3569_v11  ;;  %10424 = vmatmul.mubr.msk.bf16.gmra.mrb[64].mxu0 %vm634_vm3, %v4136_v43  ;;  %v15383_v11 = vld [vmem:[#allocation31_spill] sm:$0xff] }
 0x4a7   : > { %10427 = vmatprep.mubr.msk.bf16.mxu0 %vm11451_vm1, %v15172_v14 }
 0x4a9   : > { %v3496_v22 = vpop.f32.mrb[216].mxu0 }
 0x4aa   : > { %v3570_v51 = vadd.f32 %v3496_v22, %v13519_v19  ;;  %v10225_v41 = vpop.f32.mrb[217].mxu0 }
 0x4ab   : > { %v3499_v47 = vpop.f32.mrb[218].mxu0  ;;  %v15384_v41 = vld [vmem:[#allocation49_spill] sm:$0xff] }
 0x4ac   : > { %v3571_v61 = vadd.f32 %v3499_v47, %v15381_v63  ;;  %v13862_v18 = vadd.f32 %v13630_v27, %v3570_v51  ;;  %v10226_v3 = vpop.f32.mrb[219].mxu0 }
 0x4ae   : > { %v13865_v29 = vadd.f32 %v13636_v12, %v3571_v61  ;;  %10428 = vmatmul.mubr.msk.bf16.gmra.mrb[68].mxu0 %vm634_vm3, %v4135_v10  ;;  %v15385_v10 = vld [vmem:[#allocation14_spill] sm:$0xff] }
 0x4b1   : > { %v3504_v28 = vpop.f32.mrb[220].mxu0 }
 0x4b2   : > { %v3572_v54 = vadd.f32 %v3504_v28, %v15382_v33  ;;  %v10229_v43 = vpop.f32.mrb[221].mxu0 }
 0x4b3   : > { %v3507_v60 = vpop.f32.mrb[222].mxu0 }
 0x4b4   : > { %v3573_v19 = vadd.f32 %v3507_v60, %v15383_v11  ;;  %v13871_v56 = vadd.f32 %v13647_v49, %v3572_v54  ;;  %v10230_v22 = vpop.f32.mrb[223].mxu0  ;;  %v15386_v54 = vld [vmem:[#allocation9_spill] sm:$0xff]  ;;  %v15387_v11 = vld [vmem:[#allocation24_spill] sm:$0xff] }
 0x4b6   : > { %v13874_v27 = vadd.f32 %v13653_v38, %v3573_v19 }
 0x4b9   : > { %v3512_v51 = vpop.f32.mrb[224].mxu0 }
 0x4ba   : > { %v3574_v12 = vadd.f32 %v3512_v51, %v15384_v41  ;;  %v10233_v47 = vpop.f32.mrb[225].mxu0 }
 0x4bb   : > { %v3515_v63 = vpop.f32.mrb[226].mxu0 }
 0x4bc   : > { %v3575_v61 = vadd.f32 %v3515_v63, %v15385_v10  ;;  %v13879_v3 = vadd.f32 %v13664_v32, %v3574_v12  ;;  %v10234_v28 = vpop.f32.mrb[227].mxu0  ;;  %v15388_v12 = vld [vmem:[#allocation48_spill] sm:$0xff] }
 0x4bd   : > { %v13899_v28 = vld [vmem:[%s15077_s2] ss:$0 sm:$0xff] }
 0x4be   : > { %v13882_v33 = vadd.f32 %v13670_v24, %v3575_v61 }
 0x4c1   : > { %v3520_v49 = vpop.f32.mrb[228].mxu0 }
 0x4c2   : > { %v3576_v43 = vadd.f32 %v3520_v49, %v15386_v54  ;;  %v10237_v60 = vpop.f32.mrb[229].mxu0 }
 0x4c3   : > { %v3523_v38 = vpop.f32.mrb[230].mxu0 }
 0x4c4   : > { %v3577_v19 = vadd.f32 %v3523_v38, %v15387_v11  ;;  %v13887_v22 = vadd.f32 %v13681_v20, %v3576_v43  ;;  %v10238_v51 = vpop.f32.mrb[231].mxu0 }
 0x4c6   : > { %v13890_v41 = vadd.f32 %v13687_v9, %v3577_v19 }
 0x4c9   : > { %v3528_v32 = vpop.f32.mrb[232].mxu0 }
 0x4ca   : > { %v3578_v47 = vadd.f32 %v3528_v32, %v15388_v12  ;;  %v10241_v63 = vpop.f32.mrb[233].mxu0 }
 0x4cb   : > { %v3531_v24 = vpop.f32.mrb[234].mxu0 }
 0x4cc   : > { %v13894_v10 = vadd.f32 %v13698_v55, %v3578_v47  ;;  %v10242_v61 = vpop.f32.mrb[235].mxu0 }
 0x4d1   : > { %v4248_v20 = vpop.f32.mrb[236].mxu0 }
 0x4d2   : > { %v4430_v49 = vadd.f32 %v4248_v20, %v13600_v36  ;;  %v10341_v54 = vpop.f32.mrb[237].mxu0 }
 0x4d3   : > { %v4251_v9 = vpop.f32.mrb[238].mxu0 }
 0x4d4   : > { %v4481_v43 = vadd.f32 %v13899_v28, %v4430_v49  ;;  %v4431_v60 = vadd.f32 %v4251_v9, %v13605_v42  ;;  %v10342_v38 = vpop.f32.mrb[239].mxu0 }
 0x4d6   : > { %v4482_v11 = vadd.f32 %v13899_v28, %v4431_v60  ;;  %v4526_v55 = vmax.f32 %v4481_v43, 0.0 }
 0x4d8   : > { %v4527_v19 = vmax.f32 %v4482_v11, 0.0 }
 0x4d9   : > { %v4256_v51 = vpop.f32.mrb[240].mxu0 }
 0x4da   : > { %v4571_v32 = vpack.c.bf16 %v4527_v19, %v4526_v55  ;;  %v4432_v12 = vadd.f32 %v4256_v51, %v13617_v39  ;;  %v10345_v47 = vpop.f32.mrb[241].mxu0 }
 0x4db   : > { %v4259_v63 = vpop.f32.mrb[242].mxu0 }
 0x4dc   : > { %4595 = vst.msk [vmem:[#allocation2] sm:$0xff] %vm4594_vm7, %v4571_v32  ;;  %v4483_v36 = vadd.f32 %v13899_v28, %v4432_v12  ;;  %v4433_v24 = vadd.f32 %v4259_v63, %v13622_v58  ;;  %v10346_v61 = vpop.f32.mrb[243].mxu0 }
 0x4de   : > { %v4484_v42 = vadd.f32 %v13899_v28, %v4433_v24  ;;  %v4528_v20 = vmax.f32 %v4483_v36, 0.0 }
 0x4e0   : > { %v4529_v49 = vmax.f32 %v4484_v42, 0.0 }
 0x4e1   : > { %v4264_v54 = vpop.f32.mrb[244].mxu0 }
 0x4e2   : > { %v4572_v9 = vpack.c.bf16 %v4529_v49, %v4528_v20  ;;  %v4434_v43 = vadd.f32 %v4264_v54, %v13634_v45  ;;  %v10349_v60 = vpop.f32.mrb[245].mxu0 }
 0x4e3   : > { %v4267_v38 = vpop.f32.mrb[246].mxu0  ;;  %v4620_v39 = vld [vmem:[#allocation2] sm:$0xff] }
 0x4e4   : > { %4596 = vst.msk [vmem:[#allocation2 + $0x8] sm:$0xff] %vm4594_vm7, %v4572_v9  ;;  %v4485_v11 = vadd.f32 %v13899_v28, %v4434_v43  ;;  %v4435_v55 = vadd.f32 %v4267_v38, %v13639_v53  ;;  %v10350_v19 = vpop.f32.mrb[247].mxu0  ;;  %v4653_v51 = vshll.u32 %v4620_v39, 16  ;;  %v4651_v54 = vshrl.u32 %v4620_v39, 16 }
 0x4e6   : > { %v4486_v58 = vadd.f32 %v13899_v28, %v4435_v55  ;;  %v4530_v32 = vmax.f32 %v4485_v11, 0.0  ;;  %v4655_v24 = vrot.slane %v4653_v51, 1 }
 0x4e8   : > { %v4531_v12 = vmax.f32 %v4486_v58, 0.0  ;;  %v4656_v60 = vor.u32 %v4655_v24, %v4651_v54 }
 0x4e9   : > { %v4272_v47 = vpop.f32.mrb[248].mxu0 }
 0x4ea   : > { %v4573_v63 = vpack.c.bf16 %v4531_v12, %v4530_v32  ;;  %v4436_v36 = vadd.f32 %v4272_v47, %v13651_v15  ;;  %v10353_v45 = vpop.f32.mrb[249].mxu0 }
 0x4eb   : > { %v4275_v61 = vpop.f32.mrb[250].mxu0  ;;  %v4621_v42 = vld [vmem:[#allocation2 + $0x8] sm:$0xff] }
 0x4ec   : > { %4597 = vst.msk [vmem:[#allocation2 + $0x10] sm:$0xff] %vm4594_vm7, %v4573_v63  ;;  %v4487_v20 = vadd.f32 %v13899_v28, %v4436_v36  ;;  %v4437_v53 = vadd.f32 %v4275_v61, %v13656_v30  ;;  %v10354_v49 = vpop.f32.mrb[251].mxu0  ;;  %v4658_v9 = vshll.u32 %v4621_v42, 16  ;;  %v4662_v47 = vshrl.u32 %v4621_v42, 16 }
 0x4ee   : > { %v4488_v43 = vadd.f32 %v13899_v28, %v4437_v53  ;;  %v4660_v38 = vrot.slane %v4658_v9, 1  ;;  %v4532_v11 = vmax.f32 %v4487_v20, 0.0 }
 0x4f0   : > { %v4533_v55 = vmax.f32 %v4488_v43, 0.0  ;;  %v4661_v15 = vsel %vm445_vm2, %v4656_v60, %v4660_v38  ;;  %v4664_v24 = vor.u32 %v4662_v47, %v4660_v38 }
 0x4f1   : > { %v4280_v19 = vpop.f32.mrb[252].mxu0  ;;  %10435 = vmatprep.mubr.msk.bf16.mxu1 %vm4594_vm7, %v4661_v15 }
 0x4f2   : > { %v4574_v58 = vpack.c.bf16 %v4533_v55, %v4532_v11  ;;  %v4438_v51 = vadd.f32 %v4280_v19, %v13668_v21  ;;  %v10357_v32 = vpop.f32.mrb[253].mxu0 }
 0x4f3   : > { %v4283_v12 = vpop.f32.mrb[254].mxu0  ;;  %v4622_v30 = vld [vmem:[#allocation2 + $0x10] sm:$0xff] }
 0x4f4   : > { %4598 = vst.msk [vmem:[#allocation2 + $0x18] sm:$0xff] %vm4594_vm7, %v4574_v58  ;;  %v4489_v39 = vadd.f32 %v13899_v28, %v4438_v51  ;;  %v4439_v63 = vadd.f32 %v4283_v12, %v13673_v23  ;;  %v10358_v36 = vpop.f32.mrb[255].mxu0  ;;  %v4666_v45 = vshll.u32 %v4622_v30, 16  ;;  %v13930_v42 = vld [vmem:[#allocation2 + $0x10] sm:$0xff]  ;;  %v4670_v58 = vshrl.u32 %v4622_v30, 16 }
 0x4f5   : > { %v6967_v32 = vld [vmem:[#allocation2 + $0x10] sm:$0xf0]  ;;  %v15111_v12 = vrot.slane %v13930_v42, 3 }
 0x4f6   : > { %v4490_v61 = vadd.f32 %v13899_v28, %v4439_v63  ;;  %v4668_v20 = vrot.slane %v4666_v45, 1  ;;  %v4534_v53 = vmax.f32 %v4489_v39, 0.0  ;;  %v7369_v36 = vshrl.u32 %v6967_v32, 16 }
 0x4f7   : > { %v7372_v45 = vshll.u32 %v6967_v32, 16 }
 0x4f8   : > { %v4535_v49 = vmax.f32 %v4490_v61, 0.0  ;;  %v4669_v21 = vsel %vm445_vm2, %v4664_v24, %v4668_v20  ;;  %v4672_v39 = vor.u32 %v4670_v58, %v4668_v20 }
 0x4f9   : > { %v4288_v54 = vpop.f32.mrb[0].mxu0  ;;  %10436 = vmatmul.mubr.msk.bf16.vlgmr.msra.gmra.mrb[244].mxu1 %vm4594_vm7, %v4669_v21 }
 0x4fa   : > { %v4575_v9 = vpack.c.bf16 %v4535_v49, %v4534_v53  ;;  %v4440_v43 = vadd.f32 %v4288_v54, %v13685_v46  ;;  %v10361_v60 = vpop.f32.mrb[1].mxu0 }
 0x4fb   : > { %v4291_v23 = vpop.f32.mrb[2].mxu0  ;;  %v4623_v11 = vld [vmem:[#allocation2 + $0x18] sm:$0xff] }
 0x4fc   : > { %v13932_v55 = vld [vmem:[#allocation2 + $0x18] sm:$0xff]  ;;  %4599 = vst.msk [vmem:[#allocation2 + $0x20] sm:$0xff] %vm4594_vm7, %v4575_v9  ;;  %v4491_v38 = vadd.f32 %v13899_v28, %v4440_v43  ;;  %v4441_v15 = vadd.f32 %v4291_v23, %v13690_v5  ;;  %v10362_v19 = vpop.f32.mrb[3].mxu0  ;;  %v4674_v51 = vshll.u32 %v4623_v11, 16  ;;  %v11298_v5 = vld [vmem:[%s15078_s3] sm:$0xff]  }
 0x4fd   : > { %v6624_v63 = vrot.slane %v13932_v55, 3  ;;  %v15115_v20 = vshrl.u32 %v13932_v55, 16  ;;  %v15114_v21 = vshll.u32 %v13932_v55, 16  ;;  %10475 = vmatprep.subr.bf16.mxu1 %v11298_v5  ;;  %v7374_v19 = vrot.slane %v7372_v45, 5 }
 0x4fe   : > { %v4492_v46 = vadd.f32 %v13899_v28, %v4441_v15  ;;  %v4676_v47 = vrot.slane %v4674_v51, 1  ;;  %v4536_v24 = vmax.f32 %v4491_v38, 0.0  ;;  %10476 = vmatpush3.bf16.msra.mxu1 %v11298_v5  ;;  %v7371_v15 = vrot.slane %v7369_v36, 4 }
 0x4ff   : > { %v13947_v30 = vsel %vm704_vm0, %v15111_v12, %v6624_v63  ;;  %v7382_v36 = vrot.slane %v15114_v21, 5 }
 0x500   : > { %v4537_v61 = vmax.f32 %v4492_v46, 0.0  ;;  %v4677_v53 = vsel %vm445_vm2, %v4672_v39, %v4676_v47  ;;  %v4678_v46 = vshrl.u32 %v4623_v11, 16  ;;  %v15109_v11 = vrot.slane %v13932_v55, 4 }
 0x501   : > { %v4296_v49 = vpop.f32.mrb[4].mxu0  ;;  %10439 = vmatprep.mubr.msk.bf16.mxu1 %vm4594_vm7, %v4677_v53  ;;  %v7375_v5 = vor.u32 %v7374_v19, %v7371_v15 }
 0x502   : > { %v4576_v54 = vpack.c.bf16 %v4537_v61, %v4536_v24  ;;  %v4442_v9 = vadd.f32 %v4296_v49, %v13702_v44  ;;  %v10365_v43 = vpop.f32.mrb[5].mxu0  ;;  %v11299_v44 = vld [vmem:[%s15078_s3 + $0x8] sm:$0xff]   ;;  %v7379_v24 = vrot.slane %v15115_v20, 4  ;;  %v4680_v61 = vor.u32 %v4678_v46, %v4676_v47 }
 0x503   : > { %v4299_v60 = vpop.f32.mrb[6].mxu0  ;;  %v4624_v23 = vld [vmem:[#allocation2 + $0x20] sm:$0xff]  ;;  %10477 = vmatprep.subr.bf16.mxu1 %v11299_v44 }
 0x504   : > { %v13953_v38 = vld [vmem:[#allocation2 + $0x20] sm:$0xff]  ;;  %4600 = vst.msk [vmem:[#allocation2 + $0x28] sm:$0xff] %vm4594_vm7, %v4576_v54  ;;  %v4493_v58 = vadd.f32 %v13899_v28, %v4442_v9  ;;  %v4443_v51 = vadd.f32 %v4299_v60, %v13705_v7  ;;  %v10366_v32 = vpop.f32.mrb[7].mxu0  ;;  %v4682_v39 = vshll.u32 %v4624_v23, 16  ;;  %10478 = vmatpush3.bf16.msra.mxu1 %v11299_v44  ;;  %v7383_v46 = vor.u32 %v7382_v36, %v7379_v24 }
 0x505   : > { %v15110_v7 = vrot.slane %v13953_v38, 3  ;;  %v15113_v43 = vshrl.u32 %v13953_v38, 16  ;;  %v15112_v47 = vshll.u32 %v13953_v38, 16  ;;  %v15108_v32 = vrot.slane %v13953_v38, 4 }
 0x506   : > { %v4494_v45 = vadd.f32 %v13899_v28, %v4443_v51  ;;  %v4684_v53 = vrot.slane %v4682_v39, 1  ;;  %v4538_v49 = vmax.f32 %v4493_v58, 0.0 }
 0x507   : > { %v13975_v51 = vsel %vm704_vm0, %v6624_v63, %v15110_v7  ;;  %v13987_v63 = vsel %vm7367_vm8, %v7375_v5, %v7383_v46 }
 0x508   : > { %v4539_v54 = vmax.f32 %v4494_v45, 0.0  ;;  %v4685_v9 = vsel %vm445_vm2, %v4680_v61, %v4684_v53  ;;  %15389 = vst [vmem:[#allocation32_spill] sm:$0xff] %v13975_v51  ;;  %v4686_v45 = vshrl.u32 %v4624_v23, 16  ;;  %v13984_v61 = vsel %vm7014_vm9, %v15109_v11, %v15108_v32  ;;  %15391 = vst [vmem:[#allocation51_spill] sm:$0xff] %v13987_v63  ;;  %v11360_v51 = vld [vmem:[#allocation2] sm:$0xff] }
 0x509   : > { %v4304_v60 = vpop.f32.mrb[8].mxu0  ;;  %10440 = vmatmul.mubr.msk.bf16.gmra.mrb[248].mxu1 %vm4594_vm7, %v4685_v9  ;;  %15390 = vst [vmem:[#allocation33_spill] sm:$0xff] %v13984_v61  ;;  %v7388_v23 = vrot.slane %v15113_v43, 4  ;;  %v7391_v9 = vrot.slane %v15112_v47, 5 }
 0x50a   : > { %v4577_v15 = vpack.c.bf16 %v4539_v54, %v4538_v49  ;;  %v4444_v19 = vadd.f32 %v4304_v60, %v13715_v34  ;;  %v10369_v58 = vpop.f32.mrb[9].mxu0 }
 0x50b   : > { %v4307_v39 = vpop.f32.mrb[10].mxu0  ;;  %v4625_v44 = vld [vmem:[#allocation2 + $0x28] sm:$0xff]  ;;  %v4688_v58 = vor.u32 %v4686_v45, %v4684_v53 }
 0x50c   : > { %4601 = vst.msk [vmem:[#allocation2 + $0x30] sm:$0xff] %vm4594_vm7, %v4577_v15  ;;  %v4495_v24 = vadd.f32 %v13899_v28, %v4444_v19  ;;  %v4445_v34 = vadd.f32 %v4307_v39, %v13718_v0  ;;  %v10370_v36 = vpop.f32.mrb[11].mxu0  ;;  %v4690_v49 = vshll.u32 %v4625_v44, 16  ;;  %v4694_v54 = vshrl.u32 %v4625_v44, 16  ;;  %v13997_v11 = vld [vmem:[#allocation2 + $0x28] sm:$0xff] }
 0x50d   : > { %v7392_v36 = vor.u32 %v7391_v9, %v7388_v23  ;;  %v7395_v12 = vshrl.u32 %v13997_v11, 16 }
 0x50e   : > { %v4496_v60 = vadd.f32 %v13899_v28, %v4445_v34  ;;  %v4692_v5 = vrot.slane %v4690_v49, 1  ;;  %v6143_v32 = vrot.slane %v4694_v54, 2  ;;  %v6146_v15 = vrot.slane %v4690_v49, 3 }
 0x50f   : > { %v4540_v19 = vmax.f32 %v4495_v24, 0.0  ;;  %v7398_v34 = vshll.u32 %v13997_v11, 16  ;;  %v14007_v24 = vsel %vm7367_vm8, %v7383_v46, %v7392_v36 }
 0x510   : > { %v4541_v7 = vmax.f32 %v4496_v60, 0.0  ;;  %v4693_v0 = vsel %vm445_vm2, %v4688_v58, %v4692_v5  ;;  %v14001_v44 = vor.u32 %v6146_v15, %v6143_v32  ;;  %15392 = vst [vmem:[#allocation52_spill] sm:$0xff] %v14007_v24  ;;  %v4696_v15 = vor.u32 %v4694_v54, %v4692_v5 }
 0x511   : > { %v4312_v39 = vpop.f32.mrb[12].mxu0  ;;  %10443 = vmatprep.mubr.msk.bf16.mxu1 %vm4594_vm7, %v4693_v0  ;;  %v7397_v0 = vrot.slane %v7395_v12, 4  ;;  %v15116_v54 = vrot.slane %v13932_v55, 5 }
 0x512   : > { %v4578_v53 = vpack.c.bf16 %v4541_v7, %v4540_v19  ;;  %v4446_v45 = vadd.f32 %v4312_v39, %v13728_v16  ;;  %v10373_v47 = vpop.f32.mrb[13].mxu0  ;;  %v7400_v7 = vrot.slane %v7398_v34, 5  ;;  %v7873_v16 = vrot.slane %v13953_v38, 5 }
 0x513   : > { %v4315_v43 = vpop.f32.mrb[14].mxu0  ;;  %v4626_v49 = vld [vmem:[#allocation2 + $0x30] sm:$0xff] }
 0x514   : > { %4602 = vst.msk [vmem:[#allocation2 + $0x38] sm:$0xff] %vm4594_vm7, %v4578_v53  ;;  %v4497_v60 = vadd.f32 %v13899_v28, %v4446_v45  ;;  %v4447_v32 = vadd.f32 %v4315_v43, %v13731_v50  ;;  %v10374_v23 = vpop.f32.mrb[15].mxu0  ;;  %v4698_v9 = vshll.u32 %v4626_v49, 16  ;;  %v4702_v58 = vshrl.u32 %v4626_v49, 16  ;;  %v14014_v46 = vld [vmem:[#allocation2 + $0x30] sm:$0xff] }
 0x515   : > { %v15117_v53 = vrot.slane %v13997_v11, 5  ;;  %v7401_v34 = vor.u32 %v7400_v7, %v7397_v0  ;;  %v7404_v49 = vshrl.u32 %v14014_v46, 16 }
 0x516   : > { %v4498_v47 = vadd.f32 %v13899_v28, %v4447_v32  ;;  %v4700_v19 = vrot.slane %v4698_v9, 1  ;;  %v6152_v39 = vrot.slane %v4702_v58, 2  ;;  %v6155_v21 = vrot.slane %v4698_v9, 3 }
 0x517   : > { %v4542_v45 = vmax.f32 %v4497_v60, 0.0  ;;  %v7407_v32 = vshll.u32 %v14014_v46, 16  ;;  %v14026_v60 = vsel %vm7869_vm10, %v15116_v54, %v7873_v16 }
 0x518   : > { %v4543_v50 = vmax.f32 %v4498_v47, 0.0  ;;  %v4701_v43 = vsel %vm445_vm2, %v4696_v15, %v4700_v19  ;;  %v6156_v5 = vor.u32 %v6155_v21, %v6152_v39  ;;  %15393 = vst [vmem:[#allocation50_spill] sm:$0xff] %v14026_v60  ;;  %v14031_v15 = vsel %vm7869_vm10, %v7873_v16, %v15117_v53 }
 0x519   : > { %v4320_v12 = vpop.f32.mrb[16].mxu0  ;;  %10444 = vmatmul.mubr.msk.bf16.gmra.mrb[252].mxu1 %vm4594_vm7, %v4701_v43  ;;  %15394 = vst [vmem:[#allocation34_spill] sm:$0xff] %v14031_v15  ;;  %v7406_v43 = vrot.slane %v7404_v49, 4  ;;  %v4704_v54 = vor.u32 %v4702_v58, %v4700_v19 }
 0x51a   : > { %v4579_v23 = vpack.c.bf16 %v4543_v50, %v4542_v45  ;;  %v4448_v20 = vadd.f32 %v4320_v12, %v13741_v37  ;;  %v10377_v9 = vpop.f32.mrb[17].mxu0  ;;  %v14037_v7 = vsel %vm2144_vm6, %v14001_v44, %v6156_v5  ;;  %v14040_v37 = vsel %vm7367_vm8, %v7392_v36, %v7401_v34 }
 0x51b   : > { %v4323_v21 = vpop.f32.mrb[18].mxu0  ;;  %v14033_v0 = vld [vmem:[#allocation2 + $0x38] sm:$0xff]  ;;  %15395 = vst [vmem:[#allocation11_spill] sm:$0xff] %v14040_v37  ;;  %v7409_v12 = vrot.slane %v7407_v32, 5 }
 0x51c   : > { %4603 = vst.msk [vmem:[#allocation2 + $0x40] sm:$0xff] %vm4594_vm7, %v4579_v23  ;;  %v4499_v47 = vadd.f32 %v13899_v28, %v4448_v20  ;;  %v4449_v39 = vadd.f32 %v4323_v21, %v13744_v62  ;;  %v10378_v45 = vpop.f32.mrb[19].mxu0  ;;  %v4706_v16 = vshll.u32 %v14033_v0, 16  ;;  %v4710_v50 = vshrl.u32 %v14033_v0, 16  ;;  %v14048_v36 = vld [vmem:[#allocation2 + $0x38] sm:$0xff] }
 0x51d   : > { %v7410_v45 = vor.u32 %v7409_v12, %v7406_v43  ;;  %v7413_v49 = vshrl.u32 %v14048_v36, 16  ;;  %v7416_v32 = vshll.u32 %v14048_v36, 16 }
 0x51e   : > { %v4500_v9 = vadd.f32 %v13899_v28, %v4449_v39  ;;  %v4708_v53 = vrot.slane %v4706_v16, 1  ;;  %v6161_v14 = vrot.slane %v4710_v50, 2  ;;  %v6164_v15 = vrot.slane %v4706_v16, 3 }
 0x51f   : > { %v4544_v23 = vmax.f32 %v4499_v47, 0.0 }
 0x520   : > { %v4545_v60 = vmax.f32 %v4500_v9, 0.0  ;;  %v4709_v20 = vsel %vm445_vm2, %v4704_v54, %v4708_v53  ;;  %v6165_v21 = vor.u32 %v6164_v15, %v6161_v14  ;;  %v14061_v54 = vsel %vm7367_vm8, %v7401_v34, %v7410_v45 }
 0x521   : > { %v4328_v62 = vpop.f32.mrb[20].mxu0  ;;  %10447 = vmatprep.mubr.msk.bf16.mxu1 %vm4594_vm7, %v4709_v20  ;;  %15396 = vst [vmem:[#allocation35_spill] sm:$0xff] %v14061_v54  ;;  %v4712_v12 = vor.u32 %v4710_v50, %v4708_v53  ;;  %v7415_v9 = vrot.slane %v7413_v49, 4 }
 0x522   : > { %v4580_v39 = vpack.c.bf16 %v4545_v60, %v4544_v23  ;;  %v4450_v58 = vadd.f32 %v4328_v62, %v13754_v25  ;;  %v10381_v19 = vpop.f32.mrb[21].mxu0  ;;  %v14058_v47 = vsel %vm2144_vm6, %v6156_v5, %v6165_v21  ;;  %v7418_v23 = vrot.slane %v7416_v32, 5 }
 0x523   : > { %v14055_v37 = vld [vmem:[#allocation2 + $0x40] sm:$0xff]  ;;  %v4331_v16 = vpop.f32.mrb[22].mxu0  ;;  %v7877_v5 = vrot.slane %v14014_v46, 5 }
 0x524   : > { %4604 = vst.msk [vmem:[#allocation2 + $0x48] sm:$0xff] %vm4594_vm7, %v4580_v39  ;;  %v4501_v14 = vadd.f32 %v13899_v28, %v4450_v58  ;;  %v4714_v15 = vshll.u32 %v14055_v37, 16  ;;  %v4451_v60 = vadd.f32 %v4331_v16, %v13757_v35  ;;  %v10382_v43 = vpop.f32.mrb[23].mxu0  ;;  %v4718_v25 = vshrl.u32 %v14055_v37, 16  ;;  %v14070_v19 = vld [vmem:[#allocation2 + $0x40] sm:$0xff] }
 0x525   : > { %v7419_v50 = vor.u32 %v7418_v23, %v7415_v9  ;;  %v7422_v46 = vshrl.u32 %v14070_v19, 16  ;;  %v7425_v49 = vshll.u32 %v14070_v19, 16  ;;  %v15397_v39 = vrot.slane %v13997_v11, 5 }
 0x526   : > { %v4716_v20 = vrot.slane %v4714_v15, 1  ;;  %v4502_v34 = vadd.f32 %v13899_v28, %v4451_v60  ;;  %v6170_v62 = vrot.slane %v4718_v25, 2  ;;  %v6173_v58 = vrot.slane %v4714_v15, 3 }
 0x527   : > { %v4546_v54 = vmax.f32 %v4501_v14, 0.0  ;;  %v14081_v14 = vsel %vm7869_vm10, %v15397_v39, %v7877_v5  ;;  %v15399_v15 = vrot.slane %v14048_v36, 5  ;;  %v7424_v39 = vrot.slane %v7422_v46, 4 }
 0x528   : > { %v4717_v35 = vsel %vm445_vm2, %v4712_v12, %v4716_v20  ;;  %v4547_v16 = vmax.f32 %v4502_v34, 0.0  ;;  %v6174_v53 = vor.u32 %v6173_v58, %v6170_v62  ;;  %15398 = vst [vmem:[#allocation38_spill] sm:$0xff] %v14081_v14  ;;  %v7427_v58 = vrot.slane %v7425_v49, 5 }
 0x529   : > { %v4336_v43 = vpop.f32.mrb[24].mxu0  ;;  %10448 = vmatmul.mubr.msk.bf16.gmra.mrb[0].mxu1 %vm4594_vm7, %v4717_v35  ;;  %v14086_v12 = vsel %vm7869_vm10, %v7877_v5, %v15399_v15 }
 0x52a   : > { %v4581_v32 = vpack.c.bf16 %v4547_v16, %v4546_v54  ;;  %v4452_v60 = vadd.f32 %v4336_v43, %v13773_v1  ;;  %v10385_v24 = vpop.f32.mrb[25].mxu0  ;;  %15400 = vst [vmem:[#allocation36_spill] sm:$0xff] %v14086_v12  ;;  %v14091_v23 = vsel %vm2144_vm6, %v6165_v21, %v6174_v53  ;;  %v14094_v54 = vsel %vm7367_vm8, %v7410_v45, %v7419_v50 }
 0x52b   : > { %v4339_v34 = vpop.f32.mrb[26].mxu0  ;;  %v14088_v9 = vld [vmem:[#allocation2 + $0x48] sm:$0xff]  ;;  %15401 = vst [vmem:[#allocation37_spill] sm:$0xff] %v14094_v54  ;;  %v4720_v21 = vor.u32 %v4718_v25, %v4716_v20 }
 0x52c   : > { %4605 = vst.msk [vmem:[#allocation2 + $0x50] sm:$0xff] %vm4594_vm7, %v4581_v32  ;;  %v4503_v1 = vadd.f32 %v13899_v28, %v4452_v60  ;;  %v4453_v11 = vadd.f32 %v4339_v34, %v13776_v26  ;;  %v10386_v24 = vpop.f32.mrb[27].mxu0  ;;  %v4722_v62 = vshll.u32 %v14088_v9, 16  ;;  %v4726_v5 = vshrl.u32 %v14088_v9, 16  ;;  %v14102_v45 = vld [vmem:[#allocation2 + $0x48] sm:$0xff] }
 0x52d   : > { %v7428_v24 = vor.u32 %v7427_v58, %v7424_v39  ;;  %v7431_v46 = vshrl.u32 %v14102_v45, 16  ;;  %v7434_v49 = vshll.u32 %v14102_v45, 16 }
 0x52e   : > { %v4504_v35 = vadd.f32 %v13899_v28, %v4453_v11  ;;  %v4724_v16 = vrot.slane %v4722_v62, 1  ;;  %v6179_v43 = vrot.slane %v4726_v5, 2  ;;  %v6182_v15 = vrot.slane %v4722_v62, 3 }
 0x52f   : > { %v4548_v32 = vmax.f32 %v4503_v1, 0.0 }
 0x530   : > { %v4549_v12 = vmax.f32 %v4504_v35, 0.0  ;;  %v4725_v60 = vsel %vm445_vm2, %v4720_v21, %v4724_v16  ;;  %v6183_v34 = vor.u32 %v6182_v15, %v6179_v43  ;;  %v14115_v35 = vsel %vm7367_vm8, %v7419_v50, %v7428_v24 }
 0x531   : > { %v4344_v26 = vpop.f32.mrb[28].mxu0  ;;  %10451 = vmatprep.mubr.msk.bf16.mxu1 %vm4594_vm7, %v4725_v60  ;;  %15402 = vst [vmem:[#allocation7_spill] sm:$0xff] %v14115_v35  ;;  %v4728_v43 = vor.u32 %v4726_v5, %v4724_v16  ;;  %v7433_v15 = vrot.slane %v7431_v46, 4 }
 0x532   : > { %v4582_v11 = vpack.c.bf16 %v4549_v12, %v4548_v32  ;;  %v4454_v25 = vadd.f32 %v4344_v26, %v13786_v17  ;;  %v10389_v20 = vpop.f32.mrb[29].mxu0  ;;  %v14112_v1 = vsel %vm2144_vm6, %v6174_v53, %v6183_v34  ;;  %v7436_v32 = vrot.slane %v7434_v49, 5 }
 0x533   : > { %v14109_v14 = vld [vmem:[#allocation2 + $0x50] sm:$0xff]  ;;  %v4347_v62 = vpop.f32.mrb[30].mxu0  ;;  %v7881_v53 = vrot.slane %v14070_v19, 5 }
 0x534   : > { %4606 = vst.msk [vmem:[#allocation2 + $0x58] sm:$0xff] %vm4594_vm7, %v4582_v11  ;;  %v4505_v39 = vadd.f32 %v13899_v28, %v4454_v25  ;;  %v4730_v58 = vshll.u32 %v14109_v14, 16  ;;  %v4455_v12 = vadd.f32 %v4347_v62, %v13789_v8  ;;  %v10390_v21 = vpop.f32.mrb[31].mxu0  ;;  %v4734_v17 = vshrl.u32 %v14109_v14, 16  ;;  %v14124_v20 = vld [vmem:[#allocation2 + $0x50] sm:$0xff] }
 0x535   : > { %v7437_v16 = vor.u32 %v7436_v32, %v7433_v15  ;;  %v7440_v19 = vshrl.u32 %v14124_v20, 16  ;;  %v7443_v46 = vshll.u32 %v14124_v20, 16  ;;  %v15403_v11 = vrot.slane %v14048_v36, 5 }
 0x536   : > { %v4732_v60 = vrot.slane %v4730_v58, 1  ;;  %v4506_v50 = vadd.f32 %v13899_v28, %v4455_v12  ;;  %v6188_v26 = vrot.slane %v4734_v17, 2  ;;  %v6191_v25 = vrot.slane %v4730_v58, 3 }
 0x537   : > { %v4550_v35 = vmax.f32 %v4505_v39, 0.0  ;;  %v14135_v39 = vsel %vm7869_vm10, %v15403_v11, %v7881_v53  ;;  %v15405_v58 = vrot.slane %v14102_v45, 5  ;;  %v7442_v11 = vrot.slane %v7440_v19, 4 }
 0x538   : > { %v4733_v8 = vsel %vm445_vm2, %v4728_v43, %v4732_v60  ;;  %v4551_v62 = vmax.f32 %v4506_v50, 0.0  ;;  %v6192_v5 = vor.u32 %v6191_v25, %v6188_v26  ;;  %15404 = vst [vmem:[#allocation15_spill] sm:$0xff] %v14135_v39  ;;  %v7445_v25 = vrot.slane %v7443_v46, 5 }
 0x539   : > { %v4352_v21 = vpop.f32.mrb[32].mxu0  ;;  %10452 = vmatmul.mubr.msk.bf16.gmra.mrb[4].mxu1 %vm4594_vm7, %v4733_v8  ;;  %v14140_v43 = vsel %vm7869_vm10, %v7881_v53, %v15405_v58 }
 0x53a   : > { %v4583_v49 = vpack.c.bf16 %v4551_v62, %v4550_v35  ;;  %v4456_v12 = vadd.f32 %v4352_v21, %v13799_v4  ;;  %v10393_v54 = vpop.f32.mrb[33].mxu0  ;;  %15406 = vst [vmem:[#allocation40_spill] sm:$0xff] %v14140_v43  ;;  %v14145_v32 = vsel %vm2144_vm6, %v6183_v34, %v6192_v5  ;;  %v14148_v35 = vsel %vm7367_vm8, %v7428_v24, %v7437_v16 }
 0x53b   : > { %v4355_v50 = vpop.f32.mrb[34].mxu0  ;;  %v14142_v15 = vld [vmem:[#allocation2 + $0x58] sm:$0xff]  ;;  %15407 = vst [vmem:[#allocation16_spill] sm:$0xff] %v14148_v35  ;;  %v4736_v34 = vor.u32 %v4734_v17, %v4732_v60 }
 0x53c   : > { %4607 = vst.msk [vmem:[#allocation2 + $0x60] sm:$0xff] %vm4594_vm7, %v4583_v49  ;;  %v4507_v4 = vadd.f32 %v13899_v28, %v4456_v12  ;;  %v4457_v36 = vadd.f32 %v4355_v50, %v13802_v6  ;;  %v10394_v54 = vpop.f32.mrb[35].mxu0  ;;  %v4738_v26 = vshll.u32 %v14142_v15, 16  ;;  %v4742_v53 = vshrl.u32 %v14142_v15, 16  ;;  %v14156_v24 = vld [vmem:[#allocation2 + $0x58] sm:$0xff] }
 0x53d   : > { %v7446_v54 = vor.u32 %v7445_v25, %v7442_v11  ;;  %v7449_v19 = vshrl.u32 %v14156_v24, 16  ;;  %v7452_v46 = vshll.u32 %v14156_v24, 16 }
 0x53e   : > { %v4508_v8 = vadd.f32 %v13899_v28, %v4457_v36  ;;  %v4740_v62 = vrot.slane %v4738_v26, 1  ;;  %v6197_v21 = vrot.slane %v4742_v53, 2  ;;  %v6200_v58 = vrot.slane %v4738_v26, 3 }
 0x53f   : > { %v4552_v49 = vmax.f32 %v4507_v4, 0.0 }
 0x540   : > { %v4553_v43 = vmax.f32 %v4508_v8, 0.0  ;;  %v4741_v12 = vsel %vm445_vm2, %v4736_v34, %v4740_v62  ;;  %v6201_v50 = vor.u32 %v6200_v58, %v6197_v21  ;;  %v14169_v8 = vsel %vm7367_vm8, %v7437_v16, %v7446_v54 }
 0x541   : > { %v4360_v6 = vpop.f32.mrb[36].mxu0  ;;  %10455 = vmatprep.mubr.msk.bf16.mxu1 %vm4594_vm7, %v4741_v12  ;;  %15408 = vst [vmem:[#allocation41_spill] sm:$0xff] %v14169_v8  ;;  %v4744_v21 = vor.u32 %v4742_v53, %v4740_v62  ;;  %v7451_v58 = vrot.slane %v7449_v19, 4 }
 0x542   : > { %v4584_v36 = vpack.c.bf16 %v4553_v43, %v4552_v49  ;;  %v4458_v17 = vadd.f32 %v4360_v6, %v13812_v13  ;;  %v10397_v60 = vpop.f32.mrb[37].mxu0  ;;  %v14166_v4 = vsel %vm2144_vm6, %v6192_v5, %v6201_v50  ;;  %v7454_v49 = vrot.slane %v7452_v46, 5 }
 0x543   : > { %v14163_v39 = vld [vmem:[#allocation2 + $0x60] sm:$0xff]  ;;  %v4363_v26 = vpop.f32.mrb[38].mxu0  ;;  %v7885_v5 = vrot.slane %v14124_v20, 5 }
 0x544   : > { %4608 = vst.msk [vmem:[#allocation2 + $0x68] sm:$0xff] %vm4594_vm7, %v4584_v36  ;;  %v4509_v11 = vadd.f32 %v13899_v28, %v4458_v17  ;;  %v4746_v25 = vshll.u32 %v14163_v39, 16  ;;  %v4459_v43 = vadd.f32 %v4363_v26, %v13815_v52  ;;  %v10398_v34 = vpop.f32.mrb[39].mxu0  ;;  %v4750_v13 = vshrl.u32 %v14163_v39, 16  ;;  %v14178_v60 = vld [vmem:[#allocation2 + $0x60] sm:$0xff] }
 0x545   : > { %v7455_v62 = vor.u32 %v7454_v49, %v7451_v58  ;;  %v7458_v20 = vshrl.u32 %v14178_v60, 16  ;;  %v7461_v19 = vshll.u32 %v14178_v60, 16  ;;  %v15409_v36 = vrot.slane %v14102_v45, 5 }
 0x546   : > { %v4748_v12 = vrot.slane %v4746_v25, 1  ;;  %v4510_v16 = vadd.f32 %v13899_v28, %v4459_v43  ;;  %v6206_v6 = vrot.slane %v4750_v13, 2  ;;  %v6209_v17 = vrot.slane %v4746_v25, 3 }
 0x547   : > { %v4554_v8 = vmax.f32 %v4509_v11, 0.0  ;;  %v14189_v11 = vsel %vm7869_vm10, %v15409_v36, %v7885_v5  ;;  %v15411_v25 = vrot.slane %v14156_v24, 5  ;;  %v7460_v36 = vrot.slane %v7458_v20, 4 }
 0x548   : > { %v4749_v52 = vsel %vm445_vm2, %v4744_v21, %v4748_v12  ;;  %v4555_v26 = vmax.f32 %v4510_v16, 0.0  ;;  %v6210_v53 = vor.u32 %v6209_v17, %v6206_v6  ;;  %15410 = vst [vmem:[#allocation18_spill] sm:$0xff] %v14189_v11  ;;  %v7463_v17 = vrot.slane %v7461_v19, 5 }
 0x549   : > { %v4368_v34 = vpop.f32.mrb[40].mxu0  ;;  %10456 = vmatmul.mubr.msk.bf16.gmra.mrb[8].mxu1 %vm4594_vm7, %v4749_v52  ;;  %v14194_v21 = vsel %vm7869_vm10, %v7885_v5, %v15411_v25 }
 0x54a   : > { %v4585_v46 = vpack.c.bf16 %v4555_v26, %v4554_v8  ;;  %v4460_v43 = vadd.f32 %v4368_v34, %v13825_v31  ;;  %v10401_v35 = vpop.f32.mrb[41].mxu0  ;;  %15412 = vst [vmem:[#allocation8_spill] sm:$0xff] %v14194_v21  ;;  %v14199_v49 = vsel %vm2144_vm6, %v6201_v50, %v6210_v53  ;;  %v14202_v8 = vsel %vm7367_vm8, %v7446_v54, %v7455_v62 }
 0x54b   : > { %v4371_v16 = vpop.f32.mrb[42].mxu0  ;;  %v14196_v58 = vld [vmem:[#allocation2 + $0x68] sm:$0xff]  ;;  %15413 = vst [vmem:[#allocation53_spill] sm:$0xff] %v14202_v8  ;;  %v4752_v50 = vor.u32 %v4750_v13, %v4748_v12  ;;  %v7464_v19 = vor.u32 %v7463_v17, %v7460_v36 }
 0x54c   : > { %4609 = vst.msk [vmem:[#allocation2 + $0x70] sm:$0xff] %vm4594_vm7, %v4585_v46  ;;  %v4511_v31 = vadd.f32 %v13899_v28, %v4460_v43  ;;  %v4461_v45 = vadd.f32 %v4371_v16, %v13828_v57  ;;  %v10402_v35 = vpop.f32.mrb[43].mxu0  ;;  %v4754_v6 = vshll.u32 %v14196_v58, 16  ;;  %v4758_v5 = vshrl.u32 %v14196_v58, 16  ;;  %v14210_v54 = vld [vmem:[#allocation2 + $0x68] sm:$0xff]  ;;  %v14216_v57 = vld [vmem:[%s15078_s3 + $0x20] sm:$0xff]  }
 0x54d   : > { %v7467_v13 = vshrl.u32 %v14210_v54, 16  ;;  %v7470_v12 = vshll.u32 %v14210_v54, 16  ;;  %10519 = vmatprep.subr.bf16.mxu1 %v14216_v57 }
 0x54e   : > { %v4512_v52 = vadd.f32 %v13899_v28, %v4461_v45  ;;  %v4756_v26 = vrot.slane %v4754_v6, 1  ;;  %v6215_v34 = vrot.slane %v4758_v5, 2  ;;  %v6218_v25 = vrot.slane %v4754_v6, 3 }
 0x54f   : > { %v4556_v46 = vmax.f32 %v4511_v31, 0.0 }
 0x550   : > { %v4557_v21 = vmax.f32 %v4512_v52, 0.0  ;;  %v4757_v43 = vsel %vm445_vm2, %v4752_v50, %v4756_v26  ;;  %v6219_v20 = vor.u32 %v6218_v25, %v6215_v34  ;;  %v4760_v25 = vor.u32 %v4758_v5, %v4756_v26 }
 0x551   : > { %v4376_v16 = vpop.f32.mrb[44].mxu0  ;;  %10459 = vmatprep.mubr.msk.bf16.mxu1 %vm4594_vm7, %v4757_v43  ;;  %v14229_v43 = vsel %vm7367_vm8, %v7455_v62, %v7464_v19 }
 0x552   : > { %v4586_v45 = vpack.c.bf16 %v4557_v21, %v4556_v46  ;;  %v4462_v31 = vadd.f32 %v4376_v16, %v13838_v48  ;;  %v10405_v35 = vpop.f32.mrb[45].mxu0  ;;  %v14226_v50 = vsel %vm2144_vm6, %v6210_v53, %v6219_v20  ;;  %15414 = vst [vmem:[#allocation17_spill] sm:$0xff] %v14229_v43  ;;  %v7469_v46 = vrot.slane %v7467_v13, 4 }
 0x553   : > { %v14223_v6 = vld [vmem:[#allocation2 + $0x70] sm:$0xff]  ;;  %v4379_v52 = vpop.f32.mrb[46].mxu0  ;;  %v7472_v16 = vrot.slane %v7470_v12, 5  ;;  %v7889_v53 = vrot.slane %v14178_v60, 5 }
 0x554   : > { %4610 = vst.msk [vmem:[#allocation2 + $0x78] sm:$0xff] %vm4594_vm7, %v4586_v45  ;;  %v4513_v36 = vadd.f32 %v13899_v28, %v4462_v31  ;;  %v4762_v21 = vshll.u32 %v14223_v6, 16  ;;  %v4463_v48 = vadd.f32 %v4379_v52, %v13841_v2  ;;  %v10406_v17 = vpop.f32.mrb[47].mxu0  ;;  %v4766_v34 = vshrl.u32 %v14223_v6, 16  ;;  %v14238_v43 = vld [vmem:[#allocation2 + $0x70] sm:$0xff] }
 0x555   : > { %v7473_v26 = vor.u32 %v7472_v16, %v7469_v46  ;;  %v7476_v60 = vshrl.u32 %v14238_v43, 16  ;;  %v7479_v13 = vshll.u32 %v14238_v43, 16  ;;  %v15415_v45 = vrot.slane %v14156_v24, 5 }
 0x556   : > { %v4764_v35 = vrot.slane %v4762_v21, 1  ;;  %v4514_v62 = vadd.f32 %v13899_v28, %v4463_v48  ;;  %v6224_v11 = vrot.slane %v4766_v34, 2  ;;  %v6227_v31 = vrot.slane %v4762_v21, 3 }
 0x557   : > { %v4558_v8 = vmax.f32 %v4513_v36, 0.0  ;;  %v14249_v36 = vsel %vm7869_vm10, %v15415_v45, %v7889_v53  ;;  %v15417_v21 = vrot.slane %v14210_v54, 5  ;;  %v7478_v45 = vrot.slane %v7476_v60, 4 }
 0x558   : > { %v4765_v2 = vsel %vm445_vm2, %v4760_v25, %v4764_v35  ;;  %v4559_v52 = vmax.f32 %v4514_v62, 0.0  ;;  %v6228_v5 = vor.u32 %v6227_v31, %v6224_v11  ;;  %15416 = vst [vmem:[#allocation21_spill] sm:$0xff] %v14249_v36  ;;  %v7481_v31 = vrot.slane %v7479_v13, 5 }
 0x559   : > { %v4384_v17 = vpop.f32.mrb[48].mxu0  ;;  %10460 = vmatmul.mubr.msk.bf16.gmra.mrb[12].mxu1 %vm4594_vm7, %v4765_v2  ;;  %v14254_v25 = vsel %vm7869_vm10, %v7889_v53, %v15417_v21 }
 0x55a   : > { %v4587_v12 = vpack.c.bf16 %v4559_v52, %v4558_v8  ;;  %v4464_v48 = vadd.f32 %v4384_v17, %v13851_v59  ;;  %v10409_v63 = vpop.f32.mrb[49].mxu0  ;;  %15418 = vst [vmem:[#allocation23_spill] sm:$0xff] %v14254_v25  ;;  %v14259_v16 = vsel %vm2144_vm6, %v6219_v20, %v6228_v5  ;;  %v14262_v8 = vsel %vm7367_vm8, %v7464_v19, %v7473_v26 }
 0x55b   : > { %v4387_v11 = vpop.f32.mrb[50].mxu0  ;;  %v14256_v46 = vld [vmem:[#allocation2 + $0x78] sm:$0xff]  ;;  %15419 = vst [vmem:[#allocation43_spill] sm:$0xff] %v14262_v8  ;;  %v4768_v20 = vor.u32 %v4766_v34, %v4764_v35 }
 0x55c   : > { %4611 = vst.msk [vmem:[#allocation2 + $0x80] sm:$0xff] %vm4594_vm7, %v4587_v12  ;;  %v4515_v59 = vadd.f32 %v13899_v28, %v4464_v48  ;;  %v4465_v63 = vadd.f32 %v4387_v11, %v13854_v40  ;;  %v10410_v24 = vpop.f32.mrb[51].mxu0  ;;  %v4770_v62 = vshll.u32 %v14256_v46, 16  ;;  %v4774_v53 = vshrl.u32 %v14256_v46, 16  ;;  %v14270_v19 = vld [vmem:[#allocation2 + $0x78] sm:$0xff] }
 0x55d   : > { %15420 = vst [vmem:[#allocation19_spill] sm:$0xff] %v14270_v19  ;;  %v7482_v24 = vor.u32 %v7481_v31, %v7478_v45  ;;  %v7485_v60 = vshrl.u32 %v14270_v19, 16  ;;  %v7488_v13 = vshll.u32 %v14270_v19, 16 }
 0x55e   : > { %v4516_v2 = vadd.f32 %v13899_v28, %v4465_v63  ;;  %v4772_v52 = vrot.slane %v4770_v62, 1  ;;  %v6233_v17 = vrot.slane %v4774_v53, 2  ;;  %v6236_v21 = vrot.slane %v4770_v62, 3 }
 0x55f   : > { %v4560_v12 = vmax.f32 %v4515_v59, 0.0 }
 0x560   : > { %v4561_v25 = vmax.f32 %v4516_v2, 0.0  ;;  %v4773_v48 = vsel %vm445_vm2, %v4768_v20, %v4772_v52  ;;  %v6237_v11 = vor.u32 %v6236_v21, %v6233_v17  ;;  %v14283_v2 = vsel %vm7367_vm8, %v7473_v26, %v7482_v24  ;;  %v14294_v26 = vld [vmem:[%s15077_s2] ss:$0 sm:$0xff] }
 0x561   : > { %v4392_v40 = vpop.f32.mrb[52].mxu0  ;;  %10463 = vmatprep.mubr.msk.bf16.mxu1 %vm4594_vm7, %v4773_v48  ;;  %15421 = vst [vmem:[#allocation47_spill] sm:$0xff] %v14283_v2  ;;  %v4776_v17 = vor.u32 %v4774_v53, %v4772_v52  ;;  %v7487_v21 = vrot.slane %v7485_v60, 4 }
 0x562   : > { %v4588_v63 = vpack.c.bf16 %v4561_v25, %v4560_v12  ;;  %v4466_v34 = vadd.f32 %v4392_v40, %v13862_v18  ;;  %v10413_v35 = vpop.f32.mrb[53].mxu0  ;;  %v14280_v59 = vsel %vm2144_vm6, %v6228_v5, %v6237_v11  ;;  %v7490_v12 = vrot.slane %v7488_v13, 5 }
 0x563   : > { %v14277_v36 = vld [vmem:[#allocation2 + $0x80] sm:$0xff]  ;;  %v4395_v62 = vpop.f32.mrb[54].mxu0  ;;  %v7893_v5 = vrot.slane %v14238_v43, 5 }
 0x564   : > { %4612 = vst.msk [vmem:[#allocation2 + $0x88] sm:$0xff] %vm4594_vm7, %v4588_v63  ;;  %v4517_v45 = vadd.f32 %v13899_v28, %v4466_v34  ;;  %v4778_v31 = vshll.u32 %v14277_v36, 16  ;;  %v4467_v25 = vadd.f32 %v4395_v62, %v13865_v29  ;;  %v10414_v20 = vpop.f32.mrb[55].mxu0  ;;  %v4782_v18 = vshrl.u32 %v14277_v36, 16  ;;  %v14297_v63 = vld [vmem:[#allocation2 + $0x80] sm:$0xff] }
 0x565   : > { %15422 = vst [vmem:[#allocation22_spill] sm:$0xff] %v14297_v63  ;;  %v7491_v13 = vor.u32 %v7490_v12, %v7487_v21  ;;  %v7494_v62 = vshrl.u32 %v14297_v63, 16  ;;  %v7497_v20 = vshll.u32 %v14297_v63, 16  ;;  %v15423_v29 = vrot.slane %v14210_v54, 5 }
 0x566   : > { %v4780_v48 = vrot.slane %v4778_v31, 1  ;;  %v4518_v28 = vadd.f32 %v14294_v26, %v4467_v25  ;;  %v6242_v40 = vrot.slane %v4782_v18, 2  ;;  %v6245_v34 = vrot.slane %v4778_v31, 3 }
 0x567   : > { %v4562_v35 = vmax.f32 %v4517_v45, 0.0  ;;  %v14308_v45 = vsel %vm7869_vm10, %v15423_v29, %v7893_v5  ;;  %v15425_v31 = vrot.slane %v14270_v19, 5 }
 0x568   : > { %v4781_v53 = vsel %vm445_vm2, %v4776_v17, %v4780_v48  ;;  %v4563_v52 = vmax.f32 %v4518_v28, 0.0  ;;  %v6246_v43 = vor.u32 %v6245_v34, %v6242_v40  ;;  %15424 = vst [vmem:[#allocation26_spill] sm:$0xff] %v14308_v45  ;;  %v14321_v40 = vsel %vm7367_vm8, %v7482_v24, %v7491_v13 }
 0x569   : > { %v4400_v60 = vpop.f32.mrb[56].mxu0  ;;  %10464 = vmatmul.mubr.msk.bf16.gmra.mrb[16].mxu1 %vm4594_vm7, %v4781_v53  ;;  %v14313_v17 = vsel %vm7869_vm10, %v7893_v5, %v15425_v31  ;;  %15427 = vst [vmem:[#allocation25_spill] sm:$0xff] %v14321_v40  ;;  %v7496_v34 = vrot.slane %v7494_v62, 4 }
 0x56a   : > { %v4589_v25 = vpack.c.bf16 %v4563_v52, %v4562_v35  ;;  %v4468_v2 = vadd.f32 %v4400_v60, %v13871_v56  ;;  %v10417_v8 = vpop.f32.mrb[57].mxu0  ;;  %15426 = vst [vmem:[#allocation20_spill] sm:$0xff] %v14313_v17  ;;  %v14318_v12 = vsel %vm2144_vm6, %v6237_v11, %v6246_v43  ;;  %v7499_v35 = vrot.slane %v7497_v20, 5 }
 0x56b   : > { %v4403_v28 = vpop.f32.mrb[58].mxu0  ;;  %v14315_v21 = vld [vmem:[#allocation2 + $0x88] sm:$0xff]  ;;  %v4784_v11 = vor.u32 %v4782_v18, %v4780_v48 }
 0x56c   : > { %4613 = vst.msk [vmem:[#allocation2 + $0x90] sm:$0xff] %vm4594_vm7, %v4589_v25  ;;  %v4519_v56 = vadd.f32 %v14294_v26, %v4468_v2  ;;  %v4469_v54 = vadd.f32 %v4403_v28, %v13874_v27  ;;  %v10418_v8 = vpop.f32.mrb[59].mxu0  ;;  %v4786_v29 = vshll.u32 %v14315_v21, 16  ;;  %v4790_v5 = vshrl.u32 %v14315_v21, 16  ;;  %v14329_v24 = vld [vmem:[#allocation2 + $0x88] sm:$0xff] }
 0x56d   : > { %v7500_v8 = vor.u32 %v7499_v35, %v7496_v34  ;;  %v7503_v62 = vshrl.u32 %v14329_v24, 16  ;;  %v7506_v20 = vshll.u32 %v14329_v24, 16 }
 0x56e   : > { %v4520_v53 = vadd.f32 %v14294_v26, %v4469_v54  ;;  %v4788_v52 = vrot.slane %v4786_v29, 1  ;;  %v6251_v60 = vrot.slane %v4790_v5, 2  ;;  %v6254_v31 = vrot.slane %v4786_v29, 3 }
 0x56f   : > { %v4564_v25 = vmax.f32 %v4519_v56, 0.0 }
 0x570   : > { %v4565_v17 = vmax.f32 %v4520_v53, 0.0  ;;  %v4789_v2 = vsel %vm445_vm2, %v4784_v11, %v4788_v52  ;;  %v6255_v28 = vor.u32 %v6254_v31, %v6251_v60  ;;  %v14342_v53 = vsel %vm7367_vm8, %v7491_v13, %v7500_v8 }
 0x571   : > { %v4408_v27 = vpop.f32.mrb[60].mxu0  ;;  %10467 = vmatprep.mubr.msk.bf16.mxu1 %vm4594_vm7, %v4789_v2  ;;  %15428 = vst [vmem:[#allocation28_spill] sm:$0xff] %v14342_v53  ;;  %v4792_v60 = vor.u32 %v4790_v5, %v4788_v52  ;;  %v7505_v31 = vrot.slane %v7503_v62, 4 }
 0x572   : > { %v4590_v54 = vpack.c.bf16 %v4565_v17, %v4564_v25  ;;  %v4470_v18 = vadd.f32 %v4408_v27, %v13879_v3  ;;  %v10421_v48 = vpop.f32.mrb[61].mxu0  ;;  %v14339_v56 = vsel %vm2144_vm6, %v6246_v43, %v6255_v28  ;;  %v7508_v25 = vrot.slane %v7506_v20, 5 }
 0x573   : > { %v14336_v45 = vld [vmem:[#allocation2 + $0x90] sm:$0xff]  ;;  %v4411_v29 = vpop.f32.mrb[62].mxu0  ;;  %v7897_v43 = vrot.slane %v14297_v63, 5 }
 0x574   : > { %4614 = vst.msk [vmem:[#allocation2 + $0x98] sm:$0xff] %vm4594_vm7, %v4590_v54  ;;  %v4521_v34 = vadd.f32 %v14294_v26, %v4470_v18  ;;  %v4794_v35 = vshll.u32 %v14336_v45, 16  ;;  %v4471_v17 = vadd.f32 %v4411_v29, %v13882_v33  ;;  %v10422_v11 = vpop.f32.mrb[63].mxu0  ;;  %v4798_v3 = vshrl.u32 %v14336_v45, 16 }
 0x575   : > { %v7509_v5 = vor.u32 %v7508_v25, %v7505_v31  ;;  %v14355_v11 = vld [vmem:[#allocation2 + $0x90] sm:$0xff] }
 0x576   : > { %v4796_v2 = vrot.slane %v4794_v35, 1  ;;  %v4522_v13 = vadd.f32 %v14294_v26, %v4471_v17  ;;  %v6260_v27 = vrot.slane %v4798_v3, 2  ;;  %v6263_v48 = vrot.slane %v4794_v35, 3 }
 0x577   : > { %v4566_v18 = vmax.f32 %v4521_v34, 0.0  ;;  %v15429_v17 = vrot.slane %v14270_v19, 5  ;;  %v15431_v34 = vrot.slane %v14329_v24, 5 }
 0x578   : > { %v4797_v53 = vsel %vm445_vm2, %v4792_v60, %v4796_v2  ;;  %v4567_v40 = vmax.f32 %v4522_v13, 0.0  ;;  %v6264_v29 = vor.u32 %v6263_v48, %v6260_v27 }
 0x579   : > { %v4416_v33 = vpop.f32.mrb[64].mxu0  ;;  %10468 = vmatmul.mubr.msk.bf16.gmra.mrb[20].mxu1 %vm4594_vm7, %v4797_v53  ;;  %v14360_v54 = vsel %vm7869_vm10, %v15429_v17, %v7897_v43  ;;  %v14365_v35 = vsel %vm7869_vm10, %v7897_v43, %v15431_v34 }
 0x57a   : > { %v4591_v52 = vpack.c.bf16 %v4567_v40, %v4566_v18  ;;  %v4472_v62 = vadd.f32 %v4416_v33, %v13887_v22  ;;  %v10425_v20 = vpop.f32.mrb[65].mxu0  ;;  %15430 = vst [vmem:[#allocation12_spill] sm:$0xff] %v14360_v54  ;;  %15432 = vst [vmem:[#allocation29_spill] sm:$0xff] %v14365_v35  ;;  %v14372_v22 = vsel %vm2144_vm6, %v6255_v28, %v6264_v29  ;;  %v7512_v33 = vshrl.u32 %v14355_v11, 16 }
 0x57b   : > { %v4419_v60 = vpop.f32.mrb[66].mxu0  ;;  %v14367_v53 = vld [vmem:[#allocation2 + $0x98] sm:$0x7f]  ;;  %v14375_v40 = vsel %vm7367_vm8, %v7500_v8, %v7509_v5  ;;  %v7515_v28 = vshll.u32 %v14355_v11, 16  ;;  %v4800_v20 = vor.u32 %v4798_v3, %v4796_v2 }
 0x57c   : > { %v14369_v31 = vld [vmem:[#allocation2 + $0x98] sm:$0xff]  ;;  %15433 = vst [vmem:[#allocation10_spill] sm:$0xff] %v14375_v40  ;;  %4615 = vst.msk [vmem:[#allocation2 + $0xa0] sm:$0xff] %vm4594_vm7, %v4591_v52  ;;  %v4523_v25 = vadd.f32 %v14294_v26, %v4472_v62  ;;  %v4473_v13 = vadd.f32 %v4419_v60, %v13890_v41  ;;  %v10426_v27 = vpop.f32.mrb[67].mxu0  ;;  %v4802_v43 = vshll.u32 %v14367_v53, 16  ;;  %v4806_v52 = vshrl.u32 %v14367_v53, 16 }
 0x57d   : > { %v6267_v48 = vshrl.u32 %v14369_v31, 16  ;;  %v6270_v18 = vshll.u32 %v14369_v31, 16  ;;  %v7514_v63 = vrot.slane %v7512_v33, 4  ;;  %v7517_v19 = vrot.slane %v7515_v28, 5 }
 0x57e   : > { %v4524_v8 = vadd.f32 %v14294_v26, %v4473_v13  ;;  %v4804_v17 = vrot.slane %v4802_v43, 1  ;;  %v4568_v41 = vmax.f32 %v4523_v25, 0.0  ;;  %v15122_v28 = vrot.slane %v14369_v31, 4 }
 0x57f   : > { %v6269_v62 = vrot.slane %v6267_v48, 2  ;;  %v6272_v34 = vrot.slane %v6270_v18, 3  ;;  %v7523_v2 = vrot.slane %v6267_v48, 4  ;;  %v7526_v43 = vrot.slane %v6270_v18, 5 }
 0x580   : > { %v4569_v60 = vmax.f32 %v4524_v8, 0.0  ;;  %v4805_v27 = vsel %vm445_vm2, %v4800_v20, %v4804_v17  ;;  %v4808_v35 = vor.u32 %v4806_v52, %v4804_v17  ;;  %v15123_v20 = vrot.slane %v14369_v31, 3 }
 0x581   : > { %v4424_v54 = vpop.f32.mrb[68].mxu0  ;;  %10471 = vmatprep.mubr.msk.bf16.mxu1 %vm4594_vm7, %v4805_v27  ;;  %v6273_v40 = vor.u32 %v6272_v34, %v6269_v62  ;;  %v7518_v17 = vor.u32 %v7517_v19, %v7514_v63  ;;  %v7901_v48 = vrot.slane %v14355_v11, 5  ;;  %v7527_v62 = vor.u32 %v7526_v43, %v7523_v2  ;;  %v11301_v27 = vld [vmem:[%s15078_s3 + $0x28] sm:$0xff]  }
 0x582   : > { %v4592_v61 = vpack.c.bf16 %v4569_v60, %v4568_v41  ;;  %v4474_v13 = vadd.f32 %v4424_v54, %v13894_v10  ;;  %10472 = vmatmul.mubr.msk.bf16.gmra.mrb[24].mxu1 %vm4594_vm7, %v4808_v35  ;;  %v10429_v3 = vpop.f32.mrb[69].mxu0  ;;  %v15434_v2 = vrot.slane %v14329_v24, 5 }
 0x583   : > { %10479 = vmatprep.mubr.msk.bf16.mxu1 %vm4594_vm7, %v11360_v51  ;;  %v14392_v25 = vld [vmem:[#allocation2 + $0xa0] sm:$0xff]  ;;  %v14395_v8 = vsel %vm2144_vm6, %v6264_v29, %v6273_v40  ;;  %v4427_v33 = vpop.f32.mrb[70].mxu0  ;;  %v14407_v52 = vsel %vm7367_vm8, %v7509_v5, %v7518_v17  ;;  %v14422_v5 = vsel %vm7367_vm8, %v7518_v17, %v7527_v62  ;;  %v11361_v17 = vld [vmem:[#allocation2 + $0x8] sm:$0xff] }
 0x584   : > { %4616 = vst.msk [vmem:[#allocation2 + $0xa8] sm:$0xff] %vm4594_vm7, %v4592_v61  ;;  %v4525_v10 = vadd.f32 %v14294_v26, %v4474_v13  ;;  %v6276_v54 = vshrl.u32 %v14392_v25, 16  ;;  %v6279_v35 = vshll.u32 %v14392_v25, 16  ;;  %v10430_v51 = vpop.f32.mrb[71].mxu0  ;;  %v6658_v29 = vrot.slane %v14392_v25, 3 }
 0x585   : > { %v15121_v18 = vrot.slane %v14392_v25, 4  ;;  %v14432_v43 = vsel %vm7869_vm10, %v15434_v2, %v7901_v48  ;;  %v7903_v33 = vrot.slane %v14369_v31, 5 }
 0x586   : > { %v4570_v19 = vmax.f32 %v4525_v10, 0.0  ;;  %v6278_v61 = vrot.slane %v6276_v54, 2  ;;  %v6281_v63 = vrot.slane %v6279_v35, 3  ;;  %v14412_v26 = vsel %vm704_vm0, %v15123_v20, %v6658_v29  ;;  %15435 = vst [vmem:[#allocation44_spill] sm:$0xff] %v14432_v43  ;;  %v14478_v43 = vld [vmem:[#allocation2 + $0x20] sm:$0xff] }
 0x587   : > { %v14419_v34 = vsel %vm7014_vm9, %v15122_v28, %v15121_v18  ;;  %v7532_v41 = vrot.slane %v6276_v54, 4  ;;  %v7535_v3 = vrot.slane %v6279_v35, 5  ;;  %v7905_v10 = vrot.slane %v14392_v25, 5 }
 0x588   : > { %v4593_v60 = vpack.c.bf16 %v4570_v19, %v4570_v19  ;;  %v14427_v13 = vor.u32 %v6281_v63, %v6278_v61  ;;  %v14441_v19 = vld [vmem:[#allocation2 + $0x10] sm:$0xff]  ;;  %v14451_v63 = vsel %vm7869_vm10, %v7901_v48, %v7903_v33 }
 0x589   : > { %v7536_v51 = vor.u32 %v7535_v3, %v7532_v41  ;;  %15436 = vst [vmem:[#allocation45_spill] sm:$0xff] %v14451_v63 }
 0x58a   : > { %4618 = vst.msk [vmem:[#allocation2 + $0xb0] sm:$0x7] %vm4617_vm11, %v4593_v60  ;;  %10480 = vmatmul.mubr.msk.bf16.vlgmr.msra.gmra.mrb[244].mxu1 %vm4594_vm7, %v11361_v17  ;;  %v14439_v54 = vsel %vm2144_vm6, %v6273_v40, %v14427_v13  ;;  %v14454_v60 = vsel %vm7869_vm10, %v7903_v33, %v7905_v10 }
 0x58b   : > { %10483 = vmatprep.mubr.msk.bf16.mxu1 %vm4594_vm7, %v14441_v19  ;;  %10520 = vmatpush3.bf16.msra.mxu1 %v14216_v57  ;;  %v14446_v35 = vld [vmem:[#allocation2 + $0xa8] sm:$0x1]  ;;  %15437 = vst [vmem:[#allocation39_spill] sm:$0xff] %v14454_v60  ;;  %v14458_v41 = vsel %vm7367_vm8, %v7527_v62, %v7536_v51  ;;  %v14473_v62 = vld [vmem:[#allocation2 + $0x18] sm:$0xff] }
 0x58c   : > { %v14448_v61 = vld [vmem:[#allocation2 + $0xa8] sm:$0xff]  ;;  %10521 = vmatprep.subr.bf16.mxu1 %v11301_v27  ;;  %v6660_v40 = vrot.slane %v14446_v35, 3 }
 0x58d   : > { %v7539_v3 = vshrl.u32 %v14448_v61, 16  ;;  %v7542_v57 = vshll.u32 %v14448_v61, 16  ;;  %v7907_v2 = vrot.slane %v14448_v61, 5 }
 0x58e   : > { %v14464_v18 = vsel %vm704_vm0, %v6658_v29, %v6660_v40  ;;  %v11302_v40 = vld [vmem:[%s15078_s3 + $0x30] sm:$0xff]  }
 0x58f   : > { %10522 = vmatpush3.bf16.msra.mxu1 %v11301_v27  ;;  %v7541_v48 = vrot.slane %v7539_v3, 4  ;;  %v7544_v28 = vrot.slane %v7542_v57, 5  ;;  %v14467_v33 = vsel %vm7869_vm10, %v7905_v10, %v7907_v2  ;;  %v14493_v10 = vld [vmem:[#allocation2 + $0x30] sm:$0xff]  ;;  %v4639_v3 = vld [vmem:[#allocation2 + $0x98] sm:$0x3f] }
 0x590   : > { %15438 = vst [vmem:[#allocation27_spill] sm:$0xff] %v14467_v33  ;;  %10563 = vmatprep.subr.bf16.mxu1 %v11302_v40 }
 0x591   : > { %v14469_v20 = vld [vmem:[#allocation2 + $0xb0] sm:$0x7]  ;;  %v14471_v60 = vor.u32 %v7544_v28, %v7541_v48  ;;  %v14489_v28 = vld [vmem:[#allocation2 + $0x28] sm:$0xff]  ;;  %v5351_v48 = vrot.slane %v14473_v62, 1 }
 0x592   : > { %10484 = vmatmul.mubr.msk.bf16.gmra.mrb[248].mxu1 %vm4594_vm7, %v14473_v62  ;;  %v7909_v63 = vrot.slane %v14469_v20, 5 }
 0x593   : > { %15439 = vst [vmem:[#allocation46_spill] sm:$0xff] %v14471_v60  ;;  %10487 = vmatprep.mubr.msk.bf16.mxu1 %vm4594_vm7, %v14478_v43  ;;  %v14484_v29 = vsel %vm7367_vm8, %v7536_v51, %v14471_v60  ;;  %v5347_v51 = vrot.slane %v11361_v17, 1  ;;  %v15442_v60 = vshrl.u32 %v13932_v55, 16 }
 0x594   : > { %15440 = vst [vmem:[#allocation42_spill] sm:$0xff] %v14484_v29  ;;  %v14487_v27 = vsel %vm7869_vm10, %v7907_v2, %v7909_v63  ;;  %v5349_v2 = vrot.slane %v14441_v19, 1 }
 0x595   : > { %15441 = vst [vmem:[#allocation13_spill] sm:$0xff] %v14487_v27  ;;  %v11303_v27 = vld [vmem:[%s15078_s3 + $0x38] sm:$0xff]   ;;  %v6125_v29 = vrot.slane %v15442_v60, 2 }
 0x596   : > { %v5350_v33 = vsel %vm1205_vm5, %v5347_v51, %v5349_v2  ;;  %v5352_v17 = vsel %vm1205_vm5, %v5349_v2, %v5351_v48  ;;  %v11307_v60 = vld [vmem:[%s15078_s3 + $0x58] sm:$0xff]  }
 0x59a   : > { %10488 = vmatmul.mubr.msk.bf16.gmra.mrb[252].mxu1 %vm4594_vm7, %v14489_v28 }
 0x59b   : > { %10491 = vmatprep.mubr.msk.bf16.mxu1 %vm4594_vm7, %v14493_v10 }
 0x5a2   : > { %10492 = vmatmul.mubr.msk.bf16.gmra.mrb[0].mxu1 %vm4594_vm7, %v14033_v0  ;;  %v5320_v0 = vld [vmem:[#allocation2] sm:$0xfe] }
 0x5a3   : > { %10495 = vmatprep.mubr.msk.bf16.mxu1 %vm4594_vm7, %v14055_v37  ;;  %v5346_v63 = vrot.slane %v5320_v0, 1  ;;  %v5353_v0 = vrot.slane %v14478_v43, 1 }
 0x5a5   : > { %v5348_v57 = vsel %vm1205_vm5, %v5346_v63, %v5347_v51  ;;  %v5355_v63 = vrot.slane %v14489_v28, 1  ;;  %v14543_v51 = vld [vmem:[#allocation2 + $0x38] sm:$0xff] }
 0x5aa   : > { %10496 = vmatmul.mubr.msk.bf16.gmra.mrb[4].mxu1 %vm4594_vm7, %v14088_v9 }
 0x5ab   : > { %10499 = vmatprep.mubr.msk.bf16.mxu1 %vm4594_vm7, %v14109_v14 }
 0x5b2   : > { %10500 = vmatmul.mubr.msk.bf16.gmra.mrb[8].mxu1 %vm4594_vm7, %v14142_v15 }
 0x5b3   : > { %10503 = vmatprep.mubr.msk.bf16.mxu1 %vm4594_vm7, %v14163_v39 }
 0x5ba   : > { %10504 = vmatmul.mubr.msk.bf16.gmra.mrb[12].mxu1 %vm4594_vm7, %v14196_v58 }
 0x5bb   : > { %10507 = vmatprep.mubr.msk.bf16.mxu1 %vm4594_vm7, %v14223_v6 }
 0x5c2   : > { %10508 = vmatmul.mubr.msk.bf16.gmra.mrb[16].mxu1 %vm4594_vm7, %v14256_v46 }
 0x5c3   : > { %10511 = vmatprep.mubr.msk.bf16.mxu1 %vm4594_vm7, %v14277_v36 }
 0x5ca   : > { %10512 = vmatmul.mubr.msk.bf16.gmra.mrb[20].mxu1 %vm4594_vm7, %v14315_v21 }
 0x5cb   : > { %10515 = vmatprep.mubr.msk.bf16.mxu1 %vm4594_vm7, %v14336_v45 }
 0x5d2   : > { %10516 = vmatmul.mubr.msk.bf16.gmra.mrb[24].mxu1 %vm4594_vm7, %v4639_v3  ;;  %v5354_v3 = vsel %vm1205_vm5, %v5351_v48, %v5353_v0  ;;  %v5361_v48 = vrot.slane %v14055_v37, 1 }
 0x5d3   : > { %10523 = vmatprep.mubr.msk.bf16.mxu1 %vm4594_vm7, %v5348_v57  ;;  %v5356_v57 = vsel %vm1205_vm5, %v5353_v0, %v5355_v63 }
 0x5da   : > { %10524 = vmatmul.mubr.msk.bf16.vlgmr.msra.gmra.mrb[244].mxu1 %vm4594_vm7, %v5350_v33  ;;  %v5357_v33 = vrot.slane %v14493_v10, 1 }
 0x5db   : > { %10527 = vmatprep.mubr.msk.bf16.mxu1 %vm4594_vm7, %v5352_v17  ;;  %10564 = vmatpush3.bf16.msra.mxu1 %v11302_v40  ;;  %v5359_v40 = vrot.slane %v14543_v51, 1  ;;  %v5363_v17 = vrot.slane %v14088_v9, 1 }
 0x5dc   : > { %10565 = vmatprep.subr.bf16.mxu1 %v11303_v27  ;;  %v5358_v2 = vsel %vm1205_vm5, %v5355_v63, %v5357_v33 }
 0x5dd   : > { %v5362_v0 = vsel %vm1205_vm5, %v5359_v40, %v5361_v48  ;;  %v5364_v63 = vsel %vm1205_vm5, %v5361_v48, %v5363_v17 }
 0x5df   : > { %10566 = vmatpush3.bf16.msra.mxu1 %v11303_v27  ;;  %v5360_v27 = vsel %vm1205_vm5, %v5357_v33, %v5359_v40  ;;  %v5367_v33 = vrot.slane %v14142_v15, 1  ;;  %v5369_v40 = vrot.slane %v14163_v39, 1 }
 0x5e2   : > { %10528 = vmatmul.mubr.msk.bf16.gmra.mrb[248].mxu1 %vm4594_vm7, %v5354_v3  ;;  %v11304_v3 = vld [vmem:[%s15078_s3 + $0x40] sm:$0xff]  }
 0x5e3   : > { %10531 = vmatprep.mubr.msk.bf16.mxu1 %vm4594_vm7, %v5356_v57  ;;  %10607 = vmatprep.subr.bf16.mxu1 %v11304_v3  ;;  %v5365_v57 = vrot.slane %v14109_v14, 1 }
 0x5e5   : > { %v5366_v37 = vsel %vm1205_vm5, %v5363_v17, %v5365_v57  ;;  %v5368_v9 = vsel %vm1205_vm5, %v5365_v57, %v5367_v33  ;;  %v5373_v17 = vrot.slane %v14223_v6, 1 }
 0x5ea   : > { %10532 = vmatmul.mubr.msk.bf16.gmra.mrb[252].mxu1 %vm4594_vm7, %v5358_v2  ;;  %v5371_v2 = vrot.slane %v14196_v58, 1 }
 0x5eb   : > { %10535 = vmatprep.mubr.msk.bf16.mxu1 %vm4594_vm7, %v5360_v27  ;;  %v5370_v27 = vsel %vm1205_vm5, %v5367_v33, %v5369_v40  ;;  %v5377_v33 = vrot.slane %v14277_v36, 1 }
 0x5ec   : > { %v5372_v48 = vsel %vm1205_vm5, %v5369_v40, %v5371_v2 }
 0x5f2   : > { %10536 = vmatmul.mubr.msk.bf16.gmra.mrb[0].mxu1 %vm4594_vm7, %v5362_v0  ;;  %v5375_v0 = vrot.slane %v14256_v46, 1 }
 0x5f3   : > { %10539 = vmatprep.mubr.msk.bf16.mxu1 %vm4594_vm7, %v5364_v63  ;;  %v5374_v63 = vsel %vm1205_vm5, %v5371_v2, %v5373_v17  ;;  %v5381_v2 = vrot.slane %v14336_v45, 1 }
 0x5f4   : > { %v5376_v57 = vsel %vm1205_vm5, %v5373_v17, %v5375_v0 }
 0x5fa   : > { %10540 = vmatmul.mubr.msk.bf16.gmra.mrb[4].mxu1 %vm4594_vm7, %v5366_v37  ;;  %v5379_v37 = vrot.slane %v14315_v21, 1 }
 0x5fb   : > { %10543 = vmatprep.mubr.msk.bf16.mxu1 %vm4594_vm7, %v5368_v9  ;;  %v5378_v9 = vsel %vm1205_vm5, %v5375_v0, %v5377_v33  ;;  %v5736_v0 = vrot.slane %v14441_v19, 2 }
 0x5fc   : > { %v5380_v40 = vsel %vm1205_vm5, %v5377_v33, %v5379_v37 }
 0x602   : > { %10544 = vmatmul.mubr.msk.bf16.gmra.mrb[8].mxu1 %vm4594_vm7, %v5370_v27  ;;  %v5383_v27 = vrot.slane %v14367_v53, 1  ;;  %v5738_v53 = vrot.slane %v14473_v62, 2  ;;  %v5744_v62 = vrot.slane %v14493_v10, 2 }
 0x603   : > { %10547 = vmatprep.mubr.msk.bf16.mxu1 %vm4594_vm7, %v5372_v48  ;;  %v5382_v48 = vsel %vm1205_vm5, %v5379_v37, %v5381_v2  ;;  %v5740_v37 = vrot.slane %v14478_v43, 2 }
 0x604   : > { %v5384_v17 = vsel %vm1205_vm5, %v5381_v2, %v5383_v27  ;;  %v5742_v2 = vrot.slane %v14489_v28, 2 }
 0x605   : > { %v5741_v19 = vsel %vm1753_vm4, %v5738_v53, %v5740_v37 }
 0x606   : > { %v5743_v43 = vsel %vm1753_vm4, %v5740_v37, %v5742_v2 }
 0x60a   : > { %10548 = vmatmul.mubr.msk.bf16.gmra.mrb[12].mxu1 %vm4594_vm7, %v5374_v63  ;;  %v5690_v63 = vld [vmem:[#allocation2 + $0x8] sm:$0xfc] }
 0x60b   : > { %10551 = vmatprep.mubr.msk.bf16.mxu1 %vm4594_vm7, %v5376_v57  ;;  %v5735_v57 = vrot.slane %v5690_v63, 2 }
 0x60d   : > { %v5737_v33 = vsel %vm1753_vm4, %v5735_v57, %v5736_v0  ;;  %v14616_v57 = vld [vmem:[#allocation2 + $0x48] sm:$0xff] }
 0x612   : > { %10552 = vmatmul.mubr.msk.bf16.gmra.mrb[16].mxu1 %vm4594_vm7, %v5378_v9  ;;  %v11305_v9 = vld [vmem:[%s15078_s3 + $0x48] sm:$0xff]  }
 0x613   : > { %10555 = vmatprep.mubr.msk.bf16.mxu1 %vm4594_vm7, %v5380_v40  ;;  %v5739_v40 = vsel %vm1753_vm4, %v5736_v0, %v5738_v53  ;;  %v5752_v53 = vrot.slane %v14109_v14, 2 }
 0x61a   : > { %10556 = vmatmul.mubr.msk.bf16.gmra.mrb[20].mxu1 %vm4594_vm7, %v5382_v48  ;;  %v5746_v48 = vrot.slane %v14543_v51, 2 }
 0x61b   : > { %10559 = vmatprep.mubr.msk.bf16.mxu1 %vm4594_vm7, %v5384_v17  ;;  %v14609_v17 = vld [vmem:[#allocation2 + $0x40] sm:$0xff] }
 0x61c   : > { %v5747_v63 = vsel %vm1753_vm4, %v5744_v62, %v5746_v48 }
 0x622   : > { %10560 = vmatmul.mubr.msk.bf16.gmra.mrb[24].mxu1 %vm4594_vm7, %v5383_v27  ;;  %v5745_v27 = vsel %vm1753_vm4, %v5742_v2, %v5744_v62  ;;  %v5756_v2 = vrot.slane %v14163_v39, 2  ;;  %v5762_v39 = vrot.slane %v14256_v46, 2 }
 0x623   : > { %10567 = vmatprep.mubr.msk.bf16.mxu1 %vm4594_vm7, %v5737_v33  ;;  %v5750_v33 = vrot.slane %v14616_v57, 2 }
 0x62a   : > { %10568 = vmatmul.mubr.msk.bf16.vlgmr.msra.gmra.mrb[244].mxu1 %vm4594_vm7, %v5739_v40  ;;  %v5753_v40 = vsel %vm1753_vm4, %v5750_v33, %v5752_v53 }
 0x62b   : > { %10571 = vmatprep.mubr.msk.bf16.mxu1 %vm4594_vm7, %v5741_v19  ;;  %10608 = vmatpush3.bf16.msra.mxu1 %v11304_v3  ;;  %v5748_v3 = vrot.slane %v14609_v17, 2  ;;  %v5754_v19 = vrot.slane %v14142_v15, 2 }
 0x62c   : > { %10609 = vmatprep.subr.bf16.mxu1 %v11305_v9 }
 0x62d   : > { %v5749_v0 = vsel %vm1753_vm4, %v5746_v48, %v5748_v3  ;;  %v5751_v37 = vsel %vm1753_vm4, %v5748_v3, %v5750_v33  ;;  %v5755_v62 = vsel %vm1753_vm4, %v5752_v53, %v5754_v19  ;;  %v5757_v14 = vsel %vm1753_vm4, %v5754_v19, %v5756_v2  ;;  %v6079_v19 = vld [vmem:[#allocation2 + $0x8] sm:$0xfc] }
 0x62e   : > { %v5764_v3 = vrot.slane %v14277_v36, 2  ;;  %v5768_v33 = vrot.slane %v14336_v45, 2 }
 0x62f   : > { %10610 = vmatpush3.bf16.msra.mxu1 %v11305_v9  ;;  %v11306_v9 = vld [vmem:[%s15078_s3 + $0x50] sm:$0xff]  }
 0x630   : > { %10651 = vmatprep.subr.bf16.mxu1 %v11306_v9 }
 0x632   : > { %10572 = vmatmul.mubr.msk.bf16.gmra.mrb[248].mxu1 %vm4594_vm7, %v5743_v43  ;;  %v5758_v43 = vrot.slane %v14196_v58, 2  ;;  %v5765_v58 = vsel %vm1753_vm4, %v5762_v39, %v5764_v3 }
 0x633   : > { %10575 = vmatprep.mubr.msk.bf16.mxu1 %vm4594_vm7, %v5745_v27  ;;  %v5760_v27 = vrot.slane %v14223_v6, 2 }
 0x634   : > { %v5759_v48 = vsel %vm1753_vm4, %v5756_v2, %v5758_v43  ;;  %v5772_v2 = vrot.slane %v14392_v25, 2 }
 0x635   : > { %v5761_v15 = vsel %vm1753_vm4, %v5758_v43, %v5760_v27 }
 0x63a   : > { %10576 = vmatmul.mubr.msk.bf16.gmra.mrb[252].mxu1 %vm4594_vm7, %v5747_v63  ;;  %v5763_v63 = vsel %vm1753_vm4, %v5760_v27, %v5762_v39  ;;  %v6106_v27 = vshrl.u32 %v6079_v19, 16 }
 0x63b   : > { %10579 = vmatprep.mubr.msk.bf16.mxu1 %vm4594_vm7, %v5749_v0  ;;  %v5766_v0 = vrot.slane %v14315_v21, 2 }
 0x63d   : > { %v5767_v53 = vsel %vm1753_vm4, %v5764_v3, %v5766_v0 }
 0x642   : > { %10580 = vmatmul.mubr.msk.bf16.gmra.mrb[0].mxu1 %vm4594_vm7, %v5751_v37  ;;  %v5769_v37 = vsel %vm1753_vm4, %v5766_v0, %v5768_v33 }
 0x643   : > { %10583 = vmatprep.mubr.msk.bf16.mxu1 %vm4594_vm7, %v5753_v40  ;;  %v5770_v40 = vrot.slane %v14369_v31, 2 }
 0x645   : > { %v5773_v39 = vsel %vm1753_vm4, %v5770_v40, %v5772_v2 }
 0x64a   : > { %10584 = vmatmul.mubr.msk.bf16.gmra.mrb[4].mxu1 %vm4594_vm7, %v5755_v62  ;;  %v11370_v62 = vld [vmem:[#allocation2 + $0x10] sm:$0xff] }
 0x64b   : > { %10587 = vmatprep.mubr.msk.bf16.mxu1 %vm4594_vm7, %v5757_v14  ;;  %v6114_v14 = vshrl.u32 %v11370_v62, 16  ;;  %v6117_v43 = vshll.u32 %v11370_v62, 16  ;;  %v15443_v62 = vshll.u32 %v13932_v55, 16 }
 0x64d   : > { %v6116_v3 = vrot.slane %v6114_v14, 2 }
 0x652   : > { %10588 = vmatmul.mubr.msk.bf16.gmra.mrb[8].mxu1 %vm4594_vm7, %v5759_v48  ;;  %v6109_v48 = vshll.u32 %v6079_v19, 16  ;;  %v6128_v19 = vrot.slane %v15443_v62, 3 }
 0x653   : > { %10591 = vmatprep.mubr.msk.bf16.mxu1 %vm4594_vm7, %v5761_v15  ;;  %v5771_v15 = vsel %vm1753_vm4, %v5768_v33, %v5770_v40  ;;  %v15444_v40 = vshrl.u32 %v13953_v38, 16 }
 0x654   : > { %v6111_v0 = vrot.slane %v6109_v48, 3 }
 0x655   : > { %v6134_v14 = vrot.slane %v15444_v40, 2 }
 0x65a   : > { %10592 = vmatmul.mubr.msk.bf16.gmra.mrb[12].mxu1 %vm4594_vm7, %v5763_v63  ;;  %v6119_v63 = vrot.slane %v6117_v43, 3  ;;  %v15445_v43 = vshll.u32 %v13953_v38, 16 }
 0x65b   : > { %10595 = vmatprep.mubr.msk.bf16.mxu1 %vm4594_vm7, %v5765_v58  ;;  %v6108_v58 = vrot.slane %v6106_v27, 2  ;;  %v6129_v27 = vor.u32 %v6128_v19, %v6125_v29  ;;  %v11308_v29 = vld [vmem:[%s15078_s3 + $0x60] sm:$0xff]   ;;  %v6646_v19 = vrot.slane %v14223_v6, 3  ;;  %v6652_v6 = vrot.slane %v14315_v21, 3  ;;  %v11375_v21 = vld [vmem:[#allocation2 + $0x10] sm:$0xf0] }
 0x662   : > { %10596 = vmatmul.mubr.msk.bf16.gmra.mrb[16].mxu1 %vm4594_vm7, %v5767_v53  ;;  %v6120_v53 = vor.u32 %v6119_v63, %v6116_v3 }
 0x663   : > { %10599 = vmatprep.mubr.msk.bf16.mxu1 %vm4594_vm7, %v5769_v37  ;;  %v6112_v37 = vor.u32 %v6111_v0, %v6108_v58  ;;  %v11373_v58 = vld [vmem:[#allocation2 + $0x60] sm:$0xff] }
 0x664   : > { %v6642_v0 = vrot.slane %v11373_v58, 3 }
 0x665   : > { %v6121_v33 = vsel %vm2144_vm6, %v6112_v37, %v6120_v53  ;;  %v11374_v37 = vld [vmem:[#allocation2 + $0x68] sm:$0xff] }
 0x666   : > { %v6644_v62 = vrot.slane %v11374_v37, 3 }
 0x668   : > { %v6647_v40 = vsel %vm704_vm0, %v6644_v62, %v6646_v19 }
 0x66a   : > { %10600 = vmatmul.mubr.msk.bf16.gmra.mrb[20].mxu1 %vm4594_vm7, %v5771_v15  ;;  %v6137_v15 = vrot.slane %v15445_v43, 3  ;;  %v6650_v43 = vrot.slane %v14277_v36, 3  ;;  %v15449_v36 = vrot.slane %v14369_v31, 3 }
 0x66b   : > { %10603 = vmatprep.mubr.msk.bf16.mxu1 %vm4594_vm7, %v5773_v39  ;;  %v6130_v39 = vsel %vm2144_vm6, %v6120_v53, %v6129_v27 }
 0x66c   : > { %v6138_v48 = vor.u32 %v6137_v15, %v6134_v14  ;;  %v6648_v14 = vrot.slane %v14256_v46, 3 }
 0x66e   : > { %v6148_v3 = vsel %vm2144_vm6, %v6138_v48, %v14001_v44  ;;  %v6285_v44 = vshll.u32 %v14446_v35, 16  ;;  %v11371_v35 = vld [vmem:[#allocation2 + $0x50] sm:$0xff]  ;;  %v6649_v15 = vsel %vm704_vm0, %v6646_v19, %v6648_v14 }
 0x672   : > { %10604 = vmatmul.mubr.msk.bf16.gmra.mrb[24].mxu1 %vm4594_vm7, %v5772_v2  ;;  %v6139_v2 = vsel %vm2144_vm6, %v6129_v27, %v6138_v48  ;;  %v6651_v27 = vsel %vm704_vm0, %v6648_v14, %v6650_v43  ;;  %v6654_v48 = vrot.slane %v14336_v45, 3  ;;  %v15450_v45 = vrot.slane %v13932_v55, 4 }
 0x673   : > { %10611 = vmatprep.mubr.msk.bf16.mxu1 %vm4594_vm7, %v6121_v33  ;;  %v6645_v33 = vsel %vm704_vm0, %v6642_v0, %v6644_v62  ;;  %v7044_v14 = vrot.slane %v14329_v24, 4  ;;  %v7052_v24 = vrot.slane %v14448_v61, 4  ;;  %v11313_v61 = vld [vmem:[%s15078_s3 + $0x88] sm:$0xff]  }
 0x674   : > { %v6655_v46 = vsel %vm704_vm0, %v6652_v6, %v6654_v48 }
 0x67a   : > { %10612 = vmatmul.mubr.msk.bf16.vlgmr.msra.gmra.mrb[244].mxu1 %vm4594_vm7, %v6130_v39  ;;  %v6657_v39 = vsel %vm704_vm0, %v6654_v48, %v15449_v36  ;;  %v15455_v48 = vrot.slane %v14369_v31, 4  ;;  %v15456_v36 = vrot.slane %v14392_v25, 4  ;;  %v15457_v31 = vld [vmem:[#allocation51_spill] sm:$0xff] }
 0x67b   : > { %10615 = vmatprep.mubr.msk.bf16.mxu1 %vm4594_vm7, %v6139_v2  ;;  %10652 = vmatpush3.bf16.msra.mxu1 %v11306_v9  ;;  %v11372_v9 = vld [vmem:[#allocation2 + $0x58] sm:$0xff]  ;;  %v7015_v2 = vrot.slane %v11375_v21, 4  ;;  %v15459_v25 = vld [vmem:[#allocation11_spill] sm:$0xff] }
 0x67c   : > { %10653 = vmatprep.subr.bf16.mxu1 %v11307_v60  ;;  %v6640_v63 = vrot.slane %v11372_v9, 3 }
 0x67e   : > { %v6643_v53 = vsel %vm704_vm0, %v6640_v63, %v6642_v0  ;;  %v11385_v0 = vld [vmem:[#allocation2 + $0x70] sm:$0xff] }
 0x67f   : > { %10654 = vmatpush3.bf16.msra.mxu1 %v11307_v60  ;;  %v6653_v60 = vsel %vm704_vm0, %v6650_v43, %v6652_v6 }
 0x680   : > { %10695 = vmatprep.subr.bf16.mxu1 %v11308_v29 }
 0x682   : > { %10616 = vmatmul.mubr.msk.bf16.gmra.mrb[248].mxu1 %vm4594_vm7, %v6148_v3  ;;  %v7017_v3 = vsel %vm7014_vm9, %v7015_v2, %v15450_v45  ;;  %v15460_v2 = vld [vmem:[#allocation35_spill] sm:$0xff]  ;;  %v15461_v45 = vld [vmem:[#allocation37_spill] sm:$0xff] }
 0x683   : > { %10619 = vmatprep.mubr.msk.bf16.mxu1 %vm4594_vm7, %v14037_v7  ;;  %v6287_v7 = vrot.slane %v6285_v44, 3 }
 0x68a   : > { %10620 = vmatmul.mubr.msk.bf16.gmra.mrb[252].mxu1 %vm4594_vm7, %v14058_v47  ;;  %v6594_v47 = vld [vmem:[#allocation2 + $0x8] sm:$0xf8] }
 0x68b   : > { %10623 = vmatprep.mubr.msk.bf16.mxu1 %vm4594_vm7, %v14091_v23  ;;  %v6621_v23 = vrot.slane %v6594_v47, 3  ;;  %v15451_v47 = vld [vmem:[#allocation33_spill] sm:$0xff] }
 0x692   : > { %10624 = vmatmul.mubr.msk.bf16.gmra.mrb[0].mxu1 %vm4594_vm7, %v14112_v1  ;;  %v6288_v1 = vsel %vm2144_vm6, %v14427_v13, %v6287_v7  ;;  %v11311_v7 = vld [vmem:[%s15078_s3 + $0x78] sm:$0xff]  }
 0x693   : > { %10627 = vmatprep.mubr.msk.bf16.mxu1 %vm4594_vm7, %v14145_v32  ;;  %v15446_v32 = vrot.slane %v13930_v42, 3  ;;  %v6630_v42 = vrot.slane %v14493_v10, 3 }
 0x69a   : > { %10628 = vmatmul.mubr.msk.bf16.gmra.mrb[4].mxu1 %vm4594_vm7, %v14166_v4  ;;  %v6623_v4 = vsel %vm704_vm0, %v6621_v23, %v15446_v32  ;;  %v11378_v32 = vld [vmem:[#allocation2 + $0x38] sm:$0xff] }
 0x69b   : > { %10631 = vmatprep.mubr.msk.bf16.mxu1 %vm4594_vm7, %v14199_v49  ;;  %v11309_v49 = vld [vmem:[%s15078_s3 + $0x68] sm:$0xff]  }
 0x6a2   : > { %10632 = vmatmul.mubr.msk.bf16.gmra.mrb[8].mxu1 %vm4594_vm7, %v14226_v50  ;;  %v15447_v50 = vld [vmem:[#allocation32_spill] sm:$0xff] }
 0x6a3   : > { %10635 = vmatprep.mubr.msk.bf16.mxu1 %vm4594_vm7, %v14259_v16  ;;  %v6628_v16 = vrot.slane %v14489_v28, 3  ;;  %v6638_v28 = vrot.slane %v11371_v35, 3 }
 0x6aa   : > { %10636 = vmatmul.mubr.msk.bf16.gmra.mrb[12].mxu1 %vm4594_vm7, %v14280_v59  ;;  %v15448_v59 = vrot.slane %v13953_v38, 3 }
 0x6ab   : > { %10639 = vmatprep.mubr.msk.bf16.mxu1 %vm4594_vm7, %v14318_v12 }
 0x6ac   : > { %v6629_v12 = vsel %vm704_vm0, %v15448_v59, %v6628_v16 }
 0x6b2   : > { %10640 = vmatmul.mubr.msk.bf16.gmra.mrb[16].mxu1 %vm4594_vm7, %v14339_v56  ;;  %v6631_v56 = vsel %vm704_vm0, %v6628_v16, %v6630_v42 }
 0x6b3   : > { %10643 = vmatprep.mubr.msk.bf16.mxu1 %vm4594_vm7, %v14372_v22  ;;  %v6634_v22 = vrot.slane %v14609_v17, 3  ;;  %v11310_v17 = vld [vmem:[%s15078_s3 + $0x70] sm:$0xff]  }
 0x6ba   : > { %10644 = vmatmul.mubr.msk.bf16.gmra.mrb[20].mxu1 %vm4594_vm7, %v14395_v8 }
 0x6bb   : > { %10647 = vmatprep.mubr.msk.bf16.mxu1 %vm4594_vm7, %v14439_v54  ;;  %v6636_v54 = vrot.slane %v14616_v57, 3  ;;  %v6641_v57 = vsel %vm704_vm0, %v6638_v28, %v6640_v63 }
 0x6bd   : > { %v6637_v10 = vsel %vm704_vm0, %v6634_v22, %v6636_v54 }
 0x6c2   : > { %10648 = vmatmul.mubr.msk.bf16.gmra.mrb[24].mxu1 %vm4594_vm7, %v6288_v1 }
 0x6c3   : > { %10655 = vmatprep.mubr.msk.bf16.mxu1 %vm4594_vm7, %v6623_v4  ;;  %v7024_v4 = vrot.slane %v11378_v32, 4  ;;  %v15471_v32 = vld [vmem:[#allocation10_spill] sm:$0xff] }
 0x6ca   : > { %10656 = vmatmul.mubr.msk.bf16.vlgmr.msra.gmra.mrb[244].mxu1 %vm4594_vm7, %v13947_v30  ;;  %v6632_v30 = vrot.slane %v14543_v51, 3  ;;  %v6639_v51 = vsel %vm704_vm0, %v6636_v54, %v6638_v28  ;;  %v11312_v28 = vld [vmem:[%s15078_s3 + $0x80] sm:$0xff]  }
 0x6cb   : > { %10659 = vmatprep.mubr.msk.bf16.mxu1 %vm4594_vm7, %v15447_v50  ;;  %10696 = vmatpush3.bf16.msra.mxu1 %v11308_v29  ;;  %v11376_v29 = vld [vmem:[#allocation2 + $0x28] sm:$0xff] }
 0x6cc   : > { %10697 = vmatprep.subr.bf16.mxu1 %v11309_v49  ;;  %v6633_v8 = vsel %vm704_vm0, %v6630_v42, %v6632_v30  ;;  %v6635_v13 = vsel %vm704_vm0, %v6632_v30, %v6634_v22  ;;  %v7020_v44 = vrot.slane %v11376_v29, 4  ;;  %v11380_v42 = vld [vmem:[#allocation2 + $0x48] sm:$0xff]  ;;  %v11381_v30 = vld [vmem:[#allocation2 + $0x50] sm:$0xff]  ;;  %v15463_v29 = vld [vmem:[#allocation16_spill] sm:$0xff] }
 0x6cd   : > { %v7028_v59 = vrot.slane %v11380_v42, 4  ;;  %v7030_v22 = vrot.slane %v11381_v30, 4  ;;  %v15475_v30 = vld [vmem:[#allocation50_spill] sm:$0xff] }
 0x6cf   : > { %10698 = vmatpush3.bf16.msra.mxu1 %v11309_v49  ;;  %v7031_v54 = vsel %vm7014_vm9, %v7028_v59, %v7030_v22 }
 0x6d0   : > { %10739 = vmatprep.subr.bf16.mxu1 %v11310_v17 }
 0x6d2   : > { %10660 = vmatmul.mubr.msk.bf16.gmra.mrb[248].mxu1 %vm4594_vm7, %v6629_v12 }
 0x6d3   : > { %10663 = vmatprep.mubr.msk.bf16.mxu1 %vm4594_vm7, %v6631_v56 }
 0x6da   : > { %10664 = vmatmul.mubr.msk.bf16.gmra.mrb[252].mxu1 %vm4594_vm7, %v6633_v8  ;;  %v11382_v8 = vld [vmem:[#allocation2 + $0x58] sm:$0xff] }
 0x6db   : > { %10667 = vmatprep.mubr.msk.bf16.mxu1 %vm4594_vm7, %v6635_v13  ;;  %v7032_v13 = vrot.slane %v11382_v8, 4  ;;  %v15478_v8 = vld [vmem:[#allocation36_spill] sm:$0xff] }
 0x6dd   : > { %v7033_v35 = vsel %vm7014_vm9, %v7030_v22, %v7032_v13  ;;  %v15477_v22 = vld [vmem:[#allocation38_spill] sm:$0xff] }
 0x6e2   : > { %10668 = vmatmul.mubr.msk.bf16.gmra.mrb[0].mxu1 %vm4594_vm7, %v6637_v10  ;;  %v11383_v10 = vld [vmem:[#allocation2 + $0x60] sm:$0xff] }
 0x6e3   : > { %10671 = vmatprep.mubr.msk.bf16.mxu1 %vm4594_vm7, %v6639_v51  ;;  %v7034_v51 = vrot.slane %v11383_v10, 4  ;;  %v15484_v10 = vld [vmem:[#allocation23_spill] sm:$0xff] }
 0x6e5   : > { %v7035_v63 = vsel %vm7014_vm9, %v7032_v13, %v7034_v51  ;;  %v15479_v13 = vld [vmem:[#allocation15_spill] sm:$0xff] }
 0x6ea   : > { %10672 = vmatmul.mubr.msk.bf16.gmra.mrb[4].mxu1 %vm4594_vm7, %v6641_v57  ;;  %v7038_v57 = vrot.slane %v11385_v0, 4  ;;  %v15490_v0 = vld [vmem:[#allocation45_spill] sm:$0xff] }
 0x6eb   : > { %10675 = vmatprep.mubr.msk.bf16.mxu1 %vm4594_vm7, %v6643_v53  ;;  %v15453_v53 = vld [vmem:[#allocation19_spill] sm:$0xff] }
 0x6ec   : > { %v7040_v37 = vrot.slane %v15453_v53, 4  ;;  %v15492_v53 = vld [vmem:[#allocation27_spill] sm:$0xff] }
 0x6ee   : > { %v7041_v19 = vsel %vm7014_vm9, %v7038_v57, %v7040_v37 }
 0x6f2   : > { %10676 = vmatmul.mubr.msk.bf16.gmra.mrb[8].mxu1 %vm4594_vm7, %v6645_v33  ;;  %v15454_v33 = vld [vmem:[#allocation22_spill] sm:$0xff] }
 0x6f3   : > { %10679 = vmatprep.mubr.msk.bf16.mxu1 %vm4594_vm7, %v6647_v40  ;;  %v7042_v40 = vrot.slane %v15454_v33, 4 }
 0x6f5   : > { %v7043_v43 = vsel %vm7014_vm9, %v7040_v37, %v7042_v40  ;;  %v15493_v37 = vld [vmem:[#allocation13_spill] sm:$0xff] }
 0x6fa   : > { %10680 = vmatmul.mubr.msk.bf16.gmra.mrb[12].mxu1 %vm4594_vm7, %v6649_v15  ;;  %v7045_v15 = vsel %vm7014_vm9, %v7042_v40, %v7044_v14 }
 0x6fb   : > { %10683 = vmatprep.mubr.msk.bf16.mxu1 %vm4594_vm7, %v6651_v27  ;;  %v7046_v27 = vrot.slane %v14355_v11, 4  ;;  %v7053_v11 = vsel %vm7014_vm9, %v15456_v36, %v7052_v24 }
 0x6fd   : > { %v7047_v6 = vsel %vm7014_vm9, %v7044_v14, %v7046_v27 }
 0x702   : > { %10684 = vmatmul.mubr.msk.bf16.gmra.mrb[16].mxu1 %vm4594_vm7, %v6653_v60  ;;  %v7049_v60 = vsel %vm7014_vm9, %v7046_v27, %v15455_v48 }
 0x703   : > { %10687 = vmatprep.mubr.msk.bf16.mxu1 %vm4594_vm7, %v6655_v46  ;;  %v6987_v46 = vld [vmem:[#allocation2 + $0xb0] sm:$0x3] }
 0x70a   : > { %10688 = vmatmul.mubr.msk.bf16.gmra.mrb[20].mxu1 %vm4594_vm7, %v6657_v39  ;;  %v7054_v39 = vrot.slane %v6987_v46, 4 }
 0x70b   : > { %10691 = vmatprep.mubr.msk.bf16.mxu1 %vm4594_vm7, %v14412_v26  ;;  %v15452_v26 = vrot.slane %v13953_v38, 4  ;;  %v11379_v38 = vld [vmem:[#allocation2 + $0x40] sm:$0xff] }
 0x70c   : > { %v7026_v16 = vrot.slane %v11379_v38, 4  ;;  %v7055_v21 = vsel %vm7014_vm9, %v7052_v24, %v7054_v39 }
 0x70d   : > { %v7021_v23 = vsel %vm7014_vm9, %v15452_v26, %v7020_v44  ;;  %v15467_v26 = vld [vmem:[#allocation43_spill] sm:$0xff] }
 0x70e   : > { %v7027_v12 = vsel %vm7014_vm9, %v7024_v4, %v7026_v16  ;;  %v7029_v56 = vsel %vm7014_vm9, %v7026_v16, %v7028_v59  ;;  %v15472_v16 = vld [vmem:[#allocation42_spill] sm:$0xff]  ;;  %v7861_v59 = vld [vmem:[#allocation2 + $0x10] sm:$0xe0] }
 0x712   : > { %10692 = vmatmul.mubr.msk.bf16.gmra.mrb[24].mxu1 %vm4594_vm7, %v14464_v18  ;;  %v11377_v18 = vld [vmem:[#allocation2 + $0x30] sm:$0xff] }
 0x713   : > { %10699 = vmatprep.mubr.msk.bf16.mxu1 %vm4594_vm7, %v7017_v3  ;;  %v7022_v1 = vrot.slane %v11377_v18, 4  ;;  %v15462_v3 = vld [vmem:[#allocation7_spill] sm:$0xff]  ;;  %v15469_v18 = vld [vmem:[#allocation25_spill] sm:$0xff] }
 0x715   : > { %v7023_v49 = vsel %vm7014_vm9, %v7020_v44, %v7022_v1  ;;  %v7025_v50 = vsel %vm7014_vm9, %v7022_v1, %v7024_v4  ;;  %v15464_v44 = vld [vmem:[#allocation41_spill] sm:$0xff]  ;;  %v15470_v1 = vld [vmem:[#allocation28_spill] sm:$0xff]  ;;  %v7548_v4 = vshrl.u32 %v14469_v20, 16 }
 0x71a   : > { %10700 = vmatmul.mubr.msk.bf16.vlgmr.msra.gmra.mrb[244].mxu1 %vm4594_vm7, %v15451_v47  ;;  %v15466_v47 = vld [vmem:[#allocation17_spill] sm:$0xff] }
 0x71b   : > { %10703 = vmatprep.mubr.msk.bf16.mxu1 %vm4594_vm7, %v7021_v23  ;;  %10740 = vmatpush3.bf16.msra.mxu1 %v11310_v17  ;;  %v11384_v17 = vld [vmem:[#allocation2 + $0x68] sm:$0xff]  ;;  %v15468_v23 = vld [vmem:[#allocation47_spill] sm:$0xff] }
 0x71c   : > { %10741 = vmatprep.subr.bf16.mxu1 %v11311_v7  ;;  %v7036_v9 = vrot.slane %v11384_v17, 4  ;;  %v15486_v17 = vld [vmem:[#allocation20_spill] sm:$0xff] }
 0x71e   : > { %v7037_v58 = vsel %vm7014_vm9, %v7034_v51, %v7036_v9  ;;  %v7039_v62 = vsel %vm7014_vm9, %v7036_v9, %v7038_v57  ;;  %v15485_v51 = vld [vmem:[#allocation26_spill] sm:$0xff]  ;;  %v15487_v9 = vld [vmem:[#allocation12_spill] sm:$0xff]  ;;  %v15491_v57 = vld [vmem:[#allocation39_spill] sm:$0xff] }
 0x71f   : > { %10742 = vmatpush3.bf16.msra.mxu1 %v11311_v7  ;;  %v15465_v7 = vld [vmem:[#allocation53_spill] sm:$0xff] }
 0x720   : > { %10783 = vmatprep.subr.bf16.mxu1 %v11312_v28 }
 0x722   : > { %10704 = vmatmul.mubr.msk.bf16.gmra.mrb[248].mxu1 %vm4594_vm7, %v7023_v49  ;;  %v7551_v49 = vshll.u32 %v14469_v20, 16 }
 0x723   : > { %10707 = vmatprep.mubr.msk.bf16.mxu1 %vm4594_vm7, %v7025_v50  ;;  %v7550_v50 = vrot.slane %v7548_v4, 4 }
 0x724   : > { %v7553_v38 = vrot.slane %v7551_v49, 5 }
 0x726   : > { %v7554_v42 = vor.u32 %v7553_v38, %v7550_v50  ;;  %v8344_v50 = vld [vmem:[%s15081_s6] sm:$0xf] }
 0x72a   : > { %10708 = vmatmul.mubr.msk.bf16.gmra.mrb[252].mxu1 %vm4594_vm7, %v7027_v12  ;;  %v7870_v12 = vrot.slane %v7861_v59, 5 }
 0x72b   : > { %10711 = vmatprep.mubr.msk.bf16.mxu1 %vm4594_vm7, %v7029_v56  ;;  %v15473_v56 = vld [vmem:[#allocation46_spill] sm:$0xff] }
 0x732   : > { %10712 = vmatmul.mubr.msk.bf16.gmra.mrb[0].mxu1 %vm4594_vm7, %v7031_v54  ;;  %v15481_v54 = vld [vmem:[#allocation18_spill] sm:$0xff] }
 0x733   : > { %10715 = vmatprep.mubr.msk.bf16.mxu1 %vm4594_vm7, %v7033_v35  ;;  %v15482_v35 = vld [vmem:[#allocation8_spill] sm:$0xff] }
 0x73a   : > { %10716 = vmatmul.mubr.msk.bf16.gmra.mrb[4].mxu1 %vm4594_vm7, %v7035_v63  ;;  %v15488_v63 = vld [vmem:[#allocation29_spill] sm:$0xff] }
 0x73b   : > { %10719 = vmatprep.mubr.msk.bf16.mxu1 %vm4594_vm7, %v7037_v58  ;;  %v15489_v58 = vld [vmem:[#allocation44_spill] sm:$0xff] }
 0x742   : > { %10720 = vmatmul.mubr.msk.bf16.gmra.mrb[8].mxu1 %vm4594_vm7, %v7039_v62  ;;  %v14927_v62 = vld [vmem:[%s15080_s5] sm:$0x3] }
 0x743   : > { %10723 = vmatprep.mubr.msk.bf16.mxu1 %vm4594_vm7, %v7041_v19  ;;  %9578 = vmatprep.mubr.msk.bf16.mxu0 %vm4594_vm7, %v14927_v62  ;;  %v14934_v19 = vld [vmem:[%s15079_s4] ss:$0 sm:$0xff] }
 0x74a   : > { %10724 = vmatmul.mubr.msk.bf16.gmra.mrb[12].mxu1 %vm4594_vm7, %v7043_v43 }
 0x74b   : > { %10727 = vmatprep.mubr.msk.bf16.mxu1 %vm4594_vm7, %v7045_v15 }
 0x752   : > { %10728 = vmatmul.mubr.msk.bf16.gmra.mrb[16].mxu1 %vm4594_vm7, %v7047_v6 }
 0x753   : > { %10731 = vmatprep.mubr.msk.bf16.mxu1 %vm4594_vm7, %v7049_v60 }
 0x75a   : > { %10732 = vmatmul.mubr.msk.bf16.gmra.mrb[20].mxu1 %vm4594_vm7, %v14419_v34  ;;  %v15458_v34 = vld [vmem:[#allocation52_spill] sm:$0xff] }
 0x75b   : > { %10735 = vmatprep.mubr.msk.bf16.mxu1 %vm4594_vm7, %v7053_v11 }
 0x762   : > { %10736 = vmatmul.mubr.msk.bf16.gmra.mrb[24].mxu1 %vm4594_vm7, %v7055_v21 }
 0x763   : > { %10743 = vmatprep.mubr.msk.bf16.mxu1 %vm4594_vm7, %v15457_v31 }
 0x76a   : > { %10744 = vmatmul.mubr.msk.bf16.vlgmr.msra.gmra.mrb[244].mxu1 %vm4594_vm7, %v15458_v34 }
 0x76b   : > { %10747 = vmatprep.mubr.msk.bf16.mxu1 %vm4594_vm7, %v15459_v25  ;;  %10784 = vmatpush3.bf16.msra.mxu1 %v11312_v28  ;;  %v15483_v28 = vld [vmem:[#allocation21_spill] sm:$0xff] }
 0x76c   : > { %10785 = vmatprep.subr.bf16.mxu1 %v11313_v61 }
 0x76f   : > { %10786 = vmatpush3.bf16.msra.mxu1 %v11313_v61 }
 0x772   : > { %10748 = vmatmul.mubr.msk.bf16.gmra.mrb[248].mxu1 %vm4594_vm7, %v15460_v2 }
 0x773   : > { %10751 = vmatprep.mubr.msk.bf16.mxu1 %vm4594_vm7, %v15461_v45 }
 0x77a   : > { %10752 = vmatmul.mubr.msk.bf16.gmra.mrb[252].mxu1 %vm4594_vm7, %v15462_v3 }
 0x77b   : > { %10755 = vmatprep.mubr.msk.bf16.mxu1 %vm4594_vm7, %v15463_v29 }
 0x782   : > { %10756 = vmatmul.mubr.msk.bf16.gmra.mrb[0].mxu1 %vm4594_vm7, %v15464_v44 }
 0x783   : > { %10759 = vmatprep.mubr.msk.bf16.mxu1 %vm4594_vm7, %v15465_v7 }
 0x78a   : > { %10760 = vmatmul.mubr.msk.bf16.gmra.mrb[4].mxu1 %vm4594_vm7, %v15466_v47 }
 0x78b   : > { %10763 = vmatprep.mubr.msk.bf16.mxu1 %vm4594_vm7, %v15467_v26 }
 0x792   : > { %10764 = vmatmul.mubr.msk.bf16.gmra.mrb[8].mxu1 %vm4594_vm7, %v15468_v23 }
 0x793   : > { %10767 = vmatprep.mubr.msk.bf16.mxu1 %vm4594_vm7, %v15469_v18 }
 0x79a   : > { %10768 = vmatmul.mubr.msk.bf16.gmra.mrb[12].mxu1 %vm4594_vm7, %v15470_v1 }
 0x79b   : > { %10771 = vmatprep.mubr.msk.bf16.mxu1 %vm4594_vm7, %v15471_v32 }
 0x7a2   : > { %10772 = vmatmul.mubr.msk.bf16.gmra.mrb[16].mxu1 %vm4594_vm7, %v14407_v52  ;;  %v7555_v52 = vsel %vm7367_vm8, %v15473_v56, %v7554_v42  ;;  %v11452_v42 = vmov 0  }
 0x7a3   : > { %10775 = vmatprep.mubr.msk.bf16.mxu1 %vm4594_vm7, %v14422_v5  ;;  %v15474_v5 = vrot.slane %v13932_v55, 5  ;;  %v15480_v55 = vld [vmem:[#allocation40_spill] sm:$0xff]  ;;  %11211 = vset.pattern.permute.xlu0 %v11452_v42 }
 0x7a4   : > { %8367 = vperm.xlu0 %11211, %v8344_v50  }
 0x7a5   : > { %v7872_v20 = vsel %vm7869_vm10, %v7870_v12, %v15474_v5 }
 0x7aa   : > { %10776 = vmatmul.mubr.msk.bf16.gmra.mrb[20].mxu1 %vm4594_vm7, %v14458_v41  ;;  %v15476_v41 = vld [vmem:[#allocation34_spill] sm:$0xff] }
 0x7ab   : > { %10779 = vmatprep.mubr.msk.bf16.mxu1 %vm4594_vm7, %v15472_v16 }
 0x7b2   : > { %10780 = vmatmul.mubr.msk.bf16.gmra.mrb[24].mxu1 %vm4594_vm7, %v7555_v52 }
 0x7b3   : > { %10787 = vmatprep.mubr.msk.bf16.mxu1 %vm4594_vm7, %v7872_v20 }
 0x7ba   : > { %10788 = vmatmul.mubr.msk.bf16.vlgmr.msra.gmra.mrb[244].mxu1 %vm4594_vm7, %v15475_v30 }
 0x7bb   : > { %10791 = vmatprep.mubr.msk.bf16.mxu1 %vm4594_vm7, %v15476_v41 }
 0x7c2   : > { %10792 = vmatmul.mubr.msk.bf16.gmra.mrb[248].mxu1 %vm4594_vm7, %v15477_v22 }
 0x7c3   : > { %10795 = vmatprep.mubr.msk.bf16.mxu1 %vm4594_vm7, %v15478_v8 }
 0x7ca   : > { %10796 = vmatmul.mubr.msk.bf16.gmra.mrb[252].mxu1 %vm4594_vm7, %v15479_v13 }
 0x7cb   : > { %10799 = vmatprep.mubr.msk.bf16.mxu1 %vm4594_vm7, %v15480_v55 }
 0x7d2   : > { %10800 = vmatmul.mubr.msk.bf16.gmra.mrb[0].mxu1 %vm4594_vm7, %v15481_v54 }
 0x7d3   : > { %10803 = vmatprep.mubr.msk.bf16.mxu1 %vm4594_vm7, %v15482_v35 }
 0x7da   : > { %10804 = vmatmul.mubr.msk.bf16.gmra.mrb[4].mxu1 %vm4594_vm7, %v15483_v28 }
 0x7db   : > { %10807 = vmatprep.mubr.msk.bf16.mxu1 %vm4594_vm7, %v15484_v10 }
 0x7e2   : > { %10808 = vmatmul.mubr.msk.bf16.gmra.mrb[8].mxu1 %vm4594_vm7, %v15485_v51 }
 0x7e3   : > { %10811 = vmatprep.mubr.msk.bf16.mxu1 %vm4594_vm7, %v15486_v17 }
 0x7ea   : > { %10812 = vmatmul.mubr.msk.bf16.gmra.mrb[12].mxu1 %vm4594_vm7, %v15487_v9 }
 0x7eb   : > { %10815 = vmatprep.mubr.msk.bf16.mxu1 %vm4594_vm7, %v15488_v63 }
 0x7f2   : > { %10816 = vmatmul.mubr.msk.bf16.gmra.mrb[16].mxu1 %vm4594_vm7, %v15489_v58 }
 0x7f3   : > { %10819 = vmatprep.mubr.msk.bf16.mxu1 %vm4594_vm7, %v15490_v0 }
 0x7fa   : > { %10820 = vmatmul.mubr.msk.bf16.gmra.mrb[20].mxu1 %vm4594_vm7, %v15491_v57 }
 0x7fb   : > { %10823 = vmatprep.mubr.msk.bf16.mxu1 %vm4594_vm7, %v15492_v53 }
 0x802   : > { %10824 = vmatmul.mubr.msk.bf16.gmra.mrb[24].mxu1 %vm4594_vm7, %v15493_v37 }
 0x88d   : > { %v10789_v33 = vpop.f32.mrb[244].mxu1 }
 0x88e   : > { %v8224_v40 = vadd.f32 %v10789_v33, %v14934_v19  ;;  %v8017_v14 = vpop.f32.mrb[245].mxu1 }
 0x88f   : > { %v8222_v43 = vadd.f32 %v14934_v19, %v8017_v14  ;;  %v10790_v15 = vpop.f32.mrb[246].mxu1 }
 0x890   : > { %v8225_v27 = vadd.f32 %v10790_v15, %v14934_v19  ;;  %v8020_v6 = vpop.f32.mrb[247].mxu1  ;;  %v8264_v60 = vmax.f32 %v8224_v40, 0.0 }
 0x891   : > { %v8223_v48 = vadd.f32 %v14934_v19, %v8020_v6  ;;  %v8262_v46 = vmax.f32 %v8222_v43, 0.0 }
 0x892   : > { %v8265_v24 = vmax.f32 %v8225_v27, 0.0 }
 0x893   : > { %v8263_v36 = vmax.f32 %v8223_v48, 0.0 }
 0x894   : > { %v8303_v11 = vpack.c.bf16 %v8265_v24, %v8264_v60 }
 0x895   : > { %v8302_v39 = vpack.c.bf16 %v8263_v36, %v8262_v46  ;;  %v10793_v21 = vpop.f32.mrb[248].mxu1 }
 0x896   : > { %8323 = vst.msk [vmem:[#allocation3 + $0x8] sm:$0xff] %vm4594_vm7, %v8303_v11  ;;  %v8228_v31 = vadd.f32 %v10793_v21, %v14934_v19  ;;  %v8033_v61 = vpop.f32.mrb[249].mxu1 }
 0x897   : > { %8322 = vst.msk [vmem:[#allocation3] sm:$0xff] %vm4594_vm7, %v8302_v39  ;;  %v8226_v34 = vadd.f32 %v14934_v19, %v8033_v61  ;;  %v10794_v25 = vpop.f32.mrb[250].mxu1 }
 0x898   : > { %v8229_v2 = vadd.f32 %v10794_v25, %v14934_v19  ;;  %v8036_v45 = vpop.f32.mrb[251].mxu1  ;;  %v8268_v29 = vmax.f32 %v8228_v31, 0.0 }
 0x899   : > { %v8227_v3 = vadd.f32 %v14934_v19, %v8036_v45  ;;  %v8266_v7 = vmax.f32 %v8226_v34, 0.0 }
 0x89a   : > { %v8269_v44 = vmax.f32 %v8229_v2, 0.0 }
 0x89b   : > { %v8267_v47 = vmax.f32 %v8227_v3, 0.0 }
 0x89c   : > { %v8305_v26 = vpack.c.bf16 %v8269_v44, %v8268_v29 }
 0x89d   : > { %v8304_v23 = vpack.c.bf16 %v8267_v47, %v8266_v7  ;;  %v10797_v18 = vpop.f32.mrb[252].mxu1 }
 0x89e   : > { %8325 = vst.msk [vmem:[#allocation3 + $0x18] sm:$0xff] %vm4594_vm7, %v8305_v26  ;;  %v8232_v1 = vadd.f32 %v10797_v18, %v14934_v19  ;;  %v8049_v32 = vpop.f32.mrb[253].mxu1  ;;  %v8345_v44 = vld [vmem:[#allocation3] sm:$0xff] }
 0x89f   : > { %8324 = vst.msk [vmem:[#allocation3 + $0x10] sm:$0xff] %vm4594_vm7, %v8304_v23  ;;  %v8230_v4 = vadd.f32 %v14934_v19, %v8049_v32  ;;  %v10798_v49 = vpop.f32.mrb[254].mxu1 }
 0x8a0   : > { %v8233_v38 = vadd.f32 %v10798_v49, %v14934_v19  ;;  %v8052_v16 = vpop.f32.mrb[255].mxu1  ;;  %v8272_v12 = vmax.f32 %v8232_v1, 0.0 }
 0x8a1   : > { %v8231_v59 = vadd.f32 %v14934_v19, %v8052_v16  ;;  %v8270_v52 = vmax.f32 %v8230_v4, 0.0  ;;  %v8374_v4 = vsel %vm4594_vm7, %v8345_v44, 0 }
 0x8a2   : > { %v8273_v56 = vmax.f32 %v8233_v38, 0.0 }
 0x8a3   : > { %v8271_v5 = vmax.f32 %v8231_v59, 0.0 }
 0x8a4   : > { %v8307_v20 = vpack.c.bf16 %v8273_v56, %v8272_v12 }
 0x8a5   : > { %v8306_v30 = vpack.c.bf16 %v8271_v5, %v8270_v52  ;;  %v10801_v41 = vpop.f32.mrb[0].mxu1  ;;  %v8346_v5 = vld [vmem:[#allocation3 + $0x8] sm:$0xff] }
 0x8a6   : > { %8327 = vst.msk [vmem:[#allocation3 + $0x28] sm:$0xff] %vm4594_vm7, %v8307_v20  ;;  %v8236_v22 = vadd.f32 %v10801_v41, %v14934_v19  ;;  %v8065_v8 = vpop.f32.mrb[1].mxu1 }
 0x8a7   : > { %8326 = vst.msk [vmem:[#allocation3 + $0x20] sm:$0xff] %vm4594_vm7, %v8306_v30  ;;  %v8234_v13 = vadd.f32 %v14934_v19, %v8065_v8  ;;  %v10802_v55 = vpop.f32.mrb[2].mxu1 }
 0x8a8   : > { %v8237_v54 = vadd.f32 %v10802_v55, %v14934_v19  ;;  %v8068_v35 = vpop.f32.mrb[3].mxu1  ;;  %v8276_v10 = vmax.f32 %v8236_v22, 0.0  ;;  %v8377_v55 = vsel %vm4594_vm7, %v8346_v5, 0  ;;  %v15494_v5 = vmov 0.0  }
 0x8a9   : > { %v8235_v28 = vadd.f32 %v14934_v19, %v8068_v35  ;;  %v8274_v17 = vmax.f32 %v8234_v13, 0.0 }
 0x8aa   : > { %v8277_v51 = vmax.f32 %v8237_v54, 0.0 }
 0x8ab   : > { %v8275_v9 = vmax.f32 %v8235_v28, 0.0 }
 0x8ac   : > { %v8309_v63 = vpack.c.bf16 %v8277_v51, %v8276_v10 }
 0x8ad   : > { %v8308_v58 = vpack.c.bf16 %v8275_v9, %v8274_v17  ;;  %v10805_v0 = vpop.f32.mrb[4].mxu1 }
 0x8ae   : > { %8329 = vst.msk [vmem:[#allocation3 + $0x38] sm:$0xff] %vm4594_vm7, %v8309_v63  ;;  %v8240_v57 = vadd.f32 %v10805_v0, %v14934_v19  ;;  %v8081_v53 = vpop.f32.mrb[5].mxu1  ;;  %v8347_v0 = vld [vmem:[#allocation3 + $0x10] sm:$0xff] }
 0x8af   : > { %8328 = vst.msk [vmem:[#allocation3 + $0x30] sm:$0xff] %vm4594_vm7, %v8308_v58  ;;  %v8238_v37 = vadd.f32 %v14934_v19, %v8081_v53  ;;  %v10806_v33 = vpop.f32.mrb[6].mxu1 }
 0x8b0   : > { %v8241_v40 = vadd.f32 %v10806_v33, %v14934_v19  ;;  %v8084_v14 = vpop.f32.mrb[7].mxu1  ;;  %v8280_v15 = vmax.f32 %v8240_v57, 0.0 }
 0x8b1   : > { %v8239_v43 = vadd.f32 %v14934_v19, %v8084_v14  ;;  %v8278_v6 = vmax.f32 %v8238_v37, 0.0 }
 0x8b2   : > { %v8281_v27 = vmax.f32 %v8241_v40, 0.0 }
 0x8b3   : > { %v8279_v48 = vmax.f32 %v8239_v43, 0.0  ;;  %v8380_v43 = vsel %vm4594_vm7, %v8347_v0, 0 }
 0x8b4   : > { %v8311_v60 = vpack.c.bf16 %v8281_v27, %v8280_v15 }
 0x8b5   : > { %v8310_v24 = vpack.c.bf16 %v8279_v48, %v8278_v6  ;;  %v10809_v46 = vpop.f32.mrb[8].mxu1 }
 0x8b6   : > { %8331 = vst.msk [vmem:[#allocation3 + $0x48] sm:$0xff] %vm4594_vm7, %v8311_v60  ;;  %v8244_v36 = vadd.f32 %v10809_v46, %v14934_v19  ;;  %v8097_v11 = vpop.f32.mrb[9].mxu1 }
 0x8b7   : > { %8330 = vst.msk [vmem:[#allocation3 + $0x40] sm:$0xff] %vm4594_vm7, %v8310_v24  ;;  %v8242_v39 = vadd.f32 %v14934_v19, %v8097_v11  ;;  %v10810_v21 = vpop.f32.mrb[10].mxu1 }
 0x8b8   : > { %v8245_v31 = vadd.f32 %v10810_v21, %v14934_v19  ;;  %v8100_v61 = vpop.f32.mrb[11].mxu1  ;;  %v8284_v25 = vmax.f32 %v8244_v36, 0.0 }
 0x8b9   : > { %v8243_v34 = vadd.f32 %v14934_v19, %v8100_v61  ;;  %v8282_v45 = vmax.f32 %v8242_v39, 0.0  ;;  %v8348_v39 = vld [vmem:[#allocation3 + $0x18] sm:$0xff] }
 0x8ba   : > { %v8285_v2 = vmax.f32 %v8245_v31, 0.0 }
 0x8bb   : > { %v8283_v3 = vmax.f32 %v8243_v34, 0.0 }
 0x8bc   : > { %v8313_v29 = vpack.c.bf16 %v8285_v2, %v8284_v25 }
 0x8bd   : > { %v8312_v7 = vpack.c.bf16 %v8283_v3, %v8282_v45  ;;  %v10813_v47 = vpop.f32.mrb[12].mxu1  ;;  %v8354_v38 = vld [vmem:[#allocation3 + $0x48] sm:$0xff]  ;;  %v8383_v45 = vsel %vm4594_vm7, %v8348_v39, 0 }
 0x8be   : > { %8333 = vst.msk [vmem:[#allocation3 + $0x58] sm:$0xff] %vm4594_vm7, %v8313_v29  ;;  %v8248_v26 = vadd.f32 %v10813_v47, %v14934_v19  ;;  %v8113_v23 = vpop.f32.mrb[13].mxu1  ;;  %v8353_v18 = vld [vmem:[#allocation3 + $0x40] sm:$0xff] }
 0x8bf   : > { %8332 = vst.msk [vmem:[#allocation3 + $0x50] sm:$0xff] %vm4594_vm7, %v8312_v7  ;;  %v8246_v1 = vadd.f32 %v14934_v19, %v8113_v23  ;;  %v10814_v32 = vpop.f32.mrb[14].mxu1  ;;  %11161 = vmatprep.subr.msk.bf16.mxu0 %vm4594_vm7, %v8353_v18 }
 0x8c0   : > { %v8249_v49 = vadd.f32 %v10814_v32, %v14934_v19  ;;  %v8116_v50 = vpop.f32.mrb[15].mxu1  ;;  %9563 = vmatpush3.bf16.xpose.msra.mxu0 %v8374_v4  ;;  %v8288_v42 = vmax.f32 %v8248_v26, 0.0  ;;  %v8349_v32 = vld [vmem:[#allocation3 + $0x20] sm:$0xff] }
 0x8c1   : > { %v8247_v16 = vadd.f32 %v14934_v19, %v8116_v50  ;;  %11162 = vmatprep.subr.msk.bf16.mxu0 %vm4594_vm7, %v8354_v38  ;;  %v8286_v12 = vmax.f32 %v8246_v1, 0.0 }
 0x8c2   : > { %v8289_v59 = vmax.f32 %v8249_v49, 0.0  ;;  %v8386_v49 = vsel %vm4594_vm7, %v8349_v32, 0 }
 0x8c3   : > { %v8287_v56 = vmax.f32 %v8247_v16, 0.0 }
 0x8c4   : > { %v8315_v52 = vpack.c.bf16 %v8289_v59, %v8288_v42  ;;  %v8351_v42 = vld [vmem:[#allocation3 + $0x30] sm:$0xff] }
 0x8c5   : > { %v8314_v20 = vpack.c.bf16 %v8287_v56, %v8286_v12  ;;  %v10817_v30 = vpop.f32.mrb[16].mxu1  ;;  %v8356_v6 = vld [vmem:[#allocation3 + $0x58] sm:$0xff]  ;;  %v8392_v59 = vsel %vm4594_vm7, %v8351_v42, 0 }
 0x8c6   : > { %8335 = vst.msk [vmem:[#allocation3 + $0x68] sm:$0xff] %vm4594_vm7, %v8315_v52  ;;  %v8252_v41 = vadd.f32 %v10817_v30, %v14934_v19  ;;  %v8129_v22 = vpop.f32.mrb[17].mxu1  ;;  %v8355_v28 = vld [vmem:[#allocation3 + $0x50] sm:$0xff]  ;;  %v8352_v56 = vld [vmem:[#allocation3 + $0x38] sm:$0xff] }
 0x8c7   : > { %8334 = vst.msk [vmem:[#allocation3 + $0x60] sm:$0xff] %vm4594_vm7, %v8314_v20  ;;  %v8250_v8 = vadd.f32 %v14934_v19, %v8129_v22  ;;  %v10818_v13 = vpop.f32.mrb[18].mxu1  ;;  %v8395_v52 = vsel %vm4594_vm7, %v8352_v56, 0 }
 0x8c8   : > { %v8253_v54 = vadd.f32 %v10818_v13, %v14934_v19  ;;  %v8132_v35 = vpop.f32.mrb[19].mxu1  ;;  %9565 = vmatpush3.bf16.xpose.msra.mxu0 %v8377_v55  ;;  %v8292_v51 = vmax.f32 %v8252_v41, 0.0 }
 0x8c9   : > { %v8251_v10 = vadd.f32 %v14934_v19, %v8132_v35  ;;  %11163 = vmatprep.subr.msk.bf16.mxu0 %vm4594_vm7, %v8355_v28  ;;  %v8290_v9 = vmax.f32 %v8250_v8, 0.0  ;;  %v8368_v35 = vpop.permute.xlu0 %8367 }
 0x8ca   : > { %v8293_v17 = vmax.f32 %v8253_v54, 0.0 }
 0x8cb   : > { %v8291_v63 = vmax.f32 %v8251_v10, 0.0 }
 0x8cc   : > { %v8317_v58 = vpack.c.bf16 %v8293_v17, %v8292_v51 }
 0x8cd   : > { %v8316_v57 = vpack.c.bf16 %v8291_v63, %v8290_v9  ;;  %v10821_v53 = vpop.f32.mrb[20].mxu1  ;;  %v8358_v50 = vld [vmem:[#allocation3 + $0x68] sm:$0xff] }
 0x8ce   : > { %8337 = vst.msk [vmem:[#allocation3 + $0x78] sm:$0xff] %vm4594_vm7, %v8317_v58  ;;  %v8256_v37 = vadd.f32 %v10821_v53, %v14934_v19  ;;  %v8145_v33 = vpop.f32.mrb[21].mxu1  ;;  %v8357_v44 = vld [vmem:[#allocation3 + $0x60] sm:$0xff] }
 0x8cf   : > { %8336 = vst.msk [vmem:[#allocation3 + $0x70] sm:$0xff] %vm4594_vm7, %v8316_v57  ;;  %v8254_v40 = vadd.f32 %v14934_v19, %v8145_v33  ;;  %v10822_v14 = vpop.f32.mrb[22].mxu1 }
 0x8d0   : > { %v8257_v15 = vadd.f32 %v10822_v14, %v14934_v19  ;;  %v8148_v27 = vpop.f32.mrb[23].mxu1  ;;  %9567 = vmatpush3.bf16.xpose.msra.mxu0 %v8380_v43  ;;  %v8296_v60 = vmax.f32 %v8256_v37, 0.0 }
 0x8d1   : > { %v8255_v48 = vadd.f32 %v14934_v19, %v8148_v27  ;;  %11164 = vmatprep.subr.msk.bf16.mxu0 %vm4594_vm7, %v8356_v6  ;;  %v8294_v46 = vmax.f32 %v8254_v40, 0.0 }
 0x8d2   : > { %v8297_v24 = vmax.f32 %v8257_v15, 0.0 }
 0x8d3   : > { %v8295_v36 = vmax.f32 %v8255_v48, 0.0 }
 0x8d4   : > { %v8319_v11 = vpack.c.bf16 %v8297_v24, %v8296_v60 }
 0x8d5   : > { %v8318_v21 = vpack.c.bf16 %v8295_v36, %v8294_v46  ;;  %v10825_v31 = vpop.f32.mrb[24].mxu1  ;;  %v8360_v12 = vld [vmem:[#allocation3 + $0x78] sm:$0xff] }
 0x8d6   : > { %8339 = vst.msk [vmem:[#allocation3 + $0x88] sm:$0xff] %vm4594_vm7, %v8319_v11  ;;  %v8260_v61 = vadd.f32 %v10825_v31, %v14934_v19  ;;  %v8161_v34 = vpop.f32.mrb[25].mxu1  ;;  %v8359_v16 = vld [vmem:[#allocation3 + $0x70] sm:$0xff] }
 0x8d7   : > { %8338 = vst.msk [vmem:[#allocation3 + $0x80] sm:$0xff] %vm4594_vm7, %v8318_v21  ;;  %v8258_v25 = vadd.f32 %v14934_v19, %v8161_v34  ;;  %v10826_v2 = vpop.f32.mrb[26].mxu1 }
 0x8d8   : > { %v8261_v3 = vadd.f32 %v10826_v2, %v14934_v19  ;;  %v8164_v29 = vpop.f32.mrb[27].mxu1  ;;  %9569 = vmatpush3.bf16.xpose.msra.mxu0 %v8383_v45  ;;  %v8300_v47 = vmax.f32 %v8260_v61, 0.0 }
 0x8d9   : > { %v8259_v7 = vadd.f32 %v14934_v19, %v8164_v29  ;;  %11165 = vmatprep.subr.msk.bf16.mxu0 %vm4594_vm7, %v8357_v44  ;;  %v8298_v23 = vmax.f32 %v8258_v25, 0.0  ;;  %v8350_v19 = vld [vmem:[#allocation3 + $0x28] sm:$0xff] }
 0x8da   : > { %v8301_v26 = vmax.f32 %v8261_v3, 0.0  ;;  %v8389_v38 = vsel %vm4594_vm7, %v8350_v19, 0 }
 0x8db   : > { %v8299_v18 = vmax.f32 %v8259_v7, 0.0 }
 0x8dc   : > { %v8321_v1 = vpack.c.bf16 %v8301_v26, %v8300_v47 }
 0x8dd   : > { %v8320_v4 = vpack.c.bf16 %v8299_v18, %v8298_v23  ;;  %v8362_v41 = vld [vmem:[#allocation3 + $0x88] sm:$0xff] }
 0x8de   : > { %8342 = vst.msk [vmem:[#allocation3 + $0x98] sm:$0x3f] %vm8341_vm12, %v8321_v1  ;;  %v8361_v20 = vld [vmem:[#allocation3 + $0x80] sm:$0xff]  ;;  %v8425_v22 = vsel %vm4594_vm7, %v8362_v41, 0 }
 0x8df   : > { %8340 = vst.msk [vmem:[#allocation3 + $0x90] sm:$0xff] %vm4594_vm7, %v8320_v4  ;;  %v8422_v30 = vsel %vm4594_vm7, %v8361_v20, 0 }
 0x8e0   : > { %9571 = vmatpush3.bf16.xpose.msra.mxu0 %v8386_v49 }
 0x8e1   : > { %11166 = vmatprep.subr.msk.bf16.mxu0 %vm4594_vm7, %v8358_v50 }
 0x8e5   : > { %v8364_v55 = vld [vmem:[#allocation3 + $0x98] sm:$0x3f] }
 0x8e6   : > { %v8363_v8 = vld [vmem:[#allocation3 + $0x90] sm:$0xff]  ;;  %v8431_v54 = vsel %vm4594_vm7, %v8364_v55, 0 }
 0x8e7   : > { %v8428_v13 = vsel %vm4594_vm7, %v8363_v8, 0 }
 0x8e8   : > { %9573 = vmatpush3.bf16.xpose.msra.mxu0 %v8389_v38 }
 0x8e9   : > { %11167 = vmatprep.subr.msk.bf16.mxu0 %vm4594_vm7, %v8359_v16 }
 0x8f0   : > { %9575 = vmatpush3.bf16.xpose.msra.mxu0 %v8392_v59 }
 0x8f1   : > { %11168 = vmatprep.subr.msk.bf16.mxu0 %vm4594_vm7, %v8360_v12 }
 0x8f8   : > { %9577 = vmatpush3.bf16.xpose.msra.mxu0 %v8395_v52 }
 0x8f9   : > { %10827 = vmatprep.subr.bf16.mxu0 %v15494_v5 }
 0x8ff   : > { %9579 = vmatmul.mubr.msk.bf16.vlgmr.msra.gmra.mrb[72].mxu0 %vm4594_vm7, %v14927_v62 }
 0x900   : > { %10828 = vmatpush3.bf16.xpose.msra.mxu0 %v8422_v30  ;;  %10835 = vmatprep.mubr.msk.bf16.mxu0 %vm11451_vm1, %v15494_v5 }
 0x901   : > { %10829 = vmatprep.subr.bf16.mxu0 %v15494_v5 }
 0x908   : > { %10830 = vmatpush3.bf16.xpose.msra.mxu0 %v8425_v22 }
 0x909   : > { %10831 = vmatprep.subr.bf16.mxu0 %v15494_v5 }
 0x910   : > { %10832 = vmatpush3.bf16.xpose.msra.mxu0 %v8428_v13 }
 0x911   : > { %10833 = vmatprep.subr.bf16.mxu0 %v15494_v5 }
 0x918   : > { %10834 = vmatpush3.bf16.xpose.msra.mxu0 %v8431_v54 }
 0x91f   : > { %10836 = vmatmul.mubr.msk.bf16.vlgmr.msra.gmra.mrb[76].mxu0 %vm4594_vm7, %v14927_v62 }
 0x9d2   : > { %v8467_v28 = vpop.f32.mrb[72].mxu0 }
 0x9d3   : > { %v8469_v10 = vpop.f32.mrb[73].mxu0  ;;  %v8468_v51 = vadd.f32 %v8467_v28, %v8368_v35 }
 0x9d4   : > { %v8471_v17 = vpop.f32.mrb[74].mxu0  ;;  %v8470_v9 = vadd.f32 %v8469_v10, %v8368_v35 }
 0x9d5   : > { %v8472_v63 = vpop.f32.mrb[75].mxu0 }
 0x9d6   : > { %v8516_v58 = vcombine.low %v8468_v51, %v8470_v9 }
 0x9d8   : > { %8518 = vst [vmem:[%s272_s14] sm:$0xff] %v8516_v58 }
 0x9f2   : > { %v8508_v0 = vpop.f32.mrb[76].mxu0 }
 0x9f3   : > { %v8509_v57 = vadd.f32 %v8508_v0, %v8368_v35  ;;  %v10837_v53 = vpop.f32.mrb[77].mxu0 }
 0x9f4   : > { %v8511_v62 = vpop.f32.mrb[78].mxu0 }
 0x9f5   : > { %8520 = vst.msk [vmem:[%s272_s14 + $0x8] sm:$0xf] %vm8519_vm13, %v8509_v57  ;;  %v10838_v37 = vpop.f32.mrb[79].mxu0 }
 0x9f6   : > { %11399 = shalt.err (!%p11396_p3)
}
 0x9f7   : > { %s11400_s8 = scalar_lea.hbm %s15033_s20, 256  ;;  %s11404_s13 = scalar_lea.hbm %s15082_s7, 512 }
 0x9f8   : > { %p11401_p4 = scmp.ne.s32.totalorder %s15033_s20, %s11400_s8  ;;  %p11405_p9 = scmp.lt.u32.totalorder %s15033_s20, %s15082_s7 }
 0x9f9   : > { %p11406_p10 = scmp.lt.u32.totalorder %s11404_s13, %s11400_s8  ;;  %p11408_p12 = scmp.lt.u32.totalorder %s11400_s8, %s15033_s20 }
 0x9fa   : > { %p11402_p7 = pnand %p11401_p4, %p11532_p5 }
 0x9fb   : > { %p11407_p11 = por %p11406_p10, %p11405_p9 }
 0x9fc   : > { %p11403_p8 = pneg %p11402_p7 }
 0x9fd   : > { %p11409_p13 = por %p11408_p12, %p11407_p11 }
 0x9ff   : > { %p11410_p0 = pnand %p11409_p13, %p11403_p8 }
 0xa01   : > { %11413 = shalt.err (!%p11410_p0)
}
 0xa02   : > { %11169 = dma.vmem_to_hbm [thread:$0]  (%p11532_p5), %s15035_s16, 256, %s15033_s20, %s8522_s21  }
 0xa03 PF: > { %p11175_p1 = scmp.ge.s32.totalorder %s11448_s27, 2  ;;  %s8548_s17 = sand.u32 1, %s11436_s24  }
 0xa04   : > { %s8549_s18 = scalar_lea.sflag [#allocation5], %s8548_s17 }
 0xa05   : > { %p11172_p2 = pnand %p11175_p1, %p11536_p6 }
 0xa07   : > { %11431 = dma.done.wait (!%p11172_p2), %s8549_s18, 256  }
 0xa08   : > { %11433 = vsyncadd (!%p11172_p2), %s8549_s18, 4294967040  ;;  %p17_p3 = scmp.ge.s32.totalorder %s11519_s30, 4   ;;  %s15495_s24 = smov %s11440_s25 }
 0xa09   : > { %s15496_s25 = smov %s11444_s26  ;;  %s15497_s26 = smov %s11530_s10 }
 0xa0a   : > { %s15498_s27 = smov %s11519_s30  ;;  %19 = sbr.rel (!%p17_p3) target bundleno = 3 (0x3), region = 99 }
 0xa11   :  { %8554 = vsyncpa [#allocation5], 1 }
 0xa12   :  { %8556 = vsyncpa [#allocation5 + $0x1], 1 }

</bundles_post_ra>
